<compile_context>
chip_gen: v7x
topology: tpu7x:2x2x1
jax: 0.10.0
libtpu: 0.0.40
codegen_flags: <defaults>
</compile_context>

<pallas_src>
import jax
import jax.numpy as jnp
from jax.experimental import pallas as pl
from jax.experimental.pallas import tpu as pltpu

LEAK = 0.2
BN_EPS = 1e-5


def _leaky(x):
    return jnp.where(x > 0, x, LEAK * x)


# --------------------------------------------------------------------------
# Kernel 1: SplitChannelAttention gates only (global-avg-pool -> squeeze ->
#           two sigmoid gates).  Outputs tiny (B,1,C) vectors; the per-channel
#           multiplies are fused into the consumers.
# --------------------------------------------------------------------------
def _sca_gate_kernel(x_ref, w1_ref, wf_ref, ws_ref, sf_ref, ss_ref):
    xb = x_ref[0]                                        # (H, W, C)
    H, W, C = xb.shape
    pool = jnp.mean(xb.reshape(H * W, C).astype(jnp.float32),
                    axis=0, keepdims=True)               # (1, C)
    sq = _leaky(jnp.dot(pool, w1_ref[...], preferred_element_type=jnp.float32))
    sf = jax.nn.sigmoid(jnp.dot(sq, wf_ref[...], preferred_element_type=jnp.float32))
    ss = jax.nn.sigmoid(jnp.dot(sq, ws_ref[...], preferred_element_type=jnp.float32))
    sf_ref[0] = sf.astype(sf_ref.dtype)
    ss_ref[0] = ss.astype(ss_ref.dtype)


def sca_gates(x, w1, wf, ws):
    B, H, W, C = x.shape
    Cr = w1.shape[1]
    return pl.pallas_call(
        _sca_gate_kernel,
        out_shape=(jax.ShapeDtypeStruct((B, 1, C), jnp.float32),
                   jax.ShapeDtypeStruct((B, 1, C), jnp.float32)),
        grid=(B,),
        in_specs=[
            pl.BlockSpec((1, H, W, C), lambda b: (b, 0, 0, 0)),
            pl.BlockSpec((C, Cr), lambda b: (0, 0)),
            pl.BlockSpec((Cr, C), lambda b: (0, 0)),
            pl.BlockSpec((Cr, C), lambda b: (0, 0)),
        ],
        out_specs=(pl.BlockSpec((1, 1, C), lambda b: (b, 0, 0)),
                   pl.BlockSpec((1, 1, C), lambda b: (b, 0, 0))),
        compiler_params=pltpu.CompilerParams(dimension_semantics=("parallel",)),
    )(x, w1, wf, ws)


# --------------------------------------------------------------------------
# Kernel 2: FourierUnit conv1 — gated 1x1 conv + folded BN + LeakyReLU.
#           Gate (sf) applied in-kernel, bf16 matmul, f32 accumulation.
# --------------------------------------------------------------------------
def _fu_conv1_kernel(x_ref, sf_ref, w_ref, sc_ref, sh_ref, o_ref):
    _, H, W, Cin = x_ref.shape
    Cout = o_ref.shape[3]
    xb = (x_ref[0].astype(jnp.float32) * sf_ref[0]).reshape(H * W, Cin)
    y = jnp.dot(xb.astype(jnp.bfloat16), w_ref[...],
                preferred_element_type=jnp.float32)
    y = _leaky(y * sc_ref[...] + sh_ref[...])
    o_ref[0] = y.reshape(H, W, Cout).astype(o_ref.dtype)


def fu_conv1(x, sf, w, scale, shift):
    B, H, W, Cin = x.shape
    Cout = w.shape[1]
    return pl.pallas_call(
        _fu_conv1_kernel,
        out_shape=jax.ShapeDtypeStruct((B, H, W, Cout), jnp.float32),
        grid=(B,),
        in_specs=[
            pl.BlockSpec((1, H, W, Cin), lambda b: (b, 0, 0, 0)),
            pl.BlockSpec((1, 1, Cin), lambda b: (b, 0, 0)),
            pl.BlockSpec((Cin, Cout), lambda b: (0, 0)),
            pl.BlockSpec((1, Cout), lambda b: (0, 0)),
            pl.BlockSpec((1, Cout), lambda b: (0, 0)),
        ],
        out_specs=pl.BlockSpec((1, H, W, Cout), lambda b: (b, 0, 0, 0)),
        compiler_params=pltpu.CompilerParams(dimension_semantics=("parallel",)),
    )(x, sf, w, scale, shift)


# --------------------------------------------------------------------------
# Kernel 3: plain 1x1 conv + folded BN + LeakyReLU on flattened rows
#           (FourierUnit conv2 over the stacked FFT real/imag channels).
# --------------------------------------------------------------------------
def _conv1x1_kernel(x_ref, w_ref, sc_ref, sh_ref, o_ref):
    y = jnp.dot(x_ref[...].astype(jnp.bfloat16), w_ref[...],
                preferred_element_type=jnp.float32)
    y = y * sc_ref[...] + sh_ref[...]
    o_ref[...] = _leaky(y).astype(o_ref.dtype)


def _pick_row_tile(rows, cap=2048):
    # Single block when small; otherwise largest multiple-of-8 divisor <= cap.
    if rows <= cap:
        return rows
    for t in range(cap - cap % 8, 7, -8):
        if rows % t == 0:
            return t
    return rows  # TODO(synk): remainder tiling for pathological row counts


def conv1x1_flat(x, w, scale, shift):
    shape = x.shape
    Cin = shape[-1]
    Cout = w.shape[1]
    rows = x.size // Cin
    tm = _pick_row_tile(rows)
    out = pl.pallas_call(
        _conv1x1_kernel,
        out_shape=jax.ShapeDtypeStruct((rows, Cout), jnp.float32),
        grid=(rows // tm,),
        in_specs=[
            pl.BlockSpec((tm, Cin), lambda i: (i, 0)),
            pl.BlockSpec((Cin, Cout), lambda i: (0, 0)),
            pl.BlockSpec((1, Cout), lambda i: (0, 0)),
            pl.BlockSpec((1, Cout), lambda i: (0, 0)),
        ],
        out_specs=pl.BlockSpec((tm, Cout), lambda i: (i, 0)),
        compiler_params=pltpu.CompilerParams(dimension_semantics=("parallel",)),
    )(x.reshape(rows, Cin), w, scale, shift)
    return out.reshape(shape[:-1] + (Cout,))


# --------------------------------------------------------------------------
# Kernel 4: fused spatial branch + final residual add.
#   (x * ss_gate) -> reflect-pad -> conv3x3+BN+LReLU -> reflect-pad ->
#   conv3x3+BN+LReLU -> (+ irfft + x1)
#   conv3x3 = one im2col matmul with K = 9*Cin.
# --------------------------------------------------------------------------
def _reflect_pad1(img):
    # img (H, W, C) -> (H+2, W+2, C), reflection padding of 1 (no edge repeat).
    H, W, _ = img.shape
    img = jnp.concatenate([img[1:2], img, img[H - 2:H - 1]], axis=0)
    return jnp.concatenate([img[:, 1:2], img, img[:, W - 2:W - 1]], axis=1)


def _conv3x3_im2col(img, w_bf16):
    # img (H, W, C) f32, w_bf16 (9*C, Cout)  ->  (H*W, Cout) f32
    H, W, C = img.shape
    xp = _reflect_pad1(img)
    cols = [xp[dy:dy + H, dx:dx + W, :].reshape(H * W, C)
            for dy in range(3) for dx in range(3)]
    patch = jnp.concatenate(cols, axis=-1).astype(jnp.bfloat16)   # (H*W, 9C)
    return jnp.dot(patch, w_bf16, preferred_element_type=jnp.float32)


def _spatial_kernel(x_ref, ss_ref, w1_ref, sc1_ref, sh1_ref,
                    w2_ref, sc2_ref, sh2_ref, irfft_ref, x1_ref, o_ref):
    _, H, W, Cin = x_ref.shape
    xb = x_ref[0].astype(jnp.float32) * ss_ref[0]                 # gated input
    # spatial_branch1
    y1 = _conv3x3_im2col(xb, w1_ref[...])
    y1 = _leaky(y1 * sc1_ref[...] + sh1_ref[...]).reshape(H, W, Cin)
    # spatial_branch2
    y2 = _conv3x3_im2col(y1, w2_ref[...])
    y2 = _leaky(y2 * sc2_ref[...] + sh2_ref[...])                 # (H*W, Cout)
    # fused FourierUnit residual:  out = irfft + x1 + spatial
    o_ref[0] = (y2 + irfft_ref[0] + x1_ref[0]).astype(o_ref.dtype)


def spatial_branch_fused(x, ss, irfft2d, x1_2d,
                         w1, sc1, sh1, w2, sc2, sh2):
    B, H, W, Cin = x.shape
    Cout = w2.shape[1]
    HW = H * W
    return pl.pallas_call(
        _spatial_kernel,
        out_shape=jax.ShapeDtypeStruct((B, HW, Cout), jnp.float32),
        grid=(B,),
        in_specs=[
            pl.BlockSpec((1, H, W, Cin), lambda b: (b, 0, 0, 0)),
            pl.BlockSpec((1, 1, Cin), lambda b: (b, 0, 0)),
            pl.BlockSpec((9 * Cin, Cin), lambda b: (0, 0)),
            pl.BlockSpec((1, Cin), lambda b: (0, 0)),
            pl.BlockSpec((1, Cin), lambda b: (0, 0)),
            pl.BlockSpec((9 * Cin, Cout), lambda b: (0, 0)),
            pl.BlockSpec((1, Cout), lambda b: (0, 0)),
            pl.BlockSpec((1, Cout), lambda b: (0, 0)),
            pl.BlockSpec((1, HW, Cout), lambda b: (b, 0, 0)),
            pl.BlockSpec((1, HW, Cout), lambda b: (b, 0, 0)),
        ],
        out_specs=pl.BlockSpec((1, HW, Cout), lambda b: (b, 0, 0)),
        compiler_params=pltpu.CompilerParams(dimension_semantics=("parallel",)),
    )(x, ss, w1, sc1, sh1, w2, sc2, sh2, irfft2d, x1_2d)


# --------------------------------------------------------------------------
# Full StructureTextureInteractionModule forward
# --------------------------------------------------------------------------
def stim_forward(x_nchw, params):
    x = jnp.transpose(x_nchw, (0, 2, 3, 1)).astype(jnp.float32)   # NCHW -> NHWC
    B, H, W, _ = x.shape

    # SplitChannelAttention: only the gate vectors; gating is fused downstream.
    sf, ss = sca_gates(x, params["sca_w1"], params["sca_wf"], params["sca_ws"])

    # ---- frequency branch (FourierUnit) ----
    x1 = fu_conv1(x, sf, params["fu_w1"], params["fu1_scale"], params["fu1_shift"])
    Cout = x1.shape[-1]
    # TODO(synk): rfftn/irfftn have no Pallas TPU primitive; jnp.fft glue here.
    ff = jnp.fft.rfftn(x1, axes=(1, 2), norm="ortho")             # (B,H,Wr,C) complex
    Wr = ff.shape[2]
    # channel layout matches PyTorch permute/view: channel 2c = real, 2c+1 = imag
    stacked = jnp.stack((ff.real, ff.imag), axis=-1).reshape(B, H, Wr, 2 * Cout)
    y = conv1x1_flat(stacked, params["fu_w2"], params["fu2_scale"], params["fu2_shift"])
    y = y.reshape(B, H, Wr, Cout, 2)
    comp = jax.lax.complex(y[..., 0], y[..., 1])
    irfft = jnp.fft.irfftn(comp, s=(H, W), axes=(1, 2),
                           norm="ortho").astype(jnp.float32)

    # ---- spatial branch + final residual (irfft + x1 + spatial), fully fused ----
    out2d = spatial_branch_fused(
        x, ss,
        irfft.reshape(B, H * W, Cout), x1.reshape(B, H * W, Cout),
        params["sp1_w"], params["sp1_scale"], params["sp1_shift"],
        params["sp2_w"], params["sp2_scale"], params["sp2_shift"])
    out = out2d.reshape(B, H, W, Cout)
    return jnp.transpose(out, (0, 3, 1, 2))                       # NHWC -> NCHW


# --------------------------------------------------------------------------
# Deterministic synthetic parameters (shapes implied by the PyTorch module),
# with BatchNorm (eval mode, running stats 0/1) and conv bias folded into
# per-channel scale/shift, conv3x3 weights pre-reshaped to (9*Cin, Cout) bf16.
# --------------------------------------------------------------------------
def _bn_fold(key, c, bias=None):
    k1, k2 = jax.random.split(key)
    gamma = 1.0 + 0.1 * jax.random.normal(k1, (c,), jnp.float32)
    beta = 0.1 * jax.random.normal(k2, (c,), jnp.float32)
    scale = gamma / jnp.sqrt(1.0 + BN_EPS)
    shift = beta if bias is None else beta + bias * scale
    return scale.reshape(1, c), shift.reshape(1, c)


def init_params(key, in_ch, out_ch, ratio=16):
    ks = jax.random.split(key, 13)
    cr = max(in_ch // ratio, 1)

    def w(k, shape, s=0.1):
        return s * jax.random.normal(k, shape, jnp.float32)

    p = {}
    # SplitChannelAttention (1x1 convs, no bias) — tiny, kept in f32
    p["sca_w1"] = w(ks[0], (in_ch, cr))
    p["sca_wf"] = w(ks[1], (cr, in_ch))
    p["sca_ws"] = w(ks[2], (cr, in_ch))
    # spatial_branch1 / spatial_branch2: HWIO 3x3 weights -> (9*Cin, Cout) bf16
    sp1_w = w(ks[3], (3, 3, in_ch, in_ch))
    sp1_b = w(ks[4], (in_ch,))
    p["sp1_w"] = sp1_w.reshape(9 * in_ch, in_ch).astype(jnp.bfloat16)
    p["sp1_scale"], p["sp1_shift"] = _bn_fold(ks[5], in_ch, sp1_b)
    sp2_w = w(ks[6], (3, 3, in_ch, out_ch))
    sp2_b = w(ks[7], (out_ch,))
    p["sp2_w"] = sp2_w.reshape(9 * in_ch, out_ch).astype(jnp.bfloat16)
    p["sp2_scale"], p["sp2_shift"] = _bn_fold(ks[8], out_ch, sp2_b)
    # FourierUnit 1x1 convs (no bias), bf16 weights
    p["fu_w1"] = w(ks[9], (in_ch, out_ch)).astype(jnp.bfloat16)
    p["fu1_scale"], p["fu1_shift"] = _bn_fold(ks[10], out_ch)
    p["fu_w2"] = w(ks[11], (2 * out_ch, 2 * out_ch)).astype(jnp.bfloat16)
    p["fu2_scale"], p["fu2_shift"] = _bn_fold(ks[12], 2 * out_ch)
    return p


if __name__ == "__main__":
    key = jax.random.PRNGKey(0)
    k_x, k_p = jax.random.split(key)
    B, C, H, W = 2, 32, 16, 16          # in_channel=32 so channel // 16 >= 1
    OUT_C = 32
    x = jax.random.normal(k_x, (B, C, H, W), jnp.float32)
    params = init_params(k_p, C, OUT_C)
    fwd = jax.jit(stim_forward)
    y = fwd(x, params)
    jax.block_until_ready(y)
    assert y.shape == (B, OUT_C, H, W), y.shape
    assert bool(jnp.all(jnp.isfinite(y)))
    print("KERNEL_OK")
</pallas_src>

<mosaic_0001>
module attributes {stable_mosaic.version = 11 : i64} {
  func.func @_fu_conv1_kernel(%arg0: i32, %arg1: memref<1x16x16x32xf32, #tpu.memory_space<vmem>>, %arg2: memref<1x1x32xf32, #tpu.memory_space<vmem>>, %arg3: memref<32x32xbf16, #tpu.memory_space<vmem>>, %arg4: memref<1x32xf32, #tpu.memory_space<vmem>>, %arg5: memref<1x32xf32, #tpu.memory_space<vmem>>, %arg6: memref<1x16x16x32xf32, #tpu.memory_space<vmem>>) attributes {dimension_semantics = [#tpu.dimension_semantics<parallel>], iteration_bounds = array<i64: 2>, scalar_prefetch = 0 : i64, scratch_operands = 0 : i64, tpu.core_type = #tpu.core_type<tc>, window_params = [{transform_indices = @transform_0, window_bounds = array<i64: 1, 16, 16, 32>}, {transform_indices = @transform_1, window_bounds = array<i64: 1, 1, 32>}, {pipeline_mode = #tpu.pipeline_mode<synchronous>, transform_indices = @transform_2, window_bounds = array<i64: 32, 32>}, {pipeline_mode = #tpu.pipeline_mode<synchronous>, transform_indices = @transform_3, window_bounds = array<i64: 1, 32>}, {pipeline_mode = #tpu.pipeline_mode<synchronous>, transform_indices = @transform_4, window_bounds = array<i64: 1, 32>}, {transform_indices = @transform_5, window_bounds = array<i64: 1, 16, 16, 32>}]} {
    %c0 = arith.constant 0 : index
    %c0_0 = arith.constant 0 : index
    %c0_1 = arith.constant 0 : index
    %c0_2 = arith.constant 0 : index
    %0 = vector.load %arg1[%c0, %c0_0, %c0_1, %c0_2] : memref<1x16x16x32xf32, #tpu.memory_space<vmem>>, vector<1x16x16x32xf32>
    %1 = vector.shape_cast %0 : vector<1x16x16x32xf32> to vector<16x16x32xf32>
    %c0_3 = arith.constant 0 : index
    %c0_4 = arith.constant 0 : index
    %c0_5 = arith.constant 0 : index
    %2 = vector.load %arg2[%c0_3, %c0_4, %c0_5] : memref<1x1x32xf32, #tpu.memory_space<vmem>>, vector<1x1x32xf32>
    %3 = vector.shape_cast %2 : vector<1x1x32xf32> to vector<1x32xf32>
    %4 = vector.shape_cast %3 : vector<1x32xf32> to vector<1x1x32xf32>
    %5 = vector.broadcast %4 : vector<1x1x32xf32> to vector<16x16x32xf32>
    %6 = arith.mulf %1, %5 : vector<16x16x32xf32>
    %7 = vector.shape_cast %6 : vector<16x16x32xf32> to vector<256x32xf32>
    %8 = arith.truncf %7 : vector<256x32xf32> to vector<256x32xbf16>
    %c0_6 = arith.constant 0 : index
    %c0_7 = arith.constant 0 : index
    %9 = vector.load %arg3[%c0_6, %c0_7] : memref<32x32xbf16, #tpu.memory_space<vmem>>, vector<32x32xbf16>
    %cst = arith.constant dense<0.000000e+00> : vector<256x32xf32>
    %10 = tpu.matmul %8, %9, %cst {dimension_numbers = #tpu.dot_dimension_numbers<[1], [0], [0], [1], [0, 0, 1, 1], [], []>} : vector<256x32xbf16>, vector<32x32xbf16>, vector<256x32xf32> -> vector<256x32xf32>
    %c0_8 = arith.constant 0 : index
    %c0_9 = arith.constant 0 : index
    %11 = vector.load %arg4[%c0_8, %c0_9] : memref<1x32xf32, #tpu.memory_space<vmem>>, vector<1x32xf32>
    %12 = vector.broadcast %11 : vector<1x32xf32> to vector<256x32xf32>
    %13 = arith.mulf %10, %12 : vector<256x32xf32>
    %c0_10 = arith.constant 0 : index
    %c0_11 = arith.constant 0 : index
    %14 = vector.load %arg5[%c0_10, %c0_11] : memref<1x32xf32, #tpu.memory_space<vmem>>, vector<1x32xf32>
    %15 = vector.broadcast %14 : vector<1x32xf32> to vector<256x32xf32>
    %16 = arith.addf %13, %15 : vector<256x32xf32>
    %cst_12 = arith.constant 0.000000e+00 : f32
    %17 = vector.broadcast %cst_12 : f32 to vector<256x32xf32>
    %18 = arith.cmpf ogt, %16, %17 : vector<256x32xf32>
    %cst_13 = arith.constant 2.000000e-01 : f32
    %19 = vector.broadcast %cst_13 : f32 to vector<256x32xf32>
    %20 = arith.mulf %19, %16 : vector<256x32xf32>
    %21 = arith.select %18, %16, %20 : vector<256x32xi1>, vector<256x32xf32>
    %22 = vector.shape_cast %21 : vector<256x32xf32> to vector<16x16x32xf32>
    %c0_14 = arith.constant 0 : index
    %c0_15 = arith.constant 0 : index
    %c0_16 = arith.constant 0 : index
    %c0_17 = arith.constant 0 : index
    %23 = vector.load %arg6[%c0_14, %c0_15, %c0_16, %c0_17] : memref<1x16x16x32xf32, #tpu.memory_space<vmem>>, vector<1x16x16x32xf32>
    %24 = vector.shape_cast %23 : vector<1x16x16x32xf32> to vector<16x16x32xf32>
    %25 = vector.shape_cast %22 : vector<16x16x32xf32> to vector<1x16x16x32xf32>
    tpu.vector_store %arg6[%c0_14, %c0_15, %c0_16, %c0_17], %25 {strides = array<i32>} : memref<1x16x16x32xf32, #tpu.memory_space<vmem>>, vector<1x16x16x32xf32>,
    return
  }
  func.func @transform_0(%arg0: i32) -> (i32, i32, i32, i32) {
    %c0_i32 = arith.constant 0 : i32
    %c0_i32_0 = arith.constant 0 : i32
    %c0_i32_1 = arith.constant 0 : i32
    %c0_i32_2 = arith.constant 0 : i32
    return %arg0, %c0_i32, %c0_i32_0, %c0_i32_1 : i32, i32, i32, i32
  }
  func.func @transform_1(%arg0: i32) -> (i32, i32, i32) {
    %c0_i32 = arith.constant 0 : i32
    %c0_i32_0 = arith.constant 0 : i32
    %c0_i32_1 = arith.constant 0 : i32
    return %arg0, %c0_i32, %c0_i32_0 : i32, i32, i32
  }
  func.func @transform_2(%arg0: i32) -> (i32, i32) {
    %c0_i32 = arith.constant 0 : i32
    %c0_i32_0 = arith.constant 0 : i32
    %c0_i32_1 = arith.constant 0 : i32
    return %c0_i32, %c0_i32_0 : i32, i32
  }
  func.func @transform_3(%arg0: i32) -> (i32, i32) {
    %c0_i32 = arith.constant 0 : i32
    %c0_i32_0 = arith.constant 0 : i32
    %c0_i32_1 = arith.constant 0 : i32
    return %c0_i32, %c0_i32_0 : i32, i32
  }
  func.func @transform_4(%arg0: i32) -> (i32, i32) {
    %c0_i32 = arith.constant 0 : i32
    %c0_i32_0 = arith.constant 0 : i32
    %c0_i32_1 = arith.constant 0 : i32
    return %c0_i32, %c0_i32_0 : i32, i32
  }
  func.func @transform_5(%arg0: i32) -> (i32, i32, i32, i32) {
    %c0_i32 = arith.constant 0 : i32
    %c0_i32_0 = arith.constant 0 : i32
    %c0_i32_1 = arith.constant 0 : i32
    %c0_i32_2 = arith.constant 0 : i32
    return %arg0, %c0_i32, %c0_i32_0, %c0_i32_1 : i32, i32, i32, i32
  }
}

module attributes {stable_mosaic.version = 11 : i64} {
  func.func @_sca_gate_kernel(%arg0: i32, %arg1: memref<1x16x16x32xf32, #tpu.memory_space<vmem>>, %arg2: memref<32x2xf32, #tpu.memory_space<vmem>>, %arg3: memref<2x32xf32, #tpu.memory_space<vmem>>, %arg4: memref<2x32xf32, #tpu.memory_space<vmem>>, %arg5: memref<1x1x32xf32, #tpu.memory_space<vmem>>, %arg6: memref<1x1x32xf32, #tpu.memory_space<vmem>>) attributes {dimension_semantics = [#tpu.dimension_semantics<parallel>], iteration_bounds = array<i64: 2>, scalar_prefetch = 0 : i64, scratch_operands = 0 : i64, tpu.core_type = #tpu.core_type<tc>, window_params = [{transform_indices = @transform_0, window_bounds = array<i64: 1, 16, 16, 32>}, {pipeline_mode = #tpu.pipeline_mode<synchronous>, transform_indices = @transform_1, window_bounds = array<i64: 32, 2>}, {pipeline_mode = #tpu.pipeline_mode<synchronous>, transform_indices = @transform_2, window_bounds = array<i64: 2, 32>}, {pipeline_mode = #tpu.pipeline_mode<synchronous>, transform_indices = @transform_3, window_bounds = array<i64: 2, 32>}, {transform_indices = @transform_4, window_bounds = array<i64: 1, 1, 32>}, {transform_indices = @transform_5, window_bounds = array<i64: 1, 1, 32>}]} {
    %c0 = arith.constant 0 : index
    %c0_0 = arith.constant 0 : index
    %c0_1 = arith.constant 0 : index
    %c0_2 = arith.constant 0 : index
    %0 = vector.load %arg1[%c0, %c0_0, %c0_1, %c0_2] : memref<1x16x16x32xf32, #tpu.memory_space<vmem>>, vector<1x16x16x32xf32>
    %1 = vector.shape_cast %0 : vector<1x16x16x32xf32> to vector<16x16x32xf32>
    %2 = vector.shape_cast %1 : vector<16x16x32xf32> to vector<256x32xf32>
    %cst = arith.constant dense<0.000000e+00> : vector<32xf32>
    %3 = vector.multi_reduction <add>, %2, %cst [0] : vector<256x32xf32> to vector<32xf32>
    %4 = vector.shape_cast %3 : vector<32xf32> to vector<1x32xf32>
    %cst_3 = arith.constant 2.560000e+02 : f32
    %5 = vector.broadcast %cst_3 : f32 to vector<1x32xf32>
    %6 = arith.divf %4, %5 : vector<1x32xf32>
    %c0_4 = arith.constant 0 : index
    %c0_5 = arith.constant 0 : index
    %7 = vector.load %arg2[%c0_4, %c0_5] : memref<32x2xf32, #tpu.memory_space<vmem>>, vector<32x2xf32>
    %cst_6 = arith.constant dense<0.000000e+00> : vector<1x2xf32>
    %8 = tpu.matmul %6, %7, %cst_6 {dimension_numbers = #tpu.dot_dimension_numbers<[1], [0], [0], [1], [0, 0, 1, 1], [], []>} : vector<1x32xf32>, vector<32x2xf32>, vector<1x2xf32> -> vector<1x2xf32>
    %cst_7 = arith.constant 0.000000e+00 : f32
    %9 = vector.broadcast %cst_7 : f32 to vector<1x2xf32>
    %10 = arith.cmpf ogt, %8, %9 : vector<1x2xf32>
    %cst_8 = arith.constant 2.000000e-01 : f32
    %11 = vector.broadcast %cst_8 : f32 to vector<1x2xf32>
    %12 = arith.mulf %11, %8 : vector<1x2xf32>
    %13 = arith.select %10, %8, %12 : vector<1x2xi1>, vector<1x2xf32>
    %c0_9 = arith.constant 0 : index
    %c0_10 = arith.constant 0 : index
    %14 = vector.load %arg3[%c0_9, %c0_10] : memref<2x32xf32, #tpu.memory_space<vmem>>, vector<2x32xf32>
    %cst_11 = arith.constant dense<0.000000e+00> : vector<1x32xf32>
    %15 = tpu.matmul %13, %14, %cst_11 {dimension_numbers = #tpu.dot_dimension_numbers<[1], [0], [0], [1], [0, 0, 1, 1], [], []>} : vector<1x2xf32>, vector<2x32xf32>, vector<1x32xf32> -> vector<1x32xf32>
    %16 = arith.negf %15 : vector<1x32xf32>
    %17 = math.exp %16 : vector<1x32xf32>
    %cst_12 = arith.constant 1.000000e+00 : f32
    %18 = vector.broadcast %cst_12 : f32 to vector<1x32xf32>
    %19 = arith.addf %18, %17 : vector<1x32xf32>
    %20 = arith.divf %18, %19 : vector<1x32xf32>
    %c0_13 = arith.constant 0 : index
    %c0_14 = arith.constant 0 : index
    %21 = vector.load %arg4[%c0_13, %c0_14] : memref<2x32xf32, #tpu.memory_space<vmem>>, vector<2x32xf32>
    %cst_15 = arith.constant dense<0.000000e+00> : vector<1x32xf32>
    %22 = tpu.matmul %13, %21, %cst_15 {dimension_numbers = #tpu.dot_dimension_numbers<[1], [0], [0], [1], [0, 0, 1, 1], [], []>} : vector<1x2xf32>, vector<2x32xf32>, vector<1x32xf32> -> vector<1x32xf32>
    %23 = arith.negf %22 : vector<1x32xf32>
    %24 = math.exp %23 : vector<1x32xf32>
    %cst_16 = arith.constant 1.000000e+00 : f32
    %25 = vector.broadcast %cst_16 : f32 to vector<1x32xf32>
    %26 = arith.addf %25, %24 : vector<1x32xf32>
    %27 = arith.divf %25, %26 : vector<1x32xf32>
    %c0_17 = arith.constant 0 : index
    %c0_18 = arith.constant 0 : index
    %c0_19 = arith.constant 0 : index
    %28 = vector.load %arg5[%c0_17, %c0_18, %c0_19] : memref<1x1x32xf32, #tpu.memory_space<vmem>>, vector<1x1x32xf32>
    %29 = vector.shape_cast %28 : vector<1x1x32xf32> to vector<1x32xf32>
    %30 = vector.shape_cast %20 : vector<1x32xf32> to vector<1x1x32xf32>
    tpu.vector_store %arg5[%c0_17, %c0_18, %c0_19], %30 {strides = array<i32>} : memref<1x1x32xf32, #tpu.memory_space<vmem>>, vector<1x1x32xf32>,
    %c0_20 = arith.constant 0 : index
    %c0_21 = arith.constant 0 : index
    %c0_22 = arith.constant 0 : index
    %31 = vector.load %arg6[%c0_20, %c0_21, %c0_22] : memref<1x1x32xf32, #tpu.memory_space<vmem>>, vector<1x1x32xf32>
    %32 = vector.shape_cast %31 : vector<1x1x32xf32> to vector<1x32xf32>
    %33 = vector.shape_cast %27 : vector<1x32xf32> to vector<1x1x32xf32>
    tpu.vector_store %arg6[%c0_20, %c0_21, %c0_22], %33 {strides = array<i32>} : memref<1x1x32xf32, #tpu.memory_space<vmem>>, vector<1x1x32xf32>,
    return
  }
  func.func @transform_0(%arg0: i32) -> (i32, i32, i32, i32) {
    %c0_i32 = arith.constant 0 : i32
    %c0_i32_0 = arith.constant 0 : i32
    %c0_i32_1 = arith.constant 0 : i32
    %c0_i32_2 = arith.constant 0 : i32
    return %arg0, %c0_i32, %c0_i32_0, %c0_i32_1 : i32, i32, i32, i32
  }
  func.func @transform_1(%arg0: i32) -> (i32, i32) {
    %c0_i32 = arith.constant 0 : i32
    %c0_i32_0 = arith.constant 0 : i32
    %c0_i32_1 = arith.constant 0 : i32
    return %c0_i32, %c0_i32_0 : i32, i32
  }
  func.func @transform_2(%arg0: i32) -> (i32, i32) {
    %c0_i32 = arith.constant 0 : i32
    %c0_i32_0 = arith.constant 0 : i32
    %c0_i32_1 = arith.constant 0 : i32
    return %c0_i32, %c0_i32_0 : i32, i32
  }
  func.func @transform_3(%arg0: i32) -> (i32, i32) {
    %c0_i32 = arith.constant 0 : i32
    %c0_i32_0 = arith.constant 0 : i32
    %c0_i32_1 = arith.constant 0 : i32
    return %c0_i32, %c0_i32_0 : i32, i32
  }
  func.func @transform_4(%arg0: i32) -> (i32, i32, i32) {
    %c0_i32 = arith.constant 0 : i32
    %c0_i32_0 = arith.constant 0 : i32
    %c0_i32_1 = arith.constant 0 : i32
    return %arg0, %c0_i32, %c0_i32_0 : i32, i32, i32
  }
  func.func @transform_5(%arg0: i32) -> (i32, i32, i32) {
    %c0_i32 = arith.constant 0 : i32
    %c0_i32_0 = arith.constant 0 : i32
    %c0_i32_1 = arith.constant 0 : i32
    return %arg0, %c0_i32, %c0_i32_0 : i32, i32, i32
  }
}

module attributes {stable_mosaic.version = 11 : i64} {
  func.func @_conv1x1_kernel(%arg0: i32, %arg1: memref<288x64xf32, #tpu.memory_space<vmem>>, %arg2: memref<64x64xbf16, #tpu.memory_space<vmem>>, %arg3: memref<1x64xf32, #tpu.memory_space<vmem>>, %arg4: memref<1x64xf32, #tpu.memory_space<vmem>>, %arg5: memref<288x64xf32, #tpu.memory_space<vmem>>) attributes {dimension_semantics = [#tpu.dimension_semantics<parallel>], iteration_bounds = array<i64: 1>, scalar_prefetch = 0 : i64, scratch_operands = 0 : i64, tpu.core_type = #tpu.core_type<tc>, window_params = [{transform_indices = @transform_0, window_bounds = array<i64: 288, 64>}, {pipeline_mode = #tpu.pipeline_mode<synchronous>, transform_indices = @transform_1, window_bounds = array<i64: 64, 64>}, {pipeline_mode = #tpu.pipeline_mode<synchronous>, transform_indices = @transform_2, window_bounds = array<i64: 1, 64>}, {pipeline_mode = #tpu.pipeline_mode<synchronous>, transform_indices = @transform_3, window_bounds = array<i64: 1, 64>}, {transform_indices = @transform_4, window_bounds = array<i64: 288, 64>}]} {
    %c0 = arith.constant 0 : index
    %c0_0 = arith.constant 0 : index
    %0 = vector.load %arg1[%c0, %c0_0] : memref<288x64xf32, #tpu.memory_space<vmem>>, vector<288x64xf32>
    %1 = arith.truncf %0 : vector<288x64xf32> to vector<288x64xbf16>
    %c0_1 = arith.constant 0 : index
    %c0_2 = arith.constant 0 : index
    %2 = vector.load %arg2[%c0_1, %c0_2] : memref<64x64xbf16, #tpu.memory_space<vmem>>, vector<64x64xbf16>
    %cst = arith.constant dense<0.000000e+00> : vector<288x64xf32>
    %3 = tpu.matmul %1, %2, %cst {dimension_numbers = #tpu.dot_dimension_numbers<[1], [0], [0], [1], [0, 0, 1, 1], [], []>} : vector<288x64xbf16>, vector<64x64xbf16>, vector<288x64xf32> -> vector<288x64xf32>
    %c0_3 = arith.constant 0 : index
    %c0_4 = arith.constant 0 : index
    %4 = vector.load %arg3[%c0_3, %c0_4] : memref<1x64xf32, #tpu.memory_space<vmem>>, vector<1x64xf32>
    %5 = vector.broadcast %4 : vector<1x64xf32> to vector<288x64xf32>
    %6 = arith.mulf %3, %5 : vector<288x64xf32>
    %c0_5 = arith.constant 0 : index
    %c0_6 = arith.constant 0 : index
    %7 = vector.load %arg4[%c0_5, %c0_6] : memref<1x64xf32, #tpu.memory_space<vmem>>, vector<1x64xf32>
    %8 = vector.broadcast %7 : vector<1x64xf32> to vector<288x64xf32>
    %9 = arith.addf %6, %8 : vector<288x64xf32>
    %cst_7 = arith.constant 0.000000e+00 : f32
    %10 = vector.broadcast %cst_7 : f32 to vector<288x64xf32>
    %11 = arith.cmpf ogt, %9, %10 : vector<288x64xf32>
    %cst_8 = arith.constant 2.000000e-01 : f32
    %12 = vector.broadcast %cst_8 : f32 to vector<288x64xf32>
    %13 = arith.mulf %12, %9 : vector<288x64xf32>
    %14 = arith.select %11, %9, %13 : vector<288x64xi1>, vector<288x64xf32>
    %c0_9 = arith.constant 0 : index
    %c0_10 = arith.constant 0 : index
    %15 = vector.load %arg5[%c0_9, %c0_10] : memref<288x64xf32, #tpu.memory_space<vmem>>, vector<288x64xf32>
    tpu.vector_store %arg5[%c0_9, %c0_10], %14 {strides = array<i32>} : memref<288x64xf32, #tpu.memory_space<vmem>>, vector<288x64xf32>,
    return
  }
  func.func @transform_0(%arg0: i32) -> (i32, i32) {
    %c0_i32 = arith.constant 0 : i32
    %c0_i32_0 = arith.constant 0 : i32
    return %arg0, %c0_i32 : i32, i32
  }
  func.func @transform_1(%arg0: i32) -> (i32, i32) {
    %c0_i32 = arith.constant 0 : i32
    %c0_i32_0 = arith.constant 0 : i32
    %c0_i32_1 = arith.constant 0 : i32
    return %c0_i32, %c0_i32_0 : i32, i32
  }
  func.func @transform_2(%arg0: i32) -> (i32, i32) {
    %c0_i32 = arith.constant 0 : i32
    %c0_i32_0 = arith.constant 0 : i32
    %c0_i32_1 = arith.constant 0 : i32
    return %c0_i32, %c0_i32_0 : i32, i32
  }
  func.func @transform_3(%arg0: i32) -> (i32, i32) {
    %c0_i32 = arith.constant 0 : i32
    %c0_i32_0 = arith.constant 0 : i32
    %c0_i32_1 = arith.constant 0 : i32
    return %c0_i32, %c0_i32_0 : i32, i32
  }
  func.func @transform_4(%arg0: i32) -> (i32, i32) {
    %c0_i32 = arith.constant 0 : i32
    %c0_i32_0 = arith.constant 0 : i32
    return %arg0, %c0_i32 : i32, i32
  }
}

module attributes {stable_mosaic.version = 11 : i64} {
  func.func @_spatial_kernel(%arg0: i32, %arg1: memref<1x16x16x32xf32, #tpu.memory_space<vmem>>, %arg2: memref<1x1x32xf32, #tpu.memory_space<vmem>>, %arg3: memref<288x32xbf16, #tpu.memory_space<vmem>>, %arg4: memref<1x32xf32, #tpu.memory_space<vmem>>, %arg5: memref<1x32xf32, #tpu.memory_space<vmem>>, %arg6: memref<288x32xbf16, #tpu.memory_space<vmem>>, %arg7: memref<1x32xf32, #tpu.memory_space<vmem>>, %arg8: memref<1x32xf32, #tpu.memory_space<vmem>>, %arg9: memref<1x256x32xf32, #tpu.memory_space<vmem>>, %arg10: memref<1x256x32xf32, #tpu.memory_space<vmem>>, %arg11: memref<1x256x32xf32, #tpu.memory_space<vmem>>) attributes {dimension_semantics = [#tpu.dimension_semantics<parallel>], iteration_bounds = array<i64: 2>, scalar_prefetch = 0 : i64, scratch_operands = 0 : i64, tpu.core_type = #tpu.core_type<tc>, window_params = [{transform_indices = @transform_0, window_bounds = array<i64: 1, 16, 16, 32>}, {transform_indices = @transform_1, window_bounds = array<i64: 1, 1, 32>}, {pipeline_mode = #tpu.pipeline_mode<synchronous>, transform_indices = @transform_2, window_bounds = array<i64: 288, 32>}, {pipeline_mode = #tpu.pipeline_mode<synchronous>, transform_indices = @transform_3, window_bounds = array<i64: 1, 32>}, {pipeline_mode = #tpu.pipeline_mode<synchronous>, transform_indices = @transform_4, window_bounds = array<i64: 1, 32>}, {pipeline_mode = #tpu.pipeline_mode<synchronous>, transform_indices = @transform_5, window_bounds = array<i64: 288, 32>}, {pipeline_mode = #tpu.pipeline_mode<synchronous>, transform_indices = @transform_6, window_bounds = array<i64: 1, 32>}, {pipeline_mode = #tpu.pipeline_mode<synchronous>, transform_indices = @transform_7, window_bounds = array<i64: 1, 32>}, {transform_indices = @transform_8, window_bounds = array<i64: 1, 256, 32>}, {transform_indices = @transform_9, window_bounds = array<i64: 1, 256, 32>}, {transform_indices = @transform_10, window_bounds = array<i64: 1, 256, 32>}]} {
    %c0 = arith.constant 0 : index
    %c0_0 = arith.constant 0 : index
    %c0_1 = arith.constant 0 : index
    %c0_2 = arith.constant 0 : index
    %0 = vector.load %arg1[%c0, %c0_0, %c0_1, %c0_2] : memref<1x16x16x32xf32, #tpu.memory_space<vmem>>, vector<1x16x16x32xf32>
    %1 = vector.shape_cast %0 : vector<1x16x16x32xf32> to vector<16x16x32xf32>
    %c0_3 = arith.constant 0 : index
    %c0_4 = arith.constant 0 : index
    %c0_5 = arith.constant 0 : index
    %2 = vector.load %arg2[%c0_3, %c0_4, %c0_5] : memref<1x1x32xf32, #tpu.memory_space<vmem>>, vector<1x1x32xf32>
    %3 = vector.shape_cast %2 : vector<1x1x32xf32> to vector<1x32xf32>
    %4 = vector.shape_cast %3 : vector<1x32xf32> to vector<1x1x32xf32>
    %5 = vector.broadcast %4 : vector<1x1x32xf32> to vector<16x16x32xf32>
    %6 = arith.mulf %1, %5 : vector<16x16x32xf32>
    %c0_6 = arith.constant 0 : index
    %c0_7 = arith.constant 0 : index
    %7 = vector.load %arg3[%c0_6, %c0_7] : memref<288x32xbf16, #tpu.memory_space<vmem>>, vector<288x32xbf16>
    %8 = vector.extract_strided_slice %6 {offsets = [1, 0, 0], sizes = [1, 16, 32], strides = [1, 1, 1]} : vector<16x16x32xf32> to vector<1x16x32xf32>
    %9 = vector.extract_strided_slice %6 {offsets = [14, 0, 0], sizes = [1, 16, 32], strides = [1, 1, 1]} : vector<16x16x32xf32> to vector<1x16x32xf32>
    %10 = tpu.concatenate %8, %6, %9 in 0 : vector<1x16x32xf32>, vector<16x16x32xf32>, vector<1x16x32xf32> -> vector<18x16x32xf32>
    %11 = vector.extract_strided_slice %10 {offsets = [0, 1, 0], sizes = [18, 1, 32], strides = [1, 1, 1]} : vector<18x16x32xf32> to vector<18x1x32xf32>
    %12 = vector.extract_strided_slice %10 {offsets = [0, 14, 0], sizes = [18, 1, 32], strides = [1, 1, 1]} : vector<18x16x32xf32> to vector<18x1x32xf32>
    %13 = tpu.concatenate %11, %10, %12 in 1 : vector<18x1x32xf32>, vector<18x16x32xf32>, vector<18x1x32xf32> -> vector<18x18x32xf32>
    %14 = vector.extract_strided_slice %13 {offsets = [0, 0, 0], sizes = [16, 16, 32], strides = [1, 1, 1]} : vector<18x18x32xf32> to vector<16x16x32xf32>
    %15 = vector.shape_cast %14 : vector<16x16x32xf32> to vector<256x32xf32>
    %16 = vector.extract_strided_slice %13 {offsets = [0, 1, 0], sizes = [16, 16, 32], strides = [1, 1, 1]} : vector<18x18x32xf32> to vector<16x16x32xf32>
    %17 = vector.shape_cast %16 : vector<16x16x32xf32> to vector<256x32xf32>
    %18 = vector.extract_strided_slice %13 {offsets = [0, 2, 0], sizes = [16, 16, 32], strides = [1, 1, 1]} : vector<18x18x32xf32> to vector<16x16x32xf32>
    %19 = vector.shape_cast %18 : vector<16x16x32xf32> to vector<256x32xf32>
    %20 = vector.extract_strided_slice %13 {offsets = [1, 0, 0], sizes = [16, 16, 32], strides = [1, 1, 1]} : vector<18x18x32xf32> to vector<16x16x32xf32>
    %21 = vector.shape_cast %20 : vector<16x16x32xf32> to vector<256x32xf32>
    %22 = vector.extract_strided_slice %13 {offsets = [1, 1, 0], sizes = [16, 16, 32], strides = [1, 1, 1]} : vector<18x18x32xf32> to vector<16x16x32xf32>
    %23 = vector.shape_cast %22 : vector<16x16x32xf32> to vector<256x32xf32>
    %24 = vector.extract_strided_slice %13 {offsets = [1, 2, 0], sizes = [16, 16, 32], strides = [1, 1, 1]} : vector<18x18x32xf32> to vector<16x16x32xf32>
    %25 = vector.shape_cast %24 : vector<16x16x32xf32> to vector<256x32xf32>
    %26 = vector.extract_strided_slice %13 {offsets = [2, 0, 0], sizes = [16, 16, 32], strides = [1, 1, 1]} : vector<18x18x32xf32> to vector<16x16x32xf32>
    %27 = vector.shape_cast %26 : vector<16x16x32xf32> to vector<256x32xf32>
    %28 = vector.extract_strided_slice %13 {offsets = [2, 1, 0], sizes = [16, 16, 32], strides = [1, 1, 1]} : vector<18x18x32xf32> to vector<16x16x32xf32>
    %29 = vector.shape_cast %28 : vector<16x16x32xf32> to vector<256x32xf32>
    %30 = vector.extract_strided_slice %13 {offsets = [2, 2, 0], sizes = [16, 16, 32], strides = [1, 1, 1]} : vector<18x18x32xf32> to vector<16x16x32xf32>
    %31 = vector.shape_cast %30 : vector<16x16x32xf32> to vector<256x32xf32>
    %32 = tpu.concatenate %15, %17, %19, %21, %23, %25, %27, %29, %31 in 1 : vector<256x32xf32>, vector<256x32xf32>, vector<256x32xf32>, vector<256x32xf32>, vector<256x32xf32>, vector<256x32xf32>, vector<256x32xf32>, vector<256x32xf32>, vector<256x32xf32> -> vector<256x288xf32>
    %33 = arith.truncf %32 : vector<256x288xf32> to vector<256x288xbf16>
    %cst = arith.constant dense<0.000000e+00> : vector<256x32xf32>
    %34 = tpu.matmul %33, %7, %cst {dimension_numbers = #tpu.dot_dimension_numbers<[1], [0], [0], [1], [0, 0, 1, 1], [], []>} : vector<256x288xbf16>, vector<288x32xbf16>, vector<256x32xf32> -> vector<256x32xf32>
    %c0_8 = arith.constant 0 : index
    %c0_9 = arith.constant 0 : index
    %35 = vector.load %arg4[%c0_8, %c0_9] : memref<1x32xf32, #tpu.memory_space<vmem>>, vector<1x32xf32>
    %36 = vector.broadcast %35 : vector<1x32xf32> to vector<256x32xf32>
    %37 = arith.mulf %34, %36 : vector<256x32xf32>
    %c0_10 = arith.constant 0 : index
    %c0_11 = arith.constant 0 : index
    %38 = vector.load %arg5[%c0_10, %c0_11] : memref<1x32xf32, #tpu.memory_space<vmem>>, vector<1x32xf32>
    %39 = vector.broadcast %38 : vector<1x32xf32> to vector<256x32xf32>
    %40 = arith.addf %37, %39 : vector<256x32xf32>
    %cst_12 = arith.constant 0.000000e+00 : f32
    %41 = vector.broadcast %cst_12 : f32 to vector<256x32xf32>
    %42 = arith.cmpf ogt, %40, %41 : vector<256x32xf32>
    %cst_13 = arith.constant 2.000000e-01 : f32
    %43 = vector.broadcast %cst_13 : f32 to vector<256x32xf32>
    %44 = arith.mulf %43, %40 : vector<256x32xf32>
    %45 = arith.select %42, %40, %44 : vector<256x32xi1>, vector<256x32xf32>
    %46 = vector.shape_cast %45 : vector<256x32xf32> to vector<16x16x32xf32>
    %c0_14 = arith.constant 0 : index
    %c0_15 = arith.constant 0 : index
    %47 = vector.load %arg6[%c0_14, %c0_15] : memref<288x32xbf16, #tpu.memory_space<vmem>>, vector<288x32xbf16>
    %48 = vector.extract_strided_slice %46 {offsets = [1, 0, 0], sizes = [1, 16, 32], strides = [1, 1, 1]} : vector<16x16x32xf32> to vector<1x16x32xf32>
    %49 = vector.extract_strided_slice %46 {offsets = [14, 0, 0], sizes = [1, 16, 32], strides = [1, 1, 1]} : vector<16x16x32xf32> to vector<1x16x32xf32>
    %50 = tpu.concatenate %48, %46, %49 in 0 : vector<1x16x32xf32>, vector<16x16x32xf32>, vector<1x16x32xf32> -> vector<18x16x32xf32>
    %51 = vector.extract_strided_slice %50 {offsets = [0, 1, 0], sizes = [18, 1, 32], strides = [1, 1, 1]} : vector<18x16x32xf32> to vector<18x1x32xf32>
    %52 = vector.extract_strided_slice %50 {offsets = [0, 14, 0], sizes = [18, 1, 32], strides = [1, 1, 1]} : vector<18x16x32xf32> to vector<18x1x32xf32>
    %53 = tpu.concatenate %51, %50, %52 in 1 : vector<18x1x32xf32>, vector<18x16x32xf32>, vector<18x1x32xf32> -> vector<18x18x32xf32>
    %54 = vector.extract_strided_slice %53 {offsets = [0, 0, 0], sizes = [16, 16, 32], strides = [1, 1, 1]} : vector<18x18x32xf32> to vector<16x16x32xf32>
    %55 = vector.shape_cast %54 : vector<16x16x32xf32> to vector<256x32xf32>
    %56 = vector.extract_strided_slice %53 {offsets = [0, 1, 0], sizes = [16, 16, 32], strides = [1, 1, 1]} : vector<18x18x32xf32> to vector<16x16x32xf32>
    %57 = vector.shape_cast %56 : vector<16x16x32xf32> to vector<256x32xf32>
    %58 = vector.extract_strided_slice %53 {offsets = [0, 2, 0], sizes = [16, 16, 32], strides = [1, 1, 1]} : vector<18x18x32xf32> to vector<16x16x32xf32>
    %59 = vector.shape_cast %58 : vector<16x16x32xf32> to vector<256x32xf32>
    %60 = vector.extract_strided_slice %53 {offsets = [1, 0, 0], sizes = [16, 16, 32], strides = [1, 1, 1]} : vector<18x18x32xf32> to vector<16x16x32xf32>
    %61 = vector.shape_cast %60 : vector<16x16x32xf32> to vector<256x32xf32>
    %62 = vector.extract_strided_slice %53 {offsets = [1, 1, 0], sizes = [16, 16, 32], strides = [1, 1, 1]} : vector<18x18x32xf32> to vector<16x16x32xf32>
    %63 = vector.shape_cast %62 : vector<16x16x32xf32> to vector<256x32xf32>
    %64 = vector.extract_strided_slice %53 {offsets = [1, 2, 0], sizes = [16, 16, 32], strides = [1, 1, 1]} : vector<18x18x32xf32> to vector<16x16x32xf32>
    %65 = vector.shape_cast %64 : vector<16x16x32xf32> to vector<256x32xf32>
    %66 = vector.extract_strided_slice %53 {offsets = [2, 0, 0], sizes = [16, 16, 32], strides = [1, 1, 1]} : vector<18x18x32xf32> to vector<16x16x32xf32>
    %67 = vector.shape_cast %66 : vector<16x16x32xf32> to vector<256x32xf32>
    %68 = vector.extract_strided_slice %53 {offsets = [2, 1, 0], sizes = [16, 16, 32], strides = [1, 1, 1]} : vector<18x18x32xf32> to vector<16x16x32xf32>
    %69 = vector.shape_cast %68 : vector<16x16x32xf32> to vector<256x32xf32>
    %70 = vector.extract_strided_slice %53 {offsets = [2, 2, 0], sizes = [16, 16, 32], strides = [1, 1, 1]} : vector<18x18x32xf32> to vector<16x16x32xf32>
    %71 = vector.shape_cast %70 : vector<16x16x32xf32> to vector<256x32xf32>
    %72 = tpu.concatenate %55, %57, %59, %61, %63, %65, %67, %69, %71 in 1 : vector<256x32xf32>, vector<256x32xf32>, vector<256x32xf32>, vector<256x32xf32>, vector<256x32xf32>, vector<256x32xf32>, vector<256x32xf32>, vector<256x32xf32>, vector<256x32xf32> -> vector<256x288xf32>
    %73 = arith.truncf %72 : vector<256x288xf32> to vector<256x288xbf16>
    %cst_16 = arith.constant dense<0.000000e+00> : vector<256x32xf32>
    %74 = tpu.matmul %73, %47, %cst_16 {dimension_numbers = #tpu.dot_dimension_numbers<[1], [0], [0], [1], [0, 0, 1, 1], [], []>} : vector<256x288xbf16>, vector<288x32xbf16>, vector<256x32xf32> -> vector<256x32xf32>
    %c0_17 = arith.constant 0 : index
    %c0_18 = arith.constant 0 : index
    %75 = vector.load %arg7[%c0_17, %c0_18] : memref<1x32xf32, #tpu.memory_space<vmem>>, vector<1x32xf32>
    %76 = vector.broadcast %75 : vector<1x32xf32> to vector<256x32xf32>
    %77 = arith.mulf %74, %76 : vector<256x32xf32>
    %c0_19 = arith.constant 0 : index
    %c0_20 = arith.constant 0 : index
    %78 = vector.load %arg8[%c0_19, %c0_20] : memref<1x32xf32, #tpu.memory_space<vmem>>, vector<1x32xf32>
    %79 = vector.broadcast %78 : vector<1x32xf32> to vector<256x32xf32>
    %80 = arith.addf %77, %79 : vector<256x32xf32>
    %cst_21 = arith.constant 0.000000e+00 : f32
    %81 = vector.broadcast %cst_21 : f32 to vector<256x32xf32>
    %82 = arith.cmpf ogt, %80, %81 : vector<256x32xf32>
    %cst_22 = arith.constant 2.000000e-01 : f32
    %83 = vector.broadcast %cst_22 : f32 to vector<256x32xf32>
    %84 = arith.mulf %83, %80 : vector<256x32xf32>
    %85 = arith.select %82, %80, %84 : vector<256x32xi1>, vector<256x32xf32>
    %c0_23 = arith.constant 0 : index
    %c0_24 = arith.constant 0 : index
    %c0_25 = arith.constant 0 : index
    %86 = vector.load %arg9[%c0_23, %c0_24, %c0_25] : memref<1x256x32xf32, #tpu.memory_space<vmem>>, vector<1x256x32xf32>
    %87 = vector.shape_cast %86 : vector<1x256x32xf32> to vector<256x32xf32>
    %88 = arith.addf %85, %87 : vector<256x32xf32>
    %c0_26 = arith.constant 0 : index
    %c0_27 = arith.constant 0 : index
    %c0_28 = arith.constant 0 : index
    %89 = vector.load %arg10[%c0_26, %c0_27, %c0_28] : memref<1x256x32xf32, #tpu.memory_space<vmem>>, vector<1x256x32xf32>
    %90 = vector.shape_cast %89 : vector<1x256x32xf32> to vector<256x32xf32>
    %91 = arith.addf %88, %90 : vector<256x32xf32>
    %c0_29 = arith.constant 0 : index
    %c0_30 = arith.constant 0 : index
    %c0_31 = arith.constant 0 : index
    %92 = vector.load %arg11[%c0_29, %c0_30, %c0_31] : memref<1x256x32xf32, #tpu.memory_space<vmem>>, vector<1x256x32xf32>
    %93 = vector.shape_cast %92 : vector<1x256x32xf32> to vector<256x32xf32>
    %94 = vector.shape_cast %91 : vector<256x32xf32> to vector<1x256x32xf32>
    tpu.vector_store %arg11[%c0_29, %c0_30, %c0_31], %94 {strides = array<i32>} : memref<1x256x32xf32, #tpu.memory_space<vmem>>, vector<1x256x32xf32>,
    return
  }
  func.func @transform_0(%arg0: i32) -> (i32, i32, i32, i32) {
    %c0_i32 = arith.constant 0 : i32
    %c0_i32_0 = arith.constant 0 : i32
    %c0_i32_1 = arith.constant 0 : i32
    %c0_i32_2 = arith.constant 0 : i32
    return %arg0, %c0_i32, %c0_i32_0, %c0_i32_1 : i32, i32, i32, i32
  }
  func.func @transform_1(%arg0: i32) -> (i32, i32, i32) {
    %c0_i32 = arith.constant 0 : i32
    %c0_i32_0 = arith.constant 0 : i32
    %c0_i32_1 = arith.constant 0 : i32
    return %arg0, %c0_i32, %c0_i32_0 : i32, i32, i32
  }
  func.func @transform_2(%arg0: i32) -> (i32, i32) {
    %c0_i32 = arith.constant 0 : i32
    %c0_i32_0 = arith.constant 0 : i32
    %c0_i32_1 = arith.constant 0 : i32
    return %c0_i32, %c0_i32_0 : i32, i32
  }
  func.func @transform_3(%arg0: i32) -> (i32, i32) {
    %c0_i32 = arith.constant 0 : i32
    %c0_i32_0 = arith.constant 0 : i32
    %c0_i32_1 = arith.constant 0 : i32
    return %c0_i32, %c0_i32_0 : i32, i32
  }
  func.func @transform_4(%arg0: i32) -> (i32, i32) {
    %c0_i32 = arith.constant 0 : i32
    %c0_i32_0 = arith.constant 0 : i32
    %c0_i32_1 = arith.constant 0 : i32
    return %c0_i32, %c0_i32_0 : i32, i32
  }
  func.func @transform_5(%arg0: i32) -> (i32, i32) {
    %c0_i32 = arith.constant 0 : i32
    %c0_i32_0 = arith.constant 0 : i32
    %c0_i32_1 = arith.constant 0 : i32
    return %c0_i32, %c0_i32_0 : i32, i32
  }
  func.func @transform_6(%arg0: i32) -> (i32, i32) {
    %c0_i32 = arith.constant 0 : i32
    %c0_i32_0 = arith.constant 0 : i32
    %c0_i32_1 = arith.constant 0 : i32
    return %c0_i32, %c0_i32_0 : i32, i32
  }
  func.func @transform_7(%arg0: i32) -> (i32, i32) {
    %c0_i32 = arith.constant 0 : i32
    %c0_i32_0 = arith.constant 0 : i32
    %c0_i32_1 = arith.constant 0 : i32
    return %c0_i32, %c0_i32_0 : i32, i32
  }
  func.func @transform_8(%arg0: i32) -> (i32, i32, i32) {
    %c0_i32 = arith.constant 0 : i32
    %c0_i32_0 = arith.constant 0 : i32
    %c0_i32_1 = arith.constant 0 : i32
    return %arg0, %c0_i32, %c0_i32_0 : i32, i32, i32
  }
  func.func @transform_9(%arg0: i32) -> (i32, i32, i32) {
    %c0_i32 = arith.constant 0 : i32
    %c0_i32_0 = arith.constant 0 : i32
    %c0_i32_1 = arith.constant 0 : i32
    return %arg0, %c0_i32, %c0_i32_0 : i32, i32, i32
  }
  func.func @transform_10(%arg0: i32) -> (i32, i32, i32) {
    %c0_i32 = arith.constant 0 : i32
    %c0_i32_0 = arith.constant 0 : i32
    %c0_i32_1 = arith.constant 0 : i32
    return %arg0, %c0_i32, %c0_i32_0 : i32, i32, i32
  }
}

</mosaic_0001>

<bundles_post_ra>
// kernel: stim_forward.4
= control target key start
LH: loop header
LB: loop body
LE: loop exit
PB: predicated region body
PF: predicated region fallthrough
CT: control target
= control target key end

     0   :  { %11 = vsyncpa [#allocation3], 0  ;;  %s1300_s0 = inlined_call_operand.hbm [shape: f32[2,16,16,32], index: 0, kind: input, shape index: {}]   ;;  %s1301_s1 = inlined_call_operand.vmem [shape: f32[32,2], index: 1, kind: input, shape index: {}]   ;;  %s1302_s2 = inlined_call_operand.hbm [shape: f32[2,32], index: 2, kind: input, shape index: {}]   ;;  %s1303_s3 = inlined_call_operand.hbm [shape: f32[2,32], index: 3, kind: input, shape index: {}]   ;;  %s1304_s4 = inlined_call_operand.vmem [shape: f32[2,1,32], index: 4, kind: output, shape index: {0}]   ;;  %s1305_s5 = inlined_call_operand.vmem [shape: f32[2,1,32], index: 5, kind: output, shape index: {1}]  }
   0x1   :  { %13 = vsyncpa [#allocation3 + $0x1], 0 }
   0x2   :  { %14 = vsyncpa [#allocation5], 0  ;;  %s1025_s18 = smov 0   ;;  %s1027_s19 = smov 0  }
   0x3   :  { %s1029_s20 = smov 0   ;;  %s1031_s21 = smov 0  }
   0x4 LB: > { %s1044_s22 = sadd.s32 4294967295, %s985_s21   ;;  %s1047_s23 = sadd.s32 1, %s985_s21   ;;  %s985_s21 = sphi %s1031_s21, %s1323_s21   ;;  %s981_s20 = sphi %s1029_s20, %s1322_s20   ;;  %s977_s19 = sphi %s1027_s19, %s1321_s19   ;;  %s973_s18 = sphi %s1025_s18, %s1320_s18  }
   0x5   : > { %s24_s24 = ssub.s32 %s985_s21, %s1047_s23  ;;  %s27_s25 = sadd.s32 1, %s981_s20 }
   0x6   : > { %p25_p0 = scmp.eq.s32.totalorder %s24_s24, 0  ;;  %p34_p1 = scmp.ne.s32.totalorder %s981_s20, %s977_s19 }
   0x7   : > { %p35_p2 = scmp.eq.s32.totalorder %s985_s21, 0  ;;  %p40_p3 = scmp.ne.s32.totalorder %s977_s19, %s973_s18 }
   0x8   : > { %s1057_s26 = scalar_select %p25_p0, %s981_s20, %s27_s25  }
   0x9   : > { %p1059_p4 = por %p35_p2, %p34_p1  ;;  %p1306_p5 = scmp.eq.s32.totalorder %s1044_s22, 0 }
   0xa   : > { %p731_p6 = scmp.ge.s32.totalorder %s985_s21, 1  ;;  %p166_p7 = scmp.lt.s32.totalorder %s985_s21, 3 }
   0xb   : > { %p1068_p8 = por %p1306_p5, %p40_p3  ;;  %s987_s30 = smov [#allocation4]  }
   0xc   : > { %p1072_p9 = pnand %p731_p6, %p166_p7  ;;  %s182_s6 = sshll.u32 %s987_s30, 4  ;;  %s183_s6 = int_to_ptr.vmem [resolvable:$true] %s182_s6 }
   0xd   : > { %s1311_s28 = scalar_select %p1068_p8, 1, 0 }
   0xe   : > { %s1312_s29 = scalar_select %p1072_p9, 1, 0 }
   0xf   : > { %p798_p10 = pneg %p1072_p9  ;;  %p811_p11 = scmp.lt.s32.totalorder %s985_s21, 2 }
  0x10   : > { %s988_s8 = smov [#allocation6]   ;;  %s204_s11 = sand.u32 1, %s981_s20  }
  0x11   : > { %p1081_p12 = pnand %p798_p10, %p1306_p5  ;;  %s193_s9 = sshll.u32 %s988_s8, 4  ;;  %s1091_s9 = int_to_ptr.vmem [resolvable:$true] %s193_s9 }
  0x12   : > { %p1087_p13 = pnand %p811_p11, %p1059_p4  ;;  %s861_s14 = scalar_lea.hbm %s1302_s2, 32 }
  0x13   : > { %p862_p0 = scmp.ne.s32.totalorder %s1302_s2, %s861_s14  ;;  %p863_p1 = pneg %p1081_p12 }
  0x14   : > { %s1314_s10 = scalar_select %p1087_p13, 1, 0 }
  0x15   : > { %p864_p2 = pnand %p863_p1, %p862_p0  ;;  %p868_p4 = scmp.lt.u32.totalorder %s861_s14, %s1302_s2 }
  0x17   : > { %p865_p3 = pneg %p864_p2 }
  0x19   : > { %p870_p6 = pnand %p868_p4, %p865_p3 }
  0x1b   : > { %873 = shalt.err (!%p870_p6)
}
  0x1c   : > { %s874_s24 = scalar_lea.vmem %s183_s6, 32  ;;  %p882_p5 = scmp.lt.s32.totalorder %s183_s6, %s183_s6 }
  0x1d   : > { %p875_p7 = scmp.ne.s32.totalorder %s183_s6, %s874_s24  ;;  %p883_p8 = scmp.lt.s32.totalorder %s874_s24, %s874_s24 }
  0x1f   : > { %p877_p10 = pnand %p875_p7, %p863_p1  ;;  %p884_p9 = por %p883_p8, %p882_p5 }
  0x21   : > { %p878_p11 = pneg %p877_p10 }
  0x23   : > { %p885_p13 = pnand %p884_p9, %p878_p11 }
  0x25   : > { %888 = shalt.err (!%p885_p13)
}
  0x26   : > { %801 = dma.hbm_to_vmem [thread:$0]  (!%p1081_p12), %s1302_s2, 32, %s183_s6, [#allocation5]  }
  0x27   : > { %s889_s12 = scalar_lea.hbm %s1303_s3, 32 }
  0x28   : > { %p890_p0 = scmp.ne.s32.totalorder %s1303_s3, %s889_s12  ;;  %p896_p9 = scmp.lt.u32.totalorder %s889_s12, %s1303_s3 }
  0x2a   : > { %p892_p5 = pnand %p890_p0, %p863_p1 }
  0x2c   : > { %p893_p8 = pneg %p892_p5 }
  0x2e   : > { %p898_p13 = pnand %p896_p9, %p893_p8 }
  0x30   : > { %901 = shalt.err (!%p898_p13)
}
  0x31   : > { %s902_s6 = scalar_lea.vmem %s1091_s9, 32  ;;  %p910_p6 = scmp.lt.s32.totalorder %s1091_s9, %s1091_s9 }
  0x32   : > { %p903_p2 = scmp.ne.s32.totalorder %s1091_s9, %s902_s6  ;;  %p911_p7 = scmp.lt.s32.totalorder %s902_s6, %s902_s6 }
  0x34   : > { %p905_p3 = pnand %p903_p2, %p863_p1  ;;  %p912_p10 = por %p911_p7, %p910_p6 }
  0x36   : > { %p906_p4 = pneg %p905_p3 }
  0x38   : > { %p913_p11 = pnand %p912_p10, %p906_p4 }
  0x3a   : > { %916 = shalt.err (!%p913_p11)
}
  0x3b   : > { %804 = dma.hbm_to_vmem [thread:$0]  (!%p1081_p12), %s1303_s3, 32, %s1091_s9, [#allocation5]  }
  0x3c   : > { %s735_s24 = sshll.u32 %s204_s11, 8  ;;  %s751_s25 = sshll.u32 %s985_s21, 12 }
  0x3d   : > { %s1147_s8 = scalar_lea.hbm %s1300_s0, %s751_s25  ;;  %s208_s7 = scalar_lea.vmem [#allocation2], %s735_s24 }
  0x3e   : > { %s215_s12 = sshll.u32 %s208_s7, 4  ;;  %s1153_s13 = scalar_lea.sflag [#allocation3], %s204_s11  ;;  %s1149_s12 = int_to_ptr.vmem [resolvable:$true] %s215_s12 }
  0x3f   : > { %s917_s9 = scalar_lea.hbm %s1147_s8, 4096  ;;  %p1315_p1 = scmp.ne.s32.totalorder %s1314_s10, 0 }
  0x40   : > { %p918_p12 = scmp.ne.s32.totalorder %s1147_s8, %s917_s9  ;;  %s922_s15 = scalar_lea.hbm %s1300_s0, 8192 }
  0x41   : > { %p919_p0 = pneg %p1315_p1  ;;  %p923_p9 = scmp.lt.u32.totalorder %s1147_s8, %s1300_s0 }
  0x42   : > { %p924_p13 = scmp.lt.u32.totalorder %s922_s15, %s917_s9  ;;  %p926_p3 = scmp.lt.u32.totalorder %s917_s9, %s1147_s8 }
  0x43   : > { %p920_p5 = pnand %p919_p0, %p918_p12 }
  0x44   : > { %p925_p2 = por %p924_p13, %p923_p9 }
  0x45   : > { %p921_p8 = pneg %p920_p5 }
  0x46   : > { %p927_p4 = por %p926_p3, %p925_p2 }
  0x48   : > { %p928_p6 = pnand %p927_p4, %p921_p8 }
  0x4a   : > { %931 = shalt.err (!%p928_p6)
}
  0x4b   : > { %s932_s11 = scalar_lea.vmem %s1149_s12, 4096  ;;  %s989_s17 = smov [#allocation2]  }
  0x4c   : > { %p933_p7 = scmp.ne.s32.totalorder %s1149_s12, %s932_s11  ;;  %s937_s18 = sshll.u32 %s989_s17, 4  ;;  %s938_s18 = int_to_ptr.vmem [resolvable:$false] %s937_s18 }
  0x4d   : > { %s939_s24 = scalar_lea.vmem %s938_s18, 8192  ;;  %p940_p12 = scmp.lt.s32.totalorder %s1149_s12, %s938_s18 }
  0x4e   : > { %p935_p10 = pnand %p933_p7, %p919_p0  ;;  %p941_p5 = scmp.lt.s32.totalorder %s939_s24, %s932_s11 }
  0x50   : > { %p936_p11 = pneg %p935_p10  ;;  %p942_p9 = por %p941_p5, %p940_p12 }
  0x52   : > { %p943_p13 = pnand %p942_p9, %p936_p11 }
  0x54   : > { %946 = shalt.err (!%p943_p13)
}
  0x55   : > { %s990_s25 = smov 128   ;;  %s991_s27 = smov 8  }
  0x56   : > { %808 = dma.hbm_to_vmem [thread:$0]  (!%p1315_p1), %s1147_s8, 4096, %s1149_s12, %s1153_s13, %s990_s25, %s990_s25, %s991_s27  }
  0x57   : > { %p1316_p0 = scmp.ne.s32.totalorder %s1312_s29, 0 }
  0x58   : > { %s229_s30 = sand.u32 (!%p1316_p0), 1, %s977_s19   ;;  %p1317_p8 = scmp.ne.s32.totalorder (!%p1316_p0), %s1311_s28, 0 }
  0x59   : > { %227 = sbr.rel (%p1316_p0) target bundleno = 638 (0x27e), region = 36  ;;  %s739_s7 = sshll.u32 (!%p1316_p0), %s229_s30, 8 }
  0x5a   : > { %s230_s9 = scalar_lea.sflag (!%p1316_p0), [#allocation3], %s229_s30  ;;  %s1184_s21 = scalar_lea.vmem (!%p1316_p0), [#allocation2], %s739_s7 }
  0x60   : > { %964 = dma.done.wait (%p1317_p8), %s230_s9, 4096  }
  0x61   : > { %966 = vsyncadd (%p1317_p8), %s230_s9, 4294963200  ;;  %p1318_p2 = scmp.eq.s32.totalorder %s1044_s22, 0 }
  0x63   : > { %968 = dma.done.wait (%p1318_p2), [#allocation5], 64   ;;  %p1319_p1 = pmov %p1318_p2 }
  0x64   : > { %v992_v0 = vmov 0.0|0.0   ;;  %vm993_vm0 = vmmov 0   ;;  %v994_v1 = vmov 0.0   ;;  %vm307_vm1 = vcmask 261120   ;;  %v379_v2 = vld [vmem:[%s1301_s1] sm:$0xff]  ;;  %v380_v3 = vld [vmem:[%s1301_s1 + $0x8] sm:$0xff] }
  0x65   : > { %970 = vsyncadd (%p1319_p1), [#allocation5], 4294967232  ;;  %782 = vmatprep.subr.bf16.mxu0 %v992_v0  ;;  %769 = vmatprep.mubr.msk.f32.mxu0 %vm993_vm0, %v994_v1  ;;  %v381_v4 = vld [vmem:[%s1301_s1 + $0x10] sm:$0xff]  ;;  %v783_v5 = vpack.c.bf16 %v380_v3, %v379_v2  ;;  %v382_v6 = vld [vmem:[%s1301_s1 + $0x18] sm:$0xff]  ;;  %vm464_vm2 = vcmask 1041408   ;;  %vm460_vm4 = vcmask 15360  }
  0x66   : > { %772 = vmatprep.subr.mxu1 %v994_v1  ;;  %774 = vmatprep.mubr.msk.f32.mxu1 %vm993_vm0, %v994_v1  ;;  %v275_v7 = vld [vmem:[%s1184_s21] sm:$0xff]  ;;  %v276_v8 = vld [vmem:[%s1184_s21 + $0x8] sm:$0xff]  ;;  %v277_v9 = vld [vmem:[%s1184_s21 + $0x10] sm:$0xff]  ;;  %v786_v13 = vpack.c.bf16 %v382_v6, %v381_v4  ;;  %p269_p3 = scmp.lt.s32.totalorder %s1044_s22, 1  ;;  %vm624_vm5 = vcmask 253952  }
  0x67   : > { %v278_v10 = vld [vmem:[%s1184_s21 + $0x18] sm:$0xff]  ;;  %v308_v11 = vsel %vm307_vm1, %v275_v7, 0.0  ;;  %v309_v12 = vsel %vm307_vm1, %v276_v8, 0.0  ;;  %784 = vmatpush3.bf16.msra.mxu0 %v783_v5  ;;  %v279_v14 = vld [vmem:[%s1184_s21 + $0x20] sm:$0xff]  ;;  %v311_v16 = vsel %vm307_vm1, %v277_v9, 0.0  ;;  %v280_v18 = vld [vmem:[%s1184_s21 + $0x28] sm:$0xff] }
  0x68   : > { %v310_v15 = vadd.f32 %v309_v12, %v308_v11  ;;  %785 = vmatprep.subr.bf16.mxu0 %v992_v0  ;;  %v313_v17 = vsel %vm307_vm1, %v278_v10, 0.0  ;;  %v315_v20 = vsel %vm307_vm1, %v279_v14, 0.0  ;;  %v281_v21 = vld [vmem:[%s1184_s21 + $0x30] sm:$0xff]  ;;  %v317_v23 = vsel %vm307_vm1, %v280_v18, 0.0  ;;  %v282_v24 = vld [vmem:[%s1184_s21 + $0x38] sm:$0xff]  ;;  %v283_v27 = vld [vmem:[%s1184_s21 + $0x40] sm:$0xff] }
  0x69   : > { %v319_v26 = vsel %vm307_vm1, %v281_v21, 0.0  ;;  %v321_v29 = vsel %vm307_vm1, %v282_v24, 0.0  ;;  %v284_v30 = vld [vmem:[%s1184_s21 + $0x48] sm:$0xff]  ;;  %v323_v32 = vsel %vm307_vm1, %v283_v27, 0.0  ;;  %v285_v33 = vld [vmem:[%s1184_s21 + $0x50] sm:$0xff]  ;;  %v286_v36 = vld [vmem:[%s1184_s21 + $0x58] sm:$0xff] }
  0x6a   : > { %v312_v19 = vadd.f32 %v311_v16, %v310_v15  ;;  %v325_v35 = vsel %vm307_vm1, %v284_v30, 0.0  ;;  %v327_v38 = vsel %vm307_vm1, %v285_v33, 0.0  ;;  %v287_v39 = vld [vmem:[%s1184_s21 + $0x60] sm:$0xff]  ;;  %v329_v41 = vsel %vm307_vm1, %v286_v36, 0.0  ;;  %v288_v42 = vld [vmem:[%s1184_s21 + $0x68] sm:$0xff]  ;;  %v289_v45 = vld [vmem:[%s1184_s21 + $0x70] sm:$0xff] }
  0x6b   : > { %787 = vmatpush3.bf16.msra.mxu0 %v786_v13  ;;  %v331_v44 = vsel %vm307_vm1, %v287_v39, 0.0  ;;  %v333_v47 = vsel %vm307_vm1, %v288_v42, 0.0  ;;  %v290_v48 = vld [vmem:[%s1184_s21 + $0x78] sm:$0xff]  ;;  %v335_v50 = vsel %vm307_vm1, %v289_v45, 0.0  ;;  %v291_v51 = vld [vmem:[%s1184_s21 + $0x80] sm:$0xff]  ;;  %v292_v54 = vld [vmem:[%s1184_s21 + $0x88] sm:$0xff] }
  0x6c   : > { %v314_v22 = vadd.f32 %v313_v17, %v312_v19  ;;  %v337_v53 = vsel %vm307_vm1, %v290_v48, 0.0  ;;  %v339_v56 = vsel %vm307_vm1, %v291_v51, 0.0  ;;  %v293_v57 = vld [vmem:[%s1184_s21 + $0x90] sm:$0xff]  ;;  %v341_v59 = vsel %vm307_vm1, %v292_v54, 0.0  ;;  %v294_v60 = vld [vmem:[%s1184_s21 + $0x98] sm:$0xff]  ;;  %v295_v63 = vld [vmem:[%s1184_s21 + $0xa0] sm:$0xff] }
  0x6d   : > { %v343_v62 = vsel %vm307_vm1, %v293_v57, 0.0  ;;  %v345_v2 = vsel %vm307_vm1, %v294_v60, 0.0  ;;  %v296_v3 = vld [vmem:[%s1184_s21 + $0xa8] sm:$0xff]  ;;  %v347_v5 = vsel %vm307_vm1, %v295_v63, 0.0  ;;  %v297_v6 = vld [vmem:[%s1184_s21 + $0xb0] sm:$0xff]  ;;  %v298_v9 = vld [vmem:[%s1184_s21 + $0xb8] sm:$0xff] }
  0x6e   : > { %v316_v25 = vadd.f32 %v315_v20, %v314_v22  ;;  %v349_v8 = vsel %vm307_vm1, %v296_v3, 0.0  ;;  %v351_v11 = vsel %vm307_vm1, %v297_v6, 0.0  ;;  %v299_v12 = vld [vmem:[%s1184_s21 + $0xc0] sm:$0xff]  ;;  %v353_v14 = vsel %vm307_vm1, %v298_v9, 0.0  ;;  %v300_v15 = vld [vmem:[%s1184_s21 + $0xc8] sm:$0xff]  ;;  %v301_v18 = vld [vmem:[%s1184_s21 + $0xd0] sm:$0xff] }
  0x6f   : > { %v355_v17 = vsel %vm307_vm1, %v299_v12, 0.0  ;;  %v357_v20 = vsel %vm307_vm1, %v300_v15, 0.0  ;;  %v302_v21 = vld [vmem:[%s1184_s21 + $0xd8] sm:$0xff]  ;;  %v303_v24 = vld [vmem:[%s1184_s21 + $0xe0] sm:$0xff]  ;;  %v304_v27 = vld [vmem:[%s1184_s21 + $0xe8] sm:$0xff]  ;;  %s1325_s22 = smov (!%p269_p3, %s1044_s22), 1 }
  0x70   : > { %v318_v28 = vadd.f32 %v317_v23, %v316_v25  ;;  %v359_v23 = vsel %vm307_vm1, %v301_v18, 0.0  ;;  %v305_v30 = vld [vmem:[%s1184_s21 + $0xf0] sm:$0xff]  ;;  %v306_v33 = vld [vmem:[%s1184_s21 + $0xf8] sm:$0xff]  ;;  %v544_v51 = vld [vmem:[#allocation6] sm:$0x3]  ;;  %s271_s11 = scalar_lea.vmem %s1304_s4, %s1325_s22  ;;  %s274_s24 = scalar_lea.vmem %s1305_s5, %s1325_s22 }
  0x72   : > { %v320_v31 = vadd.f32 %v319_v26, %v318_v28  ;;  %v361_v26 = vsel %vm307_vm1, %v302_v21, 0.0 }
  0x74   : > { %v322_v34 = vadd.f32 %v321_v29, %v320_v31  ;;  %v363_v29 = vsel %vm307_vm1, %v303_v24, 0.0 }
  0x76   : > { %v324_v37 = vadd.f32 %v323_v32, %v322_v34  ;;  %v365_v32 = vsel %vm307_vm1, %v304_v27, 0.0 }
  0x78   : > { %v326_v40 = vadd.f32 %v325_v35, %v324_v37  ;;  %v367_v35 = vsel %vm307_vm1, %v305_v30, 0.0  ;;  %v369_v37 = vsel %vm307_vm1, %v306_v33, 0.0 }
  0x7a   : > { %v328_v43 = vadd.f32 %v327_v38, %v326_v40 }
  0x7c   : > { %v330_v46 = vadd.f32 %v329_v41, %v328_v43 }
  0x7e   : > { %v332_v49 = vadd.f32 %v331_v44, %v330_v46 }
  0x80   : > { %v334_v52 = vadd.f32 %v333_v47, %v332_v49  ;;  %v459_v47 = vld [vmem:[#allocation4] sm:$0x3] }
  0x81   : > { %773 = vmatpush3.msk.msra.mxu1 %vm464_vm2, %v459_v47 }
  0x82   : > { %v336_v55 = vadd.f32 %v335_v50, %v334_v52  ;;  %777 = vmatprep.subr.mxu1 %v994_v1 }
  0x84   : > { %v338_v58 = vadd.f32 %v337_v53, %v336_v55 }
  0x86   : > { %v340_v61 = vadd.f32 %v339_v56, %v338_v58 }
  0x88   : > { %v342_v0 = vadd.f32 %v341_v59, %v340_v61 }
  0x8a   : > { %v344_v4 = vadd.f32 %v343_v62, %v342_v0 }
  0x8c   : > { %v346_v7 = vadd.f32 %v345_v2, %v344_v4 }
  0x8e   : > { %v348_v10 = vadd.f32 %v347_v5, %v346_v7 }
  0x90   : > { %v350_v13 = vadd.f32 %v349_v8, %v348_v10 }
  0x92   : > { %v352_v16 = vadd.f32 %v351_v11, %v350_v13 }
  0x94   : > { %v354_v19 = vadd.f32 %v353_v14, %v352_v16 }
  0x96   : > { %v356_v22 = vadd.f32 %v355_v17, %v354_v19 }
  0x98   : > { %v358_v25 = vadd.f32 %v357_v20, %v356_v22 }
  0x9a   : > { %v360_v28 = vadd.f32 %v359_v23, %v358_v25 }
  0x9c   : > { %v362_v31 = vadd.f32 %v361_v26, %v360_v28 }
  0x9e   : > { %v364_v34 = vadd.f32 %v363_v29, %v362_v31 }
  0xa0   : > { %v366_v36 = vadd.f32 %v365_v32, %v364_v34 }
  0xa2   : > { %v368_v38 = vadd.f32 %v367_v35, %v366_v36 }
  0xa4   : > { %v370_v39 = vadd.f32 %v369_v37, %v368_v38 }
  0xa6   : > { %v371_v40 = vrot.slane %v370_v39, 4 }
  0xa8   : > { %v372_v41 = vadd.f32 %v371_v40, %v370_v39 }
  0xaa   : > { %v373_v42 = vrot.slane %v372_v41, 2 }
  0xac   : > { %v374_v43 = vadd.f32 %v373_v42, %v372_v41 }
  0xae   : > { %v375_v44 = vrot.slane %v374_v43, 1 }
  0xb0   : > { %v376_v45 = vadd.f32 %v375_v44, %v374_v43 }
  0xb2   : > { %v378_v46 = vmul.f32 0.00390625, %v376_v45 }
  0xb4   : > { %770 = vmatmul.mubr.msk.f32.vlgmr.msra.gmra.mrb[0].mxu0 %vm307_vm1, %v378_v46 }
 0x187   : > { %v452_v48 = vpop.f32.mrb[0].mxu0 }
 0x188   : > { %vm456_vm3 = vcmp.gt.f32.partialorder %v452_v48, 0.0  ;;  %v457_v49 = vmul.f32 0.2, %v452_v48  ;;  %v771_v50 = vpop.f32.mrb[1].mxu0 }
 0x18a   : > { %v458_v52 = vsel %vm456_vm3, %v452_v48, %v457_v49 }
 0x18b   : > { %775 = vmatmul.mubr.msk.f32.vlgmr.msra.gmra.mrb[0].mxu1 %vm460_vm4, %v458_v52 }
 0x18c   : > { %778 = vmatpush3.msk.msra.mxu1 %vm464_vm2, %v544_v51  ;;  %779 = vmatprep.mubr.msk.f32.mxu1 %vm993_vm0, %v994_v1 }
 0x18f   : > { %780 = vmatmul.mubr.msk.f32.vlgmr.msra.gmra.mrb[2].mxu1 %vm460_vm4, %v458_v52 }
 0x25e   : > { %v534_v53 = vpop.f32.mrb[0].mxu1 }
 0x25f   : > { %v745_v54 = vmul.f32 -1.442695, %v534_v53  ;;  %v776_v55 = vpop.f32.mrb[1].mxu1 }
 0x261   : > { %853 = vpow2.f32 %v745_v54 }
 0x262   : > { %v614_v56 = vpop.f32.mrb[2].mxu1 }
 0x263   : > { %v748_v57 = vmul.f32 -1.442695, %v614_v56  ;;  %v781_v58 = vpop.f32.mrb[3].mxu1 }
 0x265   : > { %855 = vpow2.f32 %v748_v57 }
 0x26b   : > { %v854_v59 = vpop.eup %853 }
 0x26c   : > { %v541_v60 = vadd.f32 1.0, %v854_v59 }
 0x26e   : > { %857 = vrcp.f32 %v541_v60 }
 0x26f   : > { %v856_v61 = vpop.eup %855 }
 0x270   : > { %v621_v62 = vadd.f32 1.0, %v856_v61 }
 0x272   : > { %859 = vrcp.f32 %v621_v62 }
 0x278   : > { %v858_v1 = vpop.eup %857 }
 0x279   : > { %625 = vst.msk [vmem:[%s271_s11] sm:$0x1] %vm624_vm5, %v858_v1 }
 0x27c   : > { %v860_v63 = vpop.eup %859 }
 0x27d   : > { %626 = vst.msk [vmem:[%s274_s24] sm:$0x1] %vm624_vm5, %v860_v63 }
 0x27e PF: > { %p17_p4 = scmp.ge.s32.totalorder %s1047_s23, 4   ;;  %s1320_s18 = smov %s977_s19 }
 0x27f   : > { %s1321_s19 = smov %s981_s20  ;;  %s1322_s20 = smov %s1057_s26 }
 0x280   : > { %s1323_s21 = smov %s1047_s23  ;;  %19 = sbr.rel (!%p17_p4) target bundleno = 4 (0x4), region = 96 }
 0x287   :  { %656 = vsyncpa [#allocation3], 1 }
 0x288   :  { %658 = vsyncpa [#allocation3 + $0x1], 1 }
 0x289   :  { %659 = vsyncpa [#allocation5], 1 }

// kernel: stim_forward.5
= control target key start
LH: loop header
LB: loop body
LE: loop exit
PB: predicated region body
PF: predicated region fallthrough
CT: control target
= control target key end

     0   :  { %s963_s18 = smov 0   ;;  %s1222_s0 = inlined_call_operand.vmem [shape: f32[2,16,16,32], index: 0, kind: input, shape index: {}]   ;;  %s1223_s1 = inlined_call_operand.vmem [shape: f32[2,1,32], index: 1, kind: input, shape index: {}]   ;;  %s1224_s2 = inlined_call_operand.vmem [shape: bf16[32,32], index: 2, kind: input, shape index: {}]   ;;  %s1225_s3 = inlined_call_operand.vmem [shape: f32[1,32], index: 3, kind: input, shape index: {}]   ;;  %s1226_s4 = inlined_call_operand.vmem [shape: f32[1,32], index: 4, kind: input, shape index: {}]   ;;  %s1227_s5 = inlined_call_operand.vmem [shape: f32[2,16,16,32], index: 5, kind: output, shape index: {}]  }
   0x1 LB: > { %s823_s19 = sadd.s32 4294967295, %s931_s18   ;;  %p827_p0 = scmp.ge.s32.totalorder %s931_s18, 1  ;;  %s931_s18 = sphi %s963_s18, %s15_s18  }
   0x2   : > { %p195_p1 = scmp.lt.s32.totalorder %s931_s18, 3 }
   0x4   : > { %p196_p2 = pnand %p827_p0, %p195_p1 }
   0x5   : > { %v923_v0 = vld [vmem:[%s1224_s2] sm:$0xff] (!%p196_p2)   ;;  %p226_p3 = scmp.lt.s32.totalorder (!%p196_p2), %s823_s19, 1  ;;  %v924_v1 = vld [vmem:[%s1224_s2 + $0x8] sm:$0xff] (!%p196_p2)   ;;  %vm343_vm0 = vcmask (!%p196_p2), 261120  }
   0x6   : > { %199 = sbr.rel (%p196_p2) target bundleno = 279 (0x117), region = 40  ;;  %875 = vmatprep.subr.bf16.mxu0 (!%p196_p2), %v923_v0  ;;  %911 = vmatprep.subr.bf16.mxu1 (!%p196_p2), %v923_v0 }
   0x7   : > { %876 = vmatpush3.bf16.msra.mxu0 (!%p196_p2), %v923_v0  ;;  %913 = vmatpush3.bf16.msra.mxu1 (!%p196_p2), %v923_v0 }
   0x8   : > { %877 = vmatprep.subr.bf16.mxu0 (!%p196_p2), %v924_v1  ;;  %912 = vmatprep.subr.bf16.mxu1 (!%p196_p2), %v924_v1 }
   0xb   : > { %878 = vmatpush3.bf16.msra.mxu0 (!%p196_p2), %v924_v1  ;;  %914 = vmatpush3.bf16.msra.mxu1 (!%p196_p2), %v924_v1 }
   0xd   : > { %s1229_s19 = smov (!%p226_p3, %s823_s19), 1 }
   0xe   : > { %s855_s24 = sshll.u32 %s1229_s19, 8  ;;  %s233_s27 = scalar_lea.vmem %s1223_s1, %s1229_s19 }
   0xf   : > { %s989_s30 = scalar_lea.vmem %s1222_s0, %s855_s24  ;;  %v991_v2 = vld [vmem:[%s233_s27] ss:$0 sm:$0xff]  ;;  %s1098_s12 = scalar_lea.vmem %s1227_s5, %s855_s24 }
  0x10   : > { %v240_v3 = vld [vmem:[%s989_s30] sm:$0xff]  ;;  %v241_v4 = vld [vmem:[%s989_s30 + $0x8] sm:$0xff]  ;;  %v242_v10 = vld [vmem:[%s989_s30 + $0x10] sm:$0xff] }
  0x11   : > { %v256_v5 = vld [vmem:[%s989_s30 + $0x80] sm:$0xff]  ;;  %v279_v6 = vmul.f32 %v991_v2, %v240_v3  ;;  %v280_v7 = vmul.f32 %v991_v2, %v241_v4  ;;  %v257_v8 = vld [vmem:[%s989_s30 + $0x88] sm:$0xff]  ;;  %v243_v11 = vld [vmem:[%s989_s30 + $0x18] sm:$0xff]  ;;  %v281_v13 = vmul.f32 %v991_v2, %v242_v10 }
  0x12   : > { %v295_v9 = vmul.f32 %v991_v2, %v256_v5  ;;  %v296_v12 = vmul.f32 %v991_v2, %v257_v8  ;;  %v282_v14 = vmul.f32 %v991_v2, %v243_v11  ;;  %v258_v15 = vld [vmem:[%s989_s30 + $0x90] sm:$0xff]  ;;  %v259_v16 = vld [vmem:[%s989_s30 + $0x98] sm:$0xff]  ;;  %v244_v17 = vld [vmem:[%s989_s30 + $0x20] sm:$0xff] }
  0x13   : > { %v311_v18 = vpack.c.bf16 %v280_v7, %v279_v6  ;;  %v297_v19 = vmul.f32 %v991_v2, %v258_v15  ;;  %v298_v20 = vmul.f32 %v991_v2, %v259_v16  ;;  %v245_v21 = vld [vmem:[%s989_s30 + $0x28] sm:$0xff]  ;;  %v283_v22 = vmul.f32 %v991_v2, %v244_v17  ;;  %v260_v23 = vld [vmem:[%s989_s30 + $0xa0] sm:$0xff]  ;;  %v246_v29 = vld [vmem:[%s989_s30 + $0x30] sm:$0xff] }
  0x14   : > { %v261_v24 = vld [vmem:[%s989_s30 + $0xa8] sm:$0xff]  ;;  %v319_v25 = vpack.c.bf16 %v296_v12, %v295_v9  ;;  %v312_v26 = vpack.c.bf16 %v282_v14, %v281_v13  ;;  %v284_v27 = vmul.f32 %v991_v2, %v245_v21  ;;  %v299_v28 = vmul.f32 %v991_v2, %v260_v23  ;;  %v247_v30 = vld [vmem:[%s989_s30 + $0x38] sm:$0xff]  ;;  %v262_v31 = vld [vmem:[%s989_s30 + $0xb0] sm:$0xff] }
  0x15   : > { %879 = vmatprep.mubr.msk.bf16.mxu0 %vm343_vm0, %v311_v18  ;;  %v320_v32 = vpack.c.bf16 %v298_v20, %v297_v19  ;;  %v300_v33 = vmul.f32 %v991_v2, %v261_v24  ;;  %v285_v34 = vmul.f32 %v991_v2, %v246_v29  ;;  %v263_v35 = vld [vmem:[%s989_s30 + $0xb8] sm:$0xff]  ;;  %v248_v36 = vld [vmem:[%s989_s30 + $0x40] sm:$0xff]  ;;  %v249_v37 = vld [vmem:[%s989_s30 + $0x48] sm:$0xff]  ;;  %v286_v39 = vmul.f32 %v991_v2, %v247_v30 }
  0x16   : > { %895 = vmatprep.mubr.msk.bf16.mxu1 %vm343_vm0, %v319_v25  ;;  %880 = vmatmul.mubr.msk.bf16.vlgmr.msra.gmra.mrb[0].mxu0 %vm343_vm0, %v312_v26  ;;  %v313_v38 = vpack.c.bf16 %v284_v27, %v283_v22  ;;  %v301_v40 = vmul.f32 %v991_v2, %v262_v31  ;;  %v264_v41 = vld [vmem:[%s989_s30 + $0xc0] sm:$0xff]  ;;  %v265_v42 = vld [vmem:[%s989_s30 + $0xc8] sm:$0xff]  ;;  %v302_v44 = vmul.f32 %v991_v2, %v263_v35  ;;  %v250_v52 = vld [vmem:[%s989_s30 + $0x50] sm:$0xff] }
  0x17   : > { %896 = vmatmul.mubr.msk.bf16.vlgmr.msra.gmra.mrb[0].mxu1 %vm343_vm0, %v320_v32  ;;  %v321_v43 = vpack.c.bf16 %v300_v33, %v299_v28  ;;  %v287_v45 = vmul.f32 %v991_v2, %v248_v36  ;;  %v288_v46 = vmul.f32 %v991_v2, %v249_v37  ;;  %v303_v47 = vmul.f32 %v991_v2, %v264_v41  ;;  %v251_v53 = vld [vmem:[%s989_s30 + $0x58] sm:$0xff]  ;;  %v266_v54 = vld [vmem:[%s989_s30 + $0xd0] sm:$0xff]  ;;  %v252_v57 = vld [vmem:[%s989_s30 + $0x60] sm:$0xff] }
  0x18   : > { %883 = vmatprep.mubr.msk.bf16.mxu0 %vm343_vm0, %v313_v38  ;;  %v304_v48 = vmul.f32 %v991_v2, %v265_v42  ;;  %v314_v49 = vpack.c.bf16 %v286_v39, %v285_v34  ;;  %v322_v50 = vpack.c.bf16 %v302_v44, %v301_v40  ;;  %v267_v56 = vld [vmem:[%s989_s30 + $0xd8] sm:$0xff]  ;;  %v253_v58 = vld [vmem:[%s989_s30 + $0x68] sm:$0xff]  ;;  %v268_v59 = vld [vmem:[%s989_s30 + $0xe0] sm:$0xff]  ;;  %v289_v61 = vmul.f32 %v991_v2, %v250_v52 }
  0x19   : > { %899 = vmatprep.mubr.msk.bf16.mxu1 %vm343_vm0, %v321_v43  ;;  %v315_v51 = vpack.c.bf16 %v288_v46, %v287_v45  ;;  %v269_v60 = vld [vmem:[%s989_s30 + $0xe8] sm:$0xff]  ;;  %v290_v62 = vmul.f32 %v991_v2, %v251_v53  ;;  %v305_v63 = vmul.f32 %v991_v2, %v266_v54  ;;  %v306_v0 = vmul.f32 %v991_v2, %v267_v56  ;;  %v254_v9 = vld [vmem:[%s989_s30 + $0x70] sm:$0xff]  ;;  %v255_v10 = vld [vmem:[%s989_s30 + $0x78] sm:$0xff] }
  0x1a   : > { %v323_v55 = vpack.c.bf16 %v304_v48, %v303_v47  ;;  %v291_v1 = vmul.f32 %v991_v2, %v252_v57  ;;  %v292_v3 = vmul.f32 %v991_v2, %v253_v58  ;;  %v307_v4 = vmul.f32 %v991_v2, %v268_v59  ;;  %v270_v12 = vld [vmem:[%s989_s30 + $0xf0] sm:$0xff]  ;;  %v271_v13 = vld [vmem:[%s989_s30 + $0xf8] sm:$0xff]  ;;  %v1076_v20 = vld [vmem:[%s1225_s3] ss:$0 sm:$0xff] }
  0x1b   : > { %v308_v5 = vmul.f32 %v991_v2, %v269_v60  ;;  %v316_v6 = vpack.c.bf16 %v290_v62, %v289_v61  ;;  %v324_v7 = vpack.c.bf16 %v306_v0, %v305_v63  ;;  %v293_v14 = vmul.f32 %v991_v2, %v254_v9  ;;  %v1081_v22 = vld [vmem:[%s1226_s4] ss:$0 sm:$0xff] }
  0x1c   : > { %v317_v8 = vpack.c.bf16 %v292_v3, %v291_v1  ;;  %v294_v15 = vmul.f32 %v991_v2, %v255_v10  ;;  %v309_v16 = vmul.f32 %v991_v2, %v270_v12  ;;  %v310_v17 = vmul.f32 %v991_v2, %v271_v13 }
  0x1d   : > { %v325_v11 = vpack.c.bf16 %v308_v5, %v307_v4 }
  0x1e   : > { %884 = vmatmul.mubr.msk.bf16.gmra.mrb[4].mxu0 %vm343_vm0, %v314_v49  ;;  %v318_v18 = vpack.c.bf16 %v294_v15, %v293_v14  ;;  %v326_v19 = vpack.c.bf16 %v310_v17, %v309_v16 }
  0x1f   : > { %900 = vmatmul.mubr.msk.bf16.gmra.mrb[4].mxu1 %vm343_vm0, %v322_v50  ;;  %887 = vmatprep.mubr.msk.bf16.mxu0 %vm343_vm0, %v315_v51 }
  0x20   : > { %903 = vmatprep.mubr.msk.bf16.mxu1 %vm343_vm0, %v323_v55 }
  0x26   : > { %888 = vmatmul.mubr.msk.bf16.gmra.mrb[8].mxu0 %vm343_vm0, %v316_v6 }
  0x27   : > { %904 = vmatmul.mubr.msk.bf16.gmra.mrb[8].mxu1 %vm343_vm0, %v324_v7  ;;  %891 = vmatprep.mubr.msk.bf16.mxu0 %vm343_vm0, %v317_v8 }
  0x28   : > { %907 = vmatprep.mubr.msk.bf16.mxu1 %vm343_vm0, %v325_v11 }
  0x2e   : > { %892 = vmatmul.mubr.msk.bf16.gmra.mrb[12].mxu0 %vm343_vm0, %v318_v18 }
  0x2f   : > { %908 = vmatmul.mubr.msk.bf16.gmra.mrb[12].mxu1 %vm343_vm0, %v326_v19 }
  0xe9   : > { %v881_v21 = vpop.f32.mrb[0].mxu0 }
  0xea   : > { %v562_v2 = vmul.f32 %v881_v21, %v1076_v20  ;;  %v897_v23 = vpop.f32.mrb[0].mxu1  ;;  %v426_v24 = vpop.f32.mrb[1].mxu0 }
  0xeb   : > { %v578_v25 = vmul.f32 %v897_v23, %v1076_v20  ;;  %v560_v26 = vmul.f32 %v1076_v20, %v426_v24  ;;  %v490_v27 = vpop.f32.mrb[1].mxu1  ;;  %v882_v28 = vpop.f32.mrb[2].mxu0 }
  0xec   : > { %v601_v29 = vadd.f32 %v1081_v22, %v562_v2  ;;  %v576_v30 = vmul.f32 %v1076_v20, %v490_v27  ;;  %v563_v31 = vmul.f32 %v882_v28, %v1076_v20  ;;  %v898_v32 = vpop.f32.mrb[2].mxu1  ;;  %v429_v33 = vpop.f32.mrb[3].mxu0 }
  0xed   : > { %v617_v34 = vadd.f32 %v1081_v22, %v578_v25  ;;  %v599_v35 = vadd.f32 %v1081_v22, %v560_v26  ;;  %v579_v36 = vmul.f32 %v898_v32, %v1076_v20  ;;  %v561_v37 = vmul.f32 %v1076_v20, %v429_v33  ;;  %v493_v38 = vpop.f32.mrb[3].mxu1 }
  0xee   : > { %vm633_vm1 = vcmp.gt.f32.partialorder %v601_v29, 0.0  ;;  %v665_v39 = vmul.f32 0.2, %v601_v29  ;;  %v615_v40 = vadd.f32 %v1081_v22, %v576_v30  ;;  %v602_v41 = vadd.f32 %v1081_v22, %v563_v31 }
  0xef   : > { %vm649_vm2 = vcmp.gt.f32.partialorder %v617_v34, 0.0  ;;  %v681_v42 = vmul.f32 0.2, %v617_v34  ;;  %vm631_vm3 = vcmp.gt.f32.partialorder %v599_v35, 0.0  ;;  %v663_v43 = vmul.f32 0.2, %v599_v35 }
  0xf0   : > { %v697_v44 = vsel %vm633_vm1, %v601_v29, %v665_v39  ;;  %vm647_vm4 = vcmp.gt.f32.partialorder %v615_v40, 0.0  ;;  %v679_v45 = vmul.f32 0.2, %v615_v40  ;;  %vm634_vm5 = vcmp.gt.f32.partialorder %v602_v41, 0.0 }
  0xf1   : > { %729 = vst.msk [vmem:[%s1098_s12 + $0x10] sm:$0xff] %vm343_vm0, %v697_v44  ;;  %v713_v46 = vsel %vm649_vm2, %v617_v34, %v681_v42  ;;  %v695_v47 = vsel %vm631_vm3, %v599_v35, %v663_v43  ;;  %v666_v48 = vmul.f32 0.2, %v602_v41  ;;  %v618_v49 = vadd.f32 %v1081_v22, %v579_v36  ;;  %v885_v50 = vpop.f32.mrb[4].mxu0 }
  0xf2   : > { %745 = vst.msk [vmem:[%s1098_s12 + $0x90] sm:$0xff] %vm343_vm0, %v713_v46  ;;  %727 = vst.msk [vmem:[%s1098_s12] sm:$0xff] %vm343_vm0, %v695_v47  ;;  %v711_v51 = vsel %vm647_vm4, %v615_v40, %v679_v45  ;;  %v600_v52 = vadd.f32 %v1081_v22, %v561_v37  ;;  %v577_v53 = vmul.f32 %v1076_v20, %v493_v38  ;;  %v901_v55 = vpop.f32.mrb[4].mxu1  ;;  %v442_v56 = vpop.f32.mrb[5].mxu0 }
  0xf3   : > { %v566_v54 = vmul.f32 %v885_v50, %v1076_v20  ;;  %743 = vst.msk [vmem:[%s1098_s12 + $0x80] sm:$0xff] %vm343_vm0, %v711_v51  ;;  %v698_v57 = vsel %vm634_vm5, %v602_v41, %v666_v48  ;;  %vm650_vm6 = vcmp.gt.f32.partialorder %v618_v49, 0.0  ;;  %v682_v58 = vmul.f32 0.2, %v618_v49  ;;  %v506_v60 = vpop.f32.mrb[5].mxu1  ;;  %v886_v61 = vpop.f32.mrb[6].mxu0 }
  0xf4   : > { %v582_v59 = vmul.f32 %v901_v55, %v1076_v20  ;;  %730 = vst.msk [vmem:[%s1098_s12 + $0x18] sm:$0xff] %vm343_vm0, %v698_v57  ;;  %vm632_vm7 = vcmp.gt.f32.partialorder %v600_v52, 0.0  ;;  %v664_v62 = vmul.f32 0.2, %v600_v52  ;;  %v616_v63 = vadd.f32 %v1081_v22, %v577_v53  ;;  %v902_v1 = vpop.f32.mrb[6].mxu1  ;;  %v445_v3 = vpop.f32.mrb[7].mxu0 }
  0xf5   : > { %v605_v0 = vadd.f32 %v1081_v22, %v566_v54  ;;  %v714_v4 = vsel %vm650_vm6, %v618_v49, %v682_v58  ;;  %v564_v6 = vmul.f32 %v1076_v20, %v442_v56  ;;  %v580_v7 = vmul.f32 %v1076_v20, %v506_v60  ;;  %v509_v8 = vpop.f32.mrb[7].mxu1 }
  0xf6   : > { %v621_v5 = vadd.f32 %v1081_v22, %v582_v59  ;;  %746 = vst.msk [vmem:[%s1098_s12 + $0x98] sm:$0xff] %vm343_vm0, %v714_v4  ;;  %v696_v9 = vsel %vm632_vm7, %v600_v52, %v664_v62  ;;  %vm648_vm8 = vcmp.gt.f32.partialorder %v616_v63, 0.0  ;;  %v680_v10 = vmul.f32 0.2, %v616_v63 }
  0xf7   : > { %vm637_vm9 = vcmp.gt.f32.partialorder %v605_v0, 0.0  ;;  %728 = vst.msk [vmem:[%s1098_s12 + $0x8] sm:$0xff] %vm343_vm0, %v696_v9  ;;  %v669_v11 = vmul.f32 0.2, %v605_v0  ;;  %v603_v13 = vadd.f32 %v1081_v22, %v564_v6  ;;  %v619_v15 = vadd.f32 %v1081_v22, %v580_v7 }
  0xf8   : > { %vm653_vm10 = vcmp.gt.f32.partialorder %v621_v5, 0.0  ;;  %v685_v12 = vmul.f32 0.2, %v621_v5  ;;  %v712_v14 = vsel %vm648_vm8, %v616_v63, %v680_v10  ;;  %v567_v16 = vmul.f32 %v886_v61, %v1076_v20 }
  0xf9   : > { %v583_v17 = vmul.f32 %v902_v1, %v1076_v20  ;;  %744 = vst.msk [vmem:[%s1098_s12 + $0x88] sm:$0xff] %vm343_vm0, %v712_v14  ;;  %v701_v18 = vsel %vm637_vm9, %v605_v0, %v669_v11  ;;  %vm635_vm11 = vcmp.gt.f32.partialorder %v603_v13, 0.0  ;;  %v667_v21 = vmul.f32 0.2, %v603_v13  ;;  %v889_v2 = vpop.f32.mrb[8].mxu0 }
  0xfa   : > { %v717_v19 = vsel %vm653_vm10, %v621_v5, %v685_v12  ;;  %733 = vst.msk [vmem:[%s1098_s12 + $0x30] sm:$0xff] %vm343_vm0, %v701_v18  ;;  %vm651_vm12 = vcmp.gt.f32.partialorder %v619_v15, 0.0  ;;  %v683_v23 = vmul.f32 0.2, %v619_v15  ;;  %v606_v24 = vadd.f32 %v1081_v22, %v567_v16  ;;  %v905_v26 = vpop.f32.mrb[8].mxu1  ;;  %v458_v27 = vpop.f32.mrb[9].mxu0 }
  0xfb   : > { %749 = vst.msk [vmem:[%s1098_s12 + $0xb0] sm:$0xff] %vm343_vm0, %v717_v19  ;;  %v622_v25 = vadd.f32 %v1081_v22, %v583_v17  ;;  %v699_v28 = vsel %vm635_vm11, %v603_v13, %v667_v21  ;;  %v565_v29 = vmul.f32 %v1076_v20, %v445_v3  ;;  %v581_v30 = vmul.f32 %v1076_v20, %v509_v8  ;;  %v522_v32 = vpop.f32.mrb[9].mxu1  ;;  %v890_v33 = vpop.f32.mrb[10].mxu0 }
  0xfc   : > { %v570_v31 = vmul.f32 %v889_v2, %v1076_v20  ;;  %731 = vst.msk [vmem:[%s1098_s12 + $0x20] sm:$0xff] %vm343_vm0, %v699_v28  ;;  %v715_v34 = vsel %vm651_vm12, %v619_v15, %v683_v23  ;;  %vm638_vm13 = vcmp.gt.f32.partialorder %v606_v24, 0.0  ;;  %v670_v35 = vmul.f32 0.2, %v606_v24  ;;  %v906_v36 = vpop.f32.mrb[10].mxu1  ;;  %v461_v37 = vpop.f32.mrb[11].mxu0 }
  0xfd   : > { %vm654_vm14 = vcmp.gt.f32.partialorder %v622_v25, 0.0  ;;  %747 = vst.msk [vmem:[%s1098_s12 + $0xa0] sm:$0xff] %vm343_vm0, %v715_v34  ;;  %v686_v38 = vmul.f32 0.2, %v622_v25  ;;  %v604_v39 = vadd.f32 %v1081_v22, %v565_v29  ;;  %v620_v40 = vadd.f32 %v1081_v22, %v581_v30  ;;  %v525_v42 = vpop.f32.mrb[11].mxu1 }
  0xfe   : > { %v609_v41 = vadd.f32 %v1081_v22, %v570_v31  ;;  %v702_v43 = vsel %vm638_vm13, %v606_v24, %v670_v35  ;;  %v586_v44 = vmul.f32 %v905_v26, %v1076_v20  ;;  %v568_v45 = vmul.f32 %v1076_v20, %v458_v27 }
  0xff   : > { %v584_v46 = vmul.f32 %v1076_v20, %v522_v32  ;;  %734 = vst.msk [vmem:[%s1098_s12 + $0x38] sm:$0xff] %vm343_vm0, %v702_v43  ;;  %v718_v47 = vsel %vm654_vm14, %v622_v25, %v686_v38  ;;  %vm636_vm15 = vcmp.gt.f32.partialorder %v604_v39, 0.0  ;;  %v668_v48 = vmul.f32 0.2, %v604_v39 }
 0x100   : > { %vm652_vm1 = vcmp.gt.f32.partialorder %v620_v40, 0.0  ;;  %750 = vst.msk [vmem:[%s1098_s12 + $0xb8] sm:$0xff] %vm343_vm0, %v718_v47  ;;  %v684_v49 = vmul.f32 0.2, %v620_v40  ;;  %vm641_vm2 = vcmp.gt.f32.partialorder %v609_v41, 0.0  ;;  %v625_v51 = vadd.f32 %v1081_v22, %v586_v44 }
 0x101   : > { %v673_v50 = vmul.f32 0.2, %v609_v41  ;;  %v700_v52 = vsel %vm636_vm15, %v604_v39, %v668_v48  ;;  %v607_v53 = vadd.f32 %v1081_v22, %v568_v45  ;;  %v623_v54 = vadd.f32 %v1081_v22, %v584_v46  ;;  %v893_v56 = vpop.f32.mrb[12].mxu0 }
 0x102   : > { %v571_v55 = vmul.f32 %v890_v33, %v1076_v20  ;;  %732 = vst.msk [vmem:[%s1098_s12 + $0x28] sm:$0xff] %vm343_vm0, %v700_v52  ;;  %v716_v57 = vsel %vm652_vm1, %v620_v40, %v684_v49  ;;  %vm657_vm3 = vcmp.gt.f32.partialorder %v625_v51, 0.0  ;;  %v689_v59 = vmul.f32 0.2, %v625_v51  ;;  %v909_v60 = vpop.f32.mrb[12].mxu1  ;;  %v474_v61 = vpop.f32.mrb[13].mxu0 }
 0x103   : > { %v705_v58 = vsel %vm641_vm2, %v609_v41, %v673_v50  ;;  %748 = vst.msk [vmem:[%s1098_s12 + $0xa8] sm:$0xff] %vm343_vm0, %v716_v57  ;;  %vm639_vm4 = vcmp.gt.f32.partialorder %v607_v53, 0.0  ;;  %v671_v62 = vmul.f32 0.2, %v607_v53  ;;  %vm655_vm5 = vcmp.gt.f32.partialorder %v623_v54, 0.0  ;;  %v538_v5 = vpop.f32.mrb[13].mxu1 }
 0x104   : > { %737 = vst.msk [vmem:[%s1098_s12 + $0x50] sm:$0xff] %vm343_vm0, %v705_v58  ;;  %v687_v63 = vmul.f32 0.2, %v623_v54  ;;  %v721_v0 = vsel %vm657_vm3, %v625_v51, %v689_v59  ;;  %v610_v1 = vadd.f32 %v1081_v22, %v571_v55  ;;  %v587_v3 = vmul.f32 %v906_v36, %v1076_v20  ;;  %v894_v6 = vpop.f32.mrb[14].mxu0  ;;  %v910_v11 = vpop.f32.mrb[14].mxu1 }
 0x105   : > { %v569_v4 = vmul.f32 %v1076_v20, %v461_v37  ;;  %753 = vst.msk [vmem:[%s1098_s12 + $0xd0] sm:$0xff] %vm343_vm0, %v721_v0  ;;  %v703_v7 = vsel %vm639_vm4, %v607_v53, %v671_v62  ;;  %v585_v9 = vmul.f32 %v1076_v20, %v525_v42  ;;  %v574_v10 = vmul.f32 %v893_v56, %v1076_v20  ;;  %v477_v12 = vpop.f32.mrb[15].mxu0  ;;  %v541_v16 = vpop.f32.mrb[15].mxu1 }
 0x106   : > { %v719_v8 = vsel %vm655_vm5, %v623_v54, %v687_v63  ;;  %735 = vst.msk [vmem:[%s1098_s12 + $0x40] sm:$0xff] %vm343_vm0, %v703_v7  ;;  %vm642_vm6 = vcmp.gt.f32.partialorder %v610_v1, 0.0  ;;  %v674_v13 = vmul.f32 0.2, %v610_v1  ;;  %v626_v14 = vadd.f32 %v1081_v22, %v587_v3 }
 0x107   : > { %751 = vst.msk [vmem:[%s1098_s12 + $0xc0] sm:$0xff] %vm343_vm0, %v719_v8  ;;  %v608_v15 = vadd.f32 %v1081_v22, %v569_v4  ;;  %v624_v17 = vadd.f32 %v1081_v22, %v585_v9  ;;  %v613_v18 = vadd.f32 %v1081_v22, %v574_v10  ;;  %v590_v19 = vmul.f32 %v909_v60, %v1076_v20 }
 0x108   : > { %v572_v21 = vmul.f32 %v1076_v20, %v474_v61  ;;  %v706_v2 = vsel %vm642_vm6, %v610_v1, %v674_v13  ;;  %vm658_vm7 = vcmp.gt.f32.partialorder %v626_v14, 0.0  ;;  %v690_v23 = vmul.f32 0.2, %v626_v14 }
 0x109   : > { %vm640_vm8 = vcmp.gt.f32.partialorder %v608_v15, 0.0  ;;  %738 = vst.msk [vmem:[%s1098_s12 + $0x58] sm:$0xff] %vm343_vm0, %v706_v2  ;;  %v672_v24 = vmul.f32 0.2, %v608_v15  ;;  %vm656_vm9 = vcmp.gt.f32.partialorder %v624_v17, 0.0  ;;  %vm645_vm10 = vcmp.gt.f32.partialorder %v613_v18, 0.0 }
 0x10a   : > { %v688_v25 = vmul.f32 0.2, %v624_v17  ;;  %v722_v26 = vsel %vm658_vm7, %v626_v14, %v690_v23  ;;  %v677_v27 = vmul.f32 0.2, %v613_v18  ;;  %v629_v28 = vadd.f32 %v1081_v22, %v590_v19 }
 0x10b   : > { %v611_v29 = vadd.f32 %v1081_v22, %v572_v21  ;;  %754 = vst.msk [vmem:[%s1098_s12 + $0xd8] sm:$0xff] %vm343_vm0, %v722_v26  ;;  %v704_v30 = vsel %vm640_vm8, %v608_v15, %v672_v24  ;;  %v588_v32 = vmul.f32 %v1076_v20, %v538_v5  ;;  %v575_v33 = vmul.f32 %v894_v6, %v1076_v20 }
 0x10c   : > { %v720_v31 = vsel %vm656_vm9, %v624_v17, %v688_v25  ;;  %736 = vst.msk [vmem:[%s1098_s12 + $0x48] sm:$0xff] %vm343_vm0, %v704_v30  ;;  %v709_v34 = vsel %vm645_vm10, %v613_v18, %v677_v27  ;;  %vm661_vm11 = vcmp.gt.f32.partialorder %v629_v28, 0.0  ;;  %v693_v35 = vmul.f32 0.2, %v629_v28 }
 0x10d   : > { %752 = vst.msk [vmem:[%s1098_s12 + $0xc8] sm:$0xff] %vm343_vm0, %v720_v31  ;;  %vm643_vm12 = vcmp.gt.f32.partialorder %v611_v29, 0.0  ;;  %741 = vst.msk [vmem:[%s1098_s12 + $0x70] sm:$0xff] %vm343_vm0, %v709_v34  ;;  %v675_v36 = vmul.f32 0.2, %v611_v29  ;;  %v627_v37 = vadd.f32 %v1081_v22, %v588_v32  ;;  %v614_v38 = vadd.f32 %v1081_v22, %v575_v33 }
 0x10e   : > { %v591_v39 = vmul.f32 %v910_v11, %v1076_v20  ;;  %v725_v40 = vsel %vm661_vm11, %v629_v28, %v693_v35  ;;  %v573_v41 = vmul.f32 %v1076_v20, %v477_v12  ;;  %v589_v42 = vmul.f32 %v1076_v20, %v541_v16 }
 0x10f   : > { %757 = vst.msk [vmem:[%s1098_s12 + $0xf0] sm:$0xff] %vm343_vm0, %v725_v40  ;;  %v707_v43 = vsel %vm643_vm12, %v611_v29, %v675_v36  ;;  %vm659_vm13 = vcmp.gt.f32.partialorder %v627_v37, 0.0  ;;  %v691_v44 = vmul.f32 0.2, %v627_v37  ;;  %vm646_vm14 = vcmp.gt.f32.partialorder %v614_v38, 0.0 }
 0x110   : > { %739 = vst.msk [vmem:[%s1098_s12 + $0x60] sm:$0xff] %vm343_vm0, %v707_v43  ;;  %v678_v45 = vmul.f32 0.2, %v614_v38  ;;  %v630_v46 = vadd.f32 %v1081_v22, %v591_v39  ;;  %v612_v47 = vadd.f32 %v1081_v22, %v573_v41  ;;  %v628_v48 = vadd.f32 %v1081_v22, %v589_v42 }
 0x111   : > { %v723_v20 = vsel %vm659_vm13, %v627_v37, %v691_v44 }
 0x112   : > { %755 = vst.msk [vmem:[%s1098_s12 + $0xe0] sm:$0xff] %vm343_vm0, %v723_v20  ;;  %v710_v49 = vsel %vm646_vm14, %v614_v38, %v678_v45  ;;  %vm662_vm15 = vcmp.gt.f32.partialorder %v630_v46, 0.0  ;;  %v694_v50 = vmul.f32 0.2, %v630_v46  ;;  %vm644_vm1 = vcmp.gt.f32.partialorder %v612_v47, 0.0 }
 0x113   : > { %742 = vst.msk [vmem:[%s1098_s12 + $0x78] sm:$0xff] %vm343_vm0, %v710_v49  ;;  %v676_v51 = vmul.f32 0.2, %v612_v47  ;;  %vm660_vm2 = vcmp.gt.f32.partialorder %v628_v48, 0.0  ;;  %v692_v52 = vmul.f32 0.2, %v628_v48 }
 0x114   : > { %v726_v53 = vsel %vm662_vm15, %v630_v46, %v694_v50 }
 0x115   : > { %758 = vst.msk [vmem:[%s1098_s12 + $0xf8] sm:$0xff] %vm343_vm0, %v726_v53  ;;  %v708_v54 = vsel %vm644_vm1, %v612_v47, %v676_v51  ;;  %v724_v55 = vsel %vm660_vm2, %v628_v48, %v692_v52 }
 0x116   : > { %740 = vst.msk [vmem:[%s1098_s12 + $0x68] sm:$0xff] %vm343_vm0, %v708_v54  ;;  %756 = vst.msk [vmem:[%s1098_s12 + $0xe8] sm:$0xff] %vm343_vm0, %v724_v55 }
 0x117 PF: > { %s15_s18 = sadd.s32 1, %s931_s18  }
 0x118   : > { %p12_p4 = scmp.ge.s32.totalorder %s15_s18, 4  }
 0x11a   :  { %14 = sbr.rel (!%p12_p4) target bundleno = 1 (0x1), region = 73 }

// kernel: stim_forward.6
= control target key start
LH: loop header
LB: loop body
LE: loop exit
PB: predicated region body
PF: predicated region fallthrough
CT: control target
= control target key end

     0   :  { %vm104_vm0 = vcmask 523264   ;;  %s1065_s1 = inlined_call_operand.vmem [shape: bf16[64,64], index: 1, kind: input, shape index: {}]   ;;  %s1066_s0 = inlined_call_operand.vmem [shape: f32[288,64], index: 0, kind: input, shape index: {}]   ;;  %s1067_s2 = inlined_call_operand.vmem [shape: f32[1,64], index: 2, kind: input, shape index: {}]   ;;  %s1068_s3 = inlined_call_operand.vmem [shape: f32[1,64], index: 3, kind: input, shape index: {}]   ;;  %s1069_s4 = inlined_call_operand.vmem [shape: f32[288,64], index: 4, kind: output, shape index: {}]  }
   0x1   :  { %v668_v0 = vld [vmem:[%s1065_s1] sm:$0xff]   ;;  %v669_v1 = vld [vmem:[%s1065_s1 + $0x8] sm:$0xff]   ;;  %v670_v2 = vld [vmem:[%s1065_s1 + $0x10] sm:$0xff]  }
   0x2   :  { %616 = vmatprep.subr.bf16.mxu0 %v668_v0  ;;  %660 = vmatprep.subr.bf16.mxu1 %v668_v0  ;;  %v18_v3 = vld [vmem:[%s1066_s0] sm:$0xff]  ;;  %v19_v4 = vld [vmem:[%s1066_s0 + $0x8] sm:$0xff]  ;;  %v671_v9 = vld [vmem:[%s1065_s1 + $0x18] sm:$0xff]  }
   0x3   :  { %617 = vmatpush3.bf16.msra.mxu0 %v668_v0  ;;  %664 = vmatpush3.bf16.msra.mxu1 %v668_v0  ;;  %v54_v5 = vpack.c.bf16 %v19_v4, %v18_v3  ;;  %v38_v6 = vld [vmem:[%s1066_s0 + $0xa0] sm:$0xff]  ;;  %v39_v7 = vld [vmem:[%s1066_s0 + $0xa8] sm:$0xff]  ;;  %v20_v10 = vld [vmem:[%s1066_s0 + $0x10] sm:$0xff] }
   0x4   :  { %618 = vmatprep.subr.bf16.mxu0 %v669_v1  ;;  %661 = vmatprep.subr.bf16.mxu1 %v669_v1  ;;  %v64_v8 = vpack.c.bf16 %v39_v7, %v38_v6  ;;  %v21_v11 = vld [vmem:[%s1066_s0 + $0x18] sm:$0xff]  ;;  %v40_v12 = vld [vmem:[%s1066_s0 + $0xb0] sm:$0xff]  ;;  %v22_v14 = vld [vmem:[%s1066_s0 + $0x20] sm:$0xff] }
   0x5   :  { %624 = vmatprep.mubr.msk.bf16.mxu0 %vm104_vm0, %v54_v5  ;;  %v41_v13 = vld [vmem:[%s1066_s0 + $0xb8] sm:$0xff]  ;;  %v23_v15 = vld [vmem:[%s1066_s0 + $0x28] sm:$0xff]  ;;  %v42_v16 = vld [vmem:[%s1066_s0 + $0xc0] sm:$0xff]  ;;  %v55_v18 = vpack.c.bf16 %v21_v11, %v20_v10 }
   0x6   :  { %644 = vmatprep.mubr.msk.bf16.mxu1 %vm104_vm0, %v64_v8  ;;  %v43_v17 = vld [vmem:[%s1066_s0 + $0xc8] sm:$0xff]  ;;  %v65_v19 = vpack.c.bf16 %v41_v13, %v40_v12  ;;  %v56_v20 = vpack.c.bf16 %v23_v15, %v22_v14  ;;  %v24_v22 = vld [vmem:[%s1066_s0 + $0x30] sm:$0xff]  ;;  %v25_v23 = vld [vmem:[%s1066_s0 + $0x38] sm:$0xff] }
   0x7   :  { %619 = vmatpush3.bf16.msra.mxu0 %v669_v1  ;;  %665 = vmatpush3.bf16.msra.mxu1 %v669_v1  ;;  %v66_v21 = vpack.c.bf16 %v43_v17, %v42_v16  ;;  %v44_v24 = vld [vmem:[%s1066_s0 + $0xd0] sm:$0xff]  ;;  %v45_v25 = vld [vmem:[%s1066_s0 + $0xd8] sm:$0xff]  ;;  %v26_v26 = vld [vmem:[%s1066_s0 + $0x40] sm:$0xff]  ;;  %v57_v30 = vpack.c.bf16 %v25_v23, %v24_v22 }
   0x8   :  { %620 = vmatprep.subr.bf16.mxu0 %v670_v2  ;;  %662 = vmatprep.subr.bf16.mxu1 %v670_v2  ;;  %v27_v27 = vld [vmem:[%s1066_s0 + $0x48] sm:$0xff]  ;;  %v46_v28 = vld [vmem:[%s1066_s0 + $0xe0] sm:$0xff]  ;;  %v67_v31 = vpack.c.bf16 %v45_v25, %v44_v24  ;;  %v28_v34 = vld [vmem:[%s1066_s0 + $0x50] sm:$0xff] }
   0x9   :  { %v47_v29 = vld [vmem:[%s1066_s0 + $0xe8] sm:$0xff]  ;;  %v58_v32 = vpack.c.bf16 %v27_v27, %v26_v26  ;;  %v29_v35 = vld [vmem:[%s1066_s0 + $0x58] sm:$0xff]  ;;  %v48_v36 = vld [vmem:[%s1066_s0 + $0xf0] sm:$0xff] }
   0xa   :  { %v68_v33 = vpack.c.bf16 %v47_v29, %v46_v28  ;;  %v49_v37 = vld [vmem:[%s1066_s0 + $0xf8] sm:$0xff]  ;;  %v30_v38 = vld [vmem:[%s1066_s0 + $0x60] sm:$0xff]  ;;  %v31_v39 = vld [vmem:[%s1066_s0 + $0x68] sm:$0xff]  ;;  %v59_v42 = vpack.c.bf16 %v29_v35, %v28_v34 }
   0xb   :  { %621 = vmatpush3.bf16.msra.mxu0 %v670_v2  ;;  %666 = vmatpush3.bf16.msra.mxu1 %v670_v2  ;;  %v50_v40 = vld [vmem:[%s1066_s0 + $0x100] sm:$0xff]  ;;  %v51_v41 = vld [vmem:[%s1066_s0 + $0x108] sm:$0xff]  ;;  %v69_v43 = vpack.c.bf16 %v49_v37, %v48_v36  ;;  %v60_v44 = vpack.c.bf16 %v31_v39, %v30_v38  ;;  %v32_v46 = vld [vmem:[%s1066_s0 + $0x70] sm:$0xff] }
   0xc   :  { %622 = vmatprep.subr.bf16.mxu0 %v671_v9  ;;  %663 = vmatprep.subr.bf16.mxu1 %v671_v9  ;;  %v70_v45 = vpack.c.bf16 %v51_v41, %v50_v40  ;;  %v33_v47 = vld [vmem:[%s1066_s0 + $0x78] sm:$0xff]  ;;  %v52_v48 = vld [vmem:[%s1066_s0 + $0x110] sm:$0xff]  ;;  %v34_v50 = vld [vmem:[%s1066_s0 + $0x80] sm:$0xff] }
   0xd   :  { %v53_v49 = vld [vmem:[%s1066_s0 + $0x118] sm:$0xff]  ;;  %v35_v51 = vld [vmem:[%s1066_s0 + $0x88] sm:$0xff]  ;;  %v61_v52 = vpack.c.bf16 %v33_v47, %v32_v46  ;;  %v36_v55 = vld [vmem:[%s1066_s0 + $0x90] sm:$0xff] }
   0xe   :  { %v71_v53 = vpack.c.bf16 %v53_v49, %v52_v48  ;;  %v62_v54 = vpack.c.bf16 %v35_v51, %v34_v50  ;;  %v37_v56 = vld [vmem:[%s1066_s0 + $0x98] sm:$0xff]  ;;  %v838_v58 = vld [vmem:[%s1067_s2] ss:$0 sm:$0xff] }
   0xf   :  { %623 = vmatpush3.bf16.msra.mxu0 %v671_v9  ;;  %667 = vmatpush3.bf16.msra.mxu1 %v671_v9  ;;  %v63_v57 = vpack.c.bf16 %v37_v56, %v36_v55  ;;  %v843_v60 = vld [vmem:[%s1068_s3] ss:$0 sm:$0xff] }
  0x12   :  { %625 = vmatmul.mubr.msk.bf16.vlgmr.msra.gmra.mrb[0].mxu0 %vm104_vm0, %v55_v18  ;;  %645 = vmatmul.mubr.msk.bf16.vlgmr.msra.gmra.mrb[0].mxu1 %vm104_vm0, %v65_v19 }
  0x13   :  { %628 = vmatprep.mubr.msk.bf16.mxu0 %vm104_vm0, %v56_v20  ;;  %648 = vmatprep.mubr.msk.bf16.mxu1 %vm104_vm0, %v66_v21 }
  0x1a   :  { %629 = vmatmul.mubr.msk.bf16.gmra.mrb[4].mxu0 %vm104_vm0, %v57_v30  ;;  %649 = vmatmul.mubr.msk.bf16.gmra.mrb[4].mxu1 %vm104_vm0, %v67_v31 }
  0x1b   :  { %632 = vmatprep.mubr.msk.bf16.mxu0 %vm104_vm0, %v58_v32  ;;  %652 = vmatprep.mubr.msk.bf16.mxu1 %vm104_vm0, %v68_v33 }
  0x22   :  { %633 = vmatmul.mubr.msk.bf16.gmra.mrb[8].mxu0 %vm104_vm0, %v59_v42  ;;  %653 = vmatmul.mubr.msk.bf16.gmra.mrb[8].mxu1 %vm104_vm0, %v69_v43 }
  0x23   :  { %636 = vmatprep.mubr.msk.bf16.mxu0 %vm104_vm0, %v60_v44  ;;  %656 = vmatprep.mubr.msk.bf16.mxu1 %vm104_vm0, %v70_v45 }
  0x2a   :  { %637 = vmatmul.mubr.msk.bf16.gmra.mrb[12].mxu0 %vm104_vm0, %v61_v52  ;;  %657 = vmatmul.mubr.msk.bf16.gmra.mrb[12].mxu1 %vm104_vm0, %v71_v53 }
  0x2b   :  { %640 = vmatprep.mubr.msk.bf16.mxu0 %vm104_vm0, %v62_v54 }
  0x32   :  { %641 = vmatmul.mubr.msk.bf16.gmra.mrb[16].mxu0 %vm104_vm0, %v63_v57 }
  0xe5   :  { %v626_v59 = vpop.f32.mrb[0].mxu0  ;;  %v646_v61 = vpop.f32.mrb[0].mxu1 }
  0xe6   :  { %v345_v62 = vmul.f32 %v626_v59, %v838_v58  ;;  %v193_v63 = vpop.f32.mrb[1].mxu0  ;;  %v365_v0 = vmul.f32 %v646_v61, %v838_v58  ;;  %v273_v1 = vpop.f32.mrb[1].mxu1 }
  0xe7   :  { %v343_v2 = vmul.f32 %v838_v58, %v193_v63  ;;  %v627_v3 = vpop.f32.mrb[2].mxu0  ;;  %v363_v4 = vmul.f32 %v838_v58, %v273_v1  ;;  %v647_v5 = vpop.f32.mrb[2].mxu1 }
  0xe8   :  { %v388_v6 = vadd.f32 %v843_v60, %v345_v62  ;;  %v346_v7 = vmul.f32 %v627_v3, %v838_v58  ;;  %v196_v8 = vpop.f32.mrb[3].mxu0  ;;  %v408_v9 = vadd.f32 %v843_v60, %v365_v0  ;;  %v366_v10 = vmul.f32 %v647_v5, %v838_v58  ;;  %v276_v11 = vpop.f32.mrb[3].mxu1 }
  0xe9   :  { %v386_v12 = vadd.f32 %v843_v60, %v343_v2  ;;  %v344_v13 = vmul.f32 %v838_v58, %v196_v8  ;;  %v406_v14 = vadd.f32 %v843_v60, %v363_v4  ;;  %v364_v15 = vmul.f32 %v838_v58, %v276_v11 }
  0xea   :  { %vm424_vm1 = vcmp.gt.f32.partialorder %v388_v6, 0.0  ;;  %v460_v16 = vmul.f32 0.2, %v388_v6  ;;  %v389_v17 = vadd.f32 %v843_v60, %v346_v7  ;;  %vm444_vm2 = vcmp.gt.f32.partialorder %v408_v9, 0.0 }
  0xeb   :  { %vm422_vm3 = vcmp.gt.f32.partialorder %v386_v12, 0.0  ;;  %v458_v18 = vmul.f32 0.2, %v386_v12  ;;  %v387_v19 = vadd.f32 %v843_v60, %v344_v13  ;;  %v480_v20 = vmul.f32 0.2, %v408_v9 }
  0xec   :  { %v496_v21 = vsel %vm424_vm1, %v388_v6, %v460_v16  ;;  %vm425_vm4 = vcmp.gt.f32.partialorder %v389_v17, 0.0  ;;  %v461_v22 = vmul.f32 0.2, %v389_v17  ;;  %vm442_vm5 = vcmp.gt.f32.partialorder %v406_v14, 0.0 }
  0xed   :  { %532 = vst.msk [vmem:[%s1069_s4 + $0x10] sm:$0xff] %vm104_vm0, %v496_v21  ;;  %v494_v23 = vsel %vm422_vm3, %v386_v12, %v458_v18  ;;  %vm423_vm6 = vcmp.gt.f32.partialorder %v387_v19, 0.0  ;;  %v459_v24 = vmul.f32 0.2, %v387_v19  ;;  %v516_v25 = vsel %vm444_vm2, %v408_v9, %v480_v20  ;;  %v630_v26 = vpop.f32.mrb[4].mxu0  ;;  %v650_v27 = vpop.f32.mrb[4].mxu1 }
  0xee   :  { %530 = vst.msk [vmem:[%s1069_s4] sm:$0xff] %vm104_vm0, %v494_v23  ;;  %v497_v28 = vsel %vm425_vm4, %v389_v17, %v461_v22  ;;  %552 = vst.msk [vmem:[%s1069_s4 + $0xb0] sm:$0xff] %vm104_vm0, %v516_v25  ;;  %v478_v29 = vmul.f32 0.2, %v406_v14  ;;  %v409_v30 = vadd.f32 %v843_v60, %v366_v10  ;;  %v407_v31 = vadd.f32 %v843_v60, %v364_v15  ;;  %v209_v32 = vpop.f32.mrb[5].mxu0  ;;  %v289_v33 = vpop.f32.mrb[5].mxu1 }
  0xef   :  { %533 = vst.msk [vmem:[%s1069_s4 + $0x18] sm:$0xff] %vm104_vm0, %v497_v28  ;;  %v495_v34 = vsel %vm423_vm6, %v387_v19, %v459_v24  ;;  %v349_v35 = vmul.f32 %v630_v26, %v838_v58  ;;  %v347_v36 = vmul.f32 %v838_v58, %v209_v32  ;;  %v631_v37 = vpop.f32.mrb[6].mxu0  ;;  %v369_v38 = vmul.f32 %v650_v27, %v838_v58  ;;  %v651_v39 = vpop.f32.mrb[6].mxu1 }
  0xf0   :  { %531 = vst.msk [vmem:[%s1069_s4 + $0x8] sm:$0xff] %vm104_vm0, %v495_v34  ;;  %v514_v40 = vsel %vm442_vm5, %v406_v14, %v478_v29  ;;  %vm445_vm7 = vcmp.gt.f32.partialorder %v409_v30, 0.0  ;;  %v481_v41 = vmul.f32 0.2, %v409_v30  ;;  %vm443_vm8 = vcmp.gt.f32.partialorder %v407_v31, 0.0  ;;  %v212_v42 = vpop.f32.mrb[7].mxu0 }
  0xf1   :  { %v292_v43 = vpop.f32.mrb[7].mxu1  ;;  %550 = vst.msk [vmem:[%s1069_s4 + $0xa0] sm:$0xff] %vm104_vm0, %v514_v40  ;;  %v479_v44 = vmul.f32 0.2, %v407_v31  ;;  %v392_v45 = vadd.f32 %v843_v60, %v349_v35  ;;  %v390_v46 = vadd.f32 %v843_v60, %v347_v36  ;;  %v350_v47 = vmul.f32 %v631_v37, %v838_v58 }
  0xf2   :  { %v517_v48 = vsel %vm445_vm7, %v409_v30, %v481_v41  ;;  %v348_v49 = vmul.f32 %v838_v58, %v212_v42  ;;  %v412_v50 = vadd.f32 %v843_v60, %v369_v38  ;;  %v367_v51 = vmul.f32 %v838_v58, %v289_v33 }
  0xf3   :  { %553 = vst.msk [vmem:[%s1069_s4 + $0xb8] sm:$0xff] %vm104_vm0, %v517_v48  ;;  %v515_v52 = vsel %vm443_vm8, %v407_v31, %v479_v44  ;;  %vm428_vm9 = vcmp.gt.f32.partialorder %v392_v45, 0.0  ;;  %v464_v53 = vmul.f32 0.2, %v392_v45  ;;  %vm426_vm10 = vcmp.gt.f32.partialorder %v390_v46, 0.0 }
  0xf4   :  { %551 = vst.msk [vmem:[%s1069_s4 + $0xa8] sm:$0xff] %vm104_vm0, %v515_v52  ;;  %v462_v54 = vmul.f32 0.2, %v390_v46  ;;  %v393_v55 = vadd.f32 %v843_v60, %v350_v47  ;;  %v391_v56 = vadd.f32 %v843_v60, %v348_v49  ;;  %vm448_vm11 = vcmp.gt.f32.partialorder %v412_v50, 0.0 }
  0xf5   :  { %v500_v57 = vsel %vm428_vm9, %v392_v45, %v464_v53  ;;  %v484_v59 = vmul.f32 0.2, %v412_v50  ;;  %v410_v61 = vadd.f32 %v843_v60, %v367_v51  ;;  %v370_v62 = vmul.f32 %v651_v39, %v838_v58  ;;  %v634_v63 = vpop.f32.mrb[8].mxu0  ;;  %v654_v0 = vpop.f32.mrb[8].mxu1 }
  0xf6   :  { %536 = vst.msk [vmem:[%s1069_s4 + $0x30] sm:$0xff] %vm104_vm0, %v500_v57  ;;  %v498_v1 = vsel %vm426_vm10, %v390_v46, %v462_v54  ;;  %vm429_vm12 = vcmp.gt.f32.partialorder %v393_v55, 0.0  ;;  %v465_v2 = vmul.f32 0.2, %v393_v55  ;;  %vm427_vm13 = vcmp.gt.f32.partialorder %v391_v56, 0.0  ;;  %v225_v3 = vpop.f32.mrb[9].mxu0 }
  0xf7   :  { %v305_v4 = vpop.f32.mrb[9].mxu1  ;;  %534 = vst.msk [vmem:[%s1069_s4 + $0x20] sm:$0xff] %vm104_vm0, %v498_v1  ;;  %v463_v5 = vmul.f32 0.2, %v391_v56  ;;  %v520_v6 = vsel %vm448_vm11, %v412_v50, %v484_v59  ;;  %vm446_vm14 = vcmp.gt.f32.partialorder %v410_v61, 0.0  ;;  %v635_v8 = vpop.f32.mrb[10].mxu0  ;;  %v413_v10 = vadd.f32 %v843_v60, %v370_v62 }
  0xf8   :  { %v482_v7 = vmul.f32 0.2, %v410_v61  ;;  %v501_v9 = vsel %vm429_vm12, %v393_v55, %v465_v2  ;;  %556 = vst.msk [vmem:[%s1069_s4 + $0xd0] sm:$0xff] %vm104_vm0, %v520_v6  ;;  %v368_v11 = vmul.f32 %v838_v58, %v292_v43  ;;  %v353_v12 = vmul.f32 %v634_v63, %v838_v58  ;;  %v228_v13 = vpop.f32.mrb[11].mxu0  ;;  %v655_v14 = vpop.f32.mrb[10].mxu1 }
  0xf9   :  { %537 = vst.msk [vmem:[%s1069_s4 + $0x38] sm:$0xff] %vm104_vm0, %v501_v9  ;;  %v499_v15 = vsel %vm427_vm13, %v391_v56, %v463_v5  ;;  %v351_v17 = vmul.f32 %v838_v58, %v225_v3  ;;  %v354_v18 = vmul.f32 %v635_v8, %v838_v58  ;;  %v308_v19 = vpop.f32.mrb[11].mxu1  ;;  %vm449_vm15 = vcmp.gt.f32.partialorder %v413_v10, 0.0 }
  0xfa   :  { %v518_v16 = vsel %vm446_vm14, %v410_v61, %v482_v7  ;;  %535 = vst.msk [vmem:[%s1069_s4 + $0x28] sm:$0xff] %vm104_vm0, %v499_v15  ;;  %v485_v20 = vmul.f32 0.2, %v413_v10  ;;  %v411_v21 = vadd.f32 %v843_v60, %v368_v11  ;;  %v396_v22 = vadd.f32 %v843_v60, %v353_v12 }
  0xfb   :  { %554 = vst.msk [vmem:[%s1069_s4 + $0xc0] sm:$0xff] %vm104_vm0, %v518_v16  ;;  %v394_v23 = vadd.f32 %v843_v60, %v351_v17  ;;  %v397_v24 = vadd.f32 %v843_v60, %v354_v18  ;;  %v352_v25 = vmul.f32 %v838_v58, %v228_v13  ;;  %v373_v26 = vmul.f32 %v654_v0, %v838_v58 }
  0xfc   :  { %v521_v27 = vsel %vm449_vm15, %v413_v10, %v485_v20  ;;  %vm447_vm1 = vcmp.gt.f32.partialorder %v411_v21, 0.0  ;;  %v483_v28 = vmul.f32 0.2, %v411_v21  ;;  %vm432_vm2 = vcmp.gt.f32.partialorder %v396_v22, 0.0 }
  0xfd   :  { %557 = vst.msk [vmem:[%s1069_s4 + $0xd8] sm:$0xff] %vm104_vm0, %v521_v27  ;;  %v468_v29 = vmul.f32 0.2, %v396_v22  ;;  %vm430_vm3 = vcmp.gt.f32.partialorder %v394_v23, 0.0  ;;  %v466_v30 = vmul.f32 0.2, %v394_v23  ;;  %v395_v33 = vadd.f32 %v843_v60, %v352_v25 }
  0xfe   :  { %vm433_vm4 = vcmp.gt.f32.partialorder %v397_v24, 0.0  ;;  %v519_v31 = vsel %vm447_vm1, %v411_v21, %v483_v28  ;;  %v469_v32 = vmul.f32 0.2, %v397_v24  ;;  %v416_v34 = vadd.f32 %v843_v60, %v373_v26  ;;  %v638_v35 = vpop.f32.mrb[12].mxu0  ;;  %v658_v36 = vpop.f32.mrb[12].mxu1 }
  0xff   :  { %555 = vst.msk [vmem:[%s1069_s4 + $0xc8] sm:$0xff] %vm104_vm0, %v519_v31  ;;  %v504_v37 = vsel %vm432_vm2, %v396_v22, %v468_v29  ;;  %v502_v38 = vsel %vm430_vm3, %v394_v23, %v466_v30  ;;  %v371_v39 = vmul.f32 %v838_v58, %v305_v4  ;;  %v374_v40 = vmul.f32 %v655_v14, %v838_v58  ;;  %v241_v41 = vpop.f32.mrb[13].mxu0  ;;  %v321_v42 = vpop.f32.mrb[13].mxu1 }
 0x100   :  { %540 = vst.msk [vmem:[%s1069_s4 + $0x50] sm:$0xff] %vm104_vm0, %v504_v37  ;;  %538 = vst.msk [vmem:[%s1069_s4 + $0x40] sm:$0xff] %vm104_vm0, %v502_v38  ;;  %v505_v43 = vsel %vm433_vm4, %v397_v24, %v469_v32  ;;  %vm431_vm5 = vcmp.gt.f32.partialorder %v395_v33, 0.0  ;;  %v467_v44 = vmul.f32 0.2, %v395_v33  ;;  %vm452_vm6 = vcmp.gt.f32.partialorder %v416_v34, 0.0 }
 0x101   :  { %v639_v45 = vpop.f32.mrb[14].mxu0  ;;  %v659_v46 = vpop.f32.mrb[14].mxu1  ;;  %541 = vst.msk [vmem:[%s1069_s4 + $0x58] sm:$0xff] %vm104_vm0, %v505_v43  ;;  %v488_v47 = vmul.f32 0.2, %v416_v34  ;;  %v414_v48 = vadd.f32 %v843_v60, %v371_v39  ;;  %v417_v49 = vadd.f32 %v843_v60, %v374_v40  ;;  %v372_v50 = vmul.f32 %v838_v58, %v308_v19 }
 0x102   :  { %v244_v51 = vpop.f32.mrb[15].mxu0  ;;  %v324_v52 = vpop.f32.mrb[15].mxu1  ;;  %v503_v53 = vsel %vm431_vm5, %v395_v33, %v467_v44  ;;  %v357_v54 = vmul.f32 %v638_v35, %v838_v58  ;;  %v355_v55 = vmul.f32 %v838_v58, %v241_v41  ;;  %v358_v56 = vmul.f32 %v639_v45, %v838_v58 }
 0x103   :  { %539 = vst.msk [vmem:[%s1069_s4 + $0x48] sm:$0xff] %vm104_vm0, %v503_v53  ;;  %v524_v57 = vsel %vm452_vm6, %v416_v34, %v488_v47  ;;  %vm450_vm7 = vcmp.gt.f32.partialorder %v414_v48, 0.0  ;;  %v486_v59 = vmul.f32 0.2, %v414_v48  ;;  %vm453_vm8 = vcmp.gt.f32.partialorder %v417_v49, 0.0 }
 0x104   :  { %560 = vst.msk [vmem:[%s1069_s4 + $0xf0] sm:$0xff] %vm104_vm0, %v524_v57  ;;  %v489_v61 = vmul.f32 0.2, %v417_v49  ;;  %v415_v62 = vadd.f32 %v843_v60, %v372_v50  ;;  %v400_v63 = vadd.f32 %v843_v60, %v357_v54  ;;  %v398_v0 = vadd.f32 %v843_v60, %v355_v55 }
 0x105   :  { %v522_v1 = vsel %vm450_vm7, %v414_v48, %v486_v59  ;;  %v401_v2 = vadd.f32 %v843_v60, %v358_v56  ;;  %v356_v3 = vmul.f32 %v838_v58, %v244_v51  ;;  %v377_v4 = vmul.f32 %v658_v36, %v838_v58  ;;  %v642_v5 = vpop.f32.mrb[16].mxu0 }
 0x106   :  { %558 = vst.msk [vmem:[%s1069_s4 + $0xe0] sm:$0xff] %vm104_vm0, %v522_v1  ;;  %v525_v6 = vsel %vm453_vm8, %v417_v49, %v489_v61  ;;  %vm451_vm9 = vcmp.gt.f32.partialorder %v415_v62, 0.0  ;;  %v487_v7 = vmul.f32 0.2, %v415_v62  ;;  %vm436_vm10 = vcmp.gt.f32.partialorder %v400_v63, 0.0  ;;  %v257_v8 = vpop.f32.mrb[17].mxu0 }
 0x107   :  { %561 = vst.msk [vmem:[%s1069_s4 + $0xf8] sm:$0xff] %vm104_vm0, %v525_v6  ;;  %v472_v9 = vmul.f32 0.2, %v400_v63  ;;  %vm434_vm11 = vcmp.gt.f32.partialorder %v398_v0, 0.0  ;;  %v470_v10 = vmul.f32 0.2, %v398_v0  ;;  %v399_v13 = vadd.f32 %v843_v60, %v356_v3 }
 0x108   :  { %vm437_vm12 = vcmp.gt.f32.partialorder %v401_v2, 0.0  ;;  %v523_v11 = vsel %vm451_vm9, %v415_v62, %v487_v7  ;;  %v473_v12 = vmul.f32 0.2, %v401_v2  ;;  %v420_v14 = vadd.f32 %v843_v60, %v377_v4  ;;  %v643_v15 = vpop.f32.mrb[18].mxu0 }
 0x109   :  { %559 = vst.msk [vmem:[%s1069_s4 + $0xe8] sm:$0xff] %vm104_vm0, %v523_v11  ;;  %v508_v16 = vsel %vm436_vm10, %v400_v63, %v472_v9  ;;  %v506_v17 = vsel %vm434_vm11, %v398_v0, %v470_v10  ;;  %v375_v18 = vmul.f32 %v838_v58, %v321_v42  ;;  %v378_v19 = vmul.f32 %v659_v46, %v838_v58  ;;  %v260_v20 = vpop.f32.mrb[19].mxu0 }
 0x10a   :  { %544 = vst.msk [vmem:[%s1069_s4 + $0x70] sm:$0xff] %vm104_vm0, %v508_v16  ;;  %542 = vst.msk [vmem:[%s1069_s4 + $0x60] sm:$0xff] %vm104_vm0, %v506_v17  ;;  %v509_v21 = vsel %vm437_vm12, %v401_v2, %v473_v12  ;;  %vm435_vm13 = vcmp.gt.f32.partialorder %v399_v13, 0.0  ;;  %v471_v22 = vmul.f32 0.2, %v399_v13  ;;  %vm456_vm14 = vcmp.gt.f32.partialorder %v420_v14, 0.0 }
 0x10b   :  { %545 = vst.msk [vmem:[%s1069_s4 + $0x78] sm:$0xff] %vm104_vm0, %v509_v21  ;;  %v492_v23 = vmul.f32 0.2, %v420_v14  ;;  %v418_v24 = vadd.f32 %v843_v60, %v375_v18  ;;  %v421_v25 = vadd.f32 %v843_v60, %v378_v19  ;;  %v376_v26 = vmul.f32 %v838_v58, %v324_v52 }
 0x10c   :  { %v507_v27 = vsel %vm435_vm13, %v399_v13, %v471_v22  ;;  %v361_v28 = vmul.f32 %v642_v5, %v838_v58  ;;  %v359_v29 = vmul.f32 %v838_v58, %v257_v8  ;;  %v362_v30 = vmul.f32 %v643_v15, %v838_v58 }
 0x10d   :  { %543 = vst.msk [vmem:[%s1069_s4 + $0x68] sm:$0xff] %vm104_vm0, %v507_v27  ;;  %v528_v31 = vsel %vm456_vm14, %v420_v14, %v492_v23  ;;  %vm454_vm15 = vcmp.gt.f32.partialorder %v418_v24, 0.0  ;;  %v490_v32 = vmul.f32 0.2, %v418_v24  ;;  %vm457_vm1 = vcmp.gt.f32.partialorder %v421_v25, 0.0 }
 0x10e   :  { %564 = vst.msk [vmem:[%s1069_s4 + $0x110] sm:$0xff] %vm104_vm0, %v528_v31  ;;  %v493_v33 = vmul.f32 0.2, %v421_v25  ;;  %v419_v34 = vadd.f32 %v843_v60, %v376_v26  ;;  %v404_v35 = vadd.f32 %v843_v60, %v361_v28  ;;  %v402_v36 = vadd.f32 %v843_v60, %v359_v29 }
 0x10f   :  { %v526_v37 = vsel %vm454_vm15, %v418_v24, %v490_v32  ;;  %v405_v38 = vadd.f32 %v843_v60, %v362_v30  ;;  %v360_v39 = vmul.f32 %v838_v58, %v260_v20 }
 0x110   :  { %562 = vst.msk [vmem:[%s1069_s4 + $0x100] sm:$0xff] %vm104_vm0, %v526_v37  ;;  %v529_v40 = vsel %vm457_vm1, %v421_v25, %v493_v33  ;;  %vm455_vm2 = vcmp.gt.f32.partialorder %v419_v34, 0.0  ;;  %v491_v41 = vmul.f32 0.2, %v419_v34  ;;  %vm440_vm3 = vcmp.gt.f32.partialorder %v404_v35, 0.0 }
 0x111   :  { %565 = vst.msk [vmem:[%s1069_s4 + $0x118] sm:$0xff] %vm104_vm0, %v529_v40  ;;  %v476_v42 = vmul.f32 0.2, %v404_v35  ;;  %vm438_vm4 = vcmp.gt.f32.partialorder %v402_v36, 0.0  ;;  %v474_v43 = vmul.f32 0.2, %v402_v36  ;;  %v403_v45 = vadd.f32 %v843_v60, %v360_v39 }
 0x112   :  { %vm441_vm5 = vcmp.gt.f32.partialorder %v405_v38, 0.0  ;;  %v527_v44 = vsel %vm455_vm2, %v419_v34, %v491_v41  ;;  %v477_v58 = vmul.f32 0.2, %v405_v38 }
 0x113   :  { %563 = vst.msk [vmem:[%s1069_s4 + $0x108] sm:$0xff] %vm104_vm0, %v527_v44  ;;  %v512_v46 = vsel %vm440_vm3, %v404_v35, %v476_v42  ;;  %v510_v47 = vsel %vm438_vm4, %v402_v36, %v474_v43  ;;  %vm439_vm6 = vcmp.gt.f32.partialorder %v403_v45, 0.0  ;;  %v475_v60 = vmul.f32 0.2, %v403_v45 }
 0x114   :  { %548 = vst.msk [vmem:[%s1069_s4 + $0x90] sm:$0xff] %vm104_vm0, %v512_v46  ;;  %546 = vst.msk [vmem:[%s1069_s4 + $0x80] sm:$0xff] %vm104_vm0, %v510_v47  ;;  %v513_v48 = vsel %vm441_vm5, %v405_v38, %v477_v58 }
 0x115   :  { %549 = vst.msk [vmem:[%s1069_s4 + $0x98] sm:$0xff] %vm104_vm0, %v513_v48  ;;  %v511_v49 = vsel %vm439_vm6, %v403_v45, %v475_v60 }
 0x116   :  { %547 = vst.msk [vmem:[%s1069_s4 + $0x88] sm:$0xff] %vm104_vm0, %v511_v49 }

// kernel: reverse.1
= control target key start
LH: loop header
LB: loop body
LE: loop exit
PB: predicated region body
PF: predicated region fallthrough
CT: control target
= control target key end

     0   :  { %s344_s0 = inlined_call_operand.vmem [shape: f32[2,32,16,7], index: 0, kind: input, shape index: {}]   ;;  %s345_s1 = inlined_call_operand.vmem [shape: f32[2,32,16,7], index: 1, kind: output, shape index: {}]  }
   0x1   :  { %v112_v0 = vld [vmem:[%s344_s0 + $0x60] sm:$0xff]  ;;  %v113_v1 = vld [vmem:[%s344_s0 + $0xd0] sm:$0xff]  ;;  %v138_v14 = vld [vmem:[%s344_s0 + $0x68] sm:$0xff] }
   0x2   :  { %v115_v2 = vld [vmem:[%s344_s0 + $0x50] sm:$0xff]  ;;  %4 = vst [vmem:[%s345_s1] sm:$0xff] %v112_v0  ;;  %114 = vst [vmem:[%s345_s1 + $0x70] sm:$0xff] %v113_v1  ;;  %v117_v3 = vld [vmem:[%s344_s0 + $0xc0] sm:$0xff] }
   0x3   :  { %116 = vst [vmem:[%s345_s1 + $0x10] sm:$0xff] %v115_v2  ;;  %v119_v4 = vld [vmem:[%s344_s0 + $0x40] sm:$0xff]  ;;  %v121_v5 = vld [vmem:[%s344_s0 + $0xb0] sm:$0xff]  ;;  %118 = vst [vmem:[%s345_s1 + $0x80] sm:$0xff] %v117_v3 }
   0x4   :  { %120 = vst [vmem:[%s345_s1 + $0x20] sm:$0xff] %v119_v4  ;;  %122 = vst [vmem:[%s345_s1 + $0x90] sm:$0xff] %v121_v5  ;;  %v123_v6 = vld [vmem:[%s344_s0 + $0x30] sm:$0xff]  ;;  %v125_v7 = vld [vmem:[%s344_s0 + $0xa0] sm:$0xff] }
   0x5   :  { %v127_v8 = vld [vmem:[%s344_s0 + $0x20] sm:$0xff]  ;;  %124 = vst [vmem:[%s345_s1 + $0x30] sm:$0xff] %v123_v6  ;;  %126 = vst [vmem:[%s345_s1 + $0xa0] sm:$0xff] %v125_v7  ;;  %v129_v9 = vld [vmem:[%s344_s0 + $0x90] sm:$0xff] }
   0x6   :  { %128 = vst [vmem:[%s345_s1 + $0x40] sm:$0xff] %v127_v8  ;;  %v131_v10 = vld [vmem:[%s344_s0 + $0x10] sm:$0xff]  ;;  %v133_v11 = vld [vmem:[%s344_s0 + $0x80] sm:$0xff]  ;;  %130 = vst [vmem:[%s345_s1 + $0xb0] sm:$0xff] %v129_v9 }
   0x7   :  { %132 = vst [vmem:[%s345_s1 + $0x50] sm:$0xff] %v131_v10  ;;  %134 = vst [vmem:[%s345_s1 + $0xc0] sm:$0xff] %v133_v11  ;;  %v49_v12 = vld [vmem:[%s344_s0] sm:$0xff]  ;;  %v136_v13 = vld [vmem:[%s344_s0 + $0x70] sm:$0xff] }
   0x8   :  { %135 = vst [vmem:[%s345_s1 + $0x60] sm:$0xff] %v49_v12  ;;  %137 = vst [vmem:[%s345_s1 + $0xd0] sm:$0xff] %v136_v13  ;;  %v140_v15 = vld [vmem:[%s344_s0 + $0xd8] sm:$0xff]  ;;  %v144_v17 = vld [vmem:[%s344_s0 + $0xc8] sm:$0xff] }
   0x9   :  { %139 = vst [vmem:[%s345_s1 + $0x8] sm:$0xff] %v138_v14  ;;  %v142_v16 = vld [vmem:[%s344_s0 + $0x58] sm:$0xff]  ;;  %141 = vst [vmem:[%s345_s1 + $0x78] sm:$0xff] %v140_v15  ;;  %v146_v18 = vld [vmem:[%s344_s0 + $0x48] sm:$0xff] }
   0xa   :  { %143 = vst [vmem:[%s345_s1 + $0x18] sm:$0xff] %v142_v16  ;;  %145 = vst [vmem:[%s345_s1 + $0x88] sm:$0xff] %v144_v17  ;;  %v148_v19 = vld [vmem:[%s344_s0 + $0xb8] sm:$0xff]  ;;  %v152_v21 = vld [vmem:[%s344_s0 + $0xa8] sm:$0xff] }
   0xb   :  { %v150_v20 = vld [vmem:[%s344_s0 + $0x38] sm:$0xff]  ;;  %147 = vst [vmem:[%s345_s1 + $0x28] sm:$0xff] %v146_v18  ;;  %149 = vst [vmem:[%s345_s1 + $0x98] sm:$0xff] %v148_v19  ;;  %v154_v22 = vld [vmem:[%s344_s0 + $0x28] sm:$0xff] }
   0xc   :  { %151 = vst [vmem:[%s345_s1 + $0x38] sm:$0xff] %v150_v20  ;;  %v156_v23 = vld [vmem:[%s344_s0 + $0x98] sm:$0xff]  ;;  %153 = vst [vmem:[%s345_s1 + $0xa8] sm:$0xff] %v152_v21  ;;  %v160_v25 = vld [vmem:[%s344_s0 + $0x88] sm:$0xff] }
   0xd   :  { %155 = vst [vmem:[%s345_s1 + $0x48] sm:$0xff] %v154_v22  ;;  %157 = vst [vmem:[%s345_s1 + $0xb8] sm:$0xff] %v156_v23  ;;  %v158_v24 = vld [vmem:[%s344_s0 + $0x18] sm:$0xff]  ;;  %v162_v26 = vld [vmem:[%s344_s0 + $0x8] sm:$0xff] }
   0xe   :  { %159 = vst [vmem:[%s345_s1 + $0x58] sm:$0xff] %v158_v24  ;;  %161 = vst [vmem:[%s345_s1 + $0xc8] sm:$0xff] %v160_v25  ;;  %v164_v27 = vld [vmem:[%s344_s0 + $0x78] sm:$0xff] }
   0xf   :  { %163 = vst [vmem:[%s345_s1 + $0x68] sm:$0xff] %v162_v26  ;;  %165 = vst [vmem:[%s345_s1 + $0xd8] sm:$0xff] %v164_v27 }

// kernel: stim_forward.7
= control target key start
LH: loop header
LB: loop body
LE: loop exit
PB: predicated region body
PF: predicated region fallthrough
CT: control target
= control target key end

     0   :  { %15 = vsyncpa [#allocation3], 0  ;;  %s8982_s0 = inlined_call_operand.vmem [shape: f32[2,16,16,32], index: 0, kind: input, shape index: {}]   ;;  %s8983_s1 = inlined_call_operand.vmem [shape: f32[2,1,32], index: 1, kind: input, shape index: {}]   ;;  %s8984_s2 = inlined_call_operand.vmem [shape: bf16[288,32], index: 2, kind: input, shape index: {}]   ;;  %s8985_s3 = inlined_call_operand.vmem [shape: f32[1,32], index: 3, kind: input, shape index: {}]   ;;  %s8986_s4 = inlined_call_operand.vmem [shape: f32[1,32], index: 4, kind: input, shape index: {}]   ;;  %s8987_s5 = inlined_call_operand.vmem [shape: bf16[288,32], index: 5, kind: input, shape index: {}]   ;;  %s8988_s6 = inlined_call_operand.vmem [shape: f32[1,32], index: 6, kind: input, shape index: {}]   ;;  %s8989_s7 = inlined_call_operand.vmem [shape: f32[1,32], index: 7, kind: input, shape index: {}]   ;;  %s8990_s8 = inlined_call_operand.vmem [shape: f32[2,256,32], index: 8, kind: input, shape index: {}]   ;;  %s8991_s9 = inlined_call_operand.vmem [shape: f32[2,256,32], index: 9, kind: input, shape index: {}]   ;;  %s8992_s10 = inlined_call_operand.hbm [shape: f32[2,256,32], index: 10, kind: output, shape index: {}]  }
   0x1   :  { %17 = vsyncpa [#allocation3 + $0x1], 0  ;;  %s6216_s13 = smov 0   ;;  %s6218_s14 = smov 0  }
   0x2   :  { %s6220_s15 = smov 0   ;;  %s6222_s16 = smov 0  }
   0x3 LB: > { %s6237_s17 = sadd.s32 4294967295, %s6153_s16   ;;  %s4657_s18 = sadd.s32 4294967294, %s6153_s16   ;;  %s6153_s16 = sphi %s6222_s16, %s9183_s16   ;;  %s6149_s15 = sphi %s6220_s15, %s9182_s15   ;;  %s6145_s14 = sphi %s6218_s14, %s9181_s14   ;;  %s6141_s13 = sphi %s6216_s13, %s9180_s13  }
   0x4   : > { %s6241_s19 = sadd.s32 1, %s6153_s16   ;;  %s260_s20 = sadd.s32 1, %s6149_s15 }
   0x5   : > { %s257_s21 = ssub.s32 %s6153_s16, %s6241_s19  ;;  %p270_p0 = scmp.ne.s32.totalorder %s6149_s15, %s6145_s14 }
   0x6   : > { %p258_p1 = scmp.eq.s32.totalorder %s257_s21, 0  ;;  %p271_p2 = scmp.eq.s32.totalorder %s6237_s17, 1 }
   0x7   : > { %p276_p3 = scmp.ne.s32.totalorder %s6145_s14, %s6141_s13  ;;  %p277_p4 = scmp.eq.s32.totalorder %s4657_s18, 1 }
   0x8   : > { %s6252_s22 = scalar_select %p258_p1, %s6149_s15, %s260_s20  }
   0x9   : > { %p6254_p5 = por %p271_p2, %p270_p0  ;;  %p6258_p6 = por %p277_p4, %p276_p3 }
   0xa   : > { %9052 = sst [smem:[#allocation5_spill]] %s6252_s22  ;;  %p4660_p7 = scmp.ge.s32.totalorder %s6153_s16, 1 }
   0xb   : > { %p343_p8 = scmp.lt.s32.totalorder %s6153_s16, 3 }
   0xd   : > { %p344_p9 = pnand %p4660_p7, %p343_p8 }
   0xf   : > { %347 = sbr.rel (%p344_p9) target bundleno = 979 (0x3d3), region = 60 }
  0x16   : > { %p394_p10 = scmp.lt.s32.totalorder %s6237_s17, 1  ;;  %v6050_v0 = vld [vmem:[%s8984_s2 + $0x40] sm:$0xff]   ;;  %v6052_v2 = vld [vmem:[%s8984_s2 + $0x48] sm:$0xff]   ;;  %vm584_vm0 = vcmask 1040384   ;;  %vm774_vm1 = vcmask 1046528   ;;  %vm850_vm2 = vcmask 1045504  }
  0x17   : > { %4750 = vmatprep.subr.bf16.mxu0 %v6050_v0  ;;  %v6051_v1 = vld [vmem:[%s8984_s2] sm:$0xff]   ;;  %v6053_v3 = vld [vmem:[%s8984_s2 + $0x8] sm:$0xff]   ;;  %v6054_v41 = vld [vmem:[%s8984_s2 + $0x50] sm:$0xff]   ;;  %s6156_s25 = smov 96   ;;  %s6157_s29 = smov 32   ;;  %vm1552_vm3 = vcmask 261120  }
  0x18   : > { %s395_s27 = scalar_select %p394_p10, %s6237_s17, 1  ;;  %4751 = vmatpush3.bf16.msra.mxu0 %v6051_v1  ;;  %v6055_v42 = vld [vmem:[%s8984_s2 + $0x10] sm:$0xff]   ;;  %v6056_v51 = vld [vmem:[%s8984_s2 + $0x58] sm:$0xff]   ;;  %v6058_v1 = vld [vmem:[%s8984_s2 + $0x60] sm:$0xff]   ;;  %vm1583_vm4 = vcmask 523264   ;;  %vm1614_vm5 = vcmask 785408  }
  0x19   : > { %4752 = vmatprep.subr.bf16.mxu0 %v6052_v2  ;;  %v6057_v60 = vld [vmem:[%s8984_s2 + $0x18] sm:$0xff]   ;;  %s391_s30 = sand.u32 1, %s6145_s14   ;;  %s6158_s11 = smov [#allocation2]  }
  0x1a   : > { %s6275_s12 = sshll.u32 %s395_s27, 8  ;;  %s6280_s21 = scalar_lea.vmem %s8983_s1, %s395_s27 }
  0x1b   : > { %s6289_s22 = scalar_lea.vmem %s8982_s0, %s6275_s12  ;;  %v6292_v4 = vld [vmem:[%s6280_s21] ss:$0 sm:$0xff]  ;;  %s6155_s27 = smov 64  }
  0x1c   : > { %v415_v5 = vld [vmem:[%s6289_s22 + $0x10] sm:$0xff]  ;;  %v416_v6 = vld [vmem:[%s6289_s22 + $0x18] sm:$0xff]  ;;  %v413_v7 = vld [vmem:[%s6289_s22] sm:$0xff]  ;;  %4753 = vmatpush3.bf16.msra.mxu0 %v6053_v3  ;;  %s8692_s28 = scalar_lea.vmem %s8990_s8, %s6275_s12  ;;  %s8701_s20 = scalar_lea.vmem %s8991_s9, %s6275_s12 }
  0x1d   : > { %v454_v8 = vmul.f32 %v6292_v4, %v415_v5  ;;  %v455_v9 = vmul.f32 %v6292_v4, %v416_v6  ;;  %v414_v10 = vld [vmem:[%s6289_s22 + $0x8] sm:$0xff]  ;;  %v452_v11 = vmul.f32 %v6292_v4, %v413_v7  ;;  %v417_v12 = vld [vmem:[%s6289_s22 + $0x20] sm:$0xff]  ;;  %4754 = vmatprep.subr.bf16.mxu0 %v6054_v41  ;;  %v419_v6 = vld [vmem:[%s6289_s22 + $0x30] sm:$0xff]  ;;  %s6095_s18 = sshll.u32 %s6158_s11, 4  ;;  %s6096_s18 = int_to_ptr.vmem [resolvable:$false] %s6095_s18 }
  0x1e   : > { %v418_v13 = vld [vmem:[%s6289_s22 + $0x28] sm:$0xff]  ;;  %v453_v14 = vmul.f32 %v6292_v4, %v414_v10  ;;  %v456_v15 = vmul.f32 %v6292_v4, %v417_v12  ;;  %v420_v7 = vld [vmem:[%s6289_s22 + $0x38] sm:$0xff]  ;;  %v6059_v10 = vld [vmem:[%s8984_s2 + $0x20] sm:$0xff]  }
  0x1f   : > { %v457_v16 = vmul.f32 %v6292_v4, %v418_v13  ;;  %v536_v17 = vrot.slane %v454_v8, 1  ;;  %v585_v18 = vrot.slane %v454_v8, 7  ;;  %v586_v19 = vrot.slane %v455_v9, 7  ;;  %v6060_v12 = vld [vmem:[%s8984_s2 + $0x68] sm:$0xff]  }
  0x20   : > { %v537_v20 = vrot.slane %v452_v11, 1  ;;  %v588_v21 = vrot.slane %v452_v11, 7  ;;  %v589_v22 = vrot.slane %v453_v14, 7  ;;  %v681_v23 = vrot.slane %v453_v14, 5  ;;  %4755 = vmatpush3.bf16.msra.mxu0 %v6055_v42 }
  0x21   : > { %v680_v24 = vrot.slane %v455_v9, 5  ;;  %v6307_v25 = vsel %vm584_vm0, %v585_v18, %v586_v19  ;;  %v6310_v26 = vsel %vm584_vm0, %v536_v17, %v585_v18  ;;  %v538_v27 = vrot.slane %v456_v15, 1  ;;  %4756 = vmatprep.subr.bf16.mxu0 %v6056_v51  ;;  %v6061_v17 = vld [vmem:[%s8984_s2 + $0x28] sm:$0xff]  }
  0x22   : > { %v591_v28 = vrot.slane %v456_v15, 7  ;;  %v6314_v29 = vpack.i.bf16 %v6307_v25, %v6310_v26  ;;  %v6317_v30 = vsel %vm584_vm0, %v588_v21, %v589_v22  ;;  %v6320_v31 = vsel %vm584_vm0, %v537_v20, %v588_v21  ;;  %v6064_v20 = vld [vmem:[%s8984_s2 + $0x80] sm:$0xff]  }
  0x23   : > { %v728_v32 = vsel %vm584_vm0, %v586_v19, %v680_v24  ;;  %v5135_v33 = vpack.i.bf16 %v6317_v30, %v6320_v31  ;;  %v775_v34 = vrot.slane %v6310_v26, 1  ;;  %v776_v35 = vrot.slane %v6307_v25, 1  ;;  %v6062_v19 = vld [vmem:[%s8984_s2 + $0x70] sm:$0xff]   ;;  %v421_v24 = vld [vmem:[%s6289_s22 + $0x40] sm:$0xff]  ;;  %5010 = vmatprep.subr.bf16.mxu1 %v6064_v20 }
  0x24   : > { %v778_v36 = vrot.slane %v728_v32, 1  ;;  %5131 = vrot.lane.b32.xlu0 %v6314_v29, %s6155_s27  ;;  %v592_v37 = vrot.slane %v457_v16, 7  ;;  %v682_v38 = vrot.slane %v457_v16, 5  ;;  %v6330_v39 = vsel %vm584_vm0, %v538_v27, %v591_v28  ;;  %4757 = vmatpush3.bf16.msra.mxu0 %v6057_v60 }
  0x25   : > { %v729_v40 = vsel %vm584_vm0, %v589_v22, %v681_v23  ;;  %5136 = vrot.lane.b32.xlu1 %v5135_v33, %s6156_s25  ;;  %v6341_v43 = vsel %vm774_vm1, %v775_v34, %v776_v35  ;;  %v785_v45 = vrot.slane %v6330_v39, 1  ;;  %v856_v46 = vrot.slane %v6320_v31, 2  ;;  %4758 = vmatprep.subr.bf16.mxu0 %v6058_v1 }
  0x26   : > { %v6344_v44 = vsel %vm774_vm1, %v776_v35, %v778_v36  ;;  %v6351_v48 = vsel %vm584_vm0, %v591_v28, %v592_v37  ;;  %v6354_v49 = vsel %vm584_vm0, %v592_v37, %v682_v38  ;;  %v857_v50 = vrot.slane %v6317_v30, 2  ;;  %v6067_v28 = vld [vmem:[%s8984_s2 + $0x88] sm:$0xff]   ;;  %5011 = vmatpush3.bf16.msra.mxu1 %v6064_v20  ;;  %v6065_v37 = vld [vmem:[%s8984_s2 + $0x78] sm:$0xff]  }
  0x27   : > { %v5140_v47 = vpack.i.bf16 %v6344_v44, %v6341_v43  ;;  %v786_v52 = vrot.slane %v6351_v48, 1  ;;  %v788_v53 = vrot.slane %v6354_v49, 1  ;;  %v859_v54 = vrot.slane %v729_v40, 2  ;;  %v422_v36 = vld [vmem:[%s6289_s22 + $0x48] sm:$0xff]  ;;  %5012 = vmatprep.subr.bf16.mxu1 %v6067_v28 }
  0x28   : > { %v780_v55 = vrot.slane %v6320_v31, 1  ;;  %v858_v56 = vsel %vm850_vm2, %v856_v46, %v857_v50  ;;  %v781_v57 = vrot.slane %v6317_v30, 1  ;;  %v783_v58 = vrot.slane %v729_v40, 1  ;;  %4759 = vmatpush3.bf16.msra.mxu0 %v6059_v10  ;;  %v424_v10 = vld [vmem:[%s6289_s22 + $0x58] sm:$0xff] }
  0x29   : > { %5141 = vrot.lane.b32.xlu0 %v5140_v47, %s6157_s29  ;;  %v851_v59 = vrot.slane %v6310_v26, 2  ;;  %v6371_v61 = vsel %vm774_vm1, %v785_v45, %v786_v52  ;;  %v6374_v62 = vsel %vm774_vm1, %v786_v52, %v788_v53  ;;  %v860_v63 = vsel %vm850_vm2, %v857_v50, %v859_v54  ;;  %4760 = vmatprep.subr.bf16.mxu0 %v6060_v12 }
  0x2a   : > { %v852_v0 = vrot.slane %v6307_v25, 2  ;;  %v6383_v2 = vpack.i.bf16 %v6374_v62, %v6371_v61  ;;  %v6386_v3 = vsel %vm774_vm1, %v780_v55, %v781_v57  ;;  %v6389_v5 = vsel %vm774_vm1, %v781_v57, %v783_v58  ;;  %5013 = vmatpush3.bf16.msra.mxu1 %v6067_v28 }
  0x2b   : > { %v5145_v8 = vpack.i.bf16 %v6389_v5, %v6386_v3  ;;  %v854_v9 = vrot.slane %v728_v32, 2  ;;  %v5155_v11 = vpack.i.bf16 %v860_v63, %v858_v56  ;;  %v458_v15 = vmul.f32 %v6292_v4, %v419_v6  ;;  %v6063_v32 = vld [vmem:[%s8984_s2 + $0x30] sm:$0xff]  }
  0x2c   : > { %5151 = vrot.lane.b32.xlu1 %v6383_v2, %s6157_s29  ;;  %v6405_v13 = vsel %vm850_vm2, %v851_v59, %v852_v0  ;;  %v459_v16 = vmul.f32 %v6292_v4, %v420_v7  ;;  %4761 = vmatpush3.bf16.msra.mxu0 %v6061_v17  ;;  %v5175_v33 = vpack.i.bf16 %v6351_v48, %v6330_v39  ;;  %v861_v34 = vrot.slane %v6330_v39, 2  ;;  %v423_v7 = vld [vmem:[%s6289_s22 + $0x50] sm:$0xff] }
  0x2d   : > { %5146 = vrot.lane.b32.xlu0 %v5145_v8, %s6157_s29  ;;  %v6408_v14 = vsel %vm850_vm2, %v852_v0, %v854_v9  ;;  %v539_v21 = vrot.slane %v458_v15, 1  ;;  %v594_v22 = vrot.slane %v458_v15, 7  ;;  %v862_v35 = vrot.slane %v6351_v48, 2  ;;  %4762 = vmatprep.subr.bf16.mxu0 %v6062_v19 }
  0x2e   : > { %v5160_v18 = vpack.i.bf16 %v6408_v14, %v6405_v13  ;;  %v595_v23 = vrot.slane %v459_v16, 7  ;;  %v683_v27 = vrot.slane %v459_v16, 5  ;;  %v864_v38 = vrot.slane %v6354_v49, 2 }
  0x2f   : > { %v6447_v41 = vsel %vm584_vm0, %v539_v21, %v594_v22  ;;  %v460_v45 = vmul.f32 %v6292_v4, %v421_v24  ;;  %v461_v46 = vmul.f32 %v6292_v4, %v422_v36  ;;  %v6457_v49 = vsel %vm850_vm2, %v861_v34, %v862_v35 }
  0x30   : > { %5156 = vrot.lane.b32.xlu1 %v5155_v11, %s6157_s29  ;;  %v6444_v40 = vsel %vm584_vm0, %v594_v22, %v595_v23  ;;  %v731_v42 = vsel %vm584_vm0, %v595_v23, %v683_v27  ;;  %4763 = vmatpush3.bf16.msra.mxu0 %v6063_v32  ;;  %v6461_v50 = vsel %vm850_vm2, %v862_v35, %v864_v38  ;;  %v790_v51 = vrot.slane %v6447_v41, 1 }
  0x31   : > { %5166 = vrot.lane.b32.xlu0 %v5140_v47, %s6156_s25  ;;  %v6066_v47 = vld [vmem:[%s8984_s2 + $0x38] sm:$0xff]   ;;  %4764 = vmatprep.subr.bf16.mxu0 %v6065_v37  ;;  %v791_v52 = vrot.slane %v6444_v40, 1  ;;  %v793_v53 = vrot.slane %v731_v42, 1  ;;  %v540_v54 = vrot.slane %v460_v45, 1  ;;  %v597_v55 = vrot.slane %v460_v45, 7 }
  0x32   : > { %v598_v56 = vrot.slane %v461_v46, 7  ;;  %v684_v57 = vrot.slane %v461_v46, 5  ;;  %v5195_v58 = vpack.i.bf16 %v6461_v50, %v6457_v49  ;;  %v5200_v59 = vpack.i.bf16 %v6444_v40, %v6447_v41 }
  0x33   : > { %v866_v60 = vrot.slane %v6447_v41, 2  ;;  %v6475_v63 = vsel %vm774_vm1, %v790_v51, %v791_v52  ;;  %v6478_v0 = vsel %vm774_vm1, %v791_v52, %v793_v53  ;;  %v867_v1 = vrot.slane %v6444_v40, 2  ;;  %v426_v51 = vld [vmem:[%s6289_s22 + $0x68] sm:$0xff] }
  0x34   : > { %5161 = vrot.lane.b32.xlu1 %v5160_v18, %s6155_s27  ;;  %4765 = vmatpush3.bf16.msra.mxu0 %v6066_v47  ;;  %v6482_v6 = vsel %vm584_vm0, %v540_v54, %v597_v55  ;;  %v6486_v8 = vsel %vm584_vm0, %v597_v55, %v598_v56  ;;  %v732_v9 = vsel %vm584_vm0, %v598_v56, %v684_v57  ;;  %v425_v47 = vld [vmem:[%s6289_s22 + $0x60] sm:$0xff] }
  0x35   : > { %5171 = vrot.lane.b32.xlu0 %v5160_v18, %s6157_s29  ;;  %9055 = vst [vmem:[#allocation6_spill] sm:$0xff] %v6482_v6  ;;  %9056 = vst [vmem:[#allocation7_spill] sm:$0xff] %v6486_v8  ;;  %v795_v15 = vrot.slane %v6482_v6, 1  ;;  %v462_v16 = vmul.f32 %v6292_v4, %v423_v7  ;;  %v796_v17 = vrot.slane %v6486_v8, 1  ;;  %v798_v18 = vrot.slane %v732_v9, 1 }
  0x36   : > { %v463_v19 = vmul.f32 %v6292_v4, %v424_v10  ;;  %v5220_v21 = vpack.i.bf16 %v6486_v8, %v6482_v6  ;;  %v871_v22 = vrot.slane %v6482_v6, 2  ;;  %v872_v23 = vrot.slane %v6486_v8, 2 }
  0x37   : > { %v874_v24 = vrot.slane %v732_v9, 2  ;;  %v541_v27 = vrot.slane %v462_v16, 1  ;;  %v600_v28 = vrot.slane %v462_v16, 7  ;;  %v6513_v32 = vsel %vm774_vm1, %v795_v15, %v796_v17 }
  0x38   : > { %5176 = vrot.lane.b32.xlu1 %v5175_v33, %s6155_s27  ;;  %v6516_v34 = vsel %vm774_vm1, %v796_v17, %v798_v18  ;;  %v601_v35 = vrot.slane %v463_v19, 7  ;;  %v685_v36 = vrot.slane %v463_v19, 5  ;;  %v6523_v37 = vsel %vm850_vm2, %v871_v22, %v872_v23 }
  0x39   : > { %5181 = vrot.lane.b32.xlu0 %v5155_v11, %s6155_s27  ;;  %v6495_v11 = vsel %vm850_vm2, %v866_v60, %v867_v1  ;;  %v6526_v38 = vsel %vm850_vm2, %v872_v23, %v874_v24  ;;  %v6532_v45 = vsel %vm584_vm0, %v541_v27, %v600_v28  ;;  %v464_v56 = vmul.f32 %v6292_v4, %v425_v47  ;;  %v428_v27 = vld [vmem:[%s6289_s22 + $0x78] sm:$0xff] }
  0x3a   : > { %9058 = vst [vmem:[#allocation9_spill] sm:$0xff] %v6532_v45  ;;  %v733_v46 = vsel %vm584_vm0, %v601_v35, %v685_v36  ;;  %v5240_v52 = vpack.i.bf16 %v6526_v38, %v6523_v37  ;;  %v800_v53 = vrot.slane %v6532_v45, 1  ;;  %v465_v57 = vmul.f32 %v6292_v4, %v426_v51 }
  0x3b   : > { %v803_v55 = vrot.slane %v733_v46, 1  ;;  %v876_v60 = vrot.slane %v6532_v45, 2  ;;  %v879_v9 = vrot.slane %v733_v46, 2  ;;  %v542_v10 = vrot.slane %v464_v56, 1 }
  0x3c   : > { %5186 = vrot.lane.b32.xlu1 %v6383_v2, %s6156_s25  ;;  %v869_v2 = vrot.slane %v731_v42, 2  ;;  %v6529_v42 = vsel %vm584_vm0, %v600_v28, %v601_v35  ;;  %v604_v15 = vrot.slane %v465_v57, 7  ;;  %v686_v16 = vrot.slane %v465_v57, 5 }
  0x3d   : > { %5191 = vrot.lane.b32.xlu0 %v6314_v29, %s6156_s25  ;;  %v5205_v29 = vpack.i.bf16 %v6478_v0, %v6475_v63  ;;  %9057 = vst [vmem:[#allocation8_spill] sm:$0xff] %v6529_v42  ;;  %v801_v54 = vrot.slane %v6529_v42, 1  ;;  %v877_v7 = vrot.slane %v6529_v42, 2  ;;  %v467_v51 = vmul.f32 %v6292_v4, %v428_v27  ;;  %v430_v27 = vld [vmem:[%s6289_s22 + $0x88] sm:$0xff] }
  0x3e   : > { %v6498_v12 = vsel %vm850_vm2, %v867_v1, %v869_v2  ;;  %v734_v24 = vsel %vm584_vm0, %v604_v15, %v686_v16 }
  0x3f   : > { %v5215_v20 = vpack.i.bf16 %v6498_v12, %v6495_v11  ;;  %v6551_v1 = vsel %vm774_vm1, %v800_v53, %v801_v54  ;;  %v6554_v2 = vsel %vm774_vm1, %v801_v54, %v803_v55  ;;  %v6562_v18 = vsel %vm850_vm2, %v876_v60, %v877_v7 }
  0x40   : > { %5196 = vrot.lane.b32.xlu1 %v5195_v58, %s6157_s29  ;;  %v5260_v17 = vpack.i.bf16 %v6554_v2, %v6551_v1  ;;  %v6565_v19 = vsel %vm850_vm2, %v877_v7, %v879_v9  ;;  %v808_v46 = vrot.slane %v734_v24, 1  ;;  %v607_v7 = vrot.slane %v467_v51, 7 }
  0x41   : > { %5201 = vrot.lane.b32.xlu0 %v5200_v59, %s6155_s27  ;;  %v6580_v28 = vpack.i.bf16 %v6565_v19, %v6562_v18  ;;  %v687_v9 = vrot.slane %v467_v51, 5 }
  0x44   : > { %5206 = vrot.lane.b32.xlu1 %v5205_v29, %s6156_s25 }
  0x45   : > { %5211 = vrot.lane.b32.xlu0 %v5175_v33, %s6156_s25  ;;  %v5230_v33 = vpack.i.bf16 %v6516_v34, %v6513_v32 }
  0x48   : > { %5216 = vrot.lane.b32.xlu1 %v5215_v20, %s6157_s29 }
  0x49   : > { %5221 = vrot.lane.b32.xlu0 %v5220_v21, %s6155_s27 }
  0x4c   : > { %5226 = vrot.lane.b32.xlu1 %v5195_v58, %s6155_s27  ;;  %v5250_v58 = vpack.i.bf16 %v6529_v42, %v6532_v45  ;;  %v444_v42 = vld [vmem:[%s6289_s22 + $0xf8] sm:$0xff] }
  0x4d   : > { %5231 = vrot.lane.b32.xlu0 %v5230_v33, %s6156_s25 }
  0x50   : > { %5236 = vrot.lane.b32.xlu1 %v5200_v59, %s6156_s25  ;;  %v603_v59 = vrot.slane %v464_v56, 7 }
  0x51   : > { %5241 = vrot.lane.b32.xlu0 %v5240_v52, %s6157_s29 }
  0x52   : > { %v6568_v22 = vsel %vm584_vm0, %v603_v59, %v604_v15  ;;  %v6571_v23 = vsel %vm584_vm0, %v542_v10, %v603_v59 }
  0x53   : > { %9059 = vst [vmem:[#allocation10_spill] sm:$0xff] %v6568_v22  ;;  %9060 = vst [vmem:[#allocation11_spill] sm:$0xff] %v6571_v23  ;;  %v805_v35 = vrot.slane %v6571_v23, 1  ;;  %v806_v36 = vrot.slane %v6568_v22, 1  ;;  %v881_v53 = vrot.slane %v6571_v23, 2  ;;  %v882_v56 = vrot.slane %v6568_v22, 2 }
  0x54   : > { %5246 = vrot.lane.b32.xlu1 %v5205_v29, %s6157_s29  ;;  %v427_v29 = vld [vmem:[%s6289_s22 + $0x70] sm:$0xff] }
  0x55   : > { %5251 = vrot.lane.b32.xlu0 %v5250_v58, %s6155_s27  ;;  %v466_v47 = vmul.f32 %v6292_v4, %v427_v29  ;;  %v6595_v54 = vsel %vm774_vm1, %v805_v35, %v806_v36  ;;  %v6598_v55 = vsel %vm774_vm1, %v806_v36, %v808_v46  ;;  %v6609_v59 = vsel %vm850_vm2, %v881_v53, %v882_v56  ;;  %v429_v29 = vld [vmem:[%s6289_s22 + $0x80] sm:$0xff] }
  0x56   : > { %9061 = vst [vmem:[#allocation12_spill] sm:$0xff] %v6595_v54  ;;  %9062 = vst [vmem:[#allocation13_spill] sm:$0xff] %v6598_v55  ;;  %v6606_v10 = vpack.i.bf16 %v6598_v55, %v6595_v54  ;;  %v468_v51 = vmul.f32 %v6292_v4, %v429_v29  ;;  %v469_v53 = vmul.f32 %v6292_v4, %v430_v27 }
  0x57   : > { %v543_v57 = vrot.slane %v466_v47, 1  ;;  %v606_v60 = vrot.slane %v466_v47, 7 }
  0x58   : > { %5256 = vrot.lane.b32.xlu1 %v5215_v20, %s6155_s27  ;;  %v6591_v20 = vpack.i.bf16 %v6568_v22, %v6571_v23  ;;  %v544_v29 = vrot.slane %v468_v51, 1  ;;  %v609_v27 = vrot.slane %v468_v51, 7  ;;  %v688_v23 = vrot.slane %v469_v53, 5  ;;  %v443_v22 = vld [vmem:[%s6289_s22 + $0xf0] sm:$0xff] }
  0x59   : > { %5261 = vrot.lane.b32.xlu0 %v5260_v17, %s6156_s25  ;;  %v6615_v16 = vsel %vm584_vm0, %v606_v60, %v607_v7 }
  0x5a   : > { %9063 = vst [vmem:[#allocation14_spill] sm:$0xff] %v6615_v16  ;;  %v811_v46 = vrot.slane %v6615_v16, 1 }
  0x5c   : > { %5266 = vrot.lane.b32.xlu1 %v5220_v21, %s6156_s25  ;;  %v884_v21 = vrot.slane %v734_v24, 2  ;;  %v6618_v24 = vsel %vm584_vm0, %v543_v57, %v606_v60  ;;  %v1745_v57 = vpack.c.bf16 %v6408_v14, %v6405_v13  ;;  %v431_v14 = vld [vmem:[%s6289_s22 + $0x90] sm:$0xff] }
  0x5d   : > { %5271 = vrot.lane.b32.xlu0 %v6580_v28, %s6157_s29  ;;  %9064 = vst [vmem:[#allocation15_spill] sm:$0xff] %v6618_v24  ;;  %v810_v36 = vrot.slane %v6618_v24, 1  ;;  %v470_v51 = vmul.f32 %v6292_v4, %v431_v14 }
  0x5e   : > { %v6612_v15 = vsel %vm850_vm2, %v882_v56, %v884_v21  ;;  %v886_v56 = vrot.slane %v6618_v24, 2  ;;  %v887_v21 = vrot.slane %v6615_v16, 2  ;;  %5014 = vmatprep.mubr.msk.bf16.mxu1 %vm1552_vm3, %v1745_v57 }
  0x5f   : > { %v6628_v35 = vpack.i.bf16 %v6612_v15, %v6609_v59  ;;  %v6646_v60 = vsel %vm774_vm1, %v810_v36, %v811_v46 }
  0x60   : > { %5276 = vrot.lane.b32.xlu1 %v5230_v33, %s6157_s29  ;;  %v735_v33 = vsel %vm584_vm0, %v607_v7, %v687_v9  ;;  %9065 = vst [vmem:[#allocation16_spill] sm:$0xff] %v6646_v60  ;;  %v1748_v9 = vpack.c.bf16 %v6461_v50, %v6457_v49  ;;  %v6665_v49 = vsel %vm850_vm2, %v886_v56, %v887_v21 }
  0x61   : > { %5281 = vrot.lane.b32.xlu0 %v6591_v20, %s6155_s27  ;;  %v813_v47 = vrot.slane %v735_v33, 1  ;;  %v889_v7 = vrot.slane %v735_v33, 2  ;;  %v432_v33 = vld [vmem:[%s6289_s22 + $0x98] sm:$0xff]  ;;  %v1754_v56 = vpack.c.bf16 %v6526_v38, %v6523_v37 }
  0x62   : > { %5015 = vmatmul.mubr.msk.bf16.vlgmr.msra.gmra.mrb[0].mxu1 %vm1552_vm3, %v1748_v9 }
  0x63   : > { %v6668_v50 = vsel %vm850_vm2, %v887_v21, %v889_v7 }
  0x64   : > { %5286 = vrot.lane.b32.xlu1 %v5240_v52, %s6155_s27  ;;  %v6639_v52 = vpack.i.bf16 %v6615_v16, %v6618_v24  ;;  %v610_v24 = vrot.slane %v469_v53, 7  ;;  %v471_v53 = vmul.f32 %v6292_v4, %v432_v33  ;;  %v6689_v21 = vpack.i.bf16 %v6668_v50, %v6665_v49 }
  0x65   : > { %5291 = vrot.lane.b32.xlu0 %v6606_v10, %s6156_s25 }
  0x66   : > { %v6671_v36 = vsel %vm584_vm0, %v609_v27, %v610_v24  ;;  %v613_v37 = vrot.slane %v471_v53, 7  ;;  %v689_v7 = vrot.slane %v471_v53, 5  ;;  %v433_v53 = vld [vmem:[%s6289_s22 + $0xa0] sm:$0xff] }
  0x67   : > { %9067 = vst [vmem:[#allocation18_spill] sm:$0xff] %v6671_v36 }
  0x68   : > { %5296 = vrot.lane.b32.xlu1 %v5250_v58, %s6156_s25  ;;  %v6649_v58 = vsel %vm774_vm1, %v811_v46, %v813_v47  ;;  %v736_v46 = vsel %vm584_vm0, %v610_v24, %v688_v23  ;;  %v1751_v47 = vpack.c.bf16 %v6498_v12, %v6495_v11  ;;  %v816_v12 = vrot.slane %v6671_v36, 1 }
  0x69   : > { %5301 = vrot.lane.b32.xlu0 %v6628_v35, %s6157_s29  ;;  %9066 = vst [vmem:[#allocation17_spill] sm:$0xff] %v6649_v58  ;;  %v6660_v13 = vpack.i.bf16 %v6649_v58, %v6646_v60  ;;  %v818_v23 = vrot.slane %v736_v46, 1  ;;  %v612_v24 = vrot.slane %v470_v51, 7 }
  0x6a   : > { %5018 = vmatprep.mubr.msk.bf16.mxu1 %vm1552_vm3, %v1751_v47 }
  0x6b   : > { %5019 = vmatmul.mubr.msk.bf16.gmra.mrb[4].mxu1 %vm1552_vm3, %v1754_v56  ;;  %v6714_v14 = vsel %vm584_vm0, %v612_v24, %v613_v37 }
  0x6c   : > { %5306 = vrot.lane.b32.xlu1 %v5260_v17, %s6157_s29  ;;  %v6674_v17 = vsel %vm584_vm0, %v544_v29, %v609_v27  ;;  %v892_v29 = vrot.slane %v6671_v36, 2  ;;  %v894_v27 = vrot.slane %v736_v46, 2  ;;  %9071 = vst [vmem:[#allocation22_spill] sm:$0xff] %v6714_v14  ;;  %v434_v46 = vld [vmem:[%s6289_s22 + $0xa8] sm:$0xff] }
  0x6d   : > { %5311 = vrot.lane.b32.xlu0 %v6639_v52, %s6155_s27  ;;  %9068 = vst [vmem:[#allocation19_spill] sm:$0xff] %v6674_v17  ;;  %v815_v11 = vrot.slane %v6674_v17, 1  ;;  %v6701_v38 = vpack.i.bf16 %v6671_v36, %v6674_v17  ;;  %v891_v57 = vrot.slane %v6674_v17, 2  ;;  %v438_v17 = vld [vmem:[%s6289_s22 + $0xc8] sm:$0xff] }
  0x6f   : > { %v6705_v9 = vsel %vm774_vm1, %v815_v11, %v816_v12  ;;  %v893_v56 = vsel %vm850_vm2, %v891_v57, %v892_v29  ;;  %v1757_v57 = vpack.c.bf16 %v6565_v19, %v6562_v18 }
  0x70   : > { %5316 = vrot.lane.b32.xlu1 %v6580_v28, %s6155_s27  ;;  %v545_v28 = vrot.slane %v470_v51, 1  ;;  %9069 = vst [vmem:[#allocation20_spill] sm:$0xff] %v6705_v9  ;;  %v737_v51 = vsel %vm584_vm0, %v613_v37, %v689_v7  ;;  %v1760_v7 = vpack.c.bf16 %v6612_v15, %v6609_v59 }
  0x71   : > { %5321 = vrot.lane.b32.xlu0 %v6660_v13, %s6156_s25  ;;  %5022 = vmatprep.mubr.msk.bf16.mxu1 %vm1552_vm3, %v1757_v57 }
  0x72   : > { %v6717_v33 = vsel %vm584_vm0, %v545_v28, %v612_v24  ;;  %v472_v28 = vmul.f32 %v6292_v4, %v433_v53  ;;  %v473_v24 = vmul.f32 %v6292_v4, %v434_v46  ;;  %v897_v53 = vrot.slane %v6714_v14, 2 }
  0x73   : > { %9072 = vst [vmem:[#allocation23_spill] sm:$0xff] %v6717_v33  ;;  %v820_v11 = vrot.slane %v6717_v33, 1  ;;  %v899_v46 = vrot.slane %v737_v51, 2  ;;  %5023 = vmatmul.mubr.msk.bf16.gmra.mrb[8].mxu1 %vm1552_vm3, %v1760_v7 }
  0x74   : > { %5326 = vrot.lane.b32.xlu1 %v6591_v20, %s6156_s25  ;;  %v6708_v20 = vsel %vm774_vm1, %v816_v12, %v818_v23  ;;  %v821_v12 = vrot.slane %v6714_v14, 1  ;;  %v823_v23 = vrot.slane %v737_v51, 1  ;;  %v546_v19 = vrot.slane %v472_v28, 1  ;;  %v435_v51 = vld [vmem:[%s6289_s22 + $0xb0] sm:$0xff] }
  0x75   : > { %5331 = vrot.lane.b32.xlu0 %v6689_v21, %s6157_s29  ;;  %9070 = vst [vmem:[#allocation21_spill] sm:$0xff] %v6708_v20  ;;  %v6723_v47 = vpack.i.bf16 %v6708_v20, %v6705_v9  ;;  %v615_v59 = vrot.slane %v472_v28, 7  ;;  %v616_v15 = vrot.slane %v473_v24, 7 }
  0x76   : > { %v6755_v18 = vsel %vm774_vm1, %v821_v12, %v823_v23  ;;  %v900_v23 = vsel %vm850_vm2, %v897_v53, %v899_v46 }
  0x77   : > { %9074 = vst [vmem:[#allocation25_spill] sm:$0xff] %v6755_v18  ;;  %v6776_v28 = vsel %vm584_vm0, %v615_v59, %v616_v15 }
  0x78   : > { %5336 = vrot.lane.b32.xlu1 %v6606_v10, %s6157_s29  ;;  %v895_v10 = vsel %vm850_vm2, %v892_v29, %v894_v27  ;;  %v1763_v29 = vpack.c.bf16 %v6668_v50, %v6665_v49  ;;  %v896_v27 = vrot.slane %v6717_v33, 2  ;;  %v6762_v49 = vpack.i.bf16 %v6714_v14, %v6717_v33  ;;  %9075 = vst [vmem:[#allocation26_spill] sm:$0xff] %v6776_v28  ;;  %v437_v14 = vld [vmem:[%s6289_s22 + $0xc0] sm:$0xff] }
  0x79   : > { %5341 = vrot.lane.b32.xlu0 %v6701_v38, %s6155_s27  ;;  %v6738_v37 = vpack.i.bf16 %v895_v10, %v893_v56  ;;  %v690_v50 = vrot.slane %v473_v24, 5  ;;  %v6779_v24 = vsel %vm584_vm0, %v546_v19, %v615_v59  ;;  %v1766_v57 = vpack.c.bf16 %v895_v10, %v893_v56 }
  0x7a   : > { %5026 = vmatprep.mubr.msk.bf16.mxu1 %vm1552_vm3, %v1763_v29  ;;  %9076 = vst [vmem:[#allocation27_spill] sm:$0xff] %v6779_v24  ;;  %v474_v29 = vmul.f32 %v6292_v4, %v435_v51  ;;  %v825_v10 = vrot.slane %v6779_v24, 1  ;;  %v826_v19 = vrot.slane %v6776_v28, 1 }
  0x7b   : > { %v738_v7 = vsel %vm584_vm0, %v616_v15, %v690_v50  ;;  %5027 = vmatmul.mubr.msk.bf16.gmra.mrb[12].mxu1 %vm1552_vm3, %v1766_v57  ;;  %v6808_v57 = vpack.i.bf16 %v6776_v28, %v6779_v24 }
  0x7c   : > { %5346 = vrot.lane.b32.xlu1 %v6628_v35, %s6155_s27  ;;  %v6747_v35 = vsel %vm774_vm1, %v820_v11, %v821_v12  ;;  %v898_v12 = vsel %vm850_vm2, %v896_v27, %v897_v53  ;;  %v902_v53 = vrot.slane %v6776_v28, 2  ;;  %v904_v46 = vrot.slane %v738_v7, 2 }
  0x7d   : > { %5351 = vrot.lane.b32.xlu0 %v6723_v47, %s6156_s25  ;;  %9073 = vst [vmem:[#allocation24_spill] sm:$0xff] %v6747_v35  ;;  %v6769_v11 = vpack.i.bf16 %v6755_v18, %v6747_v35  ;;  %v1769_v33 = vpack.c.bf16 %v900_v23, %v898_v12  ;;  %v6792_v56 = vpack.i.bf16 %v900_v23, %v898_v12  ;;  %v828_v59 = vrot.slane %v738_v7, 1  ;;  %v442_v18 = vld [vmem:[%s6289_s22 + $0xe8] sm:$0xff] }
  0x7e   : > { %v547_v15 = vrot.slane %v474_v29, 1  ;;  %v618_v50 = vrot.slane %v474_v29, 7  ;;  %v477_v12 = vmul.f32 %v6292_v4, %v438_v17  ;;  %v905_v7 = vsel %vm850_vm2, %v902_v53, %v904_v46 }
  0x7f   : > { %5030 = vmatprep.mubr.msk.bf16.mxu1 %vm1552_vm3, %v1769_v33  ;;  %v6811_v29 = vsel %vm774_vm1, %v825_v10, %v826_v19  ;;  %v440_v33 = vld [vmem:[%s6289_s22 + $0xd8] sm:$0xff]  ;;  %v6818_v17 = vsel %vm774_vm1, %v826_v19, %v828_v59 }
  0x80   : > { %5356 = vrot.lane.b32.xlu1 %v6639_v52, %s6156_s25  ;;  %v436_v52 = vld [vmem:[%s6289_s22 + $0xb8] sm:$0xff]  ;;  %9077 = vst [vmem:[#allocation28_spill] sm:$0xff] %v6811_v29  ;;  %9078 = vst [vmem:[#allocation29_spill] sm:$0xff] %v6818_v17  ;;  %v622_v10 = vrot.slane %v477_v12, 7  ;;  %v479_v35 = vmul.f32 %v6292_v4, %v440_v33  ;;  %v6833_v19 = vpack.i.bf16 %v6818_v17, %v6811_v29 }
  0x81   : > { %5361 = vrot.lane.b32.xlu0 %v6738_v37, %s6157_s29  ;;  %v475_v27 = vmul.f32 %v6292_v4, %v436_v52 }
  0x82   : > { %v693_v29 = vrot.slane %v479_v35, 5 }
  0x83   : > { %v619_v51 = vrot.slane %v475_v27, 7  ;;  %v691_v52 = vrot.slane %v475_v27, 5  ;;  %v439_v27 = vld [vmem:[%s6289_s22 + $0xd0] sm:$0xff] }
  0x84   : > { %5366 = vrot.lane.b32.xlu1 %v6660_v13, %s6157_s29  ;;  %v901_v13 = vrot.slane %v6779_v24, 2  ;;  %v692_v24 = vrot.slane %v477_v12, 5  ;;  %v478_v28 = vmul.f32 %v6292_v4, %v439_v27 }
  0x85   : > { %5371 = vrot.lane.b32.xlu0 %v6762_v49, %s6155_s27 }
  0x86   : > { %v903_v23 = vsel %vm850_vm2, %v901_v13, %v902_v53  ;;  %v739_v13 = vsel %vm584_vm0, %v619_v51, %v691_v52  ;;  %v740_v12 = vsel %vm584_vm0, %v622_v10, %v692_v24  ;;  %v549_v27 = vrot.slane %v478_v28, 1 }
  0x87   : > { %v1772_v36 = vpack.c.bf16 %v905_v7, %v903_v23  ;;  %v909_v52 = vrot.slane %v739_v13, 2  ;;  %v624_v33 = vrot.slane %v478_v28, 7  ;;  %v6851_v17 = vpack.i.bf16 %v905_v7, %v903_v23 }
  0x88   : > { %5376 = vrot.lane.b32.xlu1 %v6689_v21, %s6155_s27  ;;  %v476_v21 = vmul.f32 %v6292_v4, %v437_v14  ;;  %v6821_v14 = vsel %vm584_vm0, %v618_v50, %v619_v51  ;;  %v838_v23 = vrot.slane %v740_v12, 1 }
  0x89   : > { %5381 = vrot.lane.b32.xlu0 %v6769_v11, %s6156_s25  ;;  %9079 = vst [vmem:[#allocation30_spill] sm:$0xff] %v6821_v14  ;;  %5031 = vmatmul.mubr.msk.bf16.gmra.mrb[16].mxu1 %vm1552_vm3, %v1772_v36  ;;  %v907_v4 = vrot.slane %v6821_v14, 2  ;;  %v625_v36 = vrot.slane %v479_v35, 7 }
  0x8a   : > { %v548_v53 = vrot.slane %v476_v21, 1  ;;  %v621_v46 = vrot.slane %v476_v21, 7 }
  0x8b   : > { %v910_v24 = vsel %vm850_vm2, %v907_v4, %v909_v52 }
  0x8c   : > { %5386 = vrot.lane.b32.xlu1 %v6701_v38, %s6156_s25  ;;  %v6824_v38 = vsel %vm584_vm0, %v547_v15, %v618_v50  ;;  %v831_v15 = vrot.slane %v6821_v14, 1  ;;  %v833_v50 = vrot.slane %v739_v13, 1  ;;  %v6846_v21 = vsel %vm584_vm0, %v548_v53, %v621_v46 }
  0x8d   : > { %5391 = vrot.lane.b32.xlu0 %v6792_v56, %s6157_s29  ;;  %9080 = vst [vmem:[#allocation31_spill] sm:$0xff] %v6824_v38  ;;  %v830_v59 = vrot.slane %v6824_v38, 1  ;;  %v906_v51 = vrot.slane %v6824_v38, 2  ;;  %9082 = vst [vmem:[#allocation33_spill] sm:$0xff] %v6846_v21  ;;  %v835_v35 = vrot.slane %v6846_v21, 1  ;;  %v911_v7 = vrot.slane %v6846_v21, 2 }
  0x8e   : > { %v6859_v53 = vsel %vm774_vm1, %v831_v15, %v833_v50  ;;  %v6872_v50 = vsel %vm584_vm0, %v624_v33, %v625_v36  ;;  %v6884_v16 = vpack.i.bf16 %v6821_v14, %v6824_v38 }
  0x8f   : > { %v6854_v13 = vsel %vm774_vm1, %v830_v59, %v831_v15  ;;  %9084 = vst [vmem:[#allocation35_spill] sm:$0xff] %v6859_v53  ;;  %v908_v28 = vsel %vm850_vm2, %v906_v51, %v907_v4  ;;  %v441_v59 = vld [vmem:[%s6289_s22 + $0xe0] sm:$0xff]  ;;  %v914_v15 = vrot.slane %v740_v12, 2  ;;  %9085 = vst [vmem:[#allocation36_spill] sm:$0xff] %v6872_v50  ;;  %v6875_v51 = vsel %vm584_vm0, %v549_v27, %v624_v33 }
  0x90   : > { %5396 = vrot.lane.b32.xlu1 %v6723_v47, %s6157_s29  ;;  %v6843_v47 = vsel %vm584_vm0, %v621_v46, %v622_v10  ;;  %9083 = vst [vmem:[#allocation34_spill] sm:$0xff] %v6854_v13  ;;  %9086 = vst [vmem:[#allocation37_spill] sm:$0xff] %v6875_v51  ;;  %v741_v4 = vsel %vm584_vm0, %v625_v36, %v693_v29  ;;  %v6890_v12 = vpack.i.bf16 %v6859_v53, %v6854_v13  ;;  %v6086_v29 = vld [vmem:[%s6280_s21] ss:$0 sm:$0xff] }
  0x91   : > { %5401 = vrot.lane.b32.xlu0 %v6808_v57, %s6155_s27  ;;  %9081 = vst [vmem:[#allocation32_spill] sm:$0xff] %v6843_v47  ;;  %v912_v10 = vrot.slane %v6843_v47, 2  ;;  %v6892_v27 = vpack.i.bf16 %v910_v24, %v908_v28  ;;  %v480_v33 = vmul.f32 %v6086_v29, %v441_v59  ;;  %v481_v36 = vmul.f32 %v6086_v29, %v442_v18 }
  0x92   : > { %v6899_v9 = vpack.i.bf16 %v6843_v47, %v6846_v21  ;;  %v840_v38 = vrot.slane %v6875_v51, 1  ;;  %v841_v14 = vrot.slane %v6872_v50, 1  ;;  %v843_v20 = vrot.slane %v741_v4, 1 }
  0x93   : > { %v913_v18 = vsel %vm850_vm2, %v911_v7, %v912_v10  ;;  %v915_v59 = vsel %vm850_vm2, %v912_v10, %v914_v15  ;;  %v916_v21 = vrot.slane %v6875_v51, 2  ;;  %v919_v60 = vrot.slane %v741_v4, 2 }
  0x94   : > { %5406 = vrot.lane.b32.xlu1 %v6738_v37, %s6155_s27  ;;  %v836_v37 = vrot.slane %v6843_v47, 1  ;;  %v917_v47 = vrot.slane %v6872_v50, 2  ;;  %v628_v7 = vrot.slane %v481_v36, 7  ;;  %v1778_v58 = vpack.c.bf16 %v915_v59, %v913_v18 }
  0x95   : > { %5411 = vrot.lane.b32.xlu0 %v6833_v19, %s6156_s25  ;;  %v6921_v15 = vsel %vm774_vm1, %v840_v38, %v841_v14  ;;  %v694_v45 = vrot.slane %v481_v36, 5  ;;  %v6927_v54 = vmul.f32 %v6086_v29, %v443_v22  ;;  %v6939_v38 = vpack.i.bf16 %v915_v59, %v913_v18 }
  0x96   : > { %v6864_v46 = vpop.permute.xlu0 %5131  ;;  %v6904_v13 = vsel %vm774_vm1, %v835_v35, %v836_v37  ;;  %v6907_v53 = vsel %vm774_vm1, %v836_v37, %v838_v23  ;;  %v1775_v35 = vpack.c.bf16 %v910_v24, %v908_v28  ;;  %v550_v37 = vrot.slane %v480_v33, 1  ;;  %9089 = vst [vmem:[#allocation40_spill] sm:$0xff] %v6921_v15 }
  0x97   : > { %v6880_v52 = vpop.permute.xlu1 %5136  ;;  %9087 = vst [vmem:[#allocation38_spill] sm:$0xff] %v6904_v13  ;;  %9088 = vst [vmem:[#allocation39_spill] sm:$0xff] %v6907_v53  ;;  %v627_v23 = vrot.slane %v480_v33, 7  ;;  %v6934_v24 = vpack.i.bf16 %v6907_v53, %v6904_v13  ;;  %v6946_v22 = vsel %vm850_vm2, %v916_v21, %v917_v47  ;;  %v483_v33 = vmul.f32 %v6086_v29, %v444_v42 }
  0x98   : > { %5416 = vrot.lane.b32.xlu1 %v6762_v49, %s6156_s25  ;;  %5034 = vmatprep.mubr.msk.bf16.mxu1 %vm1552_vm3, %v1775_v35  ;;  %v6964_v21 = vsel %vm584_vm0, %v628_v7, %v694_v45  ;;  %v551_v18 = vrot.slane %v6927_v54, 1  ;;  %v5134_v59 = vunpack.i.h.bf16 %v6864_v46  ;;  %v5133_v35 = vunpack.i.l.bf16 %v6864_v46 }
  0x99   : > { %5421 = vrot.lane.b32.xlu0 %v6851_v17, %s6157_s29  ;;  %5035 = vmatmul.mubr.msk.bf16.gmra.mrb[20].mxu1 %vm1552_vm3, %v1778_v58  ;;  %v6961_v4 = vsel %vm584_vm0, %v550_v37, %v627_v23 }
  0x9b   : > { %v6895_v49 = vpop.permute.xlu0 %5141 }
  0x9c   : > { %5426 = vrot.lane.b32.xlu1 %v6769_v11, %s6157_s29  ;;  %v6924_v11 = vsel %vm774_vm1, %v841_v14, %v843_v20  ;;  %v6943_v20 = vpack.i.bf16 %v6872_v50, %v6875_v51  ;;  %v6949_v14 = vsel %vm850_vm2, %v917_v47, %v919_v60  ;;  %v921_v60 = vrot.slane %v6961_v4, 2 }
  0x9d   : > { %5431 = vrot.lane.b32.xlu0 %v6884_v16, %s6155_s27  ;;  %9090 = vst [vmem:[#allocation41_spill] sm:$0xff] %v6924_v11  ;;  %v6955_v58 = vpack.i.bf16 %v6924_v11, %v6921_v15  ;;  %v5144_v37 = vunpack.i.h.bf16 %v6895_v49  ;;  %v5143_v42 = vunpack.i.l.bf16 %v6895_v49  ;;  %v5139_v11 = vunpack.i.h.bf16 %v6880_v52 }
  0x9e   : > { %v6918_v10 = vpop.permute.xlu1 %5151 }
  0x9f   : > { %v6930_v28 = vpop.permute.xlu0 %5146 }
  0xa0   : > { %5436 = vrot.lane.b32.xlu1 %v6792_v56, %s6155_s27  ;;  %v6958_v56 = vsel %vm584_vm0, %v627_v23, %v628_v7  ;;  %v630_v7 = vrot.slane %v6927_v54, 7  ;;  %v1554_v54 = vsel %vm1552_vm3, %v6307_v25, %v5144_v37 }
  0xa1   : > { %5441 = vrot.lane.b32.xlu0 %v6890_v12, %s6156_s25  ;;  %v922_v47 = vrot.slane %v6958_v56, 2 }
  0xa2   : > { %v5157_v36 = vpop.permute.xlu1 %5156 }
  0xa3   : > { %v5159_v51 = vunpack.i.h.bf16 %v5157_v36  ;;  %v5158_v50 = vunpack.i.l.bf16 %v5157_v36  ;;  %v5167_v15 = vpop.permute.xlu0 %5166  ;;  %v631_v36 = vrot.slane %v483_v33, 7 }
  0xa4   : > { %5446 = vrot.lane.b32.xlu1 %v6808_v57, %s6156_s25  ;;  %v5169_v45 = vunpack.i.h.bf16 %v5167_v15  ;;  %v5168_v29 = vunpack.i.l.bf16 %v5167_v15  ;;  %v695_v15 = vrot.slane %v483_v33, 5 }
  0xa5   : > { %5451 = vrot.lane.b32.xlu0 %v6892_v27, %s6157_s29  ;;  %v1647_v23 = vsel %vm1552_vm3, %v6386_v3, %v5158_v50  ;;  %v1648_v46 = vsel %vm1552_vm3, %v6389_v5, %v5159_v51  ;;  %v5138_v5 = vunpack.i.l.bf16 %v6880_v52  ;;  %v1553_v50 = vsel %vm1552_vm3, %v6310_v26, %v5143_v42 }
  0xa6   : > { %v5162_v49 = vpop.permute.xlu1 %5161  ;;  %v1679_v13 = vsel %vm1583_vm4, %v1647_v23, %v5133_v35  ;;  %v1680_v57 = vsel %vm1583_vm4, %v1648_v46, %v5134_v59  ;;  %v7013_v42 = vsel %vm584_vm0, %v551_v18, %v630_v7 }
  0xa7   : > { %v5164_v53 = vunpack.i.h.bf16 %v5162_v49  ;;  %v5163_v55 = vunpack.i.l.bf16 %v5162_v49  ;;  %v5172_v6 = vpop.permute.xlu0 %5171  ;;  %v1711_v8 = vsel %vm1614_vm5, %v1679_v13, %v5168_v29  ;;  %v1712_v3 = vsel %vm1614_vm5, %v1680_v57, %v5169_v45 }
  0xa8   : > { %5456 = vrot.lane.b32.xlu1 %v6833_v19, %s6157_s29  ;;  %v1744_v51 = vpack.c.bf16 %v1712_v3, %v1711_v8  ;;  %v5174_v33 = vunpack.i.h.bf16 %v5172_v6  ;;  %v5173_v59 = vunpack.i.l.bf16 %v5172_v6  ;;  %v7007_v8 = vsel %vm850_vm2, %v921_v60, %v922_v47 }
  0xa9   : > { %5461 = vrot.lane.b32.xlu0 %v6899_v9, %s6155_s27  ;;  %v6997_v13 = vsel %vm1583_vm4, %v1553_v50, %v5163_v55  ;;  %v7000_v52 = vsel %vm1583_vm4, %v1554_v54, %v5164_v53  ;;  %v924_v6 = vrot.slane %v6964_v21, 2  ;;  %v5149_v19 = vunpack.i.h.bf16 %v6930_v28 }
  0xaa   : > { %v5177_v35 = vpop.permute.xlu1 %5176  ;;  %1975 = vmatprep.mubr.bf16.mxu0 %v1744_v51  ;;  %v1615_v25 = vsel %vm1614_vm5, %v6997_v13, %v5138_v5  ;;  %v1616_v26 = vsel %vm1614_vm5, %v7000_v52, %v5139_v11  ;;  %v5148_v55 = vunpack.i.l.bf16 %v6930_v28  ;;  %v7018_v11 = vsel %vm584_vm0, %v630_v7, %v631_v36 }
  0xab   : > { %v1743_v37 = vpack.c.bf16 %v1616_v26, %v1615_v25  ;;  %v5182_v53 = vpop.permute.xlu0 %5181  ;;  %v5179_v45 = vunpack.i.h.bf16 %v5177_v35  ;;  %v5178_v29 = vunpack.i.l.bf16 %v5177_v35  ;;  %v7021_v60 = vsel %vm584_vm0, %v631_v36, %v695_v15 }
  0xac   : > { %5466 = vrot.lane.b32.xlu1 %v6851_v17, %s6155_s27  ;;  %v1650_v23 = vsel %vm1552_vm3, %v6344_v44, %v5174_v33  ;;  %v1649_v28 = vsel %vm1552_vm3, %v6341_v43, %v5173_v59  ;;  %v5184_v18 = vunpack.i.h.bf16 %v5182_v53  ;;  %v5183_v46 = vunpack.i.l.bf16 %v5182_v53 }
  0xad   : > { %1976 = vmatmul.mubr.bf16.vlgmr.msra.gmra.mrb[0].mxu0 %v1743_v37  ;;  %5471 = vrot.lane.b32.xlu0 %v6934_v24, %s6156_s25  ;;  %v7030_v17 = vsel %vm850_vm2, %v922_v47, %v924_v6  ;;  %v965_v7 = vrot.slane %v7013_v42, 2  ;;  %v966_v36 = vrot.slane %v7018_v11, 2  ;;  %v968_v57 = vrot.slane %v7021_v60, 2 }
  0xae   : > { %v5187_v49 = vpop.permute.xlu1 %5186  ;;  %v1556_v44 = vsel %vm1552_vm3, %v6317_v30, %v5149_v19  ;;  %v1555_v43 = vsel %vm1552_vm3, %v6320_v31, %v5148_v55  ;;  %v1681_v50 = vsel %vm1583_vm4, %v1649_v28, %v5178_v29  ;;  %v1682_v51 = vsel %vm1583_vm4, %v1650_v23, %v5179_v45 }
  0xaf   : > { %v5189_v15 = vunpack.i.h.bf16 %v5187_v49  ;;  %v5188_v3 = vunpack.i.l.bf16 %v5187_v49  ;;  %v5192_v5 = vpop.permute.xlu0 %5191  ;;  %v1586_v31 = vsel %vm1583_vm4, %v1555_v43, %v5183_v46  ;;  %v1587_v59 = vsel %vm1583_vm4, %v1556_v44, %v5184_v18 }
  0xb0   : > { %5476 = vrot.lane.b32.xlu1 %v6884_v16, %s6156_s25  ;;  %v5194_v47 = vunpack.i.h.bf16 %v5192_v5  ;;  %v5193_v54 = vunpack.i.l.bf16 %v5192_v5  ;;  %v7052_v6 = vsel %vm850_vm2, %v965_v7, %v966_v36  ;;  %v7055_v45 = vsel %vm850_vm2, %v966_v36, %v968_v57 }
  0xb1   : > { %5481 = vrot.lane.b32.xlu0 %v6939_v38, %s6157_s29  ;;  %v1713_v30 = vsel %vm1614_vm5, %v1681_v50, %v5188_v3  ;;  %v1714_v33 = vsel %vm1614_vm5, %v1682_v51, %v5189_v15  ;;  %v1787_v28 = vpack.c.bf16 %v7055_v45, %v7052_v6  ;;  %v1781_v18 = vpack.c.bf16 %v6949_v14, %v6946_v22 }
  0xb2   : > { %v5197_v35 = vpop.permute.xlu1 %5196  ;;  %v1747_v25 = vpack.c.bf16 %v1714_v33, %v1713_v30  ;;  %v1617_v16 = vsel %vm1614_vm5, %v1586_v31, %v5193_v54  ;;  %v1618_v26 = vsel %vm1614_vm5, %v1587_v59, %v5194_v47  ;;  %v7079_v3 = vpack.i.bf16 %v6949_v14, %v6946_v22 }
  0xb3   : > { %v5199_v19 = vunpack.i.h.bf16 %v5197_v35  ;;  %v5198_v55 = vunpack.i.l.bf16 %v5197_v35  ;;  %v5202_v37 = vpop.permute.xlu0 %5201  ;;  %v1746_v53 = vpack.c.bf16 %v1618_v26, %v1617_v16  ;;  %5038 = vmatprep.mubr.msk.bf16.mxu1 %vm1552_vm3, %v1781_v18  ;;  %v845_v54 = vrot.slane %v6961_v4, 1 }
  0xb4   : > { %5486 = vrot.lane.b32.xlu1 %v6890_v12, %s6157_s29  ;;  %1983 = vmatprep.mubr.bf16.mxu0 %v1747_v25  ;;  %v5204_v29 = vunpack.i.h.bf16 %v5202_v37  ;;  %v5203_v23 = vunpack.i.l.bf16 %v5202_v37  ;;  %v1784_v12 = vpack.c.bf16 %v7030_v17, %v7007_v8  ;;  %v846_v50 = vrot.slane %v6958_v56, 1 }
  0xb5   : > { %v1652_v46 = vsel %vm1552_vm3, %v6374_v62, %v5199_v19  ;;  %v1651_v49 = vsel %vm1552_vm3, %v6371_v61, %v5198_v55  ;;  %5491 = vrot.lane.b32.xlu0 %v6943_v20, %s6155_s27  ;;  %1984 = vmatmul.mubr.bf16.gmra.mrb[4].mxu0 %v1746_v53  ;;  %v848_v14 = vrot.slane %v6964_v21, 1  ;;  %v5153_v37 = vunpack.i.l.bf16 %v6918_v10 }
  0xb6   : > { %v5207_v7 = vpop.permute.xlu1 %5206  ;;  %v1683_v36 = vsel %vm1583_vm4, %v1651_v49, %v5203_v23  ;;  %v1684_v57 = vsel %vm1583_vm4, %v1652_v46, %v5204_v29  ;;  %5039 = vmatmul.mubr.msk.bf16.gmra.mrb[24].mxu1 %vm1552_vm3, %v1784_v12  ;;  %v7102_v21 = vsel %vm774_vm1, %v845_v54, %v846_v50  ;;  %v7143_v54 = vpack.i.bf16 %v7030_v17, %v7007_v8 }
  0xb7   : > { %v5209_v44 = vunpack.i.h.bf16 %v5207_v7  ;;  %v5208_v43 = vunpack.i.l.bf16 %v5207_v7  ;;  %v5212_v62 = vpop.permute.xlu0 %5211  ;;  %5042 = vmatprep.mubr.msk.bf16.mxu1 %vm1552_vm3, %v1787_v28  ;;  %v7110_v55 = vsel %vm774_vm1, %v846_v50, %v848_v14  ;;  %v928_v7 = vrot.slane %v7013_v42, 1 }
  0xb8   : > { %5496 = vrot.lane.b32.xlu1 %v6892_v27, %s6155_s27  ;;  %v5214_v61 = vunpack.i.h.bf16 %v5212_v62  ;;  %v5213_v15 = vunpack.i.l.bf16 %v5212_v62 }
  0xb9   : > { %5501 = vrot.lane.b32.xlu0 %v6955_v58, %s6156_s25  ;;  %v1715_v5 = vsel %vm1614_vm5, %v1683_v36, %v5208_v43  ;;  %v1716_v47 = vsel %vm1614_vm5, %v1684_v57, %v5209_v44  ;;  %v1557_v36 = vsel %vm1552_vm3, %v6330_v39, %v5153_v37 }
  0xba   : > { %v5217_v27 = vpop.permute.xlu1 %5216  ;;  %v1750_v51 = vpack.c.bf16 %v1716_v47, %v1715_v5  ;;  %v1619_v30 = vsel %vm1614_vm5, %v6997_v13, %v5213_v15  ;;  %v1620_v22 = vsel %vm1614_vm5, %v7000_v52, %v5214_v61  ;;  %v7099_v13 = vpack.i.bf16 %v6958_v56, %v6961_v4 }
  0xbb   : > { %v5219_v33 = vunpack.i.h.bf16 %v5217_v27  ;;  %v5218_v31 = vunpack.i.l.bf16 %v5217_v27  ;;  %v5222_v59 = vpop.permute.xlu0 %5221  ;;  %v1749_v35 = vpack.c.bf16 %v1620_v22, %v1619_v30  ;;  %v5154_v52 = vunpack.i.h.bf16 %v6918_v10 }
  0xbc   : > { %5506 = vrot.lane.b32.xlu1 %v6899_v9, %s6156_s25  ;;  %1991 = vmatprep.mubr.bf16.mxu0 %v1750_v51  ;;  %v5224_v25 = vunpack.i.h.bf16 %v5222_v59  ;;  %v5223_v16 = vunpack.i.l.bf16 %v5222_v59  ;;  %v929_v15 = vrot.slane %v7018_v11, 1  ;;  %v931_v5 = vrot.slane %v7021_v60, 1 }
  0xbd   : > { %5511 = vrot.lane.b32.xlu0 %v7079_v3, %s6157_s29  ;;  %1992 = vmatmul.mubr.bf16.gmra.mrb[8].mxu0 %v1749_v35  ;;  %v1654_v26 = vsel %vm1552_vm3, %v6478_v0, %v5219_v33  ;;  %v1653_v9 = vsel %vm1552_vm3, %v6475_v63, %v5218_v31  ;;  %v7120_v63 = vpack.i.bf16 %v7110_v55, %v7102_v21 }
  0xbe   : > { %v5227_v19 = vpop.permute.xlu1 %5226  ;;  %5043 = vmatmul.mubr.msk.bf16.gmra.mrb[28].mxu1 %vm1552_vm3, %v1784_v12  ;;  %v1685_v0 = vsel %vm1583_vm4, %v1653_v9, %v5223_v16  ;;  %v1686_v10 = vsel %vm1583_vm4, %v1654_v26, %v5224_v25  ;;  %v1558_v46 = vsel %vm1552_vm3, %v6351_v48, %v5154_v52  ;;  %v7149_v60 = vpack.i.bf16 %v7018_v11, %v7013_v42 }
  0xbf   : > { %v5232_v53 = vpop.permute.xlu0 %5231  ;;  %v5229_v29 = vunpack.i.h.bf16 %v5227_v19  ;;  %v5228_v23 = vunpack.i.l.bf16 %v5227_v19  ;;  %v7152_v22 = vsel %vm774_vm1, %v928_v7, %v929_v15  ;;  %v7155_v14 = vsel %vm774_vm1, %v929_v15, %v931_v5 }
  0xc0   : > { %5516 = vrot.lane.b32.xlu1 %v6934_v24, %s6157_s29  ;;  %v5234_v28 = vunpack.i.h.bf16 %v5232_v53  ;;  %v5233_v18 = vunpack.i.l.bf16 %v5232_v53  ;;  %v5560_v35 = vpack.i.bf16 %v7155_v14, %v7152_v22 }
  0xc1   : > { %5521 = vrot.lane.b32.xlu0 %v7099_v13, %s6155_s27  ;;  %v1588_v61 = vsel %vm1583_vm4, %v1557_v36, %v5228_v23  ;;  %v1589_v48 = vsel %vm1583_vm4, %v1558_v46, %v5229_v29  ;;  %v5570_v46 = vpack.i.bf16 %v7055_v45, %v7052_v6 }
  0xc2   : > { %v5237_v49 = vpop.permute.xlu1 %5236  ;;  %v1717_v12 = vsel %vm1614_vm5, %v1685_v0, %v5233_v18  ;;  %v1718_v24 = vsel %vm1614_vm5, %v1686_v10, %v5234_v28 }
  0xc3   : > { %v5239_v57 = vunpack.i.h.bf16 %v5237_v49  ;;  %v5238_v44 = vunpack.i.l.bf16 %v5237_v49  ;;  %v5242_v43 = vpop.permute.xlu0 %5241  ;;  %v1753_v62 = vpack.c.bf16 %v1718_v24, %v1717_v12 }
  0xc4   : > { %5526 = vrot.lane.b32.xlu1 %v6939_v38, %s6155_s27  ;;  %v5244_v50 = vunpack.i.h.bf16 %v5242_v43  ;;  %v5243_v27 = vunpack.i.l.bf16 %v5242_v43 }
  0xc5   : > { %5531 = vrot.lane.b32.xlu0 %v7120_v63, %s6156_s25  ;;  %1999 = vmatprep.mubr.bf16.mxu0 %v1753_v62  ;;  %v1621_v39 = vsel %vm1614_vm5, %v1588_v61, %v5238_v44  ;;  %v1622_v47 = vsel %vm1614_vm5, %v1589_v48, %v5239_v57 }
  0xc6   : > { %v5247_v38 = vpop.permute.xlu1 %5246  ;;  %v1752_v51 = vpack.c.bf16 %v1622_v47, %v1621_v39  ;;  %v1655_v42 = vsel %vm1552_vm3, %v6513_v32, %v5243_v27  ;;  %v9091_v39 = vld [vmem:[#allocation7_spill] sm:$0xff] }
  0xc7   : > { %v5252_v30 = vpop.permute.xlu0 %5251  ;;  %v5249_v8 = vunpack.i.h.bf16 %v5247_v38  ;;  %v5248_v17 = vunpack.i.l.bf16 %v5247_v38  ;;  %v9092_v38 = vld [vmem:[#allocation6_spill] sm:$0xff] }
  0xc8   : > { %5536 = vrot.lane.b32.xlu1 %v6943_v20, %s6156_s25  ;;  %2000 = vmatmul.mubr.bf16.gmra.mrb[12].mxu0 %v1752_v51  ;;  %v5254_v33 = vunpack.i.h.bf16 %v5252_v30  ;;  %v5253_v31 = vunpack.i.l.bf16 %v5252_v30  ;;  %v1656_v20 = vsel %vm1552_vm3, %v6516_v34, %v5244_v50 }
  0xc9   : > { %5541 = vrot.lane.b32.xlu0 %v7143_v54, %s6157_s29  ;;  %v1560_v9 = vsel %vm1552_vm3, %v6444_v40, %v5249_v8  ;;  %v1559_v34 = vsel %vm1552_vm3, %v6447_v41, %v5248_v17 }
  0xca   : > { %v5257_v11 = vpop.permute.xlu1 %5256  ;;  %v1687_v32 = vsel %vm1583_vm4, %v1655_v42, %v5253_v31  ;;  %v1688_v19 = vsel %vm1583_vm4, %v1656_v20, %v5254_v33 }
  0xcb   : > { %v5262_v59 = vpop.permute.xlu0 %5261  ;;  %v5259_v25 = vunpack.i.h.bf16 %v5257_v11  ;;  %v5258_v16 = vunpack.i.l.bf16 %v5257_v11 }
  0xcc   : > { %5546 = vrot.lane.b32.xlu1 %v6955_v58, %s6157_s29  ;;  %v5264_v52 = vunpack.i.h.bf16 %v5262_v59  ;;  %v5263_v26 = vunpack.i.l.bf16 %v5262_v59 }
  0xcd   : > { %5551 = vrot.lane.b32.xlu0 %v7149_v60, %s6155_s27  ;;  %v1590_v40 = vsel %vm1583_vm4, %v1559_v34, %v5258_v16  ;;  %v1591_v41 = vsel %vm1583_vm4, %v1560_v9, %v5259_v25 }
  0xce   : > { %v5267_v37 = vpop.permute.xlu1 %5266  ;;  %v1719_v53 = vsel %vm1614_vm5, %v1687_v32, %v5263_v26  ;;  %v1720_v58 = vsel %vm1614_vm5, %v1688_v19, %v5264_v52  ;;  %v9094_v19 = vld [vmem:[#allocation12_spill] sm:$0xff] }
  0xcf   : > { %v5269_v29 = vunpack.i.h.bf16 %v5267_v37  ;;  %v5268_v23 = vunpack.i.l.bf16 %v5267_v37  ;;  %v5272_v28 = vpop.permute.xlu0 %5271  ;;  %v1756_v18 = vpack.c.bf16 %v1720_v58, %v1719_v53 }
  0xd0   : > { %5556 = vrot.lane.b32.xlu1 %v7079_v3, %s6155_s27  ;;  %v5274_v12 = vunpack.i.h.bf16 %v5272_v28  ;;  %v5273_v24 = vunpack.i.l.bf16 %v5272_v28 }
  0xd1   : > { %5561 = vrot.lane.b32.xlu0 %v5560_v35, %s6156_s25  ;;  %2007 = vmatprep.mubr.bf16.mxu0 %v1756_v18  ;;  %v1623_v0 = vsel %vm1614_vm5, %v1590_v40, %v5268_v23  ;;  %v1624_v10 = vsel %vm1614_vm5, %v1591_v41, %v5269_v29  ;;  %v9095_v40 = vld [vmem:[#allocation8_spill] sm:$0xff] }
  0xd2   : > { %v5277_v49 = vpop.permute.xlu1 %5276  ;;  %v1755_v7 = vpack.c.bf16 %v1624_v10, %v1623_v0  ;;  %v1658_v62 = vsel %vm1552_vm3, %v6554_v2, %v5274_v12  ;;  %v1657_v6 = vsel %vm1552_vm3, %v6551_v1, %v5273_v24  ;;  %v9096_v0 = vld [vmem:[#allocation9_spill] sm:$0xff] }
  0xd3   : > { %v5282_v36 = vpop.permute.xlu0 %5281  ;;  %v5279_v3 = vunpack.i.h.bf16 %v5277_v49  ;;  %v5278_v57 = vunpack.i.l.bf16 %v5277_v49 }
  0xd4   : > { %5566 = vrot.lane.b32.xlu1 %v7099_v13, %s6156_s25  ;;  %2008 = vmatmul.mubr.bf16.gmra.mrb[16].mxu0 %v1755_v7  ;;  %v5284_v44 = vunpack.i.h.bf16 %v5282_v36  ;;  %v5283_v43 = vunpack.i.l.bf16 %v5282_v36 }
  0xd5   : > { %5571 = vrot.lane.b32.xlu0 %v5570_v46, %s6157_s29  ;;  %v1562_v47 = vsel %vm1552_vm3, %v9091_v39, %v5279_v3  ;;  %v1561_v50 = vsel %vm1552_vm3, %v9092_v38, %v5278_v57 }
  0xd6   : > { %v5287_v45 = vpop.permute.xlu1 %5286  ;;  %v1689_v1 = vsel %vm1583_vm4, %v1657_v6, %v5283_v43  ;;  %v1690_v2 = vsel %vm1583_vm4, %v1658_v62, %v5284_v44 }
  0xd7   : > { %v5292_v61 = vpop.permute.xlu0 %5291  ;;  %v5289_v48 = vunpack.i.h.bf16 %v5287_v45  ;;  %v5288_v15 = vunpack.i.l.bf16 %v5287_v45 }
  0xd8   : > { %5576 = vrot.lane.b32.xlu1 %v7120_v63, %s6157_s29  ;;  %v5294_v13 = vunpack.i.h.bf16 %v5292_v61  ;;  %v5293_v5 = vunpack.i.l.bf16 %v5292_v61 }
  0xd9   : > { %5581 = vrot.lane.b32.xlu0 %v7143_v54, %s6155_s27  ;;  %v1592_v31 = vsel %vm1583_vm4, %v1561_v50, %v5288_v15  ;;  %v1593_v54 = vsel %vm1583_vm4, %v1562_v47, %v5289_v48 }
  0xda   : > { %v5297_v27 = vpop.permute.xlu1 %5296  ;;  %v1721_v51 = vsel %vm1614_vm5, %v1689_v1, %v5293_v5  ;;  %v1722_v63 = vsel %vm1614_vm5, %v1690_v2, %v5294_v13  ;;  %v9097_v1 = vld [vmem:[#allocation17_spill] sm:$0xff] }
  0xdb   : > { %v5299_v30 = vunpack.i.h.bf16 %v5297_v27  ;;  %v5298_v8 = vunpack.i.l.bf16 %v5297_v27  ;;  %v5302_v17 = vpop.permute.xlu0 %5301  ;;  %v1759_v33 = vpack.c.bf16 %v1722_v63, %v1721_v51  ;;  %v9098_v27 = vld [vmem:[#allocation16_spill] sm:$0xff] }
  0xdc   : > { %5586 = vrot.lane.b32.xlu1 %v7149_v60, %s6156_s25  ;;  %v5304_v59 = vunpack.i.h.bf16 %v5302_v17  ;;  %v5303_v35 = vunpack.i.l.bf16 %v5302_v17  ;;  %v9093_v60 = vld [vmem:[#allocation13_spill] sm:$0xff] }
  0xdd   : > { %2015 = vmatprep.mubr.bf16.mxu0 %v1759_v33  ;;  %v1625_v20 = vsel %vm1614_vm5, %v1592_v31, %v5298_v8  ;;  %v1626_v42 = vsel %vm1614_vm5, %v1593_v54, %v5299_v30  ;;  %v9099_v54 = vld [vmem:[#allocation10_spill] sm:$0xff] }
  0xde   : > { %v5307_v11 = vpop.permute.xlu1 %5306  ;;  %v1758_v25 = vpack.c.bf16 %v1626_v42, %v1625_v20  ;;  %v1660_v32 = vsel %vm1552_vm3, %v9093_v60, %v5304_v59  ;;  %v1659_v37 = vsel %vm1552_vm3, %v9094_v19, %v5303_v35  ;;  %v9100_v42 = vld [vmem:[#allocation11_spill] sm:$0xff] }
  0xdf   : > { %v5312_v16 = vpop.permute.xlu0 %5311  ;;  %v5309_v52 = vunpack.i.h.bf16 %v5307_v11  ;;  %v5308_v26 = vunpack.i.l.bf16 %v5307_v11 }
  0xe0   : > { %2016 = vmatmul.mubr.bf16.gmra.mrb[20].mxu0 %v1758_v25  ;;  %v5314_v9 = vunpack.i.h.bf16 %v5312_v16  ;;  %v5313_v34 = vunpack.i.l.bf16 %v5312_v16 }
  0xe1   : > { %v1564_v41 = vsel %vm1552_vm3, %v9095_v40, %v5309_v52  ;;  %v1563_v10 = vsel %vm1552_vm3, %v9096_v0, %v5308_v26 }
  0xe2   : > { %v5317_v53 = vpop.permute.xlu1 %5316  ;;  %v1691_v46 = vsel %vm1583_vm4, %v1659_v37, %v5313_v34  ;;  %v1692_v49 = vsel %vm1583_vm4, %v1660_v32, %v5314_v9 }
  0xe3   : > { %v5322_v58 = vpop.permute.xlu0 %5321  ;;  %v5319_v29 = vunpack.i.h.bf16 %v5317_v53  ;;  %v5318_v23 = vunpack.i.l.bf16 %v5317_v53 }
  0xe4   : > { %v5324_v28 = vunpack.i.h.bf16 %v5322_v58  ;;  %v5323_v18 = vunpack.i.l.bf16 %v5322_v58 }
  0xe5   : > { %v1594_v43 = vsel %vm1583_vm4, %v1563_v10, %v5318_v23  ;;  %v1595_v62 = vsel %vm1583_vm4, %v1564_v41, %v5319_v29 }
  0xe6   : > { %v5327_v12 = vpop.permute.xlu1 %5326  ;;  %v1723_v24 = vsel %vm1614_vm5, %v1691_v46, %v5323_v18  ;;  %v1724_v7 = vsel %vm1614_vm5, %v1692_v49, %v5324_v28  ;;  %v9101_v46 = vld [vmem:[#allocation21_spill] sm:$0xff] }
  0xe7   : > { %v5329_v36 = vunpack.i.h.bf16 %v5327_v12  ;;  %v5328_v3 = vunpack.i.l.bf16 %v5327_v12  ;;  %v5332_v57 = vpop.permute.xlu0 %5331  ;;  %v1762_v44 = vpack.c.bf16 %v1724_v7, %v1723_v24  ;;  %v9102_v12 = vld [vmem:[#allocation20_spill] sm:$0xff] }
  0xe8   : > { %v5334_v48 = vunpack.i.h.bf16 %v5332_v57  ;;  %v5333_v15 = vunpack.i.l.bf16 %v5332_v57 }
  0xe9   : > { %2023 = vmatprep.mubr.bf16.mxu0 %v1762_v44  ;;  %v1627_v6 = vsel %vm1614_vm5, %v1594_v43, %v5328_v3  ;;  %v1628_v45 = vsel %vm1614_vm5, %v1595_v62, %v5329_v36  ;;  %v9103_v62 = vld [vmem:[#allocation14_spill] sm:$0xff] }
  0xea   : > { %v5337_v61 = vpop.permute.xlu1 %5336  ;;  %v1761_v13 = vpack.c.bf16 %v1628_v45, %v1627_v6  ;;  %v1662_v2 = vsel %vm1552_vm3, %v9097_v1, %v5334_v48  ;;  %v1661_v51 = vsel %vm1552_vm3, %v9098_v27, %v5333_v15  ;;  %v9104_v45 = vld [vmem:[#allocation15_spill] sm:$0xff] }
  0xeb   : > { %v5342_v5 = vpop.permute.xlu0 %5341  ;;  %v5339_v39 = vunpack.i.h.bf16 %v5337_v61  ;;  %v5338_v47 = vunpack.i.l.bf16 %v5337_v61 }
  0xec   : > { %2024 = vmatmul.mubr.bf16.gmra.mrb[24].mxu0 %v1761_v13  ;;  %v5344_v38 = vunpack.i.h.bf16 %v5342_v5  ;;  %v5343_v50 = vunpack.i.l.bf16 %v5342_v5 }
  0xed   : > { %v1566_v20 = vsel %vm1552_vm3, %v9099_v54, %v5339_v39  ;;  %v1565_v11 = vsel %vm1552_vm3, %v9100_v42, %v5338_v47 }
  0xee   : > { %v5347_v63 = vpop.permute.xlu1 %5346  ;;  %v1693_v59 = vsel %vm1583_vm4, %v1661_v51, %v5343_v50  ;;  %v1694_v35 = vsel %vm1583_vm4, %v1662_v2, %v5344_v38 }
  0xef   : > { %v5352_v30 = vpop.permute.xlu0 %5351  ;;  %v5349_v8 = vunpack.i.h.bf16 %v5347_v63  ;;  %v5348_v17 = vunpack.i.l.bf16 %v5347_v63 }
  0xf0   : > { %v5354_v33 = vunpack.i.h.bf16 %v5352_v30  ;;  %v5353_v31 = vunpack.i.l.bf16 %v5352_v30 }
  0xf1   : > { %v1596_v32 = vsel %vm1583_vm4, %v1565_v11, %v5348_v17  ;;  %v1597_v19 = vsel %vm1583_vm4, %v1566_v20, %v5349_v8 }
  0xf2   : > { %v5357_v25 = vpop.permute.xlu1 %5356  ;;  %v1725_v16 = vsel %vm1614_vm5, %v1693_v59, %v5353_v31  ;;  %v1726_v52 = vsel %vm1614_vm5, %v1694_v35, %v5354_v33  ;;  %v9105_v59 = vld [vmem:[#allocation25_spill] sm:$0xff] }
  0xf3   : > { %v5359_v26 = vunpack.i.h.bf16 %v5357_v25  ;;  %v5358_v9 = vunpack.i.l.bf16 %v5357_v25  ;;  %v5362_v34 = vpop.permute.xlu0 %5361  ;;  %v1765_v60 = vpack.c.bf16 %v1726_v52, %v1725_v16  ;;  %v9106_v25 = vld [vmem:[#allocation24_spill] sm:$0xff] }
  0xf4   : > { %v5364_v29 = vunpack.i.h.bf16 %v5362_v34  ;;  %v5363_v23 = vunpack.i.l.bf16 %v5362_v34 }
  0xf5   : > { %2031 = vmatprep.mubr.bf16.mxu0 %v1765_v60  ;;  %v1629_v37 = vsel %vm1614_vm5, %v1596_v32, %v5358_v9  ;;  %v1630_v53 = vsel %vm1614_vm5, %v1597_v19, %v5359_v26  ;;  %v9107_v19 = vld [vmem:[#allocation18_spill] sm:$0xff] }
  0xf6   : > { %v5367_v58 = vpop.permute.xlu1 %5366  ;;  %v1764_v28 = vpack.c.bf16 %v1630_v53, %v1629_v37  ;;  %v1664_v49 = vsel %vm1552_vm3, %v9101_v46, %v5364_v29  ;;  %v1663_v24 = vsel %vm1552_vm3, %v9102_v12, %v5363_v23  ;;  %v9108_v53 = vld [vmem:[#allocation19_spill] sm:$0xff] }
  0xf7   : > { %v5372_v18 = vpop.permute.xlu0 %5371  ;;  %v5369_v40 = vunpack.i.h.bf16 %v5367_v58  ;;  %v5368_v41 = vunpack.i.l.bf16 %v5367_v58 }
  0xf8   : > { %2032 = vmatmul.mubr.bf16.gmra.mrb[28].mxu0 %v1764_v28  ;;  %v5374_v0 = vunpack.i.h.bf16 %v5372_v18  ;;  %v5373_v10 = vunpack.i.l.bf16 %v5372_v18 }
  0xf9   : > { %v1568_v6 = vsel %vm1552_vm3, %v9103_v62, %v5369_v40  ;;  %v1567_v61 = vsel %vm1552_vm3, %v9104_v45, %v5368_v41 }
  0xfa   : > { %v5377_v7 = vpop.permute.xlu1 %5376  ;;  %v1695_v48 = vsel %vm1583_vm4, %v1663_v24, %v5373_v10  ;;  %v1696_v15 = vsel %vm1583_vm4, %v1664_v49, %v5374_v0 }
  0xfb   : > { %v5382_v36 = vpop.permute.xlu0 %5381  ;;  %v5379_v3 = vunpack.i.h.bf16 %v5377_v7  ;;  %v5378_v57 = vunpack.i.l.bf16 %v5377_v7 }
  0xfc   : > { %v5384_v44 = vunpack.i.h.bf16 %v5382_v36  ;;  %v5383_v43 = vunpack.i.l.bf16 %v5382_v36 }
  0xfd   : > { %v1598_v2 = vsel %vm1583_vm4, %v1567_v61, %v5378_v57  ;;  %v1599_v27 = vsel %vm1583_vm4, %v1568_v6, %v5379_v3 }
  0xfe   : > { %v5387_v13 = vpop.permute.xlu1 %5386  ;;  %v1727_v5 = vsel %vm1614_vm5, %v1695_v48, %v5383_v43  ;;  %v1728_v39 = vsel %vm1614_vm5, %v1696_v15, %v5384_v44  ;;  %v9109_v48 = vld [vmem:[#allocation29_spill] sm:$0xff] }
  0xff   : > { %v5389_v47 = vunpack.i.h.bf16 %v5387_v13  ;;  %v5388_v38 = vunpack.i.l.bf16 %v5387_v13  ;;  %v5392_v50 = vpop.permute.xlu0 %5391  ;;  %v1768_v1 = vpack.c.bf16 %v1728_v39, %v1727_v5  ;;  %v9110_v13 = vld [vmem:[#allocation28_spill] sm:$0xff] }
 0x100   : > { %v5394_v8 = vunpack.i.h.bf16 %v5392_v50  ;;  %v5393_v17 = vunpack.i.l.bf16 %v5392_v50 }
 0x101   : > { %2039 = vmatprep.mubr.bf16.mxu0 %v1768_v1  ;;  %v1631_v51 = vsel %vm1614_vm5, %v1598_v2, %v5388_v38  ;;  %v1632_v63 = vsel %vm1614_vm5, %v1599_v27, %v5389_v47  ;;  %v9111_v27 = vld [vmem:[#allocation22_spill] sm:$0xff] }
 0x102   : > { %v5397_v30 = vpop.permute.xlu1 %5396  ;;  %v1767_v33 = vpack.c.bf16 %v1632_v63, %v1631_v51  ;;  %v1666_v35 = vsel %vm1552_vm3, %v9105_v59, %v5394_v8  ;;  %v1665_v16 = vsel %vm1552_vm3, %v9106_v25, %v5393_v17  ;;  %v9112_v63 = vld [vmem:[#allocation23_spill] sm:$0xff] }
 0x103   : > { %v5402_v31 = vpop.permute.xlu0 %5401  ;;  %v5399_v54 = vunpack.i.h.bf16 %v5397_v30  ;;  %v5398_v20 = vunpack.i.l.bf16 %v5397_v30 }
 0x104   : > { %2040 = vmatmul.mubr.bf16.gmra.mrb[32].mxu0 %v1767_v33  ;;  %v5404_v42 = vunpack.i.h.bf16 %v5402_v31  ;;  %v5403_v11 = vunpack.i.l.bf16 %v5402_v31 }
 0x105   : > { %v1570_v37 = vsel %vm1552_vm3, %v9107_v19, %v5399_v54  ;;  %v1569_v58 = vsel %vm1552_vm3, %v9108_v53, %v5398_v20 }
 0x106   : > { %v5407_v52 = vpop.permute.xlu1 %5406  ;;  %v1697_v29 = vsel %vm1583_vm4, %v1665_v16, %v5403_v11  ;;  %v1698_v23 = vsel %vm1583_vm4, %v1666_v35, %v5404_v42 }
 0x107   : > { %v5412_v26 = vpop.permute.xlu0 %5411  ;;  %v5409_v9 = vunpack.i.h.bf16 %v5407_v52  ;;  %v5408_v34 = vunpack.i.l.bf16 %v5407_v52 }
 0x108   : > { %v5414_v60 = vunpack.i.h.bf16 %v5412_v26  ;;  %v5413_v32 = vunpack.i.l.bf16 %v5412_v26 }
 0x109   : > { %v1600_v49 = vsel %vm1583_vm4, %v1569_v58, %v5408_v34  ;;  %v1601_v12 = vsel %vm1583_vm4, %v1570_v37, %v5409_v9 }
 0x10a   : > { %v5417_v28 = vpop.permute.xlu1 %5416  ;;  %v1729_v18 = vsel %vm1614_vm5, %v1697_v29, %v5413_v32  ;;  %v1730_v40 = vsel %vm1614_vm5, %v1698_v23, %v5414_v60  ;;  %v9113_v29 = vld [vmem:[#allocation35_spill] sm:$0xff] }
 0x10b   : > { %v5419_v41 = vunpack.i.h.bf16 %v5417_v28  ;;  %v5418_v0 = vunpack.i.l.bf16 %v5417_v28  ;;  %v5422_v10 = vpop.permute.xlu0 %5421  ;;  %v1771_v46 = vpack.c.bf16 %v1730_v40, %v1729_v18  ;;  %v9114_v28 = vld [vmem:[#allocation34_spill] sm:$0xff] }
 0x10c   : > { %v5424_v3 = vunpack.i.h.bf16 %v5422_v10  ;;  %v5423_v57 = vunpack.i.l.bf16 %v5422_v10 }
 0x10d   : > { %2047 = vmatprep.mubr.bf16.mxu0 %v1771_v46  ;;  %v1633_v24 = vsel %vm1614_vm5, %v1600_v49, %v5418_v0  ;;  %v1634_v7 = vsel %vm1614_vm5, %v1601_v12, %v5419_v41  ;;  %v9115_v12 = vld [vmem:[#allocation26_spill] sm:$0xff] }
 0x10e   : > { %v5427_v36 = vpop.permute.xlu1 %5426  ;;  %v1770_v44 = vpack.c.bf16 %v1634_v7, %v1633_v24  ;;  %v1668_v15 = vsel %vm1552_vm3, %v9109_v48, %v5424_v3  ;;  %v1667_v5 = vsel %vm1552_vm3, %v9110_v13, %v5423_v57  ;;  %v9116_v7 = vld [vmem:[#allocation27_spill] sm:$0xff] }
 0x10f   : > { %v5432_v43 = vpop.permute.xlu0 %5431  ;;  %v5429_v62 = vunpack.i.h.bf16 %v5427_v36  ;;  %v5428_v6 = vunpack.i.l.bf16 %v5427_v36 }
 0x110   : > { %2048 = vmatmul.mubr.bf16.gmra.mrb[36].mxu0 %v1770_v44  ;;  %v5434_v45 = vunpack.i.h.bf16 %v5432_v43  ;;  %v5433_v61 = vunpack.i.l.bf16 %v5432_v43 }
 0x111   : > { %v1572_v51 = vsel %vm1552_vm3, %v9111_v27, %v5429_v62  ;;  %v1571_v30 = vsel %vm1552_vm3, %v9112_v63, %v5428_v6 }
 0x112   : > { %v5437_v39 = vpop.permute.xlu1 %5436  ;;  %v1699_v8 = vsel %vm1583_vm4, %v1667_v5, %v5433_v61  ;;  %v1700_v17 = vsel %vm1583_vm4, %v1668_v15, %v5434_v45  ;;  %v7308_v5 = vld [vmem:[%s8987_s5 + $0x80] sm:$0xff]  }
 0x113   : > { %v5442_v47 = vpop.permute.xlu0 %5441  ;;  %v5439_v38 = vunpack.i.h.bf16 %v5437_v39  ;;  %v5438_v50 = vunpack.i.l.bf16 %v5437_v39  ;;  %5046 = vmatprep.subr.bf16.mxu0 %v7308_v5 }
 0x114   : > { %v5444_v1 = vunpack.i.h.bf16 %v5442_v47  ;;  %v5443_v2 = vunpack.i.l.bf16 %v5442_v47  ;;  %5047 = vmatpush3.bf16.msra.mxu0 %v7308_v5 }
 0x115   : > { %v1602_v35 = vsel %vm1583_vm4, %v1571_v30, %v5438_v50  ;;  %v1603_v25 = vsel %vm1583_vm4, %v1572_v51, %v5439_v38 }
 0x116   : > { %v5447_v33 = vpop.permute.xlu1 %5446  ;;  %v1731_v31 = vsel %vm1614_vm5, %v1699_v8, %v5443_v2  ;;  %v1732_v54 = vsel %vm1614_vm5, %v1700_v17, %v5444_v1  ;;  %v6069_v17 = vld [vmem:[%s8987_s5 + $0x88] sm:$0xff]  }
 0x117   : > { %v5449_v20 = vunpack.i.h.bf16 %v5447_v33  ;;  %v5448_v42 = vunpack.i.l.bf16 %v5447_v33  ;;  %v5452_v11 = vpop.permute.xlu0 %5451  ;;  %v1774_v59 = vpack.c.bf16 %v1732_v54, %v1731_v31  ;;  %v9117_v33 = vld [vmem:[#allocation39_spill] sm:$0xff]  ;;  %v9118_v54 = vld [vmem:[#allocation38_spill] sm:$0xff]  ;;  %5048 = vmatprep.subr.bf16.mxu0 %v6069_v17 }
 0x118   : > { %v5454_v9 = vunpack.i.h.bf16 %v5452_v11  ;;  %v5453_v34 = vunpack.i.l.bf16 %v5452_v11  ;;  %5049 = vmatpush3.bf16.msra.mxu0 %v6069_v17 }
 0x119   : > { %2055 = vmatprep.mubr.bf16.mxu0 %v1774_v59  ;;  %v1635_v16 = vsel %vm1614_vm5, %v1602_v35, %v5448_v42  ;;  %v1636_v52 = vsel %vm1614_vm5, %v1603_v25, %v5449_v20 }
 0x11a   : > { %v5457_v26 = vpop.permute.xlu1 %5456  ;;  %v1773_v60 = vpack.c.bf16 %v1636_v52, %v1635_v16  ;;  %v1670_v23 = vsel %vm1552_vm3, %v9113_v29, %v5454_v9  ;;  %v1669_v18 = vsel %vm1552_vm3, %v9114_v28, %v5453_v34  ;;  %v9119_v52 = vld [vmem:[#allocation30_spill] sm:$0xff]  ;;  %v9120_v9 = vld [vmem:[#allocation31_spill] sm:$0xff] }
 0x11b   : > { %v5462_v32 = vpop.permute.xlu0 %5461  ;;  %v5459_v19 = vunpack.i.h.bf16 %v5457_v26  ;;  %v5458_v37 = vunpack.i.l.bf16 %v5457_v26 }
 0x11c   : > { %2056 = vmatmul.mubr.bf16.gmra.mrb[40].mxu0 %v1773_v60  ;;  %v5464_v53 = vunpack.i.h.bf16 %v5462_v32  ;;  %v5463_v58 = vunpack.i.l.bf16 %v5462_v32 }
 0x11d   : > { %v1574_v24 = vsel %vm1552_vm3, %v9115_v12, %v5459_v19  ;;  %v1573_v36 = vsel %vm1552_vm3, %v9116_v7, %v5458_v37 }
 0x11e   : > { %v5467_v40 = vpop.permute.xlu1 %5466  ;;  %v1701_v3 = vsel %vm1583_vm4, %v1669_v18, %v5463_v58  ;;  %v1702_v57 = vsel %vm1583_vm4, %v1670_v23, %v5464_v53 }
 0x11f   : > { %v5472_v41 = vpop.permute.xlu0 %5471  ;;  %v5469_v0 = vunpack.i.h.bf16 %v5467_v40  ;;  %v5468_v10 = vunpack.i.l.bf16 %v5467_v40 }
 0x120   : > { %v5474_v46 = vunpack.i.h.bf16 %v5472_v41  ;;  %v5473_v49 = vunpack.i.l.bf16 %v5472_v41 }
 0x121   : > { %v1604_v15 = vsel %vm1583_vm4, %v1573_v36, %v5468_v10  ;;  %v1605_v13 = vsel %vm1583_vm4, %v1574_v24, %v5469_v0 }
 0x122   : > { %v5477_v44 = vpop.permute.xlu1 %5476  ;;  %v1733_v43 = vsel %vm1614_vm5, %v1701_v3, %v5473_v49  ;;  %v1734_v62 = vsel %vm1614_vm5, %v1702_v57, %v5474_v46 }
 0x123   : > { %v5479_v6 = vunpack.i.h.bf16 %v5477_v44  ;;  %v5478_v45 = vunpack.i.l.bf16 %v5477_v44  ;;  %v5482_v61 = vpop.permute.xlu0 %5481  ;;  %v1777_v48 = vpack.c.bf16 %v1734_v62, %v1733_v43  ;;  %v9121_v44 = vld [vmem:[#allocation41_spill] sm:$0xff]  ;;  %v9122_v62 = vld [vmem:[#allocation40_spill] sm:$0xff] }
 0x124   : > { %v5484_v50 = vunpack.i.h.bf16 %v5482_v61  ;;  %v5483_v1 = vunpack.i.l.bf16 %v5482_v61 }
 0x125   : > { %2063 = vmatprep.mubr.bf16.mxu0 %v1777_v48  ;;  %v1637_v39 = vsel %vm1614_vm5, %v1604_v15, %v5478_v45  ;;  %v1638_v47 = vsel %vm1614_vm5, %v1605_v13, %v5479_v6 }
 0x126   : > { %v5487_v38 = vpop.permute.xlu1 %5486  ;;  %v1776_v2 = vpack.c.bf16 %v1638_v47, %v1637_v39  ;;  %v1672_v31 = vsel %vm1552_vm3, %v9117_v33, %v5484_v50  ;;  %v1671_v20 = vsel %vm1552_vm3, %v9118_v54, %v5483_v1  ;;  %v9123_v47 = vld [vmem:[#allocation32_spill] sm:$0xff]  ;;  %v9124_v50 = vld [vmem:[#allocation33_spill] sm:$0xff] }
 0x127   : > { %v5492_v27 = vpop.permute.xlu0 %5491  ;;  %v5489_v51 = vunpack.i.h.bf16 %v5487_v38  ;;  %v5488_v63 = vunpack.i.l.bf16 %v5487_v38 }
 0x128   : > { %2064 = vmatmul.mubr.bf16.gmra.mrb[44].mxu0 %v1776_v2  ;;  %v5494_v30 = vunpack.i.h.bf16 %v5492_v27  ;;  %v5493_v8 = vunpack.i.l.bf16 %v5492_v27 }
 0x129   : > { %v1576_v26 = vsel %vm1552_vm3, %v9119_v52, %v5489_v51  ;;  %v1575_v34 = vsel %vm1552_vm3, %v9120_v9, %v5488_v63 }
 0x12a   : > { %v5497_v42 = vpop.permute.xlu1 %5496  ;;  %v1703_v60 = vsel %vm1583_vm4, %v1671_v20, %v5493_v8  ;;  %v1704_v32 = vsel %vm1583_vm4, %v1672_v31, %v5494_v30 }
 0x12b   : > { %v5502_v11 = vpop.permute.xlu0 %5501  ;;  %v5499_v59 = vunpack.i.h.bf16 %v5497_v42  ;;  %v5498_v35 = vunpack.i.l.bf16 %v5497_v42 }
 0x12c   : > { %v5504_v25 = vunpack.i.h.bf16 %v5502_v11  ;;  %v5503_v16 = vunpack.i.l.bf16 %v5502_v11 }
 0x12d   : > { %v1606_v18 = vsel %vm1583_vm4, %v1575_v34, %v5498_v35  ;;  %v1607_v40 = vsel %vm1583_vm4, %v1576_v26, %v5499_v59 }
 0x12e   : > { %v5507_v19 = vpop.permute.xlu1 %5506  ;;  %v1735_v37 = vsel %vm1614_vm5, %v1703_v60, %v5503_v16  ;;  %v1736_v53 = vsel %vm1614_vm5, %v1704_v32, %v5504_v25 }
 0x12f   : > { %v5509_v58 = vunpack.i.h.bf16 %v5507_v19  ;;  %v5508_v29 = vunpack.i.l.bf16 %v5507_v19  ;;  %v5512_v23 = vpop.permute.xlu0 %5511  ;;  %v1780_v28 = vpack.c.bf16 %v1736_v53, %v1735_v37 }
 0x130   : > { %v5514_v46 = vunpack.i.h.bf16 %v5512_v23  ;;  %v5513_v49 = vunpack.i.l.bf16 %v5512_v23 }
 0x131   : > { %2071 = vmatprep.mubr.bf16.mxu0 %v1780_v28  ;;  %v1639_v41 = vsel %vm1614_vm5, %v1606_v18, %v5508_v29  ;;  %v1640_v0 = vsel %vm1614_vm5, %v1607_v40, %v5509_v58 }
 0x132   : > { %v5517_v10 = vpop.permute.xlu1 %5516  ;;  %v1779_v12 = vpack.c.bf16 %v1640_v0, %v1639_v41  ;;  %v1674_v43 = vsel %vm1552_vm3, %v9121_v44, %v5514_v46  ;;  %v1673_v6 = vsel %vm1552_vm3, %v9122_v62, %v5513_v49  ;;  %v9126_v49 = vld [vmem:[#allocation37_spill] sm:$0xff] }
 0x133   : > { %v7333_v24 = vpop.permute.xlu0 %5521  ;;  %v5519_v7 = vunpack.i.h.bf16 %v5517_v10  ;;  %v5518_v36 = vunpack.i.l.bf16 %v5517_v10  ;;  %v9125_v10 = vld [vmem:[#allocation36_spill] sm:$0xff] }
 0x134   : > { %2072 = vmatmul.mubr.bf16.gmra.mrb[48].mxu0 %v1779_v12  ;;  %v5524_v3 = vunpack.i.h.bf16 %v7333_v24  ;;  %v5523_v57 = vunpack.i.l.bf16 %v7333_v24 }
 0x135   : > { %v1578_v38 = vsel %vm1552_vm3, %v9123_v47, %v5519_v7  ;;  %v1577_v1 = vsel %vm1552_vm3, %v9124_v50, %v5518_v36  ;;  %v7365_v26 = vpop.f32.mrb[0].mxu1 }
 0x136   : > { %v5527_v45 = vpop.permute.xlu1 %5526  ;;  %v1705_v2 = vsel %vm1583_vm4, %v1673_v6, %v5523_v57  ;;  %v1706_v27 = vsel %vm1583_vm4, %v1674_v43, %v5524_v3  ;;  %v7367_v9 = vpop.f32.mrb[1].mxu1 }
 0x137   : > { %v7341_v61 = vpop.permute.xlu0 %5531  ;;  %v5529_v48 = vunpack.i.h.bf16 %v5527_v45  ;;  %v5528_v15 = vunpack.i.l.bf16 %v5527_v45  ;;  %v7369_v37 = vpop.f32.mrb[2].mxu1 }
 0x138   : > { %v5534_v13 = vunpack.i.h.bf16 %v7341_v61  ;;  %v5533_v39 = vunpack.i.l.bf16 %v7341_v61  ;;  %v7375_v23 = vpop.f32.mrb[3].mxu1 }
 0x139   : > { %v1608_v54 = vsel %vm1583_vm4, %v1577_v1, %v5528_v15  ;;  %v1609_v20 = vsel %vm1583_vm4, %v1578_v38, %v5529_v48 }
 0x13a   : > { %v5537_v51 = vpop.permute.xlu1 %5536  ;;  %v1737_v63 = vsel %vm1614_vm5, %v1705_v2, %v5533_v39  ;;  %v1738_v30 = vsel %vm1614_vm5, %v1706_v27, %v5534_v13 }
 0x13b   : > { %v5539_v8 = vunpack.i.h.bf16 %v5537_v51  ;;  %v5538_v17 = vunpack.i.l.bf16 %v5537_v51  ;;  %v5542_v33 = vpop.permute.xlu0 %5541  ;;  %v1783_v31 = vpack.c.bf16 %v1738_v30, %v1737_v63 }
 0x13c   : > { %v5544_v35 = vunpack.i.h.bf16 %v5542_v33  ;;  %v5543_v25 = vunpack.i.l.bf16 %v5542_v33 }
 0x13d   : > { %2079 = vmatprep.mubr.bf16.mxu0 %v1783_v31  ;;  %v1641_v42 = vsel %vm1614_vm5, %v1608_v54, %v5538_v17  ;;  %v1642_v11 = vsel %vm1614_vm5, %v1609_v20, %v5539_v8 }
 0x13e   : > { %v5547_v59 = vpop.permute.xlu1 %5546  ;;  %v1782_v16 = vpack.c.bf16 %v1642_v11, %v1641_v42  ;;  %v1676_v53 = vsel %vm1552_vm3, %v7110_v55, %v5544_v35  ;;  %v1675_v58 = vsel %vm1552_vm3, %v7102_v21, %v5543_v25  ;;  %v7385_v48 = vpop.f32.mrb[4].mxu1 }
 0x13f   : > { %v5552_v52 = vpop.permute.xlu0 %5551  ;;  %v5549_v34 = vunpack.i.h.bf16 %v5547_v59  ;;  %v5548_v60 = vunpack.i.l.bf16 %v5547_v59  ;;  %v7389_v1 = vpop.f32.mrb[5].mxu1 }
 0x140   : > { %2080 = vmatmul.mubr.bf16.gmra.mrb[52].mxu0 %v1782_v16  ;;  %v5554_v32 = vunpack.i.h.bf16 %v5552_v52  ;;  %v5553_v19 = vunpack.i.l.bf16 %v5552_v52  ;;  %v7393_v51 = vpop.f32.mrb[6].mxu1 }
 0x141   : > { %v1580_v46 = vsel %vm1552_vm3, %v9125_v10, %v5549_v34  ;;  %v1579_v12 = vsel %vm1552_vm3, %v9126_v49, %v5548_v60  ;;  %v7399_v33 = vpop.f32.mrb[7].mxu1 }
 0x142   : > { %v5557_v29 = vpop.permute.xlu1 %5556  ;;  %v1707_v7 = vsel %vm1583_vm4, %v1675_v58, %v5553_v19  ;;  %v1708_v55 = vsel %vm1583_vm4, %v1676_v53, %v5554_v32 }
 0x143   : > { %v5562_v28 = vpop.permute.xlu0 %5561  ;;  %v5559_v18 = vunpack.i.h.bf16 %v5557_v29  ;;  %v5558_v40 = vunpack.i.l.bf16 %v5557_v29 }
 0x144   : > { %v5564_v41 = vunpack.i.h.bf16 %v5562_v28  ;;  %v5563_v0 = vunpack.i.l.bf16 %v5562_v28 }
 0x145   : > { %v1610_v38 = vsel %vm1583_vm4, %v1579_v12, %v5558_v40  ;;  %v1611_v50 = vsel %vm1583_vm4, %v1580_v46, %v5559_v18 }
 0x146   : > { %v5567_v36 = vpop.permute.xlu1 %5566  ;;  %v1739_v21 = vsel %vm1614_vm5, %v1707_v7, %v5563_v0  ;;  %v1740_v44 = vsel %vm1614_vm5, %v1708_v55, %v5564_v41  ;;  %v7421_v32 = vpop.f32.mrb[8].mxu1 }
 0x147   : > { %v5569_v43 = vunpack.i.h.bf16 %v5567_v36  ;;  %v5568_v62 = vunpack.i.l.bf16 %v5567_v36  ;;  %v5572_v6 = vpop.permute.xlu0 %5571  ;;  %v1786_v45 = vpack.c.bf16 %v1740_v44, %v1739_v21 }
 0x148   : > { %v5574_v15 = vunpack.i.h.bf16 %v5572_v6  ;;  %v5573_v47 = vunpack.i.l.bf16 %v5572_v6 }
 0x149   : > { %2087 = vmatprep.mubr.bf16.mxu0 %v1786_v45  ;;  %v1643_v2 = vsel %vm1614_vm5, %v1610_v38, %v5568_v62  ;;  %v1644_v27 = vsel %vm1614_vm5, %v1611_v50, %v5569_v43  ;;  %v7456_v43 = vld [vmem:[%s8985_s3] ss:$0 sm:$0xff] }
 0x14a   : > { %v1678_v63 = vsel %vm1552_vm3, %v7155_v14, %v5574_v15  ;;  %v1677_v30 = vsel %vm1552_vm3, %v7152_v22, %v5573_v47  ;;  %v5577_v8 = vpop.permute.xlu1 %5576  ;;  %v1785_v17 = vpack.c.bf16 %v1644_v27, %v1643_v2  ;;  %v6070_v45 = vld [vmem:[%s8987_s5 + $0x40] sm:$0xff]  }
 0x14b   : > { %v5579_v31 = vunpack.i.h.bf16 %v5577_v8  ;;  %v5578_v54 = vunpack.i.l.bf16 %v5577_v8  ;;  %v5582_v20 = vpop.permute.xlu0 %5581  ;;  %v1709_v42 = vsel %vm1583_vm4, %v1677_v30, %v5523_v57  ;;  %v1710_v11 = vsel %vm1583_vm4, %v1678_v63, %v5524_v3  ;;  %v7465_v15 = vld [vmem:[%s8986_s4] ss:$0 sm:$0xff]  ;;  %4880 = vmatprep.subr.bf16.mxu1 %v6070_v45  ;;  %v6072_v63 = vld [vmem:[%s8987_s5 + $0x48] sm:$0xff]   ;;  %v6077_v45 = vld [vmem:[%s8987_s5 + $0x18] sm:$0xff]  }
 0x14c   : > { %2088 = vmatmul.mubr.bf16.gmra.mrb[56].mxu0 %v1785_v17  ;;  %v5584_v14 = vunpack.i.h.bf16 %v5582_v20  ;;  %v5583_v59 = vunpack.i.l.bf16 %v5582_v20  ;;  %v1741_v22 = vsel %vm1614_vm5, %v1709_v42, %v5533_v39  ;;  %v1742_v35 = vsel %vm1614_vm5, %v1710_v11, %v5534_v13  ;;  %v6071_v47 = vld [vmem:[%s8987_s5] sm:$0xff]   ;;  %v6073_v8 = vld [vmem:[%s8987_s5 + $0x8] sm:$0xff]  }
 0x14d   : > { %v1582_v25 = vsel %vm1552_vm3, %v6958_v56, %v5579_v31  ;;  %v1581_v57 = vsel %vm1552_vm3, %v6961_v4, %v5578_v54  ;;  %v1789_v24 = vpack.c.bf16 %v1742_v35, %v1741_v22  ;;  %v7423_v56 = vpop.f32.mrb[9].mxu1  ;;  %4881 = vmatpush3.bf16.msra.mxu1 %v6071_v47 }
 0x14e   : > { %v1613_v3 = vsel %vm1583_vm4, %v1582_v25, %v5584_v14  ;;  %v1612_v16 = vsel %vm1583_vm4, %v1581_v57, %v5583_v59  ;;  %v5587_v52 = vpop.permute.xlu1 %5586  ;;  %v7425_v4 = vpop.f32.mrb[10].mxu1  ;;  %4882 = vmatprep.subr.bf16.mxu1 %v6072_v63  ;;  %v6074_v59 = vld [vmem:[%s8987_s5 + $0x50] sm:$0xff]  }
 0x14f   : > { %v5589_v34 = vunpack.i.h.bf16 %v5587_v52  ;;  %v5588_v60 = vunpack.i.l.bf16 %v5587_v52  ;;  %2095 = vmatprep.mubr.bf16.mxu0 %v1789_v24  ;;  %v7427_v19 = vpop.f32.mrb[11].mxu1  ;;  %v6075_v57 = vld [vmem:[%s8987_s5 + $0x10] sm:$0xff]  }
 0x150   : > { %v7429_v53 = vpop.f32.mrb[12].mxu1 }
 0x151   : > { %v1645_v39 = vsel %vm1614_vm5, %v1612_v16, %v5588_v60  ;;  %v1646_v61 = vsel %vm1614_vm5, %v1613_v3, %v5589_v34  ;;  %v7431_v58 = vpop.f32.mrb[13].mxu1  ;;  %4883 = vmatpush3.bf16.msra.mxu1 %v6073_v8 }
 0x152   : > { %v1788_v13 = vpack.c.bf16 %v1646_v61, %v1645_v39  ;;  %v7433_v29 = vpop.f32.mrb[14].mxu1  ;;  %4884 = vmatprep.subr.bf16.mxu1 %v6074_v59 }
 0x153   : > { %v7435_v28 = vpop.f32.mrb[15].mxu1 }
 0x154   : > { %2096 = vmatmul.mubr.bf16.gmra.mrb[60].mxu0 %v1788_v13 }
 0x155   : > { %4885 = vmatpush3.bf16.msra.mxu1 %v6075_v57 }
 0x15c   : > { %v7437_v18 = vpop.f32.mrb[16].mxu1 }
 0x15d   : > { %v7439_v40 = vpop.f32.mrb[17].mxu1 }
 0x15e   : > { %v7441_v41 = vpop.f32.mrb[18].mxu1 }
 0x15f   : > { %v7443_v0 = vpop.f32.mrb[19].mxu1 }
 0x16c   : > { %v7445_v10 = vpop.f32.mrb[20].mxu1 }
 0x16d   : > { %v7447_v46 = vpop.f32.mrb[21].mxu1 }
 0x16e   : > { %v7449_v49 = vpop.f32.mrb[22].mxu1 }
 0x16f   : > { %v7451_v12 = vpop.f32.mrb[23].mxu1 }
 0x180   : > { %v4766_v7 = vpop.f32.mrb[0].mxu0 }
 0x181   : > { %v4767_v55 = vpop.f32.mrb[1].mxu0 }
 0x182   : > { %v4768_v36 = vadd.f32 %v4767_v55, %v4766_v7  ;;  %v4769_v21 = vpop.f32.mrb[2].mxu0  ;;  %v6076_v55 = vld [vmem:[%s8987_s5 + $0x58] sm:$0xff]  }
 0x183   : > { %v4770_v44 = vpop.f32.mrb[3].mxu0  ;;  %4886 = vmatprep.subr.bf16.mxu1 %v6076_v55 }
 0x184   : > { %v4771_v62 = vadd.f32 %v4770_v44, %v4769_v21  ;;  %v2139_v6 = vadd.f32 %v4768_v36, %v7367_v9  ;;  %4887 = vmatpush3.bf16.msra.mxu1 %v6077_v45 }
 0x186   : > { %v2272_v38 = vmul.f32 %v7456_v43, %v2139_v6  ;;  %v2142_v50 = vadd.f32 %v4771_v62, %v7375_v23 }
 0x188   : > { %v2311_v9 = vadd.f32 %v7465_v15, %v2272_v38  ;;  %v2273_v2 = vmul.f32 %v7456_v43, %v2142_v50  ;;  %v4772_v27 = vpop.f32.mrb[4].mxu0 }
 0x189   : > { %v4773_v30 = vpop.f32.mrb[5].mxu0  ;;  %v7489_v16 = vpop.f32.mrb[24].mxu1 }
 0x18a   : > { %vm2343_vm6 = vcmp.gt.f32.partialorder %v2311_v9, 0.0  ;;  %v2375_v17 = vmul.f32 0.2, %v2311_v9  ;;  %v2312_v23 = vadd.f32 %v7465_v15, %v2273_v2  ;;  %v4774_v31 = vadd.f32 %v4773_v30, %v4772_v27  ;;  %v4775_v54 = vpop.f32.mrb[6].mxu0  ;;  %v7497_v7 = vpop.f32.mrb[25].mxu1 }
 0x18b   : > { %v4776_v20 = vpop.f32.mrb[7].mxu0  ;;  %v7508_v6 = vpop.f32.mrb[26].mxu1 }
 0x18c   : > { %v2407_v42 = vsel %vm2343_vm6, %v2311_v9, %v2375_v17  ;;  %vm2344_vm7 = vcmp.gt.f32.partialorder %v2312_v23, 0.0  ;;  %v2376_v11 = vmul.f32 0.2, %v2312_v23  ;;  %v2147_v14 = vadd.f32 %v7365_v26, %v4774_v31  ;;  %v7515_v2 = vpop.f32.mrb[27].mxu1 }
 0x18d   : > { %v2492_v22 = vrot.slane %v2407_v42, 1  ;;  %v2542_v35 = vrot.slane %v2407_v42, 7  ;;  %v4777_v25 = vadd.f32 %v4776_v20, %v4775_v54  ;;  %v6078_v42 = vld [vmem:[%s8987_s5 + $0x60] sm:$0xff]  }
 0x18e   : > { %v2408_v24 = vsel %vm2344_vm7, %v2312_v23, %v2376_v11  ;;  %v2274_v3 = vmul.f32 %v7456_v43, %v2147_v14  ;;  %4888 = vmatprep.subr.bf16.mxu1 %v6078_v42 }
 0x18f   : > { %v2543_v52 = vrot.slane %v2408_v24, 7  ;;  %v2635_v34 = vrot.slane %v2408_v24, 5  ;;  %v2150_v26 = vadd.f32 %v7369_v37, %v4777_v25  ;;  %v7493_v60 = vsel %vm584_vm0, %v2492_v22, %v2542_v35  ;;  %v6079_v22 = vld [vmem:[%s8987_s5 + $0x20] sm:$0xff]  }
 0x190   : > { %v2313_v39 = vadd.f32 %v7465_v15, %v2274_v3  ;;  %v4778_v61 = vpop.f32.mrb[8].mxu0  ;;  %v2808_v13 = vrot.slane %v7493_v60, 2  ;;  %v2733_v62 = vrot.slane %v7493_v60, 1  ;;  %4889 = vmatpush3.bf16.msra.mxu1 %v6079_v22 }
 0x191   : > { %v2275_v36 = vmul.f32 %v7456_v43, %v2150_v26  ;;  %v4779_v21 = vpop.f32.mrb[9].mxu0  ;;  %v7504_v37 = vsel %vm584_vm0, %v2542_v35, %v2543_v52  ;;  %v2683_v44 = vsel %vm584_vm0, %v2543_v52, %v2635_v34 }
 0x192   : > { %vm2345_vm8 = vcmp.gt.f32.partialorder %v2313_v39, 0.0  ;;  %v2377_v47 = vmul.f32 0.2, %v2313_v39  ;;  %v4780_v38 = vadd.f32 %v4779_v21, %v4778_v61  ;;  %v5590_v50 = vpack.i.bf16 %v7504_v37, %v7493_v60  ;;  %v4781_v9 = vpop.f32.mrb[10].mxu0 }
 0x193   : > { %v2314_v27 = vadd.f32 %v7465_v15, %v2275_v36  ;;  %v4782_v63 = vpop.f32.mrb[11].mxu0  ;;  %v2809_v30 = vrot.slane %v7504_v37, 2  ;;  %v2811_v8 = vrot.slane %v2683_v44, 2  ;;  %v2734_v17 = vrot.slane %v7504_v37, 1 }
 0x194   : > { %v2409_v23 = vsel %vm2345_vm8, %v2313_v39, %v2377_v47  ;;  %5591 = vrot.lane.b32.xlu1 %v5590_v50, %s6156_s25  ;;  %v4783_v31 = vadd.f32 %v4782_v63, %v4781_v9  ;;  %v2155_v54 = vadd.f32 %v4780_v38, %v7389_v1  ;;  %v2736_v20 = vrot.slane %v2683_v44, 1  ;;  %v6081_v9 = vld [vmem:[%s8987_s5 + $0x28] sm:$0xff]  }
 0x195   : > { %v2491_v11 = vrot.slane %v2409_v23, 1  ;;  %v2539_v14 = vrot.slane %v2409_v23, 7  ;;  %vm2346_vm9 = vcmp.gt.f32.partialorder %v2314_v27, 0.0  ;;  %v2378_v59 = vmul.f32 0.2, %v2314_v27 }
 0x196   : > { %v2276_v35 = vmul.f32 %v7456_v43, %v2155_v54  ;;  %v2810_v25 = vsel %vm850_vm2, %v2808_v13, %v2809_v30  ;;  %v2812_v57 = vsel %vm850_vm2, %v2809_v30, %v2811_v8  ;;  %v2158_v1 = vadd.f32 %v4783_v31, %v7399_v33 }
 0x197   : > { %v2410_v24 = vsel %vm2346_vm9, %v2314_v27, %v2378_v59  ;;  %v5595_v3 = vpack.i.bf16 %v2812_v57, %v2810_v25  ;;  %v7533_v52 = vsel %vm774_vm1, %v2733_v62, %v2734_v17  ;;  %v7536_v34 = vsel %vm774_vm1, %v2734_v17, %v2736_v20  ;;  %v6080_v62 = vld [vmem:[%s8987_s5 + $0x68] sm:$0xff]  }
 0x198   : > { %v2540_v26 = vrot.slane %v2410_v24, 7  ;;  %v2634_v39 = vrot.slane %v2410_v24, 5  ;;  %v2315_v61 = vadd.f32 %v7465_v15, %v2276_v35  ;;  %v2277_v13 = vmul.f32 %v7456_v43, %v2158_v1  ;;  %4890 = vmatprep.subr.bf16.mxu1 %v6080_v62 }
 0x199   : > { %5596 = vrot.lane.b32.xlu0 %v5595_v3, %s6157_s29  ;;  %v5600_v33 = vpack.i.bf16 %v7536_v34, %v7533_v52  ;;  %v7544_v55 = vsel %vm584_vm0, %v2491_v11, %v2539_v14  ;;  %4891 = vmatpush3.bf16.msra.mxu1 %v6081_v9  ;;  %v6083_v9 = vld [vmem:[%s8987_s5 + $0x30] sm:$0xff]  }
 0x19a   : > { %vm2347_vm10 = vcmp.gt.f32.partialorder %v2315_v61, 0.0  ;;  %v2379_v36 = vmul.f32 0.2, %v2315_v61  ;;  %v2316_v21 = vadd.f32 %v7465_v15, %v2277_v13  ;;  %v7548_v44 = vsel %vm584_vm0, %v2539_v14, %v2540_v26 }
 0x19b   : > { %5601 = vrot.lane.b32.xlu1 %v5600_v33, %s6157_s29  ;;  %v4784_v45 = vpop.f32.mrb[12].mxu0  ;;  %v5610_v47 = vpack.i.bf16 %v7548_v44, %v7544_v55  ;;  %v2682_v38 = vsel %vm584_vm0, %v2540_v26, %v2634_v39  ;;  %v2803_v50 = vrot.slane %v7544_v55, 2  ;;  %v2804_v8 = vrot.slane %v7548_v44, 2 }
 0x19c   : > { %v2411_v27 = vsel %vm2347_vm10, %v2315_v61, %v2379_v36  ;;  %vm2348_vm11 = vcmp.gt.f32.partialorder %v2316_v21, 0.0  ;;  %v2380_v63 = vmul.f32 0.2, %v2316_v21  ;;  %v4785_v30 = vpop.f32.mrb[13].mxu0  ;;  %v2806_v20 = vrot.slane %v2682_v38, 2 }
 0x19d   : > { %v2493_v17 = vrot.slane %v2411_v27, 1  ;;  %v2545_v23 = vrot.slane %v2411_v27, 7  ;;  %v4786_v31 = vadd.f32 %v4785_v30, %v4784_v45  ;;  %v4787_v54 = vpop.f32.mrb[14].mxu0  ;;  %5611 = vrot.lane.b32.xlu0 %v5610_v47, %s6155_s27  ;;  %v2805_v14 = vsel %vm850_vm2, %v2803_v50, %v2804_v8 }
 0x19e   : > { %v2412_v42 = vsel %vm2348_vm11, %v2316_v21, %v2380_v63  ;;  %v4788_v11 = vpop.f32.mrb[15].mxu0  ;;  %v2728_v59 = vrot.slane %v7544_v55, 1  ;;  %v2729_v22 = vrot.slane %v7548_v44, 1  ;;  %v2807_v39 = vsel %vm850_vm2, %v2804_v8, %v2806_v20 }
 0x19f   : > { %v7567_v35 = vsel %vm584_vm0, %v2493_v17, %v2545_v23  ;;  %v2546_v25 = vrot.slane %v2412_v42, 7  ;;  %v2636_v57 = vrot.slane %v2412_v42, 5  ;;  %5606 = vrot.lane.b32.xlu1 %v5595_v3, %s6155_s27  ;;  %v2163_v1 = vadd.f32 %v7385_v48, %v4786_v31  ;;  %v6082_v48 = vld [vmem:[%s8987_s5 + $0x70] sm:$0xff]  }
 0x1a0   : > { %v2813_v24 = vrot.slane %v7567_v35, 2  ;;  %v4789_v26 = vadd.f32 %v4788_v11, %v4787_v54  ;;  %v7574_v61 = vsel %vm774_vm1, %v2728_v59, %v2729_v22  ;;  %v3694_v21 = vpack.c.bf16 %v2807_v39, %v2805_v14  ;;  %4892 = vmatprep.subr.bf16.mxu1 %v6082_v48  ;;  %v7618_v48 = vpop.f32.mrb[28].mxu1 }
 0x1a1   : > { %v7577_v13 = vsel %vm584_vm0, %v2545_v23, %v2546_v25  ;;  %v2684_v33 = vsel %vm584_vm0, %v2546_v25, %v2636_v57  ;;  %v2278_v36 = vmul.f32 %v7456_v43, %v2163_v1  ;;  %v2731_v50 = vrot.slane %v2682_v38, 1  ;;  %v6084_v38 = vld [vmem:[%s8987_s5 + $0x78] sm:$0xff]   ;;  %4893 = vmatpush3.bf16.msra.mxu1 %v6083_v9  ;;  %v7629_v9 = vpop.f32.mrb[29].mxu1 }
 0x1a2   : > { %v2814_v3 = vrot.slane %v7577_v13, 2  ;;  %v2816_v62 = vrot.slane %v2684_v33, 2  ;;  %v2166_v45 = vadd.f32 %v7393_v51, %v4789_v26  ;;  %5050 = vmatprep.mubr.msk.bf16.mxu0 %vm1552_vm3, %v3694_v21  ;;  %v6085_v23 = vld [vmem:[%s8987_s5 + $0x38] sm:$0xff]   ;;  %4894 = vmatprep.subr.bf16.mxu1 %v6084_v38  ;;  %v2738_v11 = vrot.slane %v7567_v35, 1 }
 0x1a3   : > { %v2317_v27 = vadd.f32 %v7465_v15, %v2278_v36  ;;  %5616 = vrot.lane.b32.xlu1 %v5610_v47, %s6156_s25  ;;  %v7594_v30 = vsel %vm774_vm1, %v2729_v22, %v2731_v50  ;;  %v2739_v59 = vrot.slane %v7577_v13, 1  ;;  %v2741_v22 = vrot.slane %v2684_v33, 1 }
 0x1a4   : > { %v2279_v63 = vmul.f32 %v7456_v43, %v2166_v45  ;;  %v7597_v8 = vsel %vm850_vm2, %v2813_v24, %v2814_v3  ;;  %v7600_v51 = vsel %vm850_vm2, %v2814_v3, %v2816_v62  ;;  %v5630_v17 = vpack.i.bf16 %v7594_v30, %v7574_v61 }
 0x1a5   : > { %vm2349_vm12 = vcmp.gt.f32.partialorder %v2317_v27, 0.0  ;;  %v2381_v47 = vmul.f32 0.2, %v2317_v27  ;;  %v3697_v54 = vpack.c.bf16 %v7600_v51, %v7597_v8  ;;  %v5635_v26 = vpack.i.bf16 %v2807_v39, %v2805_v14  ;;  %4895 = vmatpush3.bf16.msra.mxu1 %v6085_v23 }
 0x1a6   : > { %v2318_v31 = vadd.f32 %v7465_v15, %v2279_v63  ;;  %5631 = vrot.lane.b32.xlu0 %v5630_v17, %s6156_s25  ;;  %v7624_v33 = vsel %vm774_vm1, %v2738_v11, %v2739_v59  ;;  %v7627_v50 = vsel %vm774_vm1, %v2739_v59, %v2741_v22  ;;  %5082 = vmatprep.subr.bf16.mxu1 %v7308_v5 }
 0x1a7   : > { %v2413_v20 = vsel %vm2349_vm12, %v2317_v27, %v2381_v47  ;;  %5621 = vrot.lane.b32.xlu1 %v5630_v17, %s6157_s29  ;;  %v4790_v42 = vpop.f32.mrb[16].mxu0  ;;  %5051 = vmatmul.mubr.msk.bf16.vlgmr.msra.gmra.mrb[64].mxu0 %vm1552_vm3, %v3697_v54  ;;  %v5640_v38 = vpack.i.bf16 %v7577_v13, %v7567_v35 }
 0x1a8   : > { %v2494_v25 = vrot.slane %v2413_v20, 1  ;;  %v2548_v57 = vrot.slane %v2413_v20, 7  ;;  %vm2350_vm13 = vcmp.gt.f32.partialorder %v2318_v31, 0.0  ;;  %v2382_v1 = vmul.f32 0.2, %v2318_v31  ;;  %v4791_v24 = vpop.f32.mrb[17].mxu0 }
 0x1a9   : > { %v4792_v36 = vadd.f32 %v4791_v24, %v4790_v42  ;;  %v4793_v21 = vpop.f32.mrb[18].mxu0 }
 0x1aa   : > { %v7621_v3 = vsel %vm584_vm0, %v2494_v25, %v2548_v57  ;;  %v2414_v62 = vsel %vm2350_vm13, %v2318_v31, %v2382_v1  ;;  %v4794_v45 = vpop.f32.mrb[19].mxu0  ;;  %5636 = vrot.lane.b32.xlu0 %v5635_v26, %s6157_s29  ;;  %v5650_v31 = vpack.i.bf16 %v7627_v50, %v7624_v33 }
 0x1ab   : > { %v2549_v14 = vrot.slane %v2414_v62, 7  ;;  %v2637_v39 = vrot.slane %v2414_v62, 5  ;;  %5626 = vrot.lane.b32.xlu1 %v5635_v26, %s6155_s27  ;;  %v4795_v27 = vadd.f32 %v4794_v45, %v4793_v21  ;;  %v2171_v63 = vadd.f32 %v4792_v36, %v7423_v56  ;;  %v7658_v45 = vpop.f32.mrb[30].mxu1 }
 0x1ac   : > { %v2818_v54 = vrot.slane %v7621_v3, 2  ;;  %v2743_v62 = vrot.slane %v7621_v3, 1 }
 0x1ad   : > { %v7638_v47 = vsel %vm584_vm0, %v2548_v57, %v2549_v14  ;;  %v2280_v17 = vmul.f32 %v7456_v43, %v2171_v63  ;;  %v2174_v23 = vadd.f32 %v4795_v27, %v7427_v19  ;;  %v2685_v5 = vsel %vm584_vm0, %v2549_v14, %v2637_v39 }
 0x1ae   : > { %v2819_v20 = vrot.slane %v7638_v47, 2  ;;  %v2821_v56 = vrot.slane %v2685_v5, 2  ;;  %5641 = vrot.lane.b32.xlu0 %v5640_v38, %s6155_s27  ;;  %v2744_v22 = vrot.slane %v7638_v47, 1  ;;  %v2746_v25 = vrot.slane %v2685_v5, 1 }
 0x1af   : > { %v2319_v42 = vadd.f32 %v7465_v15, %v2280_v17  ;;  %5646 = vrot.lane.b32.xlu1 %v5640_v38, %s6156_s25  ;;  %v2281_v11 = vmul.f32 %v7456_v43, %v2174_v23  ;;  %v5655_v27 = vpack.i.bf16 %v7600_v51, %v7597_v8  ;;  %v7663_v38 = vpop.f32.mrb[31].mxu1 }
 0x1b0   : > { %v2820_v19 = vsel %vm850_vm2, %v2818_v54, %v2819_v20  ;;  %v2822_v59 = vsel %vm850_vm2, %v2819_v20, %v2821_v56  ;;  %v7669_v54 = vsel %vm774_vm1, %v2744_v22, %v2746_v25 }
 0x1b1   : > { %vm2351_vm14 = vcmp.gt.f32.partialorder %v2319_v42, 0.0  ;;  %v2383_v57 = vmul.f32 0.2, %v2319_v42  ;;  %v2320_v1 = vadd.f32 %v7465_v15, %v2281_v11  ;;  %v3700_v24 = vpack.c.bf16 %v2822_v59, %v2820_v19 }
 0x1b2   : > { %5651 = vrot.lane.b32.xlu0 %v5650_v31, %s6156_s25 }
 0x1b3   : > { %v2415_v26 = vsel %vm2351_vm14, %v2319_v42, %v2383_v57  ;;  %vm2352_vm15 = vcmp.gt.f32.partialorder %v2320_v1, 0.0  ;;  %v2384_v36 = vmul.f32 0.2, %v2320_v1  ;;  %5661 = vrot.lane.b32.xlu1 %v5650_v31, %s6157_s29  ;;  %v4796_v21 = vpop.f32.mrb[20].mxu0  ;;  %5054 = vmatprep.mubr.msk.bf16.mxu0 %vm1552_vm3, %v3700_v24  ;;  %v7666_v31 = vsel %vm774_vm1, %v2743_v62, %v2744_v22 }
 0x1b4   : > { %v2495_v14 = vrot.slane %v2415_v26, 1  ;;  %v2551_v39 = vrot.slane %v2415_v26, 7  ;;  %v4797_v63 = vpop.f32.mrb[21].mxu0  ;;  %v5670_v57 = vpack.i.bf16 %v7638_v47, %v7621_v3  ;;  %v5680_v25 = vpack.i.bf16 %v7669_v54, %v7666_v31 }
 0x1b5   : > { %v2416_v17 = vsel %vm2352_vm15, %v2320_v1, %v2384_v36  ;;  %v4798_v23 = vadd.f32 %v4797_v63, %v4796_v21  ;;  %v4799_v5 = vpop.f32.mrb[22].mxu0  ;;  %v5685_v62 = vpack.i.bf16 %v2822_v59, %v2820_v19 }
 0x1b6   : > { %v7672_v20 = vsel %vm584_vm0, %v2495_v14, %v2551_v39  ;;  %v2552_v56 = vrot.slane %v2416_v17, 7  ;;  %v2638_v42 = vrot.slane %v2416_v17, 5  ;;  %v4800_v11 = vpop.f32.mrb[23].mxu0  ;;  %5656 = vrot.lane.b32.xlu0 %v5655_v27, %s6157_s29 }
 0x1b7   : > { %9127 = vst [vmem:[#allocation7_spill] sm:$0xff] %v7672_v20  ;;  %5666 = vrot.lane.b32.xlu1 %v5655_v27, %s6155_s27  ;;  %v2179_v8 = vadd.f32 %v7421_v32, %v4798_v23  ;;  %v4801_v51 = vadd.f32 %v4800_v11, %v4799_v5  ;;  %v2823_v24 = vrot.slane %v7672_v20, 2  ;;  %v2748_v11 = vrot.slane %v7672_v20, 1 }
 0x1b8   : > { %v7680_v1 = vsel %vm584_vm0, %v2551_v39, %v2552_v56  ;;  %v2686_v22 = vsel %vm584_vm0, %v2552_v56, %v2638_v42 }
 0x1b9   : > { %9128 = vst [vmem:[#allocation6_spill] sm:$0xff] %v7680_v1  ;;  %v2282_v26 = vmul.f32 %v7456_v43, %v2179_v8  ;;  %v2182_v36 = vadd.f32 %v7425_v4, %v4801_v51  ;;  %v2824_v32 = vrot.slane %v7680_v1, 2  ;;  %v2826_v21 = vrot.slane %v2686_v22, 2 }
 0x1ba   : > { %5681 = vrot.lane.b32.xlu0 %v5680_v25, %s6156_s25  ;;  %v2749_v17 = vrot.slane %v7680_v1, 1  ;;  %v2751_v23 = vrot.slane %v2686_v22, 1  ;;  %v5700_v22 = vpack.i.bf16 %v7680_v1, %v7672_v20 }
 0x1bb   : > { %v2321_v14 = vadd.f32 %v7465_v15, %v2282_v26  ;;  %v2283_v39 = vmul.f32 %v7456_v43, %v2182_v36  ;;  %5671 = vrot.lane.b32.xlu1 %v5670_v57, %s6155_s27  ;;  %v2825_v27 = vsel %vm850_vm2, %v2823_v24, %v2824_v32  ;;  %v2827_v63 = vsel %vm850_vm2, %v2824_v32, %v2826_v21 }
 0x1bc   : > { %v3703_v19 = vpack.c.bf16 %v2827_v63, %v2825_v27  ;;  %v7704_v21 = vsel %vm774_vm1, %v2748_v11, %v2749_v17 }
 0x1bd   : > { %vm2353_vm6 = vcmp.gt.f32.partialorder %v2321_v14, 0.0  ;;  %v2385_v4 = vmul.f32 0.2, %v2321_v14  ;;  %v2322_v5 = vadd.f32 %v7465_v15, %v2283_v39 }
 0x1be   : > { %5686 = vrot.lane.b32.xlu0 %v5685_v62, %s6157_s29  ;;  %5055 = vmatmul.mubr.msk.bf16.gmra.mrb[68].mxu0 %vm1552_vm3, %v3703_v19 }
 0x1bf   : > { %v2417_v59 = vsel %vm2353_vm6, %v2321_v14, %v2385_v4  ;;  %vm2354_vm7 = vcmp.gt.f32.partialorder %v2322_v5, 0.0  ;;  %v2386_v56 = vmul.f32 0.2, %v2322_v5  ;;  %5676 = vrot.lane.b32.xlu1 %v5670_v57, %s6156_s25  ;;  %v4802_v42 = vpop.f32.mrb[24].mxu0  ;;  %v7707_v14 = vsel %vm774_vm1, %v2749_v17, %v2751_v23 }
 0x1c0   : > { %v2496_v8 = vrot.slane %v2417_v59, 1  ;;  %v2554_v51 = vrot.slane %v2417_v59, 7  ;;  %v4803_v24 = vpop.f32.mrb[25].mxu0  ;;  %v5710_v17 = vpack.i.bf16 %v7707_v14, %v7704_v21 }
 0x1c1   : > { %v2418_v26 = vsel %vm2354_vm7, %v2322_v5, %v2386_v56  ;;  %v4804_v36 = vadd.f32 %v4803_v24, %v4802_v42  ;;  %v4805_v32 = vpop.f32.mrb[26].mxu0 }
 0x1c2   : > { %v7710_v57 = vsel %vm584_vm0, %v2496_v8, %v2554_v51  ;;  %v2555_v39 = vrot.slane %v2418_v26, 7  ;;  %v2639_v4 = vrot.slane %v2418_v26, 5  ;;  %v4806_v59 = vpop.f32.mrb[27].mxu0  ;;  %5701 = vrot.lane.b32.xlu0 %v5700_v22, %s6155_s27 }
 0x1c3   : > { %9129 = vst [vmem:[#allocation13_spill] sm:$0xff] %v7710_v57  ;;  %5691 = vrot.lane.b32.xlu1 %v5680_v25, %s6157_s29  ;;  %v4807_v19 = vadd.f32 %v4806_v59, %v4805_v32  ;;  %v2187_v5 = vadd.f32 %v4804_v36, %v7431_v58  ;;  %v2828_v42 = vrot.slane %v7710_v57, 2  ;;  %v5715_v36 = vpack.i.bf16 %v2827_v63, %v2825_v27 }
 0x1c4   : > { %v7716_v56 = vsel %vm584_vm0, %v2554_v51, %v2555_v39  ;;  %v2687_v23 = vsel %vm584_vm0, %v2555_v39, %v2639_v4  ;;  %v2753_v27 = vrot.slane %v7710_v57, 1 }
 0x1c5   : > { %9130 = vst [vmem:[#allocation12_spill] sm:$0xff] %v7716_v56  ;;  %v2284_v11 = vmul.f32 %v7456_v43, %v2187_v5  ;;  %v2190_v8 = vadd.f32 %v4807_v19, %v7435_v28  ;;  %v2829_v24 = vrot.slane %v7716_v56, 2  ;;  %v2831_v25 = vrot.slane %v2687_v23, 2 }
 0x1c6   : > { %5711 = vrot.lane.b32.xlu0 %v5710_v17, %s6156_s25  ;;  %v2754_v39 = vrot.slane %v7716_v56, 1  ;;  %v2756_v4 = vrot.slane %v2687_v23, 1  ;;  %v5730_v23 = vpack.i.bf16 %v7716_v56, %v7710_v57 }
 0x1c7   : > { %v2323_v26 = vadd.f32 %v7465_v15, %v2284_v11  ;;  %5696 = vrot.lane.b32.xlu1 %v5685_v62, %s6155_s27  ;;  %v2285_v58 = vmul.f32 %v7456_v43, %v2190_v8  ;;  %v2830_v51 = vsel %vm850_vm2, %v2828_v42, %v2829_v24  ;;  %v2832_v32 = vsel %vm850_vm2, %v2829_v24, %v2831_v25 }
 0x1c8   : > { %v3706_v19 = vpack.c.bf16 %v2832_v32, %v2830_v51 }
 0x1c9   : > { %vm2355_vm8 = vcmp.gt.f32.partialorder %v2323_v26, 0.0  ;;  %v2387_v28 = vmul.f32 0.2, %v2323_v26  ;;  %v2324_v59 = vadd.f32 %v7465_v15, %v2285_v58  ;;  %v7740_v58 = vsel %vm774_vm1, %v2753_v27, %v2754_v39 }
 0x1ca   : > { %5716 = vrot.lane.b32.xlu0 %v5715_v36, %s6157_s29  ;;  %5058 = vmatprep.mubr.msk.bf16.mxu0 %vm1552_vm3, %v3706_v19 }
 0x1cb   : > { %v2419_v5 = vsel %vm2355_vm8, %v2323_v26, %v2387_v28  ;;  %vm2356_vm9 = vcmp.gt.f32.partialorder %v2324_v59, 0.0  ;;  %v2388_v11 = vmul.f32 0.2, %v2324_v59  ;;  %5706 = vrot.lane.b32.xlu1 %v5700_v22, %s6156_s25  ;;  %v4808_v62 = vpop.f32.mrb[28].mxu0  ;;  %v7743_v28 = vsel %vm774_vm1, %v2754_v39, %v2756_v4 }
 0x1cc   : > { %v2497_v63 = vrot.slane %v2419_v5, 1  ;;  %v2557_v42 = vrot.slane %v2419_v5, 7  ;;  %v4809_v8 = vpop.f32.mrb[29].mxu0  ;;  %v5740_v39 = vpack.i.bf16 %v7743_v28, %v7740_v58 }
 0x1cd   : > { %v2420_v24 = vsel %vm2356_vm9, %v2324_v59, %v2388_v11  ;;  %v4810_v25 = vadd.f32 %v4809_v8, %v4808_v62  ;;  %v4811_v26 = vpop.f32.mrb[30].mxu0 }
 0x1ce   : > { %v7746_v22 = vsel %vm584_vm0, %v2497_v63, %v2557_v42  ;;  %v2558_v20 = vrot.slane %v2420_v24, 7  ;;  %v2640_v5 = vrot.slane %v2420_v24, 5  ;;  %v4812_v1 = vpop.f32.mrb[31].mxu0  ;;  %5731 = vrot.lane.b32.xlu0 %v5730_v23, %s6155_s27 }
 0x1cf   : > { %9131 = vst [vmem:[#allocation8_spill] sm:$0xff] %v7746_v22  ;;  %5721 = vrot.lane.b32.xlu1 %v5710_v17, %s6157_s29  ;;  %v2195_v59 = vadd.f32 %v7429_v53, %v4810_v25  ;;  %v4813_v19 = vadd.f32 %v4812_v1, %v4811_v26  ;;  %v2833_v4 = vrot.slane %v7746_v22, 2 }
 0x1d0   : > { %v7752_v11 = vsel %vm584_vm0, %v2557_v42, %v2558_v20  ;;  %v2688_v62 = vsel %vm584_vm0, %v2558_v20, %v2640_v5  ;;  %v5745_v42 = vpack.i.bf16 %v2832_v32, %v2830_v51  ;;  %v2758_v51 = vrot.slane %v7746_v22, 1 }
 0x1d1   : > { %9132 = vst [vmem:[#allocation9_spill] sm:$0xff] %v7752_v11  ;;  %v2286_v27 = vmul.f32 %v7456_v43, %v2195_v59  ;;  %v2198_v63 = vadd.f32 %v7433_v29, %v4813_v19  ;;  %v2834_v8 = vrot.slane %v7752_v11, 2  ;;  %v2836_v17 = vrot.slane %v2688_v62, 2 }
 0x1d2   : > { %5741 = vrot.lane.b32.xlu0 %v5740_v39, %s6156_s25  ;;  %v2759_v25 = vrot.slane %v7752_v11, 1  ;;  %v2761_v26 = vrot.slane %v2688_v62, 1  ;;  %v5760_v62 = vpack.i.bf16 %v7752_v11, %v7746_v22 }
 0x1d3   : > { %v2325_v53 = vadd.f32 %v7465_v15, %v2286_v27  ;;  %v2287_v1 = vmul.f32 %v7456_v43, %v2198_v63  ;;  %5726 = vrot.lane.b32.xlu1 %v5715_v36, %s6155_s27  ;;  %v2835_v20 = vsel %vm850_vm2, %v2833_v4, %v2834_v8  ;;  %v2837_v24 = vsel %vm850_vm2, %v2834_v8, %v2836_v17 }
 0x1d4   : > { %v3709_v59 = vpack.c.bf16 %v2837_v24, %v2835_v20 }
 0x1d5   : > { %vm2357_vm10 = vcmp.gt.f32.partialorder %v2325_v53, 0.0  ;;  %v2389_v29 = vmul.f32 0.2, %v2325_v53  ;;  %v2326_v5 = vadd.f32 %v7465_v15, %v2287_v1  ;;  %v7776_v1 = vsel %vm774_vm1, %v2758_v51, %v2759_v25 }
 0x1d6   : > { %5746 = vrot.lane.b32.xlu0 %v5745_v42, %s6157_s29  ;;  %5059 = vmatmul.mubr.msk.bf16.gmra.mrb[72].mxu0 %vm1552_vm3, %v3709_v59 }
 0x1d7   : > { %v2421_v19 = vsel %vm2357_vm10, %v2325_v53, %v2389_v29  ;;  %vm2358_vm11 = vcmp.gt.f32.partialorder %v2326_v5, 0.0  ;;  %v2390_v27 = vmul.f32 0.2, %v2326_v5  ;;  %5736 = vrot.lane.b32.xlu1 %v5730_v23, %s6156_s25  ;;  %v4814_v36 = vpop.f32.mrb[32].mxu0  ;;  %v7779_v29 = vsel %vm774_vm1, %v2759_v25, %v2761_v26 }
 0x1d8   : > { %v2498_v32 = vrot.slane %v2421_v19, 1  ;;  %v2560_v4 = vrot.slane %v2421_v19, 7  ;;  %v4815_v63 = vpop.f32.mrb[33].mxu0  ;;  %v5770_v25 = vpack.i.bf16 %v7779_v29, %v7776_v1 }
 0x1d9   : > { %v2422_v8 = vsel %vm2358_vm11, %v2326_v5, %v2390_v27  ;;  %v4816_v17 = vadd.f32 %v4815_v63, %v4814_v36  ;;  %v4817_v53 = vpop.f32.mrb[34].mxu0 }
 0x1da   : > { %v7782_v23 = vsel %vm584_vm0, %v2498_v32, %v2560_v4  ;;  %v2561_v57 = vrot.slane %v2422_v8, 7  ;;  %v2641_v19 = vrot.slane %v2422_v8, 5  ;;  %v4818_v56 = vpop.f32.mrb[35].mxu0  ;;  %5761 = vrot.lane.b32.xlu0 %v5760_v62, %s6155_s27 }
 0x1db   : > { %9133 = vst [vmem:[#allocation17_spill] sm:$0xff] %v7782_v23  ;;  %5751 = vrot.lane.b32.xlu1 %v5740_v39, %s6157_s29  ;;  %v4819_v59 = vadd.f32 %v4818_v56, %v4817_v53  ;;  %v2203_v5 = vadd.f32 %v4816_v17, %v7439_v40  ;;  %v2838_v36 = vrot.slane %v7782_v23, 2 }
 0x1dc   : > { %v7788_v27 = vsel %vm584_vm0, %v2560_v4, %v2561_v57  ;;  %v2689_v26 = vsel %vm584_vm0, %v2561_v57, %v2641_v19  ;;  %v5775_v57 = vpack.i.bf16 %v2837_v24, %v2835_v20  ;;  %v2763_v20 = vrot.slane %v7782_v23, 1 }
 0x1dd   : > { %9134 = vst [vmem:[#allocation16_spill] sm:$0xff] %v7788_v27  ;;  %v2288_v51 = vmul.f32 %v7456_v43, %v2203_v5  ;;  %v2206_v32 = vadd.f32 %v4819_v59, %v7443_v0  ;;  %v2839_v63 = vrot.slane %v7788_v27, 2  ;;  %v2841_v39 = vrot.slane %v2689_v26, 2 }
 0x1de   : > { %5771 = vrot.lane.b32.xlu0 %v5770_v25, %s6156_s25  ;;  %v2764_v17 = vrot.slane %v7788_v27, 1  ;;  %v2766_v53 = vrot.slane %v2689_v26, 1  ;;  %v5790_v26 = vpack.i.bf16 %v7788_v27, %v7782_v23 }
 0x1df   : > { %v2327_v56 = vadd.f32 %v7465_v15, %v2288_v51  ;;  %5756 = vrot.lane.b32.xlu1 %v5745_v42, %s6155_s27  ;;  %v2289_v40 = vmul.f32 %v7456_v43, %v2206_v32  ;;  %v2840_v4 = vsel %vm850_vm2, %v2838_v36, %v2839_v63  ;;  %v2842_v8 = vsel %vm850_vm2, %v2839_v63, %v2841_v39 }
 0x1e0   : > { %v3712_v59 = vpack.c.bf16 %v2842_v8, %v2840_v4 }
 0x1e1   : > { %vm2359_vm12 = vcmp.gt.f32.partialorder %v2327_v56, 0.0  ;;  %v2391_v0 = vmul.f32 0.2, %v2327_v56  ;;  %v2328_v19 = vadd.f32 %v7465_v15, %v2289_v40  ;;  %v7812_v40 = vsel %vm774_vm1, %v2763_v20, %v2764_v17 }
 0x1e2   : > { %5776 = vrot.lane.b32.xlu0 %v5775_v57, %s6157_s29  ;;  %5062 = vmatprep.mubr.msk.bf16.mxu0 %vm1552_vm3, %v3712_v59 }
 0x1e3   : > { %v2423_v5 = vsel %vm2359_vm12, %v2327_v56, %v2391_v0  ;;  %vm2360_vm13 = vcmp.gt.f32.partialorder %v2328_v19, 0.0  ;;  %v2392_v51 = vmul.f32 0.2, %v2328_v19  ;;  %5766 = vrot.lane.b32.xlu1 %v5760_v62, %s6156_s25  ;;  %v4820_v42 = vpop.f32.mrb[36].mxu0  ;;  %v7815_v0 = vsel %vm774_vm1, %v2764_v17, %v2766_v53 }
 0x1e4   : > { %v2499_v24 = vrot.slane %v2423_v5, 1  ;;  %v2563_v36 = vrot.slane %v2423_v5, 7  ;;  %v4821_v32 = vpop.f32.mrb[37].mxu0  ;;  %v5800_v17 = vpack.i.bf16 %v7815_v0, %v7812_v40 }
 0x1e5   : > { %v2424_v63 = vsel %vm2360_vm13, %v2328_v19, %v2392_v51  ;;  %v4822_v39 = vadd.f32 %v4821_v32, %v4820_v42  ;;  %v4823_v56 = vpop.f32.mrb[38].mxu0 }
 0x1e6   : > { %v7818_v62 = vsel %vm584_vm0, %v2499_v24, %v2563_v36  ;;  %v2564_v22 = vrot.slane %v2424_v63, 7  ;;  %v2642_v5 = vrot.slane %v2424_v63, 5  ;;  %v4824_v11 = vpop.f32.mrb[39].mxu0  ;;  %5791 = vrot.lane.b32.xlu0 %v5790_v26, %s6155_s27 }
 0x1e7   : > { %9135 = vst [vmem:[#allocation10_spill] sm:$0xff] %v7818_v62  ;;  %5781 = vrot.lane.b32.xlu1 %v5770_v25, %s6157_s29  ;;  %v2211_v19 = vadd.f32 %v7437_v18, %v4822_v39  ;;  %v4825_v59 = vadd.f32 %v4824_v11, %v4823_v56  ;;  %v2843_v53 = vrot.slane %v7818_v62, 2 }
 0x1e8   : > { %v7824_v51 = vsel %vm584_vm0, %v2563_v36, %v2564_v22  ;;  %v2690_v42 = vsel %vm584_vm0, %v2564_v22, %v2642_v5  ;;  %v5805_v36 = vpack.i.bf16 %v2842_v8, %v2840_v4  ;;  %v2768_v4 = vrot.slane %v7818_v62, 1 }
 0x1e9   : > { %9136 = vst [vmem:[#allocation11_spill] sm:$0xff] %v7824_v51  ;;  %v2290_v20 = vmul.f32 %v7456_v43, %v2211_v19  ;;  %v2214_v24 = vadd.f32 %v7441_v41, %v4825_v59  ;;  %v2844_v32 = vrot.slane %v7824_v51, 2  ;;  %v2846_v25 = vrot.slane %v2690_v42, 2 }
 0x1ea   : > { %5801 = vrot.lane.b32.xlu0 %v5800_v17, %s6156_s25  ;;  %v2769_v39 = vrot.slane %v7824_v51, 1  ;;  %v2771_v56 = vrot.slane %v2690_v42, 1  ;;  %v5820_v42 = vpack.i.bf16 %v7824_v51, %v7818_v62 }
 0x1eb   : > { %v2329_v18 = vadd.f32 %v7465_v15, %v2290_v20  ;;  %v2291_v11 = vmul.f32 %v7456_v43, %v2214_v24  ;;  %5786 = vrot.lane.b32.xlu1 %v5775_v57, %s6155_s27  ;;  %v2845_v22 = vsel %vm850_vm2, %v2843_v53, %v2844_v32  ;;  %v2847_v63 = vsel %vm850_vm2, %v2844_v32, %v2846_v25 }
 0x1ec   : > { %v3715_v19 = vpack.c.bf16 %v2847_v63, %v2845_v22 }
 0x1ed   : > { %vm2361_vm14 = vcmp.gt.f32.partialorder %v2329_v18, 0.0  ;;  %v2393_v41 = vmul.f32 0.2, %v2329_v18  ;;  %v2330_v5 = vadd.f32 %v7465_v15, %v2291_v11  ;;  %v7848_v11 = vsel %vm774_vm1, %v2768_v4, %v2769_v39 }
 0x1ee   : > { %5806 = vrot.lane.b32.xlu0 %v5805_v36, %s6157_s29  ;;  %5063 = vmatmul.mubr.msk.bf16.gmra.mrb[76].mxu0 %vm1552_vm3, %v3715_v19  ;;  %9137 = vst [vmem:[#allocation21_spill] sm:$0xff] %v7848_v11 }
 0x1ef   : > { %v2425_v59 = vsel %vm2361_vm14, %v2329_v18, %v2393_v41  ;;  %vm2362_vm15 = vcmp.gt.f32.partialorder %v2330_v5, 0.0  ;;  %v2394_v20 = vmul.f32 0.2, %v2330_v5  ;;  %5796 = vrot.lane.b32.xlu1 %v5790_v26, %s6156_s25  ;;  %v4826_v57 = vpop.f32.mrb[40].mxu0  ;;  %v7851_v41 = vsel %vm774_vm1, %v2769_v39, %v2771_v56 }
 0x1f0   : > { %v2500_v8 = vrot.slane %v2425_v59, 1  ;;  %v2566_v53 = vrot.slane %v2425_v59, 7  ;;  %v4827_v24 = vpop.f32.mrb[41].mxu0  ;;  %9138 = vst [vmem:[#allocation20_spill] sm:$0xff] %v7851_v41  ;;  %v5830_v39 = vpack.i.bf16 %v7851_v41, %v7848_v11 }
 0x1f1   : > { %v2426_v32 = vsel %vm2362_vm15, %v2330_v5, %v2394_v20  ;;  %v4828_v25 = vadd.f32 %v4827_v24, %v4826_v57  ;;  %v4829_v18 = vpop.f32.mrb[42].mxu0 }
 0x1f2   : > { %v7854_v26 = vsel %vm584_vm0, %v2500_v8, %v2566_v53  ;;  %v2567_v23 = vrot.slane %v2426_v32, 7  ;;  %v2643_v59 = vrot.slane %v2426_v32, 5  ;;  %v4830_v27 = vpop.f32.mrb[43].mxu0  ;;  %5821 = vrot.lane.b32.xlu0 %v5820_v42, %s6155_s27 }
 0x1f3   : > { %9139 = vst [vmem:[#allocation14_spill] sm:$0xff] %v7854_v26  ;;  %5811 = vrot.lane.b32.xlu1 %v5800_v17, %s6157_s29  ;;  %v4831_v19 = vadd.f32 %v4830_v27, %v4829_v18  ;;  %v2219_v5 = vadd.f32 %v4828_v25, %v7447_v46  ;;  %v2848_v57 = vrot.slane %v7854_v26, 2 }
 0x1f4   : > { %v7860_v20 = vsel %vm584_vm0, %v2566_v53, %v2567_v23  ;;  %v2691_v56 = vsel %vm584_vm0, %v2567_v23, %v2643_v59  ;;  %v5835_v23 = vpack.i.bf16 %v2847_v63, %v2845_v22  ;;  %v2773_v22 = vrot.slane %v7854_v26, 1 }
 0x1f5   : > { %9140 = vst [vmem:[#allocation15_spill] sm:$0xff] %v7860_v20  ;;  %v2292_v4 = vmul.f32 %v7456_v43, %v2219_v5  ;;  %v2222_v8 = vadd.f32 %v4831_v19, %v7451_v12  ;;  %v2849_v24 = vrot.slane %v7860_v20, 2  ;;  %v2851_v17 = vrot.slane %v2691_v56, 2 }
 0x1f6   : > { %5831 = vrot.lane.b32.xlu0 %v5830_v39, %s6156_s25  ;;  %v2774_v25 = vrot.slane %v7860_v20, 1  ;;  %v2776_v18 = vrot.slane %v2691_v56, 1  ;;  %v5850_v56 = vpack.i.bf16 %v7860_v20, %v7854_v26 }
 0x1f7   : > { %v2331_v27 = vadd.f32 %v7465_v15, %v2292_v4  ;;  %5816 = vrot.lane.b32.xlu1 %v5805_v36, %s6155_s27  ;;  %v2293_v46 = vmul.f32 %v7456_v43, %v2222_v8  ;;  %v2850_v53 = vsel %vm850_vm2, %v2848_v57, %v2849_v24  ;;  %v2852_v32 = vsel %vm850_vm2, %v2849_v24, %v2851_v17 }
 0x1f8   : > { %v3718_v19 = vpack.c.bf16 %v2852_v32, %v2850_v53  ;;  %v7884_v17 = vsel %vm774_vm1, %v2773_v22, %v2774_v25  ;;  %v7905_v22 = vld [vmem:[%s8985_s3] ss:$0 sm:$0xff] }
 0x1f9   : > { %vm2363_vm6 = vcmp.gt.f32.partialorder %v2331_v27, 0.0  ;;  %v2395_v12 = vmul.f32 0.2, %v2331_v27  ;;  %v2332_v59 = vadd.f32 %v7465_v15, %v2293_v46  ;;  %9141 = vst [vmem:[#allocation25_spill] sm:$0xff] %v7884_v17 }
 0x1fa   : > { %5836 = vrot.lane.b32.xlu0 %v5835_v23, %s6157_s29  ;;  %5066 = vmatprep.mubr.msk.bf16.mxu0 %vm1552_vm3, %v3718_v19 }
 0x1fb   : > { %v2427_v5 = vsel %vm2363_vm6, %v2331_v27, %v2395_v12  ;;  %vm2364_vm7 = vcmp.gt.f32.partialorder %v2332_v59, 0.0  ;;  %v2396_v4 = vmul.f32 0.2, %v2332_v59  ;;  %5826 = vrot.lane.b32.xlu1 %v5820_v42, %s6156_s25  ;;  %v4832_v43 = vpop.f32.mrb[44].mxu0  ;;  %v7887_v27 = vsel %vm774_vm1, %v2774_v25, %v2776_v18 }
 0x1fc   : > { %v2501_v36 = vrot.slane %v2427_v5, 1  ;;  %v2569_v63 = vrot.slane %v2427_v5, 7  ;;  %v4833_v57 = vpop.f32.mrb[45].mxu0  ;;  %9142 = vst [vmem:[#allocation24_spill] sm:$0xff] %v7887_v27  ;;  %v5860_v25 = vpack.i.bf16 %v7887_v27, %v7884_v17 }
 0x1fd   : > { %v2428_v15 = vsel %vm2364_vm7, %v2332_v59, %v2396_v4  ;;  %v4834_v8 = vadd.f32 %v4833_v57, %v4832_v43  ;;  %v4835_v24 = vpop.f32.mrb[46].mxu0  ;;  %v7913_v57 = vld [vmem:[%s8986_s4] ss:$0 sm:$0xff] }
 0x1fe   : > { %v7890_v42 = vsel %vm584_vm0, %v2501_v36, %v2569_v63  ;;  %v2570_v46 = vrot.slane %v2428_v15, 7  ;;  %v2644_v12 = vrot.slane %v2428_v15, 5  ;;  %v4836_v5 = vpop.f32.mrb[47].mxu0  ;;  %5851 = vrot.lane.b32.xlu0 %v5850_v56, %s6155_s27 }
 0x1ff   : > { %9143 = vst [vmem:[#allocation18_spill] sm:$0xff] %v7890_v42  ;;  %5841 = vrot.lane.b32.xlu1 %v5830_v39, %s6157_s29  ;;  %v2227_v59 = vadd.f32 %v7445_v10, %v4834_v8  ;;  %v4837_v19 = vadd.f32 %v4836_v5, %v4835_v24  ;;  %v2853_v18 = vrot.slane %v7890_v42, 2 }
 0x200   : > { %v7896_v4 = vsel %vm584_vm0, %v2569_v63, %v2570_v46  ;;  %v2692_v43 = vsel %vm584_vm0, %v2570_v46, %v2644_v12  ;;  %v5865_v46 = vpack.i.bf16 %v2852_v32, %v2850_v53  ;;  %v2778_v32 = vrot.slane %v7890_v42, 1 }
 0x201   : > { %9144 = vst [vmem:[#allocation19_spill] sm:$0xff] %v7896_v4  ;;  %v2294_v39 = vmul.f32 %v7905_v22, %v2227_v59  ;;  %v2230_v10 = vadd.f32 %v7449_v49, %v4837_v19  ;;  %v2854_v36 = vrot.slane %v7896_v4, 2  ;;  %v2856_v63 = vrot.slane %v2692_v43, 2 }
 0x202   : > { %5861 = vrot.lane.b32.xlu0 %v5860_v25, %s6156_s25  ;;  %v2779_v12 = vrot.slane %v7896_v4, 1  ;;  %v2781_v5 = vrot.slane %v2692_v43, 1  ;;  %v5880_v43 = vpack.i.bf16 %v7896_v4, %v7890_v42 }
 0x203   : > { %v2333_v15 = vadd.f32 %v7913_v57, %v2294_v39  ;;  %v2295_v8 = vmul.f32 %v7905_v22, %v2230_v10  ;;  %5846 = vrot.lane.b32.xlu1 %v5835_v23, %s6155_s27  ;;  %v2855_v24 = vsel %vm850_vm2, %v2853_v18, %v2854_v36  ;;  %v2857_v49 = vsel %vm850_vm2, %v2854_v36, %v2856_v63 }
 0x204   : > { %v3721_v26 = vpack.c.bf16 %v2857_v49, %v2855_v24  ;;  %v7932_v20 = vsel %vm774_vm1, %v2778_v32, %v2779_v12 }
 0x205   : > { %vm2365_vm8 = vcmp.gt.f32.partialorder %v2333_v15, 0.0  ;;  %v2397_v59 = vmul.f32 0.2, %v2333_v15  ;;  %v2334_v19 = vadd.f32 %v7913_v57, %v2295_v8  ;;  %9145 = vst [vmem:[#allocation29_spill] sm:$0xff] %v7932_v20 }
 0x206   : > { %5866 = vrot.lane.b32.xlu0 %v5865_v46, %s6157_s29  ;;  %v7925_v23 = vpop.permute.xlu1 %5591  ;;  %5067 = vmatmul.mubr.msk.bf16.gmra.mrb[80].mxu0 %vm1552_vm3, %v3721_v26 }
 0x207   : > { %v2429_v39 = vsel %vm2365_vm8, %v2333_v15, %v2397_v59  ;;  %vm2366_vm9 = vcmp.gt.f32.partialorder %v2334_v19, 0.0  ;;  %v2398_v10 = vmul.f32 0.2, %v2334_v19  ;;  %5856 = vrot.lane.b32.xlu1 %v5850_v56, %s6156_s25  ;;  %v4838_v53 = vpop.f32.mrb[48].mxu0  ;;  %v7935_v56 = vsel %vm774_vm1, %v2779_v12, %v2781_v5 }
 0x208   : > { %v2502_v18 = vrot.slane %v2429_v39, 1  ;;  %v2572_v36 = vrot.slane %v2429_v39, 7  ;;  %v4839_v63 = vpop.f32.mrb[49].mxu0  ;;  %9146 = vst [vmem:[#allocation28_spill] sm:$0xff] %v7935_v56  ;;  %v5890_v12 = vpack.i.bf16 %v7935_v56, %v7932_v20  ;;  %v7948_v5 = vpack.i.bf16 %v2857_v49, %v2855_v24 }
 0x209   : > { %v2430_v15 = vsel %vm2366_vm9, %v2334_v19, %v2398_v10  ;;  %v4840_v8 = vadd.f32 %v4839_v63, %v4838_v53  ;;  %v4841_v59 = vpop.f32.mrb[50].mxu0 }
 0x20a   : > { %v2573_v17 = vrot.slane %v2430_v15, 7  ;;  %v2645_v27 = vrot.slane %v2430_v15, 5  ;;  %v4842_v62 = vpop.f32.mrb[51].mxu0  ;;  %v7938_v39 = vsel %vm584_vm0, %v2502_v18, %v2572_v36  ;;  %5881 = vrot.lane.b32.xlu0 %v5880_v43, %s6155_s27 }
 0x20b   : > { %5871 = vrot.lane.b32.xlu1 %v5860_v25, %s6157_s29  ;;  %v5597_v26 = vpop.permute.xlu0 %5596  ;;  %v4843_v19 = vadd.f32 %v4842_v62, %v4841_v59  ;;  %v2235_v10 = vadd.f32 %v4840_v8, %v7497_v7  ;;  %v2858_v8 = vrot.slane %v7938_v39, 2 }
 0x20c   : > { %v7944_v53 = vsel %vm584_vm0, %v2572_v36, %v2573_v17  ;;  %v7951_v32 = vsel %vm584_vm0, %v2573_v17, %v2645_v27  ;;  %v5599_v15 = vunpack.i.h.bf16 %v5597_v26  ;;  %v5598_v36 = vunpack.i.l.bf16 %v5597_v26 }
 0x20d   : > { %v5602_v18 = vpop.permute.xlu1 %5601  ;;  %v2296_v63 = vmul.f32 %v7905_v22, %v2235_v10  ;;  %v2238_v25 = vadd.f32 %v4843_v19, %v7515_v2  ;;  %v2859_v62 = vrot.slane %v7944_v53, 2  ;;  %v2861_v7 = vrot.slane %v7951_v32, 2 }
 0x20e   : > { %5891 = vrot.lane.b32.xlu0 %v5890_v12, %s6156_s25  ;;  %v5604_v27 = vunpack.i.h.bf16 %v5602_v18  ;;  %v2783_v26 = vrot.slane %v7938_v39, 1  ;;  %v2784_v2 = vrot.slane %v7944_v53, 1 }
 0x20f   : > { %v2335_v24 = vadd.f32 %v7913_v57, %v2296_v63  ;;  %5876 = vrot.lane.b32.xlu1 %v5865_v46, %s6155_s27  ;;  %v2297_v17 = vmul.f32 %v7905_v22, %v2238_v25  ;;  %v7965_v49 = vsel %vm850_vm2, %v2858_v8, %v2859_v62  ;;  %v5612_v63 = vpop.permute.xlu0 %5611  ;;  %v7972_v42 = vsel %vm850_vm2, %v2859_v62, %v2861_v7 }
 0x210   : > { %v3597_v46 = vsel %vm1552_vm3, %v7536_v34, %v5599_v15  ;;  %v3596_v25 = vsel %vm1552_vm3, %v7533_v52, %v5598_v36  ;;  %v5603_v8 = vunpack.i.l.bf16 %v5602_v18  ;;  %v3724_v62 = vpack.c.bf16 %v7972_v42, %v7965_v49 }
 0x211   : > { %vm2367_vm10 = vcmp.gt.f32.partialorder %v2335_v24, 0.0  ;;  %v2399_v19 = vmul.f32 0.2, %v2335_v24  ;;  %v2336_v10 = vadd.f32 %v7913_v57, %v2297_v17  ;;  %v7969_v59 = vpop.permute.xlu1 %5606  ;;  %v7986_v34 = vsel %vm1552_vm3, %v7504_v37, %v5604_v27 }
 0x212   : > { %5896 = vrot.lane.b32.xlu0 %v7948_v5, %s6157_s29  ;;  %v5614_v18 = vunpack.i.h.bf16 %v5612_v63  ;;  %v5613_v15 = vunpack.i.l.bf16 %v5612_v63  ;;  %5070 = vmatprep.mubr.msk.bf16.mxu0 %vm1552_vm3, %v3724_v62  ;;  %v7995_v11 = vsel %vm1552_vm3, %v7493_v60, %v5603_v8  ;;  %v2786_v62 = vrot.slane %v7951_v32, 1 }
 0x213   : > { %v2431_v4 = vsel %vm2367_vm10, %v2335_v24, %v2399_v19  ;;  %vm2368_vm11 = vcmp.gt.f32.partialorder %v2336_v10, 0.0  ;;  %v2400_v20 = vmul.f32 0.2, %v2336_v10  ;;  %5886 = vrot.lane.b32.xlu1 %v5880_v43, %s6156_s25  ;;  %v4844_v7 = vpop.f32.mrb[52].mxu0  ;;  %v5910_v43 = vpack.i.bf16 %v7944_v53, %v7938_v39 }
 0x214   : > { %v2503_v52 = vrot.slane %v2431_v4, 1  ;;  %v4845_v36 = vpop.f32.mrb[53].mxu0  ;;  %v2575_v24 = vrot.slane %v2431_v4, 7  ;;  %v3628_v60 = vsel %vm1583_vm4, %v3596_v25, %v5613_v15  ;;  %v3629_v8 = vsel %vm1583_vm4, %v3597_v46, %v5614_v18 }
 0x215   : > { %v2432_v17 = vsel %vm2368_vm11, %v2336_v10, %v2400_v20  ;;  %v7988_v19 = vpop.permute.xlu1 %5616  ;;  %v4846_v56 = vadd.f32 %v4845_v36, %v4844_v7  ;;  %v4847_v51 = vpop.f32.mrb[54].mxu0  ;;  %v5608_v20 = vunpack.i.l.bf16 %v7969_v59  ;;  %v8009_v36 = vsel %vm774_vm1, %v2783_v26, %v2784_v2 }
 0x216   : > { %v2576_v37 = vrot.slane %v2432_v17, 7  ;;  %v2646_v27 = vrot.slane %v2432_v17, 5  ;;  %v4848_v41 = vpop.f32.mrb[55].mxu0  ;;  %5911 = vrot.lane.b32.xlu0 %v5910_v43, %s6155_s27  ;;  %v8012_v17 = vsel %vm584_vm0, %v2503_v52, %v2575_v24 }
 0x217   : > { %5901 = vrot.lane.b32.xlu1 %v5890_v12, %s6157_s29  ;;  %v2243_v4 = vadd.f32 %v7489_v16, %v4846_v56  ;;  %v4849_v10 = vadd.f32 %v4848_v41, %v4847_v51  ;;  %9148 = vst [vmem:[#allocation23_spill] sm:$0xff] %v8012_v17  ;;  %v8017_v41 = vsel %vm774_vm1, %v2784_v2, %v2786_v62 }
 0x218   : > { %v8004_v7 = vsel %vm584_vm0, %v2575_v24, %v2576_v37  ;;  %v5632_v63 = vpop.permute.xlu0 %5631  ;;  %v8020_v56 = vsel %vm584_vm0, %v2576_v37, %v2646_v27  ;;  %v8026_v18 = vpack.i.bf16 %v8017_v41, %v8009_v36 }
 0x219   : > { %9147 = vst [vmem:[#allocation22_spill] sm:$0xff] %v8004_v7  ;;  %v2298_v12 = vmul.f32 %v7905_v22, %v2243_v4  ;;  %v5622_v16 = vpop.permute.xlu1 %5621  ;;  %v2246_v51 = vadd.f32 %v7508_v6, %v4849_v10  ;;  %v5634_v32 = vunpack.i.h.bf16 %v5632_v63  ;;  %v5633_v46 = vunpack.i.l.bf16 %v5632_v63 }
 0x21a   : > { %v5624_v25 = vunpack.i.h.bf16 %v5622_v16  ;;  %v5623_v6 = vunpack.i.l.bf16 %v5622_v16  ;;  %v2864_v24 = vrot.slane %v8004_v7, 2  ;;  %5921 = vrot.lane.b32.xlu0 %v8026_v18, %s6156_s25 }
 0x21b   : > { %v2337_v26 = vadd.f32 %v7913_v57, %v2298_v12  ;;  %v2299_v52 = vmul.f32 %v7905_v22, %v2246_v51  ;;  %5906 = vrot.lane.b32.xlu1 %v7948_v5, %s6155_s27  ;;  %v3660_v2 = vsel %vm1614_vm5, %v3628_v60, %v5633_v46  ;;  %v3661_v15 = vsel %vm1614_vm5, %v3629_v8, %v5634_v32 }
 0x21c   : > { %v5637_v63 = vpop.permute.xlu0 %5636  ;;  %v3693_v10 = vpack.c.bf16 %v3661_v15, %v3660_v2  ;;  %v8038_v5 = vpack.i.bf16 %v7972_v42, %v7965_v49  ;;  %v2863_v60 = vrot.slane %v8012_v17, 2  ;;  %v3505_v16 = vsel %vm1552_vm3, %v7548_v44, %v5624_v25 }
 0x21d   : > { %vm2369_vm12 = vcmp.gt.f32.partialorder %v2337_v26, 0.0  ;;  %v2401_v37 = vmul.f32 0.2, %v2337_v26  ;;  %v2338_v27 = vadd.f32 %v7913_v57, %v2299_v52  ;;  %v5627_v4 = vpop.permute.xlu1 %5626  ;;  %v3504_v46 = vsel %vm1552_vm3, %v7544_v55, %v5623_v6 }
 0x21e   : > { %v5629_v62 = vunpack.i.h.bf16 %v5627_v4  ;;  %v5628_v12 = vunpack.i.l.bf16 %v5627_v4  ;;  %3924 = vmatprep.mubr.bf16.mxu1 %v3693_v10  ;;  %v5639_v52 = vunpack.i.h.bf16 %v5637_v63  ;;  %v5638_v2 = vunpack.i.l.bf16 %v5637_v63  ;;  %5926 = vrot.lane.b32.xlu0 %v8038_v5, %s6157_s29 }
 0x21f   : > { %v2433_v8 = vsel %vm2369_vm12, %v2337_v26, %v2401_v37  ;;  %vm2370_vm13 = vcmp.gt.f32.partialorder %v2338_v27, 0.0  ;;  %v2402_v51 = vmul.f32 0.2, %v2338_v27  ;;  %5916 = vrot.lane.b32.xlu1 %v5910_v43, %s6156_s25  ;;  %v4850_v32 = vpop.f32.mrb[56].mxu0  ;;  %v8047_v42 = vsel %vm850_vm2, %v2863_v60, %v2864_v24 }
 0x220   : > { %v4851_v49 = vpop.f32.mrb[57].mxu0  ;;  %v8052_v26 = vsel %vm1583_vm4, %v3504_v46, %v5628_v12  ;;  %v8055_v44 = vsel %vm1583_vm4, %v3505_v16, %v5629_v62  ;;  %v5642_v43 = vpop.permute.xlu0 %5641  ;;  %v2866_v55 = vrot.slane %v8020_v56, 2  ;;  %v2504_v6 = vrot.slane %v2433_v8, 1 }
 0x221   : > { %v8049_v15 = vsel %vm2370_vm13, %v2338_v27, %v2402_v51  ;;  %v8059_v25 = vpop.permute.xlu1 %5646  ;;  %v2578_v37 = vrot.slane %v2433_v8, 7  ;;  %v9149_v27 = vunpack.i.l.bf16 %v7925_v23  ;;  %v4853_v10 = vpop.f32.mrb[58].mxu0  ;;  %v8071_v62 = vsel %vm1583_vm4, %v7995_v11, %v5608_v20 }
 0x222   : > { %v9049_v63 = vrot.slane %v8049_v15, 7  ;;  %v9150_v12 = vunpack.i.h.bf16 %v7969_v59  ;;  %v9151_v8 = vunpack.i.h.bf16 %v7925_v23  ;;  %v4854_v51 = vpop.f32.mrb[59].mxu0  ;;  %v2867_v59 = vsel %vm850_vm2, %v2864_v24, %v2866_v55 }
 0x223   : > { %v3564_v4 = vsel %vm1614_vm5, %v8052_v26, %v9149_v27  ;;  %v3727_v23 = vpack.c.bf16 %v2867_v59, %v8047_v42  ;;  %v3598_v24 = vsel %vm1552_vm3, %v7574_v61, %v5638_v2  ;;  %v4852_v55 = vadd.f32 %v4851_v49, %v4850_v32  ;;  %5931 = vrot.lane.b32.xlu1 %v8026_v18, %s6157_s29  ;;  %v6089_v49 = vld [vmem:[%s8987_s5 + $0x80] sm:$0xff]  }
 0x224   : > { %v8077_v60 = vsel %vm1583_vm4, %v7986_v34, %v9150_v12  ;;  %v3565_v16 = vsel %vm1614_vm5, %v8055_v44, %v9151_v8  ;;  %v8087_v27 = vsel %vm584_vm0, %v2578_v37, %v9049_v63  ;;  %v3599_v34 = vsel %vm1552_vm3, %v7594_v30, %v5639_v52  ;;  %v5652_v8 = vpop.permute.xlu0 %5651 }
 0x225   : > { %v3692_v11 = vpack.c.bf16 %v3565_v16, %v3564_v4  ;;  %v8096_v12 = vpack.i.bf16 %v8004_v7, %v8012_v17  ;;  %v8098_v46 = vpop.permute.xlu1 %5661  ;;  %v8101_v63 = vsel %vm584_vm0, %v2504_v6, %v2578_v37  ;;  %v5644_v4 = vunpack.i.h.bf16 %v5642_v43  ;;  %5071 = vmatmul.mubr.msk.bf16.gmra.mrb[84].mxu0 %vm1552_vm3, %v3727_v23 }
 0x226   : > { %v5643_v16 = vunpack.i.l.bf16 %v5642_v43  ;;  %v5653_v30 = vunpack.i.l.bf16 %v5652_v8  ;;  %v4855_v52 = vadd.f32 %v4854_v51, %v4853_v10  ;;  %v2251_v6 = vadd.f32 %v4852_v55, %v7629_v9 }
 0x227   : > { %3925 = vmatmul.mubr.bf16.vlgmr.msra.gmra.mrb[32].mxu1 %v3692_v11  ;;  %5941 = vrot.lane.b32.xlu0 %v8096_v12, %s6155_s27  ;;  %v4856_v20 = vpop.f32.mrb[60].mxu0  ;;  %v2788_v37 = vrot.slane %v8012_v17, 1  ;;  %v2789_v61 = vrot.slane %v8004_v7, 1  ;;  %v2791_v32 = vrot.slane %v8020_v56, 1  ;;  %v5654_v51 = vunpack.i.h.bf16 %v5652_v8  ;;  %v6090_v56 = vld [vmem:[%s8987_s5 + $0x88] sm:$0xff]  }
 0x228   : > { %v4857_v2 = vpop.f32.mrb[61].mxu0  ;;  %5084 = vmatpush3.bf16.msra.mxu1 %v6089_v49  ;;  %v2254_v18 = vadd.f32 %v4855_v52, %v7663_v38  ;;  %v5657_v9 = vpop.permute.xlu0 %5656  ;;  %v2300_v23 = vmul.f32 %v7905_v22, %v2251_v6  ;;  %v3630_v8 = vsel %vm1583_vm4, %v3598_v24, %v5643_v16  ;;  %v3631_v38 = vsel %vm1583_vm4, %v3599_v34, %v5644_v4 }
 0x229   : > { %v8120_v11 = vpop.permute.xlu1 %5666  ;;  %5083 = vmatprep.subr.bf16.mxu1 %v6090_v56  ;;  %v8127_v55 = vsel %vm774_vm1, %v2788_v37, %v2789_v61  ;;  %v8130_v49 = vsel %vm774_vm1, %v2789_v61, %v2791_v32  ;;  %v4859_v10 = vpop.f32.mrb[62].mxu0  ;;  %v5664_v6 = vunpack.i.h.bf16 %v8098_v46  ;;  %v5663_v37 = vunpack.i.l.bf16 %v8098_v46  ;;  %5936 = vrot.lane.b32.xlu1 %v8038_v5, %s6155_s27 }
 0x22a   : > { %v8136_v52 = vpack.i.bf16 %v8130_v49, %v8127_v55  ;;  %v2301_v43 = vmul.f32 %v7905_v22, %v2254_v18  ;;  %v4860_v17 = vpop.f32.mrb[63].mxu0  ;;  %v2339_v7 = vadd.f32 %v7913_v57, %v2300_v23  ;;  %v3662_v24 = vsel %vm1614_vm5, %v3630_v8, %v5653_v30 }
 0x22b   : > { %v5659_v4 = vunpack.i.h.bf16 %v5657_v9  ;;  %v8149_v16 = vpack.i.bf16 %v2867_v59, %v8047_v42  ;;  %v3663_v61 = vsel %vm1614_vm5, %v3631_v38, %v5654_v51  ;;  %v5658_v18 = vunpack.i.l.bf16 %v5657_v9 }
 0x22c   : > { %5085 = vmatpush3.bf16.msra.mxu1 %v6090_v56  ;;  %5951 = vrot.lane.b32.xlu0 %v8136_v52, %s6156_s25  ;;  %v2340_v34 = vadd.f32 %v7913_v57, %v2301_v43  ;;  %v8152_v46 = vpop.permute.xlu0 %5681  ;;  %vm2371_vm14 = vcmp.gt.f32.partialorder %v2339_v7, 0.0  ;;  %v2403_v5 = vmul.f32 0.2, %v2339_v7  ;;  %v3696_v30 = vpack.c.bf16 %v3663_v61, %v3662_v24 }
 0x22d   : > { %v8154_v32 = vpop.permute.xlu1 %5671  ;;  %v4858_v23 = vadd.f32 %v4857_v2, %v4856_v20  ;;  %v5648_v8 = vunpack.i.l.bf16 %v8059_v25  ;;  %v3509_v43 = vsel %vm1552_vm3, %v7577_v13, %v5664_v6  ;;  %v9152_v59 = vunpack.i.l.bf16 %v7988_v19  ;;  %5946 = vrot.lane.b32.xlu1 %v8096_v12, %s6156_s25 }
 0x22e   : > { %vm2372_vm15 = vcmp.gt.f32.partialorder %v2340_v34, 0.0  ;;  %v2404_v56 = vmul.f32 0.2, %v2340_v34  ;;  %v2435_v42 = vsel %vm2371_vm14, %v2339_v7, %v2403_v5  ;;  %3932 = vmatprep.mubr.bf16.mxu1 %v3696_v30  ;;  %v3508_v38 = vsel %vm1552_vm3, %v7567_v35, %v5663_v37 }
 0x22f   : > { %v3566_v51 = vsel %vm1614_vm5, %v8071_v62, %v9152_v59  ;;  %v5669_v24 = vunpack.i.h.bf16 %v8120_v11  ;;  %v2259_v13 = vadd.f32 %v7618_v48, %v4858_v23  ;;  %v2581_v62 = vrot.slane %v2435_v42, 7 }
 0x230   : > { %v8165_v9 = vsel %vm2372_vm15, %v2340_v34, %v2404_v56  ;;  %5956 = vrot.lane.b32.xlu0 %v8149_v16, %s6157_s29  ;;  %v8173_v7 = vpop.permute.xlu0 %5686  ;;  %v3601_v35 = vsel %vm1552_vm3, %v7627_v50, %v5659_v4  ;;  %v9153_v6 = vunpack.i.h.bf16 %v7988_v19  ;;  %v3600_v12 = vsel %vm1552_vm3, %v7624_v33, %v5658_v18 }
 0x231   : > { %v8175_v20 = vpop.permute.xlu1 %5676  ;;  %v2582_v2 = vrot.slane %v8165_v9, 7  ;;  %v5668_v48 = vunpack.i.l.bf16 %v8120_v11  ;;  %v2302_v34 = vmul.f32 %v7905_v22, %v2259_v13  ;;  %v2505_v5 = vrot.slane %v2435_v42, 1  ;;  %5961 = vrot.lane.b32.xlu1 %v8136_v52, %s6157_s29 }
 0x232   : > { %v3567_v37 = vsel %vm1614_vm5, %v8077_v60, %v9153_v6  ;;  %v5674_v56 = vunpack.i.h.bf16 %v8154_v32  ;;  %v4861_v50 = vadd.f32 %v4860_v17, %v4859_v10  ;;  %v5673_v60 = vunpack.i.l.bf16 %v8154_v32 }
 0x233   : > { %v3695_v61 = vpack.c.bf16 %v3567_v37, %v3566_v51  ;;  %v8189_v30 = vsel %vm584_vm0, %v2581_v62, %v2582_v2  ;;  %v2341_v19 = vadd.f32 %v7913_v57, %v2302_v34  ;;  %v9154_v4 = vrot.slane %v8049_v15, 5 }
 0x234   : > { %v9155_v33 = vrot.slane %v8049_v15, 7  ;;  %v2868_v18 = vrot.slane %v8101_v63, 2  ;;  %v8200_v23 = vpop.permute.xlu0 %5701  ;;  %v2262_v59 = vadd.f32 %v7658_v45, %v4861_v50  ;;  %v2869_v17 = vrot.slane %v8087_v27, 2 }
 0x235   : > { %3933 = vmatmul.mubr.bf16.gmra.mrb[36].mxu1 %v3695_v61  ;;  %v8202_v42 = vpop.permute.xlu1 %5691  ;;  %v5970_v32 = vpack.i.bf16 %v8087_v27, %v8101_v63  ;;  %v8209_v51 = vsel %vm1583_vm4, %v3508_v38, %v5668_v48  ;;  %v8212_v15 = vsel %vm1583_vm4, %v3509_v43, %v5669_v24  ;;  %v5684_v13 = vunpack.i.h.bf16 %v8152_v46  ;;  %5966 = vrot.lane.b32.xlu1 %v8149_v16, %s6155_s27 }
 0x236   : > { %v2695_v11 = vsel %vm584_vm0, %v9155_v33, %v9154_v4  ;;  %v5683_v6 = vunpack.i.l.bf16 %v8152_v46  ;;  %v2303_v37 = vmul.f32 %v7905_v22, %v2262_v59  ;;  %v2870_v45 = vsel %vm850_vm2, %v2868_v18, %v2869_v17 }
 0x237   : > { %v2871_v10 = vrot.slane %v2695_v11, 2  ;;  %5971 = vrot.lane.b32.xlu0 %v5970_v32, %s6155_s27  ;;  %v8221_v61 = vsel %vm584_vm0, %v2505_v5, %v2581_v62  ;;  %v2648_v38 = vrot.slane %v8165_v9, 5  ;;  %v2405_v48 = vmul.f32 0.2, %v2341_v19 }
 0x238   : > { %v8226_v24 = vpop.permute.xlu0 %5711  ;;  %vm2373_vm6 = vcmp.gt.f32.partialorder %v2341_v19, 0.0  ;;  %v3633_v22 = vsel %vm1583_vm4, %v3601_v35, %v5674_v56  ;;  %v3632_v50 = vsel %vm1583_vm4, %v3600_v12, %v5673_v60  ;;  %v2342_v4 = vadd.f32 %v7913_v57, %v2303_v37 }
 0x239   : > { %v2872_v34 = vsel %vm850_vm2, %v2869_v17, %v2871_v10  ;;  %v8228_v46 = vpop.permute.xlu1 %5696  ;;  %v5689_v9 = vunpack.i.h.bf16 %v8173_v7  ;;  %v2793_v62 = vrot.slane %v8101_v63, 1  ;;  %v2794_v5 = vrot.slane %v8087_v27, 1  ;;  %5976 = vrot.lane.b32.xlu1 %v5970_v32, %s6156_s25 }
 0x23a   : > { %v3730_v43 = vpack.c.bf16 %v2872_v34, %v2870_v45  ;;  %v2796_v52 = vrot.slane %v2695_v11, 1  ;;  %vm2374_vm7 = vcmp.gt.f32.partialorder %v2342_v4, 0.0  ;;  %v2406_v33 = vmul.f32 0.2, %v2342_v4 }
 0x23b   : > { %v5688_v18 = vunpack.i.l.bf16 %v8173_v7  ;;  %v8238_v59 = vsel %vm2373_vm6, %v2341_v19, %v2405_v48  ;;  %v8241_v35 = vsel %vm774_vm1, %v2793_v62, %v2794_v5  ;;  %v3664_v12 = vsel %vm1614_vm5, %v3632_v50, %v5683_v6 }
 0x23c   : > { %5074 = vmatprep.mubr.msk.bf16.mxu0 %vm1552_vm3, %v3730_v43  ;;  %v8244_v57 = vsel %vm774_vm1, %v2794_v5, %v2796_v52  ;;  %v8247_v56 = vpop.permute.xlu0 %5716  ;;  %v2696_v11 = vsel %vm584_vm0, %v2582_v2, %v2648_v38  ;;  %v5704_v7 = vunpack.i.h.bf16 %v8200_v23  ;;  %v3665_v19 = vsel %vm1614_vm5, %v3633_v22, %v5684_v13 }
 0x23d   : > { %v8249_v60 = vpop.permute.xlu1 %5706  ;;  %v5980_v17 = vpack.i.bf16 %v8244_v57, %v8241_v35  ;;  %v8258_v10 = vsel %vm2374_vm7, %v2342_v4, %v2406_v33  ;;  %v3603_v6 = vsel %vm1552_vm3, %v7669_v54, %v5689_v9  ;;  %v5679_v37 = vunpack.i.h.bf16 %v8175_v20 }
 0x23e   : > { %v3699_v48 = vpack.c.bf16 %v3665_v19, %v3664_v12  ;;  %v2506_v2 = vrot.slane %v8238_v59, 1  ;;  %v5703_v38 = vunpack.i.l.bf16 %v8200_v23  ;;  %v3568_v16 = vsel %vm1614_vm5, %v8052_v26, %v5648_v8 }
 0x23f   : > { %5981 = vrot.lane.b32.xlu0 %v5980_v17, %s6156_s25  ;;  %v9156_v13 = vunpack.i.h.bf16 %v8059_v25  ;;  %v2584_v54 = vrot.slane %v8238_v59, 7  ;;  %v3602_v22 = vsel %vm1552_vm3, %v7666_v31, %v5688_v18  ;;  %v2585_v9 = vrot.slane %v8258_v10, 7  ;;  %5991 = vrot.lane.b32.xlu1 %v5980_v17, %s6157_s29 }
 0x240   : > { %3940 = vmatprep.mubr.bf16.mxu1 %v3699_v48  ;;  %v8277_v4 = vpop.permute.xlu0 %5731  ;;  %v5678_v26 = vunpack.i.l.bf16 %v8175_v20  ;;  %v3635_v25 = vsel %vm1583_vm4, %v3603_v6, %v5704_v7  ;;  %v5985_v8 = vpack.i.bf16 %v2872_v34, %v2870_v45  ;;  %v2873_v31 = vrot.slane %v8221_v61, 2 }
 0x241   : > { %v3569_v43 = vsel %vm1614_vm5, %v8055_v44, %v9156_v13  ;;  %v8279_v23 = vpop.permute.xlu1 %5721  ;;  %v2649_v44 = vrot.slane %v8258_v10, 5  ;;  %v2874_v62 = vrot.slane %v8189_v30, 2  ;;  %v2876_v5 = vrot.slane %v2696_v11, 2 }
 0x242   : > { %v3698_v50 = vpack.c.bf16 %v3569_v43, %v3568_v16  ;;  %v3634_v52 = vsel %vm1583_vm4, %v3602_v22, %v5703_v38  ;;  %v5694_v33 = vunpack.i.h.bf16 %v8202_v42  ;;  %v5714_v20 = vunpack.i.h.bf16 %v8226_v24 }
 0x243   : > { %5986 = vrot.lane.b32.xlu0 %v5985_v8, %s6157_s29  ;;  %v5713_v45 = vunpack.i.l.bf16 %v8226_v24  ;;  %v5693_v34 = vunpack.i.l.bf16 %v8202_v42  ;;  %v2875_v18 = vsel %vm850_vm2, %v2873_v31, %v2874_v62  ;;  %v2877_v32 = vsel %vm850_vm2, %v2874_v62, %v2876_v5  ;;  %5996 = vrot.lane.b32.xlu1 %v5985_v8, %s6155_s27 }
 0x244   : > { %3941 = vmatmul.mubr.bf16.gmra.mrb[40].mxu1 %v3698_v50  ;;  %v8296_v12 = vpop.permute.xlu0 %5741  ;;  %v5699_v19 = vunpack.i.h.bf16 %v8228_v46  ;;  %v5698_v6 = vunpack.i.l.bf16 %v8228_v46  ;;  %v8302_v48 = vpack.c.bf16 %v2877_v32, %v2875_v18  ;;  %v6000_v38 = vpack.i.bf16 %v8189_v30, %v8221_v61 }
 0x245   : > { %v8298_v7 = vpop.permute.xlu1 %5726  ;;  %v5719_v42 = vunpack.i.h.bf16 %v8247_v56  ;;  %v2798_v24 = vrot.slane %v8221_v61, 1  ;;  %v2799_v16 = vrot.slane %v8189_v30, 1  ;;  %v2801_v13 = vrot.slane %v2696_v11, 1 }
 0x246   : > { %5075 = vmatmul.mubr.msk.bf16.gmra.mrb[88].mxu0 %vm1552_vm3, %v8302_v48  ;;  %v5718_v46 = vunpack.i.l.bf16 %v8247_v56  ;;  %v3666_v43 = vsel %vm1614_vm5, %v3634_v52, %v5713_v45  ;;  %v3667_v22 = vsel %vm1614_vm5, %v3635_v25, %v5714_v20  ;;  %v3570_v11 = vsel %vm1614_vm5, %v8209_v51, %v5678_v26 }
 0x247   : > { %6001 = vrot.lane.b32.xlu0 %v6000_v38, %s6155_s27  ;;  %v8317_v17 = vsel %vm774_vm1, %v2798_v24, %v2799_v16  ;;  %v8320_v50 = vsel %vm774_vm1, %v2799_v16, %v2801_v13  ;;  %v3702_v31 = vpack.c.bf16 %v3667_v22, %v3666_v43  ;;  %v3511_v56 = vsel %vm1552_vm3, %v7638_v47, %v5694_v33  ;;  %v9157_v16 = vld [vmem:[#allocation6_spill] sm:$0xff] }
 0x248   : > { %v8324_v62 = vpop.permute.xlu0 %5746  ;;  %v3510_v25 = vsel %vm1552_vm3, %v7621_v3, %v5693_v34  ;;  %v6010_v52 = vpack.i.bf16 %v8320_v50, %v8317_v17  ;;  %v3571_v20 = vsel %vm1614_vm5, %v8212_v15, %v5679_v37  ;;  %v3541_v45 = vsel %vm1583_vm4, %v3511_v56, %v5699_v19  ;;  %6006 = vrot.lane.b32.xlu1 %v6000_v38, %s6156_s25 }
 0x249   : > { %v8326_v5 = vpop.permute.xlu1 %5736  ;;  %3948 = vmatprep.mubr.bf16.mxu1 %v3702_v31  ;;  %v3701_v51 = vpack.c.bf16 %v3571_v20, %v3570_v11  ;;  %v5734_v26 = vunpack.i.h.bf16 %v8277_v4  ;;  %v5733_v24 = vunpack.i.l.bf16 %v8277_v4  ;;  %v3540_v47 = vsel %vm1583_vm4, %v3510_v25, %v5698_v6  ;;  %v9158_v25 = vld [vmem:[#allocation7_spill] sm:$0xff] }
 0x24a   : > { %v3605_v3 = vsel %vm1552_vm3, %v7707_v14, %v5719_v42  ;;  %v5709_v33 = vunpack.i.h.bf16 %v8249_v60  ;;  %v5724_v15 = vunpack.i.h.bf16 %v8279_v23  ;;  %v3604_v37 = vsel %vm1552_vm3, %v7704_v21, %v5718_v46 }
 0x24b   : > { %6011 = vrot.lane.b32.xlu0 %v6010_v52, %s6156_s25  ;;  %v5708_v8 = vunpack.i.l.bf16 %v8249_v60  ;;  %v8349_v34 = vpack.i.bf16 %v2877_v32, %v2875_v18  ;;  %v5744_v14 = vunpack.i.h.bf16 %v8296_v12  ;;  %v5743_v6 = vunpack.i.l.bf16 %v8296_v12 }
 0x24c   : > { %3949 = vmatmul.mubr.bf16.gmra.mrb[44].mxu1 %v3701_v51  ;;  %v8351_v4 = vpop.permute.xlu0 %5761  ;;  %v2586_v42 = vsel %vm584_vm0, %v2584_v54, %v2585_v9  ;;  %v2681_v21 = vsel %vm584_vm0, %v2506_v2, %v2584_v54  ;;  %v3636_v60 = vsel %vm1583_vm4, %v3604_v37, %v5733_v24  ;;  %v3637_v18 = vsel %vm1583_vm4, %v3605_v3, %v5734_v26 }
 0x24d   : > { %v8353_v19 = vpop.permute.xlu1 %5751  ;;  %v5723_v32 = vunpack.i.l.bf16 %v8279_v23  ;;  %v6025_v12 = vpack.i.bf16 %v2586_v42, %v2681_v21  ;;  %v3513_v13 = vsel %vm1552_vm3, %v9157_v16, %v5724_v15  ;;  %v5729_v46 = vunpack.i.h.bf16 %v8298_v7  ;;  %6021 = vrot.lane.b32.xlu1 %v6010_v52, %s6157_s29 }
 0x24e   : > { %v5728_v59 = vunpack.i.l.bf16 %v8298_v7  ;;  %v2697_v2 = vsel %vm584_vm0, %v2585_v9, %v2649_v44  ;;  %v2880_v54 = vrot.slane %v2681_v21, 1  ;;  %v2881_v23 = vrot.slane %v2586_v42, 1 }
 0x24f   : > { %6016 = vrot.lane.b32.xlu0 %v8349_v34, %s6157_s29  ;;  %v2883_v38 = vrot.slane %v2697_v2, 1  ;;  %v3668_v31 = vsel %vm1614_vm5, %v3636_v60, %v5743_v6  ;;  %v3669_v11 = vsel %vm1614_vm5, %v3637_v18, %v5744_v14  ;;  %v3572_v56 = vsel %vm1614_vm5, %v3540_v47, %v5708_v8 }
 0x250   : > { %v5772_v43 = vpop.permute.xlu0 %5771  ;;  %v8389_v7 = vsel %vm774_vm1, %v2880_v54, %v2881_v23  ;;  %v3705_v9 = vpack.c.bf16 %v3669_v11, %v3668_v31  ;;  %v3573_v44 = vsel %vm1614_vm5, %v3541_v45, %v5709_v33  ;;  %v3512_v20 = vsel %vm1552_vm3, %v9158_v25, %v5723_v32 }
 0x251   : > { %v8382_v22 = vpop.permute.xlu1 %5756  ;;  %v8392_v10 = vsel %vm774_vm1, %v2881_v23, %v2883_v38  ;;  %v5749_v51 = vunpack.i.h.bf16 %v8324_v62  ;;  %v5748_v26 = vunpack.i.l.bf16 %v8324_v62  ;;  %v3704_v24 = vpack.c.bf16 %v3573_v44, %v3572_v56  ;;  %6046 = vrot.lane.b32.xlu1 %v6025_v12, %s6156_s25 }
 0x252   : > { %v3542_v52 = vsel %vm1583_vm4, %v3512_v20, %v5728_v59  ;;  %3956 = vmatprep.mubr.bf16.mxu1 %v3705_v9  ;;  %v5763_v47 = vunpack.i.l.bf16 %v8351_v4  ;;  %v2917_v3 = vrot.slane %v2681_v21, 2  ;;  %v2918_v15 = vrot.slane %v2586_v42, 2 }
 0x253   : > { %6026 = vrot.lane.b32.xlu0 %v6025_v12, %s6155_s27  ;;  %v3543_v45 = vsel %vm1583_vm4, %v3513_v13, %v5729_v46  ;;  %v6030_v33 = vpack.i.bf16 %v8392_v10, %v8389_v7  ;;  %v5764_v14 = vunpack.i.h.bf16 %v8351_v4  ;;  %v2920_v6 = vrot.slane %v2697_v2, 2 }
 0x254   : > { %v5777_v37 = vpop.permute.xlu0 %5776  ;;  %3957 = vmatmul.mubr.bf16.gmra.mrb[48].mxu1 %v3704_v24  ;;  %v5738_v62 = vunpack.i.l.bf16 %v8326_v5  ;;  %v8409_v60 = vsel %vm850_vm2, %v2917_v3, %v2918_v15  ;;  %v5774_v21 = vunpack.i.h.bf16 %v5772_v43  ;;  %v5773_v42 = vunpack.i.l.bf16 %v5772_v43 }
 0x255   : > { %v5767_v8 = vpop.permute.xlu1 %5766  ;;  %v3607_v18 = vsel %vm1552_vm3, %v7743_v28, %v5749_v51  ;;  %v3606_v32 = vsel %vm1552_vm3, %v7740_v58, %v5748_v26  ;;  %v5739_v16 = vunpack.i.h.bf16 %v8326_v5  ;;  %v8418_v4 = vsel %vm850_vm2, %v2918_v15, %v2920_v6  ;;  %v9159_v15 = vld [vmem:[#allocation12_spill] sm:$0xff] }
 0x256   : > { %v3638_v12 = vsel %vm1583_vm4, %v3606_v32, %v5763_v47  ;;  %v5754_v13 = vunpack.i.h.bf16 %v8353_v19  ;;  %v5753_v46 = vunpack.i.l.bf16 %v8353_v19  ;;  %v6035_v59 = vpack.i.bf16 %v8418_v4, %v8409_v60 }
 0x257   : > { %6031 = vrot.lane.b32.xlu0 %v6030_v33, %s6156_s25  ;;  %v3639_v58 = vsel %vm1583_vm4, %v3607_v18, %v5764_v14  ;;  %v5779_v54 = vunpack.i.h.bf16 %v5777_v37  ;;  %v5778_v5 = vunpack.i.l.bf16 %v5777_v37  ;;  %v3670_v23 = vsel %vm1614_vm5, %v3638_v12, %v5773_v42  ;;  %v9160_v33 = vld [vmem:[#allocation13_spill] sm:$0xff]  ;;  %s4749_s25 = sshll.u32 %s6237_s17, 12  ;;  %s8941_s17 = scalar_lea.sflag [#allocation3], %s391_s30 }
 0x258   : > { %v5792_v28 = vpop.permute.xlu0 %5791  ;;  %v5759_v38 = vunpack.i.h.bf16 %v8382_v22  ;;  %v5758_v43 = vunpack.i.l.bf16 %v8382_v22  ;;  %v3671_v31 = vsel %vm1614_vm5, %v3639_v58, %v5774_v21  ;;  %v3574_v11 = vsel %vm1614_vm5, %v3542_v52, %v5738_v62  ;;  %s8929_s26 = scalar_lea.hbm %s8992_s10, %s4749_s25 }
 0x259   : > { %v5782_v2 = vpop.permute.xlu1 %5781  ;;  %v3708_v19 = vpack.c.bf16 %v3671_v31, %v3670_v23  ;;  %v3575_v56 = vsel %vm1614_vm5, %v3543_v45, %v5739_v16  ;;  %v5794_v9 = vunpack.i.h.bf16 %v5792_v28  ;;  %v5793_v44 = vunpack.i.l.bf16 %v5792_v28 }
 0x25a   : > { %v5769_v25 = vunpack.i.h.bf16 %v5767_v8  ;;  %v5768_v20 = vunpack.i.l.bf16 %v5767_v8  ;;  %v3707_v51 = vpack.c.bf16 %v3575_v56, %v3574_v11  ;;  %v3609_v47 = vsel %vm1552_vm3, %v7779_v29, %v5779_v54 }
 0x25b   : > { %6036 = vrot.lane.b32.xlu0 %v6035_v59, %s6157_s29  ;;  %v3608_v22 = vsel %vm1552_vm3, %v7776_v1, %v5778_v5  ;;  %3964 = vmatprep.mubr.bf16.mxu1 %v3708_v19  ;;  %v3515_v37 = vsel %vm1552_vm3, %v9159_v15, %v5754_v13  ;;  %v3641_v8 = vsel %vm1583_vm4, %v3609_v47, %v5794_v9  ;;  %v5783_v13 = vunpack.i.l.bf16 %v5782_v2  ;;  %v9161_v19 = vld [vmem:[#allocation9_spill] sm:$0xff]  ;;  %v9162_v9 = vld [vmem:[#allocation8_spill] sm:$0xff] }
 0x25c   : > { %v5802_v26 = vpop.permute.xlu0 %5801  ;;  %3965 = vmatmul.mubr.bf16.gmra.mrb[52].mxu1 %v3707_v51  ;;  %v3640_v45 = vsel %vm1583_vm4, %v3608_v22, %v5793_v44  ;;  %v3514_v14 = vsel %vm1552_vm3, %v9160_v33, %v5753_v46  ;;  %v3736_v6 = vpack.c.bf16 %v8418_v4, %v8409_v60  ;;  %v3545_v21 = vsel %vm1583_vm4, %v3515_v37, %v5759_v38 }
 0x25d   : > { %v5787_v24 = vpop.permute.xlu1 %5786  ;;  %v5804_v52 = vunpack.i.h.bf16 %v5802_v26  ;;  %v5803_v3 = vunpack.i.l.bf16 %v5802_v26  ;;  %v3544_v62 = vsel %vm1583_vm4, %v3514_v14, %v5758_v43  ;;  %v3577_v12 = vsel %vm1614_vm5, %v3545_v21, %v5769_v25 }
 0x25e   : > { %v3576_v16 = vsel %vm1614_vm5, %v3544_v62, %v5768_v20  ;;  %v5789_v46 = vunpack.i.h.bf16 %v5787_v24  ;;  %v5788_v59 = vunpack.i.l.bf16 %v5787_v24  ;;  %v3516_v44 = vsel %vm1552_vm3, %v9162_v9, %v5783_v13 }
 0x25f   : > { %6041 = vrot.lane.b32.xlu0 %v8349_v34, %s6155_s27  ;;  %v3672_v29 = vsel %vm1614_vm5, %v3640_v45, %v5803_v3  ;;  %v3673_v1 = vsel %vm1614_vm5, %v3641_v8, %v5804_v52  ;;  %v5784_v34 = vunpack.i.h.bf16 %v5782_v2  ;;  %v3710_v28 = vpack.c.bf16 %v3577_v12, %v3576_v16  ;;  %s4661_s27 = sshll.u32 %s391_s30, 8 }
 0x260   : > { %v5807_v42 = vpop.permute.xlu0 %5806  ;;  %v3711_v32 = vpack.c.bf16 %v3673_v1, %v3672_v29  ;;  %v3546_v2 = vsel %vm1583_vm4, %v3516_v44, %v5788_v59  ;;  %v9163_v59 = vld [vmem:[#allocation16_spill] sm:$0xff]  ;;  %s8710_s12 = scalar_lea.vmem [#allocation2], %s4661_s27 }
 0x261   : > { %v5797_v18 = vpop.permute.xlu1 %5796  ;;  %v5809_v5 = vunpack.i.h.bf16 %v5807_v42  ;;  %v5808_v23 = vunpack.i.l.bf16 %v5807_v42  ;;  %v3517_v56 = vsel %vm1552_vm3, %v9161_v19, %v5784_v34  ;;  %v9166_v19 = vld [vmem:[#allocation21_spill] sm:$0xff]  ;;  %s4562_s29 = sshll.u32 %s8710_s12, 4  ;;  %s8931_s29 = int_to_ptr.vmem [resolvable:$true] %s4562_s29 }
 0x262   : > { %3972 = vmatprep.mubr.bf16.mxu1 %v3711_v32  ;;  %v5799_v43 = vunpack.i.h.bf16 %v5797_v18  ;;  %v5798_v31 = vunpack.i.l.bf16 %v5797_v18  ;;  %v3547_v25 = vsel %vm1583_vm4, %v3517_v56, %v5789_v46  ;;  %p6098_p0 = scmp.lt.s32.totalorder %s8931_s29, %s6096_s18 }
 0x263   : > { %v3611_v26 = vsel %vm1552_vm3, %v7815_v0, %v5809_v5  ;;  %v3610_v24 = vsel %vm1552_vm3, %v7812_v40, %v5808_v23 }
 0x264   : > { %v5822_v58 = vpop.permute.xlu0 %5821  ;;  %3973 = vmatmul.mubr.bf16.gmra.mrb[56].mxu1 %v3710_v28  ;;  %v3578_v15 = vsel %vm1614_vm5, %v3546_v2, %v5798_v31  ;;  %v3579_v37 = vsel %vm1614_vm5, %v3547_v25, %v5799_v43 }
 0x265   : > { %v5812_v54 = vpop.permute.xlu1 %5811  ;;  %v5824_v38 = vunpack.i.h.bf16 %v5822_v58  ;;  %v5823_v11 = vunpack.i.l.bf16 %v5822_v58  ;;  %v3713_v29 = vpack.c.bf16 %v3579_v37, %v3578_v15  ;;  %v9164_v58 = vld [vmem:[#allocation17_spill] sm:$0xff] }
 0x266   : > { %v5814_v40 = vunpack.i.h.bf16 %v5812_v54  ;;  %v5813_v1 = vunpack.i.l.bf16 %v5812_v54 }
 0x267   : > { %v3642_v52 = vsel %vm1583_vm4, %v3610_v24, %v5823_v11  ;;  %v3643_v3 = vsel %vm1583_vm4, %v3611_v26, %v5824_v38  ;;  %v9165_v38 = vld [vmem:[#allocation20_spill] sm:$0xff] }
 0x268   : > { %v5832_v20 = vpop.permute.xlu0 %5831  ;;  %v3519_v28 = vsel %vm1552_vm3, %v9163_v59, %v5814_v40  ;;  %v3518_v5 = vsel %vm1552_vm3, %v9164_v58, %v5813_v1 }
 0x269   : > { %v5817_v51 = vpop.permute.xlu1 %5816  ;;  %v5834_v47 = vunpack.i.h.bf16 %v5832_v20  ;;  %v5833_v22 = vunpack.i.l.bf16 %v5832_v20 }
 0x26a   : > { %v5819_v62 = vunpack.i.h.bf16 %v5817_v51  ;;  %v5818_v21 = vunpack.i.l.bf16 %v5817_v51 }
 0x26b   : > { %v3674_v45 = vsel %vm1614_vm5, %v3642_v52, %v5833_v22  ;;  %v3675_v8 = vsel %vm1614_vm5, %v3643_v3, %v5834_v47 }
 0x26c   : > { %v5837_v33 = vpop.permute.xlu0 %5836  ;;  %v3714_v0 = vpack.c.bf16 %v3675_v8, %v3674_v45  ;;  %v3548_v23 = vsel %vm1583_vm4, %v3518_v5, %v5818_v21  ;;  %v3549_v54 = vsel %vm1583_vm4, %v3519_v28, %v5819_v62 }
 0x26d   : > { %v5827_v14 = vpop.permute.xlu1 %5826  ;;  %v5839_v32 = vunpack.i.h.bf16 %v5837_v33  ;;  %v5838_v16 = vunpack.i.l.bf16 %v5837_v33 }
 0x26e   : > { %3980 = vmatprep.mubr.bf16.mxu1 %v3714_v0  ;;  %v5829_v12 = vunpack.i.h.bf16 %v5827_v14  ;;  %v5828_v34 = vunpack.i.l.bf16 %v5827_v14 }
 0x26f   : > { %3981 = vmatmul.mubr.bf16.gmra.mrb[60].mxu1 %v3713_v29  ;;  %v3613_v11 = vsel %vm1552_vm3, %v9165_v38, %v5839_v32  ;;  %v3612_v56 = vsel %vm1552_vm3, %v9166_v19, %v5838_v16 }
 0x270   : > { %v5852_v42 = vpop.permute.xlu0 %5851  ;;  %v3580_v20 = vsel %vm1614_vm5, %v3548_v23, %v5828_v34  ;;  %v3581_v51 = vsel %vm1614_vm5, %v3549_v54, %v5829_v12  ;;  %v9167_v34 = vld [vmem:[#allocation11_spill] sm:$0xff]  ;;  %v9169_v23 = vld [vmem:[#allocation24_spill] sm:$0xff] }
 0x271   : > { %v5842_v18 = vpop.permute.xlu1 %5841  ;;  %v5854_v13 = vunpack.i.h.bf16 %v5852_v42  ;;  %v5853_v46 = vunpack.i.l.bf16 %v5852_v42  ;;  %v3716_v3 = vpack.c.bf16 %v3581_v51, %v3580_v20 }
 0x272   : > { %v5844_v37 = vunpack.i.h.bf16 %v5842_v18  ;;  %v5843_v45 = vunpack.i.l.bf16 %v5842_v18 }
 0x273   : > { %v3644_v2 = vsel %vm1583_vm4, %v3612_v56, %v5853_v46  ;;  %v3645_v25 = vsel %vm1583_vm4, %v3613_v11, %v5854_v13  ;;  %v9168_v13 = vld [vmem:[#allocation10_spill] sm:$0xff] }
 0x274   : > { %v5862_v43 = vpop.permute.xlu0 %5861  ;;  %v3521_v18 = vsel %vm1552_vm3, %v9167_v34, %v5844_v37  ;;  %v3520_v46 = vsel %vm1552_vm3, %v9168_v13, %v5843_v45 }
 0x275   : > { %v5847_v31 = vpop.permute.xlu1 %5846  ;;  %v5864_v9 = vunpack.i.h.bf16 %v5862_v43  ;;  %v5863_v44 = vunpack.i.l.bf16 %v5862_v43  ;;  %v9170_v43 = vld [vmem:[#allocation25_spill] sm:$0xff] }
 0x276   : > { %v5849_v33 = vunpack.i.h.bf16 %v5847_v31  ;;  %v5848_v14 = vunpack.i.l.bf16 %v5847_v31 }
 0x277   : > { %v3676_v26 = vsel %vm1614_vm5, %v3644_v2, %v5863_v44  ;;  %v3677_v24 = vsel %vm1614_vm5, %v3645_v25, %v5864_v9 }
 0x278   : > { %v5867_v47 = vpop.permute.xlu0 %5866  ;;  %v3717_v52 = vpack.c.bf16 %v3677_v24, %v3676_v26  ;;  %v3550_v59 = vsel %vm1583_vm4, %v3520_v46, %v5848_v14  ;;  %v3551_v28 = vsel %vm1583_vm4, %v3521_v18, %v5849_v33 }
 0x279   : > { %v5857_v22 = vpop.permute.xlu1 %5856  ;;  %v5869_v40 = vunpack.i.h.bf16 %v5867_v47  ;;  %v5868_v1 = vunpack.i.l.bf16 %v5867_v47 }
 0x27a   : > { %3988 = vmatprep.mubr.bf16.mxu1 %v3717_v52  ;;  %v8485_v15 = vpop.f32.mrb[64].mxu0  ;;  %v5859_v21 = vunpack.i.h.bf16 %v5857_v22  ;;  %v5858_v42 = vunpack.i.l.bf16 %v5857_v22 }
 0x27b   : > { %3989 = vmatmul.mubr.bf16.gmra.mrb[64].mxu1 %v3716_v3  ;;  %v8487_v8 = vpop.f32.mrb[65].mxu0  ;;  %v3615_v54 = vsel %vm1552_vm3, %v9169_v23, %v5869_v40  ;;  %v3614_v31 = vsel %vm1552_vm3, %v9170_v43, %v5868_v1 }
 0x27c   : > { %v5882_v0 = vpop.permute.xlu0 %5881  ;;  %v8489_v62 = vpop.f32.mrb[66].mxu0  ;;  %v3582_v9 = vsel %vm1614_vm5, %v3550_v59, %v5858_v42  ;;  %v3583_v44 = vsel %vm1614_vm5, %v3551_v28, %v5859_v21  ;;  %v9171_v42 = vld [vmem:[#allocation15_spill] sm:$0xff]  ;;  %v9173_v59 = vld [vmem:[#allocation28_spill] sm:$0xff] }
 0x27d   : > { %v5872_v29 = vpop.permute.xlu1 %5871  ;;  %v5884_v32 = vunpack.i.h.bf16 %v5882_v0  ;;  %v5883_v16 = vunpack.i.l.bf16 %v5882_v0  ;;  %v8491_v12 = vpop.f32.mrb[67].mxu0  ;;  %v3719_v24 = vpack.c.bf16 %v3583_v44, %v3582_v9 }
 0x27e   : > { %v5874_v52 = vunpack.i.h.bf16 %v5872_v29  ;;  %v5873_v3 = vunpack.i.l.bf16 %v5872_v29 }
 0x27f   : > { %v3646_v19 = vsel %vm1583_vm4, %v3614_v31, %v5883_v16  ;;  %v3647_v56 = vsel %vm1583_vm4, %v3615_v54, %v5884_v32  ;;  %v9172_v16 = vld [vmem:[#allocation14_spill] sm:$0xff] }
 0x280   : > { %v5892_v58 = vpop.permute.xlu0 %5891  ;;  %v3523_v32 = vsel %vm1552_vm3, %v9171_v42, %v5874_v52  ;;  %v3522_v34 = vsel %vm1552_vm3, %v9172_v16, %v5873_v3 }
 0x281   : > { %v5877_v5 = vpop.permute.xlu1 %5876  ;;  %v5894_v38 = vunpack.i.h.bf16 %v5892_v58  ;;  %v5893_v11 = vunpack.i.l.bf16 %v5892_v58  ;;  %v9174_v58 = vld [vmem:[#allocation29_spill] sm:$0xff] }
 0x282   : > { %v5879_v37 = vunpack.i.h.bf16 %v5877_v5  ;;  %v5878_v45 = vunpack.i.l.bf16 %v5877_v5 }
 0x283   : > { %v3678_v2 = vsel %vm1614_vm5, %v3646_v19, %v5893_v11  ;;  %v3679_v25 = vsel %vm1614_vm5, %v3647_v56, %v5894_v38 }
 0x284   : > { %v5897_v20 = vpop.permute.xlu0 %5896  ;;  %v3720_v26 = vpack.c.bf16 %v3679_v25, %v3678_v2  ;;  %v3552_v13 = vsel %vm1583_vm4, %v3522_v34, %v5878_v45  ;;  %v3553_v46 = vsel %vm1583_vm4, %v3523_v32, %v5879_v37  ;;  %v9175_v32 = vld [vmem:[#allocation19_spill] sm:$0xff]  ;;  %v9176_v34 = vld [vmem:[#allocation18_spill] sm:$0xff] }
 0x285   : > { %v5887_v51 = vpop.permute.xlu1 %5886  ;;  %v5899_v33 = vunpack.i.h.bf16 %v5897_v20  ;;  %v5898_v14 = vunpack.i.l.bf16 %v5897_v20 }
 0x286   : > { %3996 = vmatprep.mubr.bf16.mxu1 %v3720_v26  ;;  %v5889_v0 = vunpack.i.h.bf16 %v5887_v51  ;;  %v5888_v40 = vunpack.i.l.bf16 %v5887_v51 }
 0x287   : > { %3997 = vmatmul.mubr.bf16.gmra.mrb[68].mxu1 %v3719_v24  ;;  %v3617_v28 = vsel %vm1552_vm3, %v9173_v59, %v5899_v33  ;;  %v3616_v5 = vsel %vm1552_vm3, %v9174_v58, %v5898_v14 }
 0x288   : > { %v5912_v47 = vpop.permute.xlu0 %5911  ;;  %v3584_v38 = vsel %vm1614_vm5, %v3552_v13, %v5888_v40  ;;  %v3585_v11 = vsel %vm1614_vm5, %v3553_v46, %v5889_v0 }
 0x289   : > { %v5902_v22 = vpop.permute.xlu1 %5901  ;;  %v5914_v1 = vunpack.i.h.bf16 %v5912_v47  ;;  %v5913_v21 = vunpack.i.l.bf16 %v5912_v47  ;;  %v3722_v20 = vpack.c.bf16 %v3585_v11, %v3584_v38 }
 0x28a   : > { %v5904_v52 = vunpack.i.h.bf16 %v5902_v22  ;;  %v5903_v3 = vunpack.i.l.bf16 %v5902_v22 }
 0x28b   : > { %v3648_v43 = vsel %vm1583_vm4, %v3616_v5, %v5913_v21  ;;  %v3649_v31 = vsel %vm1583_vm4, %v3617_v28, %v5914_v1 }
 0x28c   : > { %v5922_v29 = vpop.permute.xlu0 %5921  ;;  %v3525_v16 = vsel %vm1552_vm3, %v9175_v32, %v5904_v52  ;;  %v3524_v13 = vsel %vm1552_vm3, %v9176_v34, %v5903_v3 }
 0x28d   : > { %v5907_v18 = vpop.permute.xlu1 %5906  ;;  %v5924_v23 = vunpack.i.h.bf16 %v5922_v29  ;;  %v5923_v54 = vunpack.i.l.bf16 %v5922_v29 }
 0x28e   : > { %v5909_v45 = vunpack.i.h.bf16 %v5907_v18  ;;  %v5908_v33 = vunpack.i.l.bf16 %v5907_v18 }
 0x28f   : > { %v3680_v19 = vsel %vm1614_vm5, %v3648_v43, %v5923_v54  ;;  %v3681_v56 = vsel %vm1614_vm5, %v3649_v31, %v5924_v23 }
 0x290   : > { %v5927_v9 = vpop.permute.xlu0 %5926  ;;  %v3723_v44 = vpack.c.bf16 %v3681_v56, %v3680_v19  ;;  %v3554_v46 = vsel %vm1583_vm4, %v3524_v13, %v5908_v33  ;;  %v3555_v29 = vsel %vm1583_vm4, %v3525_v16, %v5909_v45 }
 0x291   : > { %v8525_v2 = vpop.f32.mrb[68].mxu0  ;;  %v5917_v25 = vpop.permute.xlu1 %5916  ;;  %v5929_v14 = vunpack.i.h.bf16 %v5927_v9  ;;  %v5928_v0 = vunpack.i.l.bf16 %v5927_v9 }
 0x292   : > { %v8527_v51 = vpop.f32.mrb[69].mxu0  ;;  %4004 = vmatprep.mubr.bf16.mxu1 %v3723_v44  ;;  %v5919_v40 = vunpack.i.h.bf16 %v5917_v25  ;;  %v5918_v1 = vunpack.i.l.bf16 %v5917_v25 }
 0x293   : > { %v8529_v26 = vpop.f32.mrb[70].mxu0  ;;  %4005 = vmatmul.mubr.bf16.gmra.mrb[72].mxu1 %v3722_v20  ;;  %v3619_v18 = vsel %vm1552_vm3, %v8017_v41, %v5929_v14  ;;  %v3618_v28 = vsel %vm1552_vm3, %v8009_v36, %v5928_v0 }
 0x294   : > { %v8531_v24 = vpop.f32.mrb[71].mxu0  ;;  %v3586_v43 = vsel %vm1614_vm5, %v3554_v46, %v5918_v1  ;;  %v3587_v31 = vsel %vm1614_vm5, %v3555_v29, %v5919_v40 }
 0x295   : > { %v5932_v37 = vpop.permute.xlu1 %5931  ;;  %v3725_v56 = vpack.c.bf16 %v3587_v31, %v3586_v43 }
 0x296   : > { %v5933_v52 = vunpack.i.l.bf16 %v5932_v37 }
 0x298   : > { %v3526_v13 = vsel %vm1552_vm3, %v7938_v39, %v5933_v52 }
 0x299   : > { %v5942_v47 = vpop.permute.xlu0 %5941 }
 0x29a   : > { %v5944_v21 = vunpack.i.h.bf16 %v5942_v47  ;;  %v5943_v42 = vunpack.i.l.bf16 %v5942_v47  ;;  %v5934_v47 = vunpack.i.h.bf16 %v5932_v37 }
 0x29b   : > { %v5937_v59 = vpop.permute.xlu1 %5936 }
 0x29c   : > { %v3650_v23 = vsel %vm1583_vm4, %v3618_v28, %v5943_v42  ;;  %v3651_v54 = vsel %vm1583_vm4, %v3619_v18, %v5944_v21  ;;  %v5939_v45 = vunpack.i.h.bf16 %v5937_v59  ;;  %v5938_v33 = vunpack.i.l.bf16 %v5937_v59 }
 0x29d   : > { %v3527_v34 = vsel %vm1552_vm3, %v7944_v53, %v5934_v47 }
 0x29e   : > { %v5952_v22 = vpop.permute.xlu0 %5951  ;;  %v3556_v37 = vsel %vm1583_vm4, %v3526_v13, %v5938_v33  ;;  %v3557_v46 = vsel %vm1583_vm4, %v3527_v34, %v5939_v45 }
 0x29f   : > { %v5954_v58 = vunpack.i.h.bf16 %v5952_v22  ;;  %v5953_v5 = vunpack.i.l.bf16 %v5952_v22  ;;  %v5947_v41 = vpop.permute.xlu1 %5946 }
 0x2a0   : > { %v5949_v1 = vunpack.i.h.bf16 %v5947_v41  ;;  %v5948_v21 = vunpack.i.l.bf16 %v5947_v41 }
 0x2a1   : > { %v3682_v38 = vsel %vm1614_vm5, %v3650_v23, %v5953_v5  ;;  %v3683_v11 = vsel %vm1614_vm5, %v3651_v54, %v5954_v58 }
 0x2a2   : > { %v3726_v19 = vpack.c.bf16 %v3683_v11, %v3682_v38  ;;  %v5957_v9 = vpop.permute.xlu0 %5956  ;;  %v3588_v5 = vsel %vm1614_vm5, %v3556_v37, %v5948_v21  ;;  %v3589_v39 = vsel %vm1614_vm5, %v3557_v46, %v5949_v1  ;;  %v9178_v21 = vld [vmem:[#allocation23_spill] sm:$0xff] }
 0x2a3   : > { %v5962_v36 = vpop.permute.xlu1 %5961  ;;  %v5959_v0 = vunpack.i.h.bf16 %v5957_v9  ;;  %v5958_v40 = vunpack.i.l.bf16 %v5957_v9  ;;  %v3728_v38 = vpack.c.bf16 %v3589_v39, %v3588_v5 }
 0x2a4   : > { %4012 = vmatprep.mubr.bf16.mxu1 %v3726_v19  ;;  %v5963_v11 = vunpack.i.l.bf16 %v5962_v36 }
 0x2a5   : > { %4013 = vmatmul.mubr.bf16.gmra.mrb[76].mxu1 %v3725_v56  ;;  %v3621_v22 = vsel %vm1552_vm3, %v8130_v49, %v5959_v0  ;;  %v3620_v59 = vsel %vm1552_vm3, %v8127_v55, %v5958_v40  ;;  %v5964_v55 = vunpack.i.h.bf16 %v5962_v36  ;;  %v9177_v40 = vld [vmem:[#allocation22_spill] sm:$0xff] }
 0x2a6   : > { %v3528_v36 = vsel %vm1552_vm3, %v9178_v21, %v5963_v11 }
 0x2a7   : > { %v5967_v16 = vpop.permute.xlu1 %5966  ;;  %v3529_v1 = vsel %vm1552_vm3, %v9177_v40, %v5964_v55 }
 0x2a8   : > { %v5969_v56 = vunpack.i.h.bf16 %v5967_v16  ;;  %v5968_v41 = vunpack.i.l.bf16 %v5967_v16 }
 0x2a9   : > { %v8549_v44 = vpop.f32.mrb[72].mxu0  ;;  %v5972_v25 = vpop.permute.xlu0 %5971 }
 0x2aa   : > { %v8551_v20 = vpop.f32.mrb[73].mxu0  ;;  %v5974_v42 = vunpack.i.h.bf16 %v5972_v25  ;;  %v5973_v32 = vunpack.i.l.bf16 %v5972_v25 }
 0x2ab   : > { %v8553_v3 = vpop.f32.mrb[74].mxu0  ;;  %v5977_v23 = vpop.permute.xlu1 %5976 }
 0x2ac   : > { %v8555_v14 = vpop.f32.mrb[75].mxu0  ;;  %v3652_v58 = vsel %vm1583_vm4, %v3620_v59, %v5973_v32  ;;  %v3653_v53 = vsel %vm1583_vm4, %v3621_v22, %v5974_v42  ;;  %v5979_v52 = vunpack.i.h.bf16 %v5977_v23  ;;  %v5978_v45 = vunpack.i.l.bf16 %v5977_v23 }
 0x2ad   : > { %v3558_v42 = vsel %vm1583_vm4, %v3528_v36, %v5968_v41  ;;  %v3559_v32 = vsel %vm1583_vm4, %v3529_v1, %v5969_v56 }
 0x2b1   : > { %v5982_v29 = vpop.permute.xlu0 %5981  ;;  %v5992_v19 = vpop.permute.xlu1 %5991 }
 0x2b2   : > { %v5984_v18 = vunpack.i.h.bf16 %v5982_v29  ;;  %v5983_v28 = vunpack.i.l.bf16 %v5982_v29 }
 0x2b4   : > { %v3684_v54 = vsel %vm1614_vm5, %v3652_v58, %v5983_v28  ;;  %v3685_v43 = vsel %vm1614_vm5, %v3653_v53, %v5984_v18  ;;  %v3590_v18 = vsel %vm1614_vm5, %v3558_v42, %v5978_v45 }
 0x2b5   : > { %v5987_v31 = vpop.permute.xlu0 %5986  ;;  %v3729_v49 = vpack.c.bf16 %v3685_v43, %v3684_v54  ;;  %v5997_v29 = vpop.permute.xlu1 %5996  ;;  %v5994_v54 = vunpack.i.h.bf16 %v5992_v19  ;;  %v5993_v43 = vunpack.i.l.bf16 %v5992_v19 }
 0x2b6   : > { %v5989_v25 = vunpack.i.h.bf16 %v5987_v31  ;;  %v5988_v47 = vunpack.i.l.bf16 %v5987_v31  ;;  %v5998_v55 = vunpack.i.l.bf16 %v5997_v29 }
 0x2b7   : > { %4020 = vmatprep.mubr.bf16.mxu1 %v3729_v49  ;;  %v3531_v1 = vsel %vm1552_vm3, %v8087_v27, %v5994_v54  ;;  %v3530_v19 = vsel %vm1552_vm3, %v8101_v63, %v5993_v43 }
 0x2b8   : > { %4021 = vmatmul.mubr.bf16.gmra.mrb[80].mxu1 %v3728_v38  ;;  %v3623_v34 = vsel %vm1552_vm3, %v8244_v57, %v5989_v25  ;;  %v3622_v13 = vsel %vm1552_vm3, %v8241_v35, %v5988_v47  ;;  %v3591_v57 = vsel %vm1614_vm5, %v3559_v32, %v5979_v52  ;;  %v5999_v38 = vunpack.i.h.bf16 %v5997_v29 }
 0x2b9   : > { %v8573_v9 = vpop.permute.xlu0 %6001  ;;  %v3731_v5 = vpack.c.bf16 %v3591_v57, %v3590_v18  ;;  %v3560_v21 = vsel %vm1583_vm4, %v3530_v19, %v5998_v55 }
 0x2ba   : > { %v6004_v33 = vunpack.i.h.bf16 %v8573_v9  ;;  %v6003_v0 = vunpack.i.l.bf16 %v8573_v9  ;;  %v6007_v31 = vpop.permute.xlu1 %6006  ;;  %v3561_v36 = vsel %vm1583_vm4, %v3531_v1, %v5999_v38 }
 0x2bb   : > { %v6009_v47 = vunpack.i.h.bf16 %v6007_v31  ;;  %v6008_v52 = vunpack.i.l.bf16 %v6007_v31 }
 0x2bc   : > { %v3654_v22 = vsel %vm1583_vm4, %v3622_v13, %v6003_v0  ;;  %v3655_v59 = vsel %vm1583_vm4, %v3623_v34, %v6004_v33 }
 0x2bd   : > { %v8583_v16 = vpop.permute.xlu0 %6011  ;;  %v3592_v63 = vsel %vm1614_vm5, %v3560_v21, %v6008_v52  ;;  %v3593_v18 = vsel %vm1614_vm5, %v3561_v36, %v6009_v47 }
 0x2be   : > { %v6014_v37 = vunpack.i.h.bf16 %v8583_v16  ;;  %v6013_v46 = vunpack.i.l.bf16 %v8583_v16 }
 0x2bf   : > { %v6022_v13 = vpop.permute.xlu1 %6021 }
 0x2c0   : > { %v3686_v35 = vsel %vm1614_vm5, %v3654_v22, %v6013_v46  ;;  %v3687_v28 = vsel %vm1614_vm5, %v3655_v59, %v6014_v37  ;;  %v6023_v54 = vunpack.i.l.bf16 %v6022_v13 }
 0x2c1   : > { %v6017_v58 = vpop.permute.xlu0 %6016  ;;  %v3732_v53 = vpack.c.bf16 %v3687_v28, %v3686_v35  ;;  %v8605_v39 = vpop.f32.mrb[76].mxu0  ;;  %v6024_v28 = vunpack.i.h.bf16 %v6022_v13  ;;  %v8676_v13 = vld [vmem:[%s8988_s6] ss:$0 sm:$0xff] }
 0x2c2   : > { %v8607_v23 = vpop.f32.mrb[77].mxu0  ;;  %v6019_v41 = vunpack.i.h.bf16 %v6017_v58  ;;  %v6018_v25 = vunpack.i.l.bf16 %v6017_v58 }
 0x2c3   : > { %4028 = vmatprep.mubr.bf16.mxu1 %v3732_v53  ;;  %v8609_v49 = vpop.f32.mrb[78].mxu0  ;;  %v6047_v43 = vpop.permute.xlu1 %6046  ;;  %v3533_v55 = vsel %vm1552_vm3, %v8189_v30, %v6024_v28  ;;  %v3532_v30 = vsel %vm1552_vm3, %v8221_v61, %v6023_v54 }
 0x2c4   : > { %4029 = vmatmul.mubr.bf16.gmra.mrb[84].mxu1 %v3731_v5  ;;  %v8611_v56 = vpop.f32.mrb[79].mxu0  ;;  %v3625_v32 = vsel %vm1552_vm3, %v8320_v50, %v6019_v41  ;;  %v3624_v34 = vsel %vm1552_vm3, %v8317_v17, %v6018_v25  ;;  %v3734_v5 = vpack.c.bf16 %v3593_v18, %v3592_v63 }
 0x2c5   : > { %v6027_v11 = vpop.permute.xlu0 %6026 }
 0x2c6   : > { %v6029_v45 = vunpack.i.h.bf16 %v6027_v11  ;;  %v6028_v40 = vunpack.i.l.bf16 %v6027_v11 }
 0x2c8   : > { %v3656_v59 = vsel %vm1583_vm4, %v3624_v34, %v6028_v40  ;;  %v3657_v27 = vsel %vm1583_vm4, %v3625_v32, %v6029_v45  ;;  %v6049_v45 = vunpack.i.h.bf16 %v6047_v43  ;;  %v6048_v40 = vunpack.i.l.bf16 %v6047_v43  ;;  %v4453_v43 = vld [vmem:[%s8701_s20 + $0x8] sm:$0xff] }
 0x2c9   : > { %v6032_v42 = vpop.permute.xlu0 %6031 }
 0x2ca   : > { %v6034_v29 = vunpack.i.h.bf16 %v6032_v42  ;;  %v6033_v22 = vunpack.i.l.bf16 %v6032_v42 }
 0x2cc   : > { %v3688_v57 = vsel %vm1614_vm5, %v3656_v59, %v6033_v22  ;;  %v3689_v35 = vsel %vm1614_vm5, %v3657_v27, %v6034_v29  ;;  %v8684_v27 = vld [vmem:[%s8989_s7] ss:$0 sm:$0xff] }
 0x2cd   : > { %v6037_v50 = vpop.permute.xlu0 %6036  ;;  %v3735_v58 = vpack.c.bf16 %v3689_v35, %v3688_v57  ;;  %v4388_v35 = vld [vmem:[%s8692_s28] sm:$0xff] }
 0x2ce   : > { %v6039_v53 = vunpack.i.h.bf16 %v6037_v50  ;;  %v6038_v17 = vunpack.i.l.bf16 %v6037_v50 }
 0x2cf   : > { %4036 = vmatprep.mubr.bf16.mxu1 %v3735_v58  ;;  %v4452_v58 = vld [vmem:[%s8701_s20] sm:$0xff] }
 0x2d0   : > { %v3627_v31 = vsel %vm1552_vm3, %v8392_v10, %v6039_v53  ;;  %v3626_v38 = vsel %vm1552_vm3, %v8389_v7, %v6038_v17  ;;  %4037 = vmatmul.mubr.bf16.gmra.mrb[88].mxu1 %v3734_v5  ;;  %v4389_v17 = vld [vmem:[%s8692_s28 + $0x8] sm:$0xff] }
 0x2d1   : > { %v6042_v11 = vpop.permute.xlu0 %6041  ;;  %v3658_v41 = vsel %vm1583_vm4, %v3626_v38, %v6003_v0  ;;  %v3659_v25 = vsel %vm1583_vm4, %v3627_v31, %v6004_v33 }
 0x2d2   : > { %v6044_v47 = vunpack.i.h.bf16 %v6042_v11  ;;  %v6043_v52 = vunpack.i.l.bf16 %v6042_v11  ;;  %v3690_v10 = vsel %vm1614_vm5, %v3658_v41, %v6013_v46  ;;  %v3691_v7 = vsel %vm1614_vm5, %v3659_v25, %v6014_v37 }
 0x2d3   : > { %v3738_v0 = vpack.c.bf16 %v3691_v7, %v3690_v10 }
 0x2d4   : > { %v3562_v9 = vsel %vm1583_vm4, %v3532_v30, %v6043_v52  ;;  %v3563_v33 = vsel %vm1583_vm4, %v3533_v55, %v6044_v47 }
 0x2d5   : > { %4044 = vmatprep.mubr.bf16.mxu1 %v3738_v0  ;;  %v3594_v1 = vsel %vm1614_vm5, %v3562_v9, %v6048_v40  ;;  %v3595_v19 = vsel %vm1614_vm5, %v3563_v33, %v6049_v45  ;;  %v4390_v33 = vld [vmem:[%s8692_s28 + $0x10] sm:$0xff] }
 0x2d6   : > { %v3737_v46 = vpack.c.bf16 %v3595_v19, %v3594_v1 }
 0x2d8   : > { %4045 = vmatmul.mubr.bf16.gmra.mrb[92].mxu1 %v3737_v46  ;;  %v4454_v46 = vld [vmem:[%s8701_s20 + $0x10] sm:$0xff] }
 0x2d9   : > { %5078 = vmatprep.mubr.msk.bf16.mxu1 %vm1552_vm3, %v3736_v6  ;;  %v8657_v61 = vpop.f32.mrb[80].mxu0 }
 0x2da   : > { %v8659_v16 = vpop.f32.mrb[81].mxu0 }
 0x2db   : > { %v8661_v37 = vpop.f32.mrb[82].mxu0 }
 0x2dc   : > { %v8663_v21 = vpop.f32.mrb[83].mxu0 }
 0x2e0   : > { %5079 = vmatmul.mubr.msk.bf16.vlgmr.msra.gmra.mrb[96].mxu1 %vm1552_vm3, %v8302_v48 }
 0x2f8   : > { %v8667_v42 = vpop.f32.mrb[84].mxu0 }
 0x2f9   : > { %v8669_v60 = vpop.f32.mrb[85].mxu0 }
 0x2fa   : > { %v4896_v36 = vpop.f32.mrb[32].mxu1  ;;  %v8671_v34 = vpop.f32.mrb[86].mxu0 }
 0x2fb   : > { %v4897_v32 = vpop.f32.mrb[33].mxu1  ;;  %v8679_v22 = vpop.f32.mrb[87].mxu0 }
 0x2fc   : > { %v4898_v4 = vadd.f32 %v4897_v32, %v4896_v36  ;;  %v4899_v6 = vpop.f32.mrb[34].mxu1  ;;  %v4391_v36 = vld [vmem:[%s8692_s28 + $0x18] sm:$0xff] }
 0x2fd   : > { %v4900_v29 = vpop.f32.mrb[35].mxu1 }
 0x2fe   : > { %v4088_v48 = vadd.f32 %v4898_v4, %v8487_v8  ;;  %v4901_v59 = vadd.f32 %v4900_v29, %v4899_v6  ;;  %v4455_v6 = vld [vmem:[%s8701_s20 + $0x18] sm:$0xff] }
 0x300   : > { %v4221_v63 = vmul.f32 %v8676_v13, %v4088_v48  ;;  %v4091_v18 = vadd.f32 %v4901_v59, %v8491_v12 }
 0x302   : > { %v4260_v8 = vadd.f32 %v8684_v27, %v4221_v63  ;;  %v4222_v57 = vmul.f32 %v8676_v13, %v4091_v18 }
 0x304   : > { %vm4292_vm0 = vcmp.gt.f32.partialorder %v4260_v8, 0.0  ;;  %v4324_v12 = vmul.f32 0.2, %v4260_v8  ;;  %v4261_v28 = vadd.f32 %v8684_v27, %v4222_v57 }
 0x306   : > { %v4356_v50 = vsel %vm4292_vm0, %v4260_v8, %v4324_v12  ;;  %vm4293_vm1 = vcmp.gt.f32.partialorder %v4261_v28, 0.0  ;;  %v4325_v53 = vmul.f32 0.2, %v4261_v28 }
 0x307   : > { %v4420_v5 = vadd.f32 %v4388_v35, %v4356_v50 }
 0x308   : > { %v4357_v54 = vsel %vm4293_vm1, %v4261_v28, %v4325_v53  ;;  %v4902_v55 = vpop.f32.mrb[36].mxu1 }
 0x309   : > { %v4484_v31 = vadd.f32 %v4452_v58, %v4420_v5  ;;  %v4421_v38 = vadd.f32 %v4389_v17, %v4357_v54  ;;  %v4903_v11 = vpop.f32.mrb[37].mxu1 }
 0x30a   : > { %v4904_v25 = vadd.f32 %v4903_v11, %v4902_v55  ;;  %v4905_v47 = vpop.f32.mrb[38].mxu1 }
 0x30b   : > { %4516 = vst.msk [vmem:[%s8710_s12] sm:$0xff] %vm1552_vm3, %v4484_v31  ;;  %v4485_v41 = vadd.f32 %v4453_v43, %v4421_v38  ;;  %v4906_v52 = vpop.f32.mrb[39].mxu1  ;;  %v4392_v31 = vld [vmem:[%s8692_s28 + $0x20] sm:$0xff] }
 0x30c   : > { %v4096_v10 = vadd.f32 %v8485_v15, %v4904_v25  ;;  %v4907_v7 = vadd.f32 %v4906_v52, %v4905_v47  ;;  %v4393_v47 = vld [vmem:[%s8692_s28 + $0x28] sm:$0xff] }
 0x30d   : > { %4517 = vst.msk [vmem:[%s8710_s12 + $0x8] sm:$0xff] %vm1552_vm3, %v4485_v41  ;;  %v4456_v41 = vld [vmem:[%s8701_s20 + $0x20] sm:$0xff] }
 0x30e   : > { %v4223_v30 = vmul.f32 %v8676_v13, %v4096_v10  ;;  %v4099_v45 = vadd.f32 %v8489_v62, %v4907_v7 }
 0x310   : > { %v4262_v40 = vadd.f32 %v8684_v27, %v4223_v30  ;;  %v4224_v0 = vmul.f32 %v8676_v13, %v4099_v45 }
 0x312   : > { %vm4294_vm2 = vcmp.gt.f32.partialorder %v4262_v40, 0.0  ;;  %v4326_v9 = vmul.f32 0.2, %v4262_v40  ;;  %v4263_v1 = vadd.f32 %v8684_v27, %v4224_v0 }
 0x314   : > { %v4358_v19 = vsel %vm4294_vm2, %v4262_v40, %v4326_v9  ;;  %vm4295_vm4 = vcmp.gt.f32.partialorder %v4263_v1, 0.0  ;;  %v4327_v15 = vmul.f32 0.2, %v4263_v1  ;;  %v4457_v40 = vld [vmem:[%s8701_s20 + $0x28] sm:$0xff] }
 0x315   : > { %v4422_v32 = vadd.f32 %v4390_v33, %v4358_v19 }
 0x316   : > { %v4359_v4 = vsel %vm4295_vm4, %v4263_v1, %v4327_v15 }
 0x317   : > { %v4908_v62 = vpop.f32.mrb[40].mxu1  ;;  %v4486_v29 = vadd.f32 %v4454_v46, %v4422_v32  ;;  %v4423_v48 = vadd.f32 %v4391_v36, %v4359_v4 }
 0x318   : > { %v4909_v59 = vpop.f32.mrb[41].mxu1 }
 0x319   : > { %v4910_v63 = vadd.f32 %v4909_v59, %v4908_v62  ;;  %v4911_v18 = vpop.f32.mrb[42].mxu1  ;;  %4518 = vst.msk [vmem:[%s8710_s12 + $0x10] sm:$0xff] %vm1552_vm3, %v4486_v29  ;;  %v4487_v8 = vadd.f32 %v4455_v6, %v4423_v48  ;;  %v8731_v28 = vpop.f32.mrb[88].mxu0  ;;  %v4394_v6 = vld [vmem:[%s8692_s28 + $0x30] sm:$0xff] }
 0x31a   : > { %v4912_v57 = vpop.f32.mrb[43].mxu1  ;;  %v8735_v53 = vpop.f32.mrb[89].mxu0 }
 0x31b   : > { %v4104_v12 = vadd.f32 %v4910_v63, %v8527_v51  ;;  %v4913_v35 = vadd.f32 %v4912_v57, %v4911_v18  ;;  %4519 = vst.msk [vmem:[%s8710_s12 + $0x18] sm:$0xff] %vm1552_vm3, %v4487_v8  ;;  %v8737_v17 = vpop.f32.mrb[90].mxu0  ;;  %v4458_v63 = vld [vmem:[%s8701_s20 + $0x30] sm:$0xff]  ;;  %v4395_v8 = vld [vmem:[%s8692_s28 + $0x38] sm:$0xff] }
 0x31c   : > { %v8741_v51 = vpop.f32.mrb[91].mxu0 }
 0x31d   : > { %v4225_v50 = vmul.f32 %v8676_v13, %v4104_v12  ;;  %v4107_v58 = vadd.f32 %v4913_v35, %v8531_v24 }
 0x31f   : > { %v4264_v5 = vadd.f32 %v8684_v27, %v4225_v50  ;;  %v4226_v54 = vmul.f32 %v8676_v13, %v4107_v58  ;;  %v4914_v55 = vpop.f32.mrb[44].mxu1 }
 0x320   : > { %v4915_v11 = vpop.f32.mrb[45].mxu1 }
 0x321   : > { %vm4296_vm5 = vcmp.gt.f32.partialorder %v4264_v5, 0.0  ;;  %v4328_v43 = vmul.f32 0.2, %v4264_v5  ;;  %v4265_v38 = vadd.f32 %v8684_v27, %v4226_v54  ;;  %v4916_v52 = vadd.f32 %v4915_v11, %v4914_v55  ;;  %v4917_v10 = vpop.f32.mrb[46].mxu1 }
 0x322   : > { %v4918_v30 = vpop.f32.mrb[47].mxu1 }
 0x323   : > { %v4360_v24 = vsel %vm4296_vm5, %v4264_v5, %v4328_v43  ;;  %vm4297_vm8 = vcmp.gt.f32.partialorder %v4265_v38, 0.0  ;;  %v4329_v25 = vmul.f32 0.2, %v4265_v38  ;;  %v4112_v0 = vadd.f32 %v8525_v2, %v4916_v52  ;;  %v4459_v5 = vld [vmem:[%s8701_s20 + $0x38] sm:$0xff] }
 0x324   : > { %v4424_v7 = vadd.f32 %v4392_v31, %v4360_v24  ;;  %v4919_v9 = vadd.f32 %v4918_v30, %v4917_v10  ;;  %v4460_v30 = vld [vmem:[%s8701_s20 + $0x40] sm:$0xff] }
 0x325   : > { %v4361_v45 = vsel %vm4297_vm8, %v4265_v38, %v4329_v25  ;;  %v4227_v19 = vmul.f32 %v8676_v13, %v4112_v0  ;;  %v4396_v25 = vld [vmem:[%s8692_s28 + $0x40] sm:$0xff] }
 0x326   : > { %v4488_v33 = vadd.f32 %v4456_v41, %v4424_v7  ;;  %v4425_v1 = vadd.f32 %v4393_v47, %v4361_v45  ;;  %v4115_v46 = vadd.f32 %v8529_v26, %v4919_v9 }
 0x327   : > { %v4266_v36 = vadd.f32 %v8684_v27, %v4227_v19  ;;  %v4920_v4 = vpop.f32.mrb[48].mxu1 }
 0x328   : > { %4520 = vst.msk [vmem:[%s8710_s12 + $0x20] sm:$0xff] %vm1552_vm3, %v4488_v33  ;;  %v4489_v15 = vadd.f32 %v4457_v40, %v4425_v1  ;;  %v4228_v32 = vmul.f32 %v8676_v13, %v4115_v46  ;;  %v4921_v29 = vpop.f32.mrb[49].mxu1  ;;  %v4397_v40 = vld [vmem:[%s8692_s28 + $0x48] sm:$0xff] }
 0x329   : > { %vm4298_vm9 = vcmp.gt.f32.partialorder %v4266_v36, 0.0  ;;  %v4330_v2 = vmul.f32 0.2, %v4266_v36  ;;  %v4922_v48 = vadd.f32 %v4921_v29, %v4920_v4  ;;  %v4923_v26 = vpop.f32.mrb[50].mxu1  ;;  %v4461_v46 = vld [vmem:[%s8701_s20 + $0x48] sm:$0xff] }
 0x32a   : > { %4521 = vst.msk [vmem:[%s8710_s12 + $0x28] sm:$0xff] %vm1552_vm3, %v4489_v15  ;;  %v4267_v62 = vadd.f32 %v8684_v27, %v4228_v32  ;;  %v4924_v57 = vpop.f32.mrb[51].mxu1 }
 0x32b   : > { %v4362_v59 = vsel %vm4298_vm9, %v4266_v36, %v4330_v2  ;;  %v4120_v35 = vadd.f32 %v4922_v48, %v8551_v20  ;;  %v4925_v50 = vadd.f32 %v4924_v57, %v4923_v26  ;;  %v4398_v26 = vld [vmem:[%s8692_s28 + $0x50] sm:$0xff] }
 0x32c   : > { %vm4299_vm10 = vcmp.gt.f32.partialorder %v4267_v62, 0.0  ;;  %v4331_v18 = vmul.f32 0.2, %v4267_v62  ;;  %v4426_v12 = vadd.f32 %v4394_v6, %v4362_v59  ;;  %v4462_v57 = vld [vmem:[%s8701_s20 + $0x50] sm:$0xff] }
 0x32d   : > { %v4229_v31 = vmul.f32 %v8676_v13, %v4120_v35  ;;  %v4123_v38 = vadd.f32 %v4925_v50, %v8555_v14  ;;  %v4399_v35 = vld [vmem:[%s8692_s28 + $0x58] sm:$0xff] }
 0x32e   : > { %v4363_v58 = vsel %vm4299_vm10, %v4267_v62, %v4331_v18  ;;  %v4490_v54 = vadd.f32 %v4458_v63, %v4426_v12 }
 0x32f   : > { %v4427_v43 = vadd.f32 %v4395_v8, %v4363_v58  ;;  %v4268_v11 = vadd.f32 %v8684_v27, %v4229_v31  ;;  %v4230_v24 = vmul.f32 %v8676_v13, %v4123_v38  ;;  %v4926_v20 = vpop.f32.mrb[52].mxu1 }
 0x330   : > { %4522 = vst.msk [vmem:[%s8710_s12 + $0x30] sm:$0xff] %vm1552_vm3, %v4490_v54  ;;  %v4927_v52 = vpop.f32.mrb[53].mxu1 }
 0x331   : > { %v4491_v55 = vadd.f32 %v4459_v5, %v4427_v43  ;;  %vm4300_vm11 = vcmp.gt.f32.partialorder %v4268_v11, 0.0  ;;  %v4332_v41 = vmul.f32 0.2, %v4268_v11  ;;  %v4269_v47 = vadd.f32 %v8684_v27, %v4230_v24  ;;  %v4929_v14 = vpop.f32.mrb[54].mxu1  ;;  %v4463_v43 = vld [vmem:[%s8701_s20 + $0x58] sm:$0xff] }
 0x332   : > { %v4928_v10 = vadd.f32 %v4927_v52, %v4926_v20  ;;  %v4930_v0 = vpop.f32.mrb[55].mxu1 }
 0x333   : > { %4523 = vst.msk [vmem:[%s8710_s12 + $0x38] sm:$0xff] %vm1552_vm3, %v4491_v55  ;;  %v4364_v7 = vsel %vm4300_vm11, %v4268_v11, %v4332_v41  ;;  %vm4301_vm12 = vcmp.gt.f32.partialorder %v4269_v47, 0.0  ;;  %v4333_v45 = vmul.f32 0.2, %v4269_v47  ;;  %v4931_v1 = vadd.f32 %v4930_v0, %v4929_v14 }
 0x334   : > { %v4428_v9 = vadd.f32 %v4396_v25, %v4364_v7  ;;  %v4128_v33 = vadd.f32 %v8549_v44, %v4928_v10 }
 0x335   : > { %v4365_v19 = vsel %vm4301_vm12, %v4269_v47, %v4333_v45  ;;  %v4131_v4 = vadd.f32 %v8553_v3, %v4931_v1  ;;  %v4400_v47 = vld [vmem:[%s8692_s28 + $0x60] sm:$0xff] }
 0x336   : > { %v4492_v15 = vadd.f32 %v4460_v30, %v4428_v9  ;;  %v4429_v36 = vadd.f32 %v4397_v40, %v4365_v19  ;;  %v4231_v32 = vmul.f32 %v8676_v13, %v4128_v33  ;;  %v4464_v30 = vld [vmem:[%s8701_s20 + $0x60] sm:$0xff]  ;;  %v4401_v9 = vld [vmem:[%s8692_s28 + $0x68] sm:$0xff] }
 0x337   : > { %v4232_v62 = vmul.f32 %v8676_v13, %v4131_v4  ;;  %v4932_v44 = vpop.f32.mrb[56].mxu1 }
 0x338   : > { %4524 = vst.msk [vmem:[%s8710_s12 + $0x40] sm:$0xff] %vm1552_vm3, %v4492_v15  ;;  %v4493_v2 = vadd.f32 %v4461_v46, %v4429_v36  ;;  %v4270_v6 = vadd.f32 %v8684_v27, %v4231_v32  ;;  %v4933_v29 = vpop.f32.mrb[57].mxu1  ;;  %v4465_v15 = vld [vmem:[%s8701_s20 + $0x68] sm:$0xff] }
 0x339   : > { %v4271_v59 = vadd.f32 %v8684_v27, %v4232_v62  ;;  %v4934_v3 = vadd.f32 %v4933_v29, %v4932_v44  ;;  %v4935_v63 = vpop.f32.mrb[58].mxu1  ;;  %v4402_v44 = vld [vmem:[%s8692_s28 + $0x70] sm:$0xff] }
 0x33a   : > { %4525 = vst.msk [vmem:[%s8710_s12 + $0x48] sm:$0xff] %vm1552_vm3, %v4493_v2  ;;  %vm4302_vm13 = vcmp.gt.f32.partialorder %v4270_v6, 0.0  ;;  %v4334_v48 = vmul.f32 0.2, %v4270_v6  ;;  %v4936_v18 = vpop.f32.mrb[59].mxu1 }
 0x33b   : > { %vm4303_vm14 = vcmp.gt.f32.partialorder %v4271_v59, 0.0  ;;  %v4335_v12 = vmul.f32 0.2, %v4271_v59  ;;  %v4136_v50 = vadd.f32 %v4934_v3, %v8607_v23  ;;  %v4937_v5 = vadd.f32 %v4936_v18, %v4935_v63  ;;  %v4403_v63 = vld [vmem:[%s8692_s28 + $0x78] sm:$0xff] }
 0x33c   : > { %v4366_v8 = vsel %vm4302_vm13, %v4270_v6, %v4334_v48 }
 0x33d   : > { %v4430_v58 = vadd.f32 %v4398_v26, %v4366_v8  ;;  %v4367_v54 = vsel %vm4303_vm14, %v4271_v59, %v4335_v12  ;;  %v4233_v31 = vmul.f32 %v8676_v13, %v4136_v50  ;;  %v4139_v11 = vadd.f32 %v4937_v5, %v8611_v56  ;;  %v4466_v26 = vld [vmem:[%s8701_s20 + $0x70] sm:$0xff]  ;;  %v4467_v50 = vld [vmem:[%s8701_s20 + $0x78] sm:$0xff] }
 0x33e   : > { %v4431_v55 = vadd.f32 %v4399_v35, %v4367_v54 }
 0x33f   : > { %v4494_v38 = vadd.f32 %v4462_v57, %v4430_v58  ;;  %v4272_v24 = vadd.f32 %v8684_v27, %v4233_v31  ;;  %v4234_v23 = vmul.f32 %v8676_v13, %v4139_v11 }
 0x340   : > { %v4495_v20 = vadd.f32 %v4463_v43, %v4431_v55 }
 0x341   : > { %4526 = vst.msk [vmem:[%s8710_s12 + $0x50] sm:$0xff] %vm1552_vm3, %v4494_v38  ;;  %vm4304_vm15 = vcmp.gt.f32.partialorder %v4272_v24, 0.0  ;;  %v4336_v25 = vmul.f32 0.2, %v4272_v24  ;;  %v4273_v10 = vadd.f32 %v8684_v27, %v4234_v23  ;;  %v4404_v23 = vld [vmem:[%s8692_s28 + $0x80] sm:$0xff] }
 0x342   : > { %v4938_v41 = vpop.f32.mrb[60].mxu1  ;;  %4527 = vst.msk [vmem:[%s8710_s12 + $0x58] sm:$0xff] %vm1552_vm3, %v4495_v20 }
 0x343   : > { %v4939_v52 = vpop.f32.mrb[61].mxu1  ;;  %v4368_v7 = vsel %vm4304_vm15, %v4272_v24, %v4336_v25  ;;  %vm4305_vm6 = vcmp.gt.f32.partialorder %v4273_v10, 0.0  ;;  %v4337_v0 = vmul.f32 0.2, %v4273_v10  ;;  %v4468_v25 = vld [vmem:[%s8701_s20 + $0x80] sm:$0xff] }
 0x344   : > { %v4940_v14 = vadd.f32 %v4939_v52, %v4938_v41  ;;  %v4941_v56 = vpop.f32.mrb[62].mxu1  ;;  %v4432_v40 = vadd.f32 %v4400_v47, %v4368_v7  ;;  %v4405_v52 = vld [vmem:[%s8692_s28 + $0x88] sm:$0xff] }
 0x345   : > { %v4942_v45 = vpop.f32.mrb[63].mxu1  ;;  %v4369_v46 = vsel %vm4305_vm6, %v4273_v10, %v4337_v0  ;;  %v4469_v7 = vld [vmem:[%s8701_s20 + $0x88] sm:$0xff] }
 0x346   : > { %v4144_v33 = vadd.f32 %v8605_v39, %v4940_v14  ;;  %v4943_v1 = vadd.f32 %v4942_v45, %v4941_v56  ;;  %v4496_v19 = vadd.f32 %v4464_v30, %v4432_v40  ;;  %v4433_v32 = vadd.f32 %v4401_v9, %v4369_v46 }
 0x348   : > { %v4235_v36 = vmul.f32 %v8676_v13, %v4144_v33  ;;  %v4147_v4 = vadd.f32 %v8609_v49, %v4943_v1  ;;  %4528 = vst.msk [vmem:[%s8710_s12 + $0x60] sm:$0xff] %vm1552_vm3, %v4496_v19  ;;  %v4497_v6 = vadd.f32 %v4465_v15, %v4433_v32 }
 0x34a   : > { %v4274_v2 = vadd.f32 %v8684_v27, %v4235_v36  ;;  %v4236_v62 = vmul.f32 %v8676_v13, %v4147_v4  ;;  %4529 = vst.msk [vmem:[%s8710_s12 + $0x68] sm:$0xff] %vm1552_vm3, %v4497_v6 }
 0x34c   : > { %vm4306_vm7 = vcmp.gt.f32.partialorder %v4274_v2, 0.0  ;;  %v4338_v39 = vmul.f32 0.2, %v4274_v2  ;;  %v4275_v29 = vadd.f32 %v8684_v27, %v4236_v62  ;;  %v4470_v62 = vld [vmem:[%s8701_s20 + $0x90] sm:$0xff] }
 0x34e   : > { %v4370_v48 = vsel %vm4306_vm7, %v4274_v2, %v4338_v39  ;;  %v4944_v49 = vpop.f32.mrb[64].mxu1  ;;  %vm4307_vm0 = vcmp.gt.f32.partialorder %v4275_v29, 0.0  ;;  %v4339_v3 = vmul.f32 0.2, %v4275_v29  ;;  %v4406_v2 = vld [vmem:[%s8692_s28 + $0x90] sm:$0xff] }
 0x34f   : > { %v4434_v59 = vadd.f32 %v4402_v44, %v4370_v48  ;;  %v4945_v18 = vpop.f32.mrb[65].mxu1  ;;  %v4407_v44 = vld [vmem:[%s8692_s28 + $0x98] sm:$0xff] }
 0x350   : > { %v4946_v8 = vadd.f32 %v4945_v18, %v4944_v49  ;;  %v4947_v57 = vpop.f32.mrb[66].mxu1  ;;  %v4371_v35 = vsel %vm4307_vm0, %v4275_v29, %v4339_v3  ;;  %v4471_v48 = vld [vmem:[%s8701_s20 + $0x98] sm:$0xff] }
 0x351   : > { %v4498_v12 = vadd.f32 %v4466_v26, %v4434_v59  ;;  %v4948_v58 = vpop.f32.mrb[67].mxu1  ;;  %v4435_v5 = vadd.f32 %v4403_v63, %v4371_v35 }
 0x352   : > { %v4152_v54 = vadd.f32 %v4946_v8, %v8659_v16  ;;  %v4949_v43 = vadd.f32 %v4948_v58, %v4947_v57 }
 0x353   : > { %4530 = vst.msk [vmem:[%s8710_s12 + $0x70] sm:$0xff] %vm1552_vm3, %v4498_v12  ;;  %v4499_v31 = vadd.f32 %v4467_v50, %v4435_v5 }
 0x354   : > { %v4237_v38 = vmul.f32 %v8676_v13, %v4152_v54  ;;  %v4155_v55 = vadd.f32 %v4949_v43, %v8663_v21 }
 0x355   : > { %4531 = vst.msk [vmem:[%s8710_s12 + $0x78] sm:$0xff] %vm1552_vm3, %v4499_v31  ;;  %v4408_v31 = vld [vmem:[%s8692_s28 + $0xa0] sm:$0xff] }
 0x356   : > { %v4276_v11 = vadd.f32 %v8684_v27, %v4237_v38  ;;  %v4238_v24 = vmul.f32 %v8676_v13, %v4155_v55 }
 0x358   : > { %vm4308_vm1 = vcmp.gt.f32.partialorder %v4276_v11, 0.0  ;;  %v4340_v20 = vmul.f32 0.2, %v4276_v11  ;;  %v4277_v16 = vadd.f32 %v8684_v27, %v4238_v24  ;;  %v4409_v24 = vld [vmem:[%s8692_s28 + $0xa8] sm:$0xff] }
 0x35a   : > { %v4372_v41 = vsel %vm4308_vm1, %v4276_v11, %v4340_v20  ;;  %vm4309_vm2 = vcmp.gt.f32.partialorder %v4277_v16, 0.0  ;;  %v4341_v47 = vmul.f32 0.2, %v4277_v16  ;;  %v4950_v10 = vpop.f32.mrb[68].mxu1 }
 0x35b   : > { %v4436_v21 = vadd.f32 %v4404_v23, %v4372_v41  ;;  %v4951_v14 = vpop.f32.mrb[69].mxu1 }
 0x35c   : > { %v4373_v56 = vsel %vm4309_vm2, %v4277_v16, %v4341_v47  ;;  %v4952_v30 = vadd.f32 %v4951_v14, %v4950_v10  ;;  %v4953_v45 = vpop.f32.mrb[70].mxu1  ;;  %v4473_v16 = vld [vmem:[%s8701_s20 + $0xa8] sm:$0xff] }
 0x35d   : > { %v4500_v40 = vadd.f32 %v4468_v25, %v4436_v21  ;;  %v4437_v0 = vadd.f32 %v4405_v52, %v4373_v56  ;;  %v4954_v9 = vpop.f32.mrb[71].mxu1 }
 0x35e   : > { %v4160_v33 = vadd.f32 %v8657_v61, %v4952_v30  ;;  %v4955_v1 = vadd.f32 %v4954_v9, %v4953_v45 }
 0x35f   : > { %4532 = vst.msk [vmem:[%s8710_s12 + $0x80] sm:$0xff] %vm1552_vm3, %v4500_v40  ;;  %v4501_v19 = vadd.f32 %v4469_v7, %v4437_v0 }
 0x360   : > { %v4239_v46 = vmul.f32 %v8676_v13, %v4160_v33  ;;  %v4163_v15 = vadd.f32 %v8661_v37, %v4955_v1  ;;  %v4410_v33 = vld [vmem:[%s8692_s28 + $0xb0] sm:$0xff] }
 0x361   : > { %4533 = vst.msk [vmem:[%s8710_s12 + $0x88] sm:$0xff] %vm1552_vm3, %v4501_v19 }
 0x362   : > { %v4278_v36 = vadd.f32 %v8684_v27, %v4239_v46  ;;  %v4240_v32 = vmul.f32 %v8676_v13, %v4163_v15  ;;  %v4474_v46 = vld [vmem:[%s8701_s20 + $0xb0] sm:$0xff]  ;;  %v4411_v15 = vld [vmem:[%s8692_s28 + $0xb8] sm:$0xff] }
 0x364   : > { %vm4310_vm4 = vcmp.gt.f32.partialorder %v4278_v36, 0.0  ;;  %v4342_v4 = vmul.f32 0.2, %v4278_v36  ;;  %v4279_v61 = vadd.f32 %v8684_v27, %v4240_v32 }
 0x366   : > { %v4374_v6 = vsel %vm4310_vm4, %v4278_v36, %v4342_v4  ;;  %vm4311_vm5 = vcmp.gt.f32.partialorder %v4279_v61, 0.0  ;;  %v4343_v39 = vmul.f32 0.2, %v4279_v61  ;;  %v4956_v26 = vpop.f32.mrb[72].mxu1  ;;  %v4475_v4 = vld [vmem:[%s8701_s20 + $0xb8] sm:$0xff] }
 0x367   : > { %v4438_v29 = vadd.f32 %v4406_v2, %v4374_v6  ;;  %v4957_v3 = vpop.f32.mrb[73].mxu1 }
 0x368   : > { %v4375_v37 = vsel %vm4311_vm5, %v4279_v61, %v4343_v39  ;;  %v4958_v63 = vadd.f32 %v4957_v3, %v4956_v26  ;;  %v4959_v18 = vpop.f32.mrb[74].mxu1 }
 0x369   : > { %v4502_v49 = vadd.f32 %v4470_v62, %v4438_v29  ;;  %v4439_v59 = vadd.f32 %v4407_v44, %v4375_v37  ;;  %v4960_v57 = vpop.f32.mrb[75].mxu1 }
 0x36a   : > { %v4168_v12 = vadd.f32 %v4958_v63, %v8669_v60  ;;  %v4961_v35 = vadd.f32 %v4960_v57, %v4959_v18  ;;  %v4472_v60 = vld [vmem:[%s8701_s20 + $0xa0] sm:$0xff] }
 0x36b   : > { %4534 = vst.msk [vmem:[%s8710_s12 + $0x90] sm:$0xff] %vm1552_vm3, %v4502_v49  ;;  %v4503_v8 = vadd.f32 %v4471_v48, %v4439_v59  ;;  %v4412_v18 = vld [vmem:[%s8692_s28 + $0xc0] sm:$0xff] }
 0x36c   : > { %v4241_v50 = vmul.f32 %v8676_v13, %v4168_v12  ;;  %v4171_v58 = vadd.f32 %v4961_v35, %v8679_v22  ;;  %v4476_v12 = vld [vmem:[%s8701_s20 + $0xc0] sm:$0xff]  ;;  %v4413_v35 = vld [vmem:[%s8692_s28 + $0xc8] sm:$0xff] }
 0x36d   : > { %4535 = vst.msk [vmem:[%s8710_s12 + $0x98] sm:$0xff] %vm1552_vm3, %v4503_v8 }
 0x36e   : > { %v4280_v5 = vadd.f32 %v8684_v27, %v4241_v50  ;;  %v4242_v54 = vmul.f32 %v8676_v13, %v4171_v58 }
 0x370   : > { %vm4312_vm8 = vcmp.gt.f32.partialorder %v4280_v5, 0.0  ;;  %v4344_v43 = vmul.f32 0.2, %v4280_v5  ;;  %v4281_v38 = vadd.f32 %v8684_v27, %v4242_v54  ;;  %v4477_v54 = vld [vmem:[%s8701_s20 + $0xc8] sm:$0xff] }
 0x372   : > { %v4376_v55 = vsel %vm4312_vm8, %v4280_v5, %v4344_v43  ;;  %vm4313_vm9 = vcmp.gt.f32.partialorder %v4281_v38, 0.0  ;;  %v4345_v11 = vmul.f32 0.2, %v4281_v38 }
 0x373   : > { %v4440_v20 = vadd.f32 %v4408_v31, %v4376_v55 }
 0x374   : > { %v4377_v23 = vsel %vm4313_vm9, %v4281_v38, %v4345_v11 }
 0x375   : > { %v4504_v22 = vadd.f32 %v4472_v60, %v4440_v20  ;;  %v4441_v41 = vadd.f32 %v4409_v24, %v4377_v23 }
 0x377   : > { %4536 = vst.msk [vmem:[%s8710_s12 + $0xa0] sm:$0xff] %vm1552_vm3, %v4504_v22  ;;  %v4505_v47 = vadd.f32 %v4473_v16, %v4441_v41 }
 0x378   : > { %v4962_v25 = vpop.f32.mrb[76].mxu1 }
 0x379   : > { %v4963_v52 = vpop.f32.mrb[77].mxu1  ;;  %4537 = vst.msk [vmem:[%s8710_s12 + $0xa8] sm:$0xff] %vm1552_vm3, %v4505_v47  ;;  %v4414_v47 = vld [vmem:[%s8692_s28 + $0xd0] sm:$0xff] }
 0x37a   : > { %v4964_v10 = vadd.f32 %v4963_v52, %v4962_v25  ;;  %v4965_v21 = vpop.f32.mrb[78].mxu1 }
 0x37b   : > { %v4966_v14 = vpop.f32.mrb[79].mxu1 }
 0x37c   : > { %v4176_v56 = vadd.f32 %v8667_v42, %v4964_v10  ;;  %v4967_v7 = vadd.f32 %v4966_v14, %v4965_v21  ;;  %v4478_v10 = vld [vmem:[%s8701_s20 + $0xd0] sm:$0xff]  ;;  %v4415_v14 = vld [vmem:[%s8692_s28 + $0xd8] sm:$0xff] }
 0x37e   : > { %v4243_v30 = vmul.f32 %v8676_v13, %v4176_v56  ;;  %v4179_v45 = vadd.f32 %v8671_v34, %v4967_v7 }
 0x380   : > { %v4282_v40 = vadd.f32 %v8684_v27, %v4243_v30  ;;  %v4244_v0 = vmul.f32 %v8676_v13, %v4179_v45  ;;  %v4479_v45 = vld [vmem:[%s8701_s20 + $0xd8] sm:$0xff] }
 0x382   : > { %vm4314_vm10 = vcmp.gt.f32.partialorder %v4282_v40, 0.0  ;;  %v4346_v9 = vmul.f32 0.2, %v4282_v40  ;;  %v4283_v1 = vadd.f32 %v8684_v27, %v4244_v0 }
 0x384   : > { %v4378_v19 = vsel %vm4314_vm10, %v4282_v40, %v4346_v9  ;;  %vm4315_vm11 = vcmp.gt.f32.partialorder %v4283_v1, 0.0  ;;  %v4347_v42 = vmul.f32 0.2, %v4283_v1 }
 0x385   : > { %v4442_v36 = vadd.f32 %v4410_v33, %v4378_v19 }
 0x386   : > { %v4379_v32 = vsel %vm4315_vm11, %v4283_v1, %v4347_v42 }
 0x387   : > { %v4506_v34 = vadd.f32 %v4474_v46, %v4442_v36  ;;  %v4443_v2 = vadd.f32 %v4411_v15, %v4379_v32 }
 0x389   : > { %4538 = vst.msk [vmem:[%s8710_s12 + $0xb0] sm:$0xff] %vm1552_vm3, %v4506_v34  ;;  %v4507_v61 = vadd.f32 %v4475_v4, %v4443_v2 }
 0x38b   : > { %4539 = vst.msk [vmem:[%s8710_s12 + $0xb8] sm:$0xff] %vm1552_vm3, %v4507_v61  ;;  %v4968_v6 = vpop.f32.mrb[80].mxu1 }
 0x38c   : > { %v4969_v62 = vpop.f32.mrb[81].mxu1 }
 0x38d   : > { %v4970_v39 = vadd.f32 %v4969_v62, %v4968_v6  ;;  %v4971_v44 = vpop.f32.mrb[82].mxu1 }
 0x38e   : > { %v4972_v29 = vpop.f32.mrb[83].mxu1 }
 0x38f   : > { %v4184_v37 = vadd.f32 %v4970_v39, %v8735_v53  ;;  %v4973_v48 = vadd.f32 %v4972_v29, %v4971_v44 }
 0x391   : > { %v4245_v26 = vmul.f32 %v8676_v13, %v4184_v37  ;;  %v4187_v49 = vadd.f32 %v4973_v48, %v8741_v51 }
 0x393   : > { %v4284_v59 = vadd.f32 %v8684_v27, %v4245_v26  ;;  %v4246_v3 = vmul.f32 %v8676_v13, %v4187_v49 }
 0x395   : > { %vm4316_vm12 = vcmp.gt.f32.partialorder %v4284_v59, 0.0  ;;  %v4348_v63 = vmul.f32 0.2, %v4284_v59  ;;  %v4285_v8 = vadd.f32 %v8684_v27, %v4246_v3 }
 0x397   : > { %v4380_v57 = vsel %vm4316_vm12, %v4284_v59, %v4348_v63  ;;  %vm4317_vm13 = vcmp.gt.f32.partialorder %v4285_v8, 0.0  ;;  %v4349_v53 = vmul.f32 0.2, %v4285_v8  ;;  %v4974_v50 = vpop.f32.mrb[84].mxu1 }
 0x398   : > { %v4444_v58 = vadd.f32 %v4412_v18, %v4380_v57  ;;  %v4975_v51 = vpop.f32.mrb[85].mxu1 }
 0x399   : > { %v4381_v5 = vsel %vm4317_vm13, %v4285_v8, %v4349_v53  ;;  %v4976_v43 = vadd.f32 %v4975_v51, %v4974_v50  ;;  %v4977_v31 = vpop.f32.mrb[86].mxu1  ;;  %v4418_v8 = vld [vmem:[%s8692_s28 + $0xf0] sm:$0xff]  ;;  %v4416_v53 = vld [vmem:[%s8692_s28 + $0xe0] sm:$0xff] }
 0x39a   : > { %v4508_v38 = vadd.f32 %v4476_v12, %v4444_v58  ;;  %v4445_v55 = vadd.f32 %v4413_v35, %v4381_v5  ;;  %v4978_v60 = vpop.f32.mrb[87].mxu1  ;;  %v4482_v58 = vld [vmem:[%s8701_s20 + $0xf0] sm:$0xff] }
 0x39b   : > { %v4192_v11 = vadd.f32 %v8731_v28, %v4976_v43  ;;  %v4979_v24 = vadd.f32 %v4978_v60, %v4977_v31  ;;  %v4480_v43 = vld [vmem:[%s8701_s20 + $0xe0] sm:$0xff] }
 0x39c   : > { %4540 = vst.msk [vmem:[%s8710_s12 + $0xc0] sm:$0xff] %vm1552_vm3, %v4508_v38  ;;  %v4509_v20 = vadd.f32 %v4477_v54, %v4445_v55  ;;  %v4417_v38 = vld [vmem:[%s8692_s28 + $0xe8] sm:$0xff] }
 0x39d   : > { %v4247_v23 = vmul.f32 %v8676_v13, %v4192_v11  ;;  %v4195_v16 = vadd.f32 %v8737_v17, %v4979_v24  ;;  %v4483_v11 = vld [vmem:[%s8701_s20 + $0xf8] sm:$0xff] }
 0x39e   : > { %4541 = vst.msk [vmem:[%s8710_s12 + $0xc8] sm:$0xff] %vm1552_vm3, %v4509_v20 }
 0x39f   : > { %v4286_v22 = vadd.f32 %v8684_v27, %v4247_v23  ;;  %v4248_v41 = vmul.f32 %v8676_v13, %v4195_v16  ;;  %v4481_v23 = vld [vmem:[%s8701_s20 + $0xe8] sm:$0xff]  ;;  %s6097_s20 = scalar_lea.vmem %s6096_s18, 8192 }
 0x3a1   : > { %vm4318_vm14 = vcmp.gt.f32.partialorder %v4286_v22, 0.0  ;;  %v4350_v25 = vmul.f32 0.2, %v4286_v22  ;;  %v4287_v28 = vadd.f32 %v8684_v27, %v4248_v41 }
 0x3a3   : > { %v4382_v52 = vsel %vm4318_vm14, %v4286_v22, %v4350_v25  ;;  %vm4319_vm15 = vcmp.gt.f32.partialorder %v4287_v28, 0.0  ;;  %v4351_v21 = vmul.f32 0.2, %v4287_v28  ;;  %v4980_v17 = vpop.f32.mrb[88].mxu1 }
 0x3a4   : > { %v4446_v56 = vadd.f32 %v4414_v47, %v4382_v52  ;;  %v4981_v7 = vpop.f32.mrb[89].mxu1 }
 0x3a5   : > { %v4383_v30 = vsel %vm4319_vm15, %v4287_v28, %v4351_v21  ;;  %v4982_v40 = vadd.f32 %v4981_v7, %v4980_v17  ;;  %v4983_v0 = vpop.f32.mrb[90].mxu1 }
 0x3a6   : > { %v4510_v9 = vadd.f32 %v4478_v10, %v4446_v56  ;;  %v4447_v33 = vadd.f32 %v4415_v14, %v4383_v30  ;;  %v4984_v1 = vpop.f32.mrb[91].mxu1 }
 0x3a7   : > { %v4985_v19 = vadd.f32 %v4984_v1, %v4983_v0 }
 0x3a8   : > { %4542 = vst.msk [vmem:[%s8710_s12 + $0xd0] sm:$0xff] %vm1552_vm3, %v4510_v9  ;;  %v4511_v46 = vadd.f32 %v4479_v45, %v4447_v33 }
 0x3aa   : > { %4543 = vst.msk [vmem:[%s8710_s12 + $0xd8] sm:$0xff] %vm1552_vm3, %v4511_v46 }
 0x3ab   : > { %v4986_v42 = vpop.f32.mrb[92].mxu1 }
 0x3ac   : > { %v4987_v15 = vpop.f32.mrb[93].mxu1 }
 0x3ad   : > { %v4988_v36 = vadd.f32 %v4987_v15, %v4986_v42  ;;  %v4989_v32 = vpop.f32.mrb[94].mxu1 }
 0x3ae   : > { %v4990_v4 = vpop.f32.mrb[95].mxu1 }
 0x3af   : > { %v4991_v34 = vadd.f32 %v4990_v4, %v4989_v32 }
 0x3b3   : > { %v5080_v2 = vpop.f32.mrb[96].mxu1 }
 0x3b4   : > { %v4208_v61 = vadd.f32 %v5080_v2, %v4988_v36  ;;  %v4199_v6 = vpop.f32.mrb[97].mxu1 }
 0x3b5   : > { %v4200_v62 = vadd.f32 %v4982_v40, %v4199_v6  ;;  %v5081_v39 = vpop.f32.mrb[98].mxu1 }
 0x3b6   : > { %v4251_v44 = vmul.f32 %v8676_v13, %v4208_v61  ;;  %v4211_v29 = vadd.f32 %v5081_v39, %v4991_v34  ;;  %v4202_v37 = vpop.f32.mrb[99].mxu1 }
 0x3b7   : > { %v4249_v48 = vmul.f32 %v8676_v13, %v4200_v62  ;;  %v4203_v26 = vadd.f32 %v4985_v19, %v4202_v37 }
 0x3b8   : > { %v4290_v49 = vadd.f32 %v8684_v27, %v4251_v44  ;;  %v4252_v59 = vmul.f32 %v8676_v13, %v4211_v29 }
 0x3b9   : > { %v4288_v3 = vadd.f32 %v8684_v27, %v4249_v48  ;;  %v4250_v63 = vmul.f32 %v8676_v13, %v4203_v26  ;;  %v4419_v13 = vld [vmem:[%s8692_s28 + $0xf8] sm:$0xff]  ;;  %s6091_s28 = scalar_lea.vmem %s8931_s29, 4096 }
 0x3ba   : > { %vm4322_vm6 = vcmp.gt.f32.partialorder %v4290_v49, 0.0  ;;  %v4354_v18 = vmul.f32 0.2, %v4290_v49  ;;  %v4291_v57 = vadd.f32 %v8684_v27, %v4252_v59  ;;  %p6092_p11 = scmp.ne.s32.totalorder %s8931_s29, %s6091_s28  ;;  %p6099_p1 = scmp.lt.s32.totalorder %s6097_s20, %s6091_s28 }
 0x3bb   : > { %vm4320_vm7 = vcmp.gt.f32.partialorder %v4288_v3, 0.0  ;;  %v4352_v12 = vmul.f32 0.2, %v4288_v3  ;;  %v4289_v35 = vadd.f32 %v8684_v27, %v4250_v63 }
 0x3bc   : > { %v4386_v50 = vsel %vm4322_vm6, %v4290_v49, %v4354_v18  ;;  %vm4323_vm0 = vcmp.gt.f32.partialorder %v4291_v57, 0.0  ;;  %v4355_v51 = vmul.f32 0.2, %v4291_v57  ;;  %p6093_p12 = pnand %p6092_p11, %p6254_p5  ;;  %p6100_p2 = por %p6099_p1, %p6098_p0 }
 0x3bd   : > { %v4450_v5 = vadd.f32 %v4418_v8, %v4386_v50  ;;  %v4384_v54 = vsel %vm4320_vm7, %v4288_v3, %v4352_v12  ;;  %vm4321_vm1 = vcmp.gt.f32.partialorder %v4289_v35, 0.0  ;;  %v4353_v31 = vmul.f32 0.2, %v4289_v35 }
 0x3be   : > { %v4448_v55 = vadd.f32 %v4416_v53, %v4384_v54  ;;  %v4387_v60 = vsel %vm4323_vm0, %v4291_v57, %v4355_v51  ;;  %p6094_p13 = pneg %p6093_p12 }
 0x3bf   : > { %v4514_v27 = vadd.f32 %v4482_v58, %v4450_v5  ;;  %v4451_v24 = vadd.f32 %v4419_v13, %v4387_v60  ;;  %v4385_v20 = vsel %vm4321_vm1, %v4289_v35, %v4353_v31 }
 0x3c0   : > { %v4512_v16 = vadd.f32 %v4480_v43, %v4448_v55  ;;  %v4449_v22 = vadd.f32 %v4417_v38, %v4385_v20  ;;  %p6101_p3 = pnand %p6100_p2, %p6094_p13 }
 0x3c1   : > { %4546 = vst.msk [vmem:[%s8710_s12 + $0xf0] sm:$0xff] %vm1552_vm3, %v4514_v27  ;;  %v4515_v41 = vadd.f32 %v4483_v11, %v4451_v24 }
 0x3c2   : > { %4544 = vst.msk [vmem:[%s8710_s12 + $0xe0] sm:$0xff] %vm1552_vm3, %v4512_v16  ;;  %v4513_v25 = vadd.f32 %v4481_v23, %v4449_v22 }
 0x3c3   : > { %4547 = vst.msk [vmem:[%s8710_s12 + $0xf8] sm:$0xff] %vm1552_vm3, %v4515_v41 }
 0x3c4   : > { %4545 = vst.msk [vmem:[%s8710_s12 + $0xe8] sm:$0xff] %vm1552_vm3, %v4513_v25 }
 0x3c5   : > { %6104 = shalt.err (!%p6101_p3)
}
 0x3c6   : > { %s6105_s30 = scalar_lea.hbm %s8929_s26, 4096  ;;  %s6109_s25 = scalar_lea.hbm %s8992_s10, 8192 }
 0x3c7   : > { %p6106_p4 = scmp.ne.s32.totalorder %s8929_s26, %s6105_s30  ;;  %p6110_p9 = scmp.lt.u32.totalorder %s8929_s26, %s8992_s10 }
 0x3c8   : > { %p6111_p10 = scmp.lt.u32.totalorder %s6109_s25, %s6105_s30  ;;  %p6113_p12 = scmp.lt.u32.totalorder %s6105_s30, %s8929_s26 }
 0x3c9   : > { %p6107_p7 = pnand %p6106_p4, %p6254_p5 }
 0x3ca   : > { %p6112_p11 = por %p6111_p10, %p6110_p9 }
 0x3cb   : > { %p6108_p8 = pneg %p6107_p7 }
 0x3cc   : > { %p6114_p13 = por %p6113_p12, %p6112_p11 }
 0x3ce   : > { %p6115_p0 = pnand %p6114_p13, %p6108_p8 }
 0x3d0   : > { %6118 = shalt.err (!%p6115_p0)
}
 0x3d1   : > { %s6159_s28 = smov 128   ;;  %s6160_s11 = smov 8  }
 0x3d2   : > { %5086 = dma.vmem_to_hbm [thread:$0]  (%p6254_p5), %s8931_s29, 4096, %s8929_s26, %s8941_s17, %s6159_s28, %s6159_s28, %s6160_s11  }
 0x3d3 PF: > { %p5092_p1 = scmp.ge.s32.totalorder %s6153_s16, 2  ;;  %s4577_s18 = sand.u32 1, %s6141_s13  }
 0x3d4   : > { %s4578_s20 = scalar_lea.sflag [#allocation3], %s4577_s18 }
 0x3d5   : > { %p5089_p2 = pnand %p5092_p1, %p6258_p6 }
 0x3d7   : > { %6136 = dma.done.wait (!%p5089_p2), %s4578_s20, 4096  }
 0x3d8   : > { %6138 = vsyncadd (!%p5089_p2), %s4578_s20, 4294963200  ;;  %s9179_s30 = sld [smem:[#allocation5_spill]]  ;;  %p20_p3 = scmp.ge.s32.totalorder %s6241_s19, 4  }
 0x3d9   : > { %s9180_s13 = smov %s6145_s14  ;;  %s9181_s14 = smov %s6149_s15 }
 0x3da   : > { %s9183_s16 = smov %s6241_s19  ;;  %22 = sbr.rel (!%p20_p3) target bundleno = 3 (0x3), region = 104 }
 0x3de   : > { %s9182_s15 = smov %s9179_s30 }
 0x3e1   :  { %4583 = vsyncpa [#allocation3], 1 }
 0x3e2   :  { %4585 = vsyncpa [#allocation3 + $0x1], 1 }

</bundles_post_ra>
